<compile_context>
chip_gen: v5e
topology: v5e:2x2
jax: 0.10.0
libtpu: 0.0.40
codegen_flags: <defaults>
</compile_context>

<pallas_src>
import functools

import jax
import jax.numpy as jnp
from jax import lax
from jax.experimental import pallas as pl
from jax.experimental.pallas import tpu as pltpu


# Channel layout of the fused 1x1 weight/bias (all consume the 480-ch input):
#   [  0:192) -> branch1 1x1
#   [192:288) -> 3x3 reduce
#   [288:304) -> 5x5 reduce
#   [304:368) -> pool projection (applied BEFORE the avg pool; linearity)
_C1, _C3R, _C5R, _CP = 192, 96, 16, 64
_CCAT = _C1 + _C3R + _C5R + _CP          # 368
_C3, _C5 = 208, 48
_COUT = _C1 + _C3 + _C5 + _CP            # 512 (torch.cat order: 192|208|48|64)


# ---------------------------------------------------------------------------
# Fused kernel: one grid step == one image.
# ---------------------------------------------------------------------------

def _inception_kernel(x_ref, wcat_ref, w3_ref, w5_ref, bcat_ref, b3_ref, b5_ref,
                      o_ref, r3pad, r5pad, p4pad, acc3, acc5, *, H, W):
    M = H * W
    f32 = jnp.float32

    # ---- fused 1x1 stage: one (M,480)x(480,368) bf16 matmul, f32 accumulate --
    y = jnp.dot(x_ref[0], wcat_ref[...], preferred_element_type=f32)   # (M,368)

    # branch 1 (1x1 -> 192): bias + ReLU in f32, straight into the output slab.
    o_ref[0, :, 0:_C1] = jnp.maximum(
        y[:, 0:_C1] + bcat_ref[:, 0:_C1], 0.0).astype(o_ref.dtype)

    # Reduced features stay in VMEM (never round-trip HBM).
    r3 = jnp.maximum(y[:, _C1:_C1 + _C3R]
                     + bcat_ref[:, _C1:_C1 + _C3R], 0.0)               # (M,96)
    r5 = jnp.maximum(y[:, _C1 + _C3R:_C1 + _C3R + _C5R]
                     + bcat_ref[:, _C1 + _C3R:_C1 + _C3R + _C5R], 0.0)  # (M,16)
    p4 = y[:, _C1 + _C3R + _C5R:]        # pool-proj pre-activation (bias later)

    # Zero-padded spatial scratch (pad ring re-zeroed every step so the grid
    # axis is safely "parallel"); interiors overwritten with this image's data.
    r3pad[...] = jnp.zeros_like(r3pad)
    r5pad[...] = jnp.zeros_like(r5pad)
    p4pad[...] = jnp.zeros_like(p4pad)
    r3pad[1:H + 1, 1:W + 1, :] = r3.reshape(H, W, _C3R)
    r5pad[2:H + 2, 2:W + 2, :] = r5.reshape(H, W, _C5R)
    p4pad[1:H + 1, 1:W + 1, :] = p4.reshape(H, W, _CP)

    # ---- branch 2: 3x3 conv (96 -> 208) as 9 shifted bf16 matmuls -----------
    acc3[...] = jnp.zeros_like(acc3)
    for kh in range(3):
        for kw in range(3):
            win = r3pad[kh:kh + H, kw:kw + W, :].reshape(M, _C3R)
            acc3[...] += jnp.dot(win.astype(jnp.bfloat16), w3_ref[kh * 3 + kw],
                                 preferred_element_type=f32)
    o_ref[0, :, _C1:_C1 + _C3] = jnp.maximum(
        acc3[...] + b3_ref[...], 0.0).astype(o_ref.dtype)

    # ---- branch 3: 5x5 conv (16 -> 48), reduce output never leaves VMEM -----
    acc5[...] = jnp.zeros_like(acc5)
    for kh in range(5):
        for kw in range(5):
            win = r5pad[kh:kh + H, kw:kw + W, :].reshape(M, _C5R)
            acc5[...] += jnp.dot(win.astype(jnp.bfloat16), w5_ref[kh * 5 + kw],
                                 preferred_element_type=f32)
    o_ref[0, :, _C1 + _C3:_C1 + _C3 + _C5] = jnp.maximum(
        acc5[...] + b5_ref[...], 0.0).astype(o_ref.dtype)

    # ---- branch 4: 3x3 avg pool (stride 1, pad 1, count_include_pad=True) ---
    # Pool applied AFTER the 1x1 projection (linear ops commute), so only 64
    # channels are pooled.  Divisor is always 9 (torch AvgPool2d default).
    # Pure VPU work; runs off the MXU critical path.
    psum = jnp.zeros((H, W, _CP), f32)
    for kh in range(3):
        for kw in range(3):
            psum = psum + p4pad[kh:kh + H, kw:kw + W, :]
    out4 = jnp.maximum(psum * (1.0 / 9.0)
                       + bcat_ref[:, _C1 + _C3R + _C5R:], 0.0)
    o_ref[0, :, _C1 + _C3 + _C5:] = out4.reshape(M, _CP).astype(o_ref.dtype)


# ---------------------------------------------------------------------------
# Wrapper
# ---------------------------------------------------------------------------

def inception4a_forward(x_nchw, p):
    """x: (N, 480, H, W) f32 NCHW -> (N, 512, H, W) f32 NCHW."""
    N, C, H, W = x_nchw.shape
    assert C == 480
    # In-kernel (M,C)<->(H,W,C) reshapes assume the sublane dim stays aligned.
    assert W % 8 == 0, "row-tiling with halos needed for W % 8 != 0"
    M = H * W

    # NCHW -> NHWC, flatten spatial, cast activations to bf16 (MXU operands).
    x_flat = jnp.transpose(x_nchw, (0, 2, 3, 1)).reshape(N, M, 480)
    x_flat = x_flat.astype(jnp.bfloat16)

    # Fuse the four x-consuming 1x1 convs into one (480, 368) weight.
    wcat = jnp.concatenate(
        [p["w_1x1"], p["w_3x3_red"], p["w_5x5_red"], p["w_pool"]],
        axis=1).astype(jnp.bfloat16)
    bcat = jnp.concatenate(
        [p["b_1x1"], p["b_3x3_red"], p["b_5x5_red"], p["b_pool"]],
        axis=0).reshape(1, _CCAT).astype(jnp.float32)
    w3 = p["w_3x3"].reshape(9, _C3R, _C3).astype(jnp.bfloat16)
    w5 = p["w_5x5"].reshape(25, _C5R, _C5).astype(jnp.bfloat16)
    b3 = p["b_3x3"].reshape(1, _C3).astype(jnp.float32)
    b5 = p["b_5x5"].reshape(1, _C5).astype(jnp.float32)

    kern = functools.partial(_inception_kernel, H=H, W=W)

    out = pl.pallas_call(
        kern,
        out_shape=jax.ShapeDtypeStruct((N, M, _COUT), jnp.float32),
        grid=(N,),
        in_specs=[
            pl.BlockSpec((1, M, 480), lambda n: (n, 0, 0)),       # x (per image)
            pl.BlockSpec((480, _CCAT), lambda n: (0, 0)),         # fused 1x1 W
            pl.BlockSpec((9, _C3R, _C3), lambda n: (0, 0, 0)),    # 3x3 taps
            pl.BlockSpec((25, _C5R, _C5), lambda n: (0, 0, 0)),   # 5x5 taps
            pl.BlockSpec((1, _CCAT), lambda n: (0, 0)),           # fused biases
            pl.BlockSpec((1, _C3), lambda n: (0, 0)),
            pl.BlockSpec((1, _C5), lambda n: (0, 0)),
        ],
        out_specs=pl.BlockSpec((1, M, _COUT), lambda n: (n, 0, 0)),
        scratch_shapes=[
            pltpu.VMEM((H + 2, W + 2, _C3R), jnp.float32),  # padded 3x3-reduce
            pltpu.VMEM((H + 4, W + 4, _C5R), jnp.float32),  # padded 5x5-reduce
            pltpu.VMEM((H + 2, W + 2, _CP), jnp.float32),   # padded pool-proj
            pltpu.VMEM((M, _C3), jnp.float32),              # 3x3 accumulator
            pltpu.VMEM((M, _C5), jnp.float32),              # 5x5 accumulator
        ],
        compiler_params=pltpu.CompilerParams(
            dimension_semantics=("parallel",),
            vmem_limit_bytes=32 * 1024 * 1024,
        ),
    )(x_flat, wcat, w3, w5, bcat, b3, b5)

    return jnp.transpose(out.reshape(N, H, W, _COUT), (0, 3, 1, 2))


# ---------------------------------------------------------------------------
# Parameters + pure-JAX reference
# ---------------------------------------------------------------------------

def init_params(key):
    """Deterministic synthetic parameters matching Inception4a shapes."""
    ks = jax.random.split(key, 12)

    def w(k, shape, fan_in):
        return jax.random.normal(k, shape, jnp.float32) / jnp.sqrt(fan_in)

    return {
        "w_1x1": w(ks[0], (480, 192), 480),
        "b_1x1": 0.01 * jax.random.normal(ks[1], (192,), jnp.float32),
        "w_3x3_red": w(ks[2], (480, 96), 480),
        "b_3x3_red": 0.01 * jax.random.normal(ks[3], (96,), jnp.float32),
        "w_3x3": w(ks[4], (3, 3, 96, 208), 96 * 9),
        "b_3x3": 0.01 * jax.random.normal(ks[5], (208,), jnp.float32),
        "w_5x5_red": w(ks[6], (480, 16), 480),
        "b_5x5_red": 0.01 * jax.random.normal(ks[7], (16,), jnp.float32),
        "w_5x5": w(ks[8], (5, 5, 16, 48), 16 * 25),
        "b_5x5": 0.01 * jax.random.normal(ks[9], (48,), jnp.float32),
        "w_pool": w(ks[10], (480, 64), 480),
        "b_pool": 0.01 * jax.random.normal(ks[11], (64,), jnp.float32),
    }


def _ref_conv(x, w_hwio, b, pad):
    y = lax.conv_general_dilated(x, w_hwio, (1, 1), ((pad, pad), (pad, pad)),
                                 dimension_numbers=("NHWC", "HWIO", "NHWC"))
    return jnp.maximum(y + b, 0.0)


def inception4a_reference(x_nchw, p):
    """f32 reference with the same bf16 operand rounding as the kernel."""
    q = lambda a: a.astype(jnp.bfloat16).astype(jnp.float32)
    x = q(jnp.transpose(x_nchw, (0, 2, 3, 1)))
    b1 = _ref_conv(x, q(p["w_1x1"]).reshape(1, 1, 480, 192), p["b_1x1"], 0)
    b2 = _ref_conv(x, q(p["w_3x3_red"]).reshape(1, 1, 480, 96), p["b_3x3_red"], 0)
    b2 = _ref_conv(q(b2), q(p["w_3x3"]), p["b_3x3"], 1)
    b3 = _ref_conv(x, q(p["w_5x5_red"]).reshape(1, 1, 480, 16), p["b_5x5_red"], 0)
    b3 = _ref_conv(q(b3), q(p["w_5x5"]), p["b_5x5"], 2)
    pooled = lax.reduce_window(x, 0.0, lax.add, (1, 3, 3, 1), (1, 1, 1, 1),
                               ((0, 0), (1, 1), (1, 1), (0, 0))) / 9.0
    b4 = _ref_conv(pooled, q(p["w_pool"]).reshape(1, 1, 480, 64), p["b_pool"], 0)
    out = jnp.concatenate([b1, b2, b3, b4], axis=-1)
    return jnp.transpose(out, (0, 3, 1, 2))


# ---------------------------------------------------------------------------

if __name__ == "__main__":
    key = jax.random.PRNGKey(0)
    kx, kp = jax.random.split(key)

    # Channels are fixed by the module (480 in, 512 out); small batch/spatial.
    N, C, H, W = 2, 480, 8, 8
    x = jax.random.normal(kx, (N, C, H, W), jnp.float32)
    params = init_params(kp)

    out = jax.block_until_ready(jax.jit(inception4a_forward)(x, params))
    assert out.shape == (N, 192 + 208 + 48 + 64, H, W), out.shape

    ref = jax.block_until_ready(jax.jit(inception4a_reference)(x, params))
    max_err = float(jnp.max(jnp.abs(out - ref)))
    # bf16 MXU operands (intentional) -> looser tolerance.
    assert jnp.allclose(out, ref, rtol=2e-2, atol=2e-2), max_err

    print("KERNEL_OK")
</pallas_src>

<mosaic_0001>
module attributes {stable_mosaic.version = 11 : i64} {
  func.func @_inception_kernel(%arg0: i32, %arg1: memref<1x64x480xbf16, #tpu.memory_space<vmem>>, %arg2: memref<480x368xbf16, #tpu.memory_space<vmem>>, %arg3: memref<9x96x208xbf16, #tpu.memory_space<vmem>>, %arg4: memref<25x16x48xbf16, #tpu.memory_space<vmem>>, %arg5: memref<1x368xf32, #tpu.memory_space<vmem>>, %arg6: memref<1x208xf32, #tpu.memory_space<vmem>>, %arg7: memref<1x48xf32, #tpu.memory_space<vmem>>, %arg8: memref<1x64x512xf32, #tpu.memory_space<vmem>>, %arg9: memref<10x10x96xf32, #tpu.memory_space<vmem>>, %arg10: memref<12x12x16xf32, #tpu.memory_space<vmem>>, %arg11: memref<10x10x64xf32, #tpu.memory_space<vmem>>, %arg12: memref<64x208xf32, #tpu.memory_space<vmem>>, %arg13: memref<64x48xf32, #tpu.memory_space<vmem>>) attributes {dimension_semantics = [#tpu.dimension_semantics<parallel>], iteration_bounds = array<i64: 2>, scalar_prefetch = 0 : i64, scratch_operands = 5 : i64, tpu.core_type = #tpu.core_type<tc>, window_params = [{transform_indices = @transform_0, window_bounds = array<i64: 1, 64, 480>}, {pipeline_mode = #tpu.pipeline_mode<synchronous>, transform_indices = @transform_1, window_bounds = array<i64: 480, 368>}, {pipeline_mode = #tpu.pipeline_mode<synchronous>, transform_indices = @transform_2, window_bounds = array<i64: 9, 96, 208>}, {pipeline_mode = #tpu.pipeline_mode<synchronous>, transform_indices = @transform_3, window_bounds = array<i64: 25, 16, 48>}, {pipeline_mode = #tpu.pipeline_mode<synchronous>, transform_indices = @transform_4, window_bounds = array<i64: 1, 368>}, {pipeline_mode = #tpu.pipeline_mode<synchronous>, transform_indices = @transform_5, window_bounds = array<i64: 1, 208>}, {pipeline_mode = #tpu.pipeline_mode<synchronous>, transform_indices = @transform_6, window_bounds = array<i64: 1, 48>}, {transform_indices = @transform_7, window_bounds = array<i64: 1, 64, 512>}]} {
    %c0 = arith.constant 0 : index
    %c0_0 = arith.constant 0 : index
    %c0_1 = arith.constant 0 : index
    %0 = vector.load %arg1[%c0, %c0_0, %c0_1] : memref<1x64x480xbf16, #tpu.memory_space<vmem>>, vector<1x64x480xbf16>
    %1 = vector.shape_cast %0 : vector<1x64x480xbf16> to vector<64x480xbf16>
    %c0_2 = arith.constant 0 : index
    %c0_3 = arith.constant 0 : index
    %2 = vector.load %arg2[%c0_2, %c0_3] : memref<480x368xbf16, #tpu.memory_space<vmem>>, vector<480x368xbf16>
    %cst = arith.constant dense<0.000000e+00> : vector<64x368xf32>
    %3 = tpu.matmul %1, %2, %cst {dimension_numbers = #tpu.dot_dimension_numbers<[1], [0], [0], [1], [0, 0, 1, 1], [], []>} : vector<64x480xbf16>, vector<480x368xbf16>, vector<64x368xf32> -> vector<64x368xf32>
    %4 = vector.extract_strided_slice %3 {offsets = [0, 0], sizes = [64, 192], strides = [1, 1]} : vector<64x368xf32> to vector<64x192xf32>
    %c0_4 = arith.constant 0 : index
    %c0_5 = arith.constant 0 : index
    %5 = vector.load %arg5[%c0_4, %c0_5] : memref<1x368xf32, #tpu.memory_space<vmem>>, vector<1x192xf32>
    %6 = vector.broadcast %5 : vector<1x192xf32> to vector<64x192xf32>
    %7 = arith.addf %4, %6 : vector<64x192xf32>
    %cst_6 = arith.constant 0.000000e+00 : f32
    %8 = vector.broadcast %cst_6 : f32 to vector<64x192xf32>
    %9 = arith.maximumf %7, %8 : vector<64x192xf32>
    %c0_7 = arith.constant 0 : index
    %c0_8 = arith.constant 0 : index
    %c0_9 = arith.constant 0 : index
    %10 = vector.load %arg8[%c0_7, %c0_8, %c0_9] : memref<1x64x512xf32, #tpu.memory_space<vmem>>, vector<1x64x192xf32>
    %11 = vector.shape_cast %10 : vector<1x64x192xf32> to vector<64x192xf32>
    %12 = vector.shape_cast %9 : vector<64x192xf32> to vector<1x64x192xf32>
    tpu.vector_store %arg8[%c0_7, %c0_8, %c0_9], %12 {strides = array<i32>} : memref<1x64x512xf32, #tpu.memory_space<vmem>>, vector<1x64x192xf32>,
    %13 = vector.extract_strided_slice %3 {offsets = [0, 192], sizes = [64, 96], strides = [1, 1]} : vector<64x368xf32> to vector<64x96xf32>
    %c0_10 = arith.constant 0 : index
    %c192 = arith.constant 192 : index
    %14 = vector.load %arg5[%c0_10, %c192] : memref<1x368xf32, #tpu.memory_space<vmem>>, vector<1x96xf32>
    %15 = vector.broadcast %14 : vector<1x96xf32> to vector<64x96xf32>
    %16 = arith.addf %13, %15 : vector<64x96xf32>
    %cst_11 = arith.constant 0.000000e+00 : f32
    %17 = vector.broadcast %cst_11 : f32 to vector<64x96xf32>
    %18 = arith.maximumf %16, %17 : vector<64x96xf32>
    %19 = vector.extract_strided_slice %3 {offsets = [0, 288], sizes = [64, 16], strides = [1, 1]} : vector<64x368xf32> to vector<64x16xf32>
    %c0_12 = arith.constant 0 : index
    %c288 = arith.constant 288 : index
    %20 = vector.load %arg5[%c0_12, %c288] : memref<1x368xf32, #tpu.memory_space<vmem>>, vector<1x16xf32>
    %21 = vector.broadcast %20 : vector<1x16xf32> to vector<64x16xf32>
    %22 = arith.addf %19, %21 : vector<64x16xf32>
    %cst_13 = arith.constant 0.000000e+00 : f32
    %23 = vector.broadcast %cst_13 : f32 to vector<64x16xf32>
    %24 = arith.maximumf %22, %23 : vector<64x16xf32>
    %25 = vector.extract_strided_slice %3 {offsets = [0, 304], sizes = [64, 64], strides = [1, 1]} : vector<64x368xf32> to vector<64x64xf32>
    %cst_14 = arith.constant 0.000000e+00 : f32
    %26 = vector.broadcast %cst_14 : f32 to vector<10x10x96xf32>
    %c0_15 = arith.constant 0 : index
    %c0_16 = arith.constant 0 : index
    %c0_17 = arith.constant 0 : index
    %27 = vector.load %arg9[%c0_15, %c0_16, %c0_17] : memref<10x10x96xf32, #tpu.memory_space<vmem>>, vector<10x10x96xf32>
    tpu.vector_store %arg9[%c0_15, %c0_16, %c0_17], %26 {strides = array<i32>} : memref<10x10x96xf32, #tpu.memory_space<vmem>>, vector<10x10x96xf32>,
    %cst_18 = arith.constant 0.000000e+00 : f32
    %28 = vector.broadcast %cst_18 : f32 to vector<12x12x16xf32>
    %c0_19 = arith.constant 0 : index
    %c0_20 = arith.constant 0 : index
    %c0_21 = arith.constant 0 : index
    %29 = vector.load %arg10[%c0_19, %c0_20, %c0_21] : memref<12x12x16xf32, #tpu.memory_space<vmem>>, vector<12x12x16xf32>
    tpu.vector_store %arg10[%c0_19, %c0_20, %c0_21], %28 {strides = array<i32>} : memref<12x12x16xf32, #tpu.memory_space<vmem>>, vector<12x12x16xf32>,
    %cst_22 = arith.constant 0.000000e+00 : f32
    %30 = vector.broadcast %cst_22 : f32 to vector<10x10x64xf32>
    %c0_23 = arith.constant 0 : index
    %c0_24 = arith.constant 0 : index
    %c0_25 = arith.constant 0 : index
    %31 = vector.load %arg11[%c0_23, %c0_24, %c0_25] : memref<10x10x64xf32, #tpu.memory_space<vmem>>, vector<10x10x64xf32>
    tpu.vector_store %arg11[%c0_23, %c0_24, %c0_25], %30 {strides = array<i32>} : memref<10x10x64xf32, #tpu.memory_space<vmem>>, vector<10x10x64xf32>,
    %32 = vector.shape_cast %18 : vector<64x96xf32> to vector<8x8x96xf32>
    %c1 = arith.constant 1 : index
    %c1_26 = arith.constant 1 : index
    %c0_27 = arith.constant 0 : index
    %33 = vector.load %arg9[%c1, %c1_26, %c0_27] : memref<10x10x96xf32, #tpu.memory_space<vmem>>, vector<8x8x96xf32>
    tpu.vector_store %arg9[%c1, %c1_26, %c0_27], %32 {strides = array<i32>} : memref<10x10x96xf32, #tpu.memory_space<vmem>>, vector<8x8x96xf32>,
    %34 = vector.shape_cast %24 : vector<64x16xf32> to vector<8x8x16xf32>
    %c2 = arith.constant 2 : index
    %c2_28 = arith.constant 2 : index
    %c0_29 = arith.constant 0 : index
    %35 = vector.load %arg10[%c2, %c2_28, %c0_29] : memref<12x12x16xf32, #tpu.memory_space<vmem>>, vector<8x8x16xf32>
    tpu.vector_store %arg10[%c2, %c2_28, %c0_29], %34 {strides = array<i32>} : memref<12x12x16xf32, #tpu.memory_space<vmem>>, vector<8x8x16xf32>,
    %36 = vector.shape_cast %25 : vector<64x64xf32> to vector<8x8x64xf32>
    %c1_30 = arith.constant 1 : index
    %c1_31 = arith.constant 1 : index
    %c0_32 = arith.constant 0 : index
    %37 = vector.load %arg11[%c1_30, %c1_31, %c0_32] : memref<10x10x64xf32, #tpu.memory_space<vmem>>, vector<8x8x64xf32>
    tpu.vector_store %arg11[%c1_30, %c1_31, %c0_32], %36 {strides = array<i32>} : memref<10x10x64xf32, #tpu.memory_space<vmem>>, vector<8x8x64xf32>,
    %cst_33 = arith.constant 0.000000e+00 : f32
    %38 = vector.broadcast %cst_33 : f32 to vector<64x208xf32>
    %c0_34 = arith.constant 0 : index
    %c0_35 = arith.constant 0 : index
    %39 = vector.load %arg12[%c0_34, %c0_35] : memref<64x208xf32, #tpu.memory_space<vmem>>, vector<64x208xf32>
    tpu.vector_store %arg12[%c0_34, %c0_35], %38 {strides = array<i32>} : memref<64x208xf32, #tpu.memory_space<vmem>>, vector<64x208xf32>,
    %c0_36 = arith.constant 0 : index
    %c0_37 = arith.constant 0 : index
    %c0_38 = arith.constant 0 : index
    %40 = vector.load %arg9[%c0_36, %c0_37, %c0_38] : memref<10x10x96xf32, #tpu.memory_space<vmem>>, vector<8x8x96xf32>
    %41 = vector.shape_cast %40 : vector<8x8x96xf32> to vector<64x96xf32>
    %c0_39 = arith.constant 0 : index
    %c0_40 = arith.constant 0 : index
    %42 = vector.load %arg12[%c0_39, %c0_40] : memref<64x208xf32, #tpu.memory_space<vmem>>, vector<64x208xf32>
    %43 = arith.truncf %41 : vector<64x96xf32> to vector<64x96xbf16>
    %c0_41 = arith.constant 0 : index
    %c0_42 = arith.constant 0 : index
    %c0_43 = arith.constant 0 : index
    %44 = vector.load %arg3[%c0_41, %c0_42, %c0_43] : memref<9x96x208xbf16, #tpu.memory_space<vmem>>, vector<1x96x208xbf16>
    %45 = vector.shape_cast %44 : vector<1x96x208xbf16> to vector<96x208xbf16>
    %cst_44 = arith.constant dense<0.000000e+00> : vector<64x208xf32>
    %46 = tpu.matmul %43, %45, %cst_44 {dimension_numbers = #tpu.dot_dimension_numbers<[1], [0], [0], [1], [0, 0, 1, 1], [], []>} : vector<64x96xbf16>, vector<96x208xbf16>, vector<64x208xf32> -> vector<64x208xf32>
    %47 = arith.addf %42, %46 : vector<64x208xf32>
    %c0_45 = arith.constant 0 : index
    %c0_46 = arith.constant 0 : index
    %48 = vector.load %arg12[%c0_45, %c0_46] : memref<64x208xf32, #tpu.memory_space<vmem>>, vector<64x208xf32>
    tpu.vector_store %arg12[%c0_45, %c0_46], %47 {strides = array<i32>} : memref<64x208xf32, #tpu.memory_space<vmem>>, vector<64x208xf32>,
    %c0_47 = arith.constant 0 : index
    %c1_48 = arith.constant 1 : index
    %c0_49 = arith.constant 0 : index
    %49 = vector.load %arg9[%c0_47, %c1_48, %c0_49] : memref<10x10x96xf32, #tpu.memory_space<vmem>>, vector<8x8x96xf32>
    %50 = vector.shape_cast %49 : vector<8x8x96xf32> to vector<64x96xf32>
    %c0_50 = arith.constant 0 : index
    %c0_51 = arith.constant 0 : index
    %51 = vector.load %arg12[%c0_50, %c0_51] : memref<64x208xf32, #tpu.memory_space<vmem>>, vector<64x208xf32>
    %52 = arith.truncf %50 : vector<64x96xf32> to vector<64x96xbf16>
    %c1_52 = arith.constant 1 : index
    %c0_53 = arith.constant 0 : index
    %c0_54 = arith.constant 0 : index
    %53 = vector.load %arg3[%c1_52, %c0_53, %c0_54] : memref<9x96x208xbf16, #tpu.memory_space<vmem>>, vector<1x96x208xbf16>
    %54 = vector.shape_cast %53 : vector<1x96x208xbf16> to vector<96x208xbf16>
    %cst_55 = arith.constant dense<0.000000e+00> : vector<64x208xf32>
    %55 = tpu.matmul %52, %54, %cst_55 {dimension_numbers = #tpu.dot_dimension_numbers<[1], [0], [0], [1], [0, 0, 1, 1], [], []>} : vector<64x96xbf16>, vector<96x208xbf16>, vector<64x208xf32> -> vector<64x208xf32>
    %56 = arith.addf %51, %55 : vector<64x208xf32>
    %c0_56 = arith.constant 0 : index
    %c0_57 = arith.constant 0 : index
    %57 = vector.load %arg12[%c0_56, %c0_57] : memref<64x208xf32, #tpu.memory_space<vmem>>, vector<64x208xf32>
    tpu.vector_store %arg12[%c0_56, %c0_57], %56 {strides = array<i32>} : memref<64x208xf32, #tpu.memory_space<vmem>>, vector<64x208xf32>,
    %c0_58 = arith.constant 0 : index
    %c2_59 = arith.constant 2 : index
    %c0_60 = arith.constant 0 : index
    %58 = vector.load %arg9[%c0_58, %c2_59, %c0_60] : memref<10x10x96xf32, #tpu.memory_space<vmem>>, vector<8x8x96xf32>
    %59 = vector.shape_cast %58 : vector<8x8x96xf32> to vector<64x96xf32>
    %c0_61 = arith.constant 0 : index
    %c0_62 = arith.constant 0 : index
    %60 = vector.load %arg12[%c0_61, %c0_62] : memref<64x208xf32, #tpu.memory_space<vmem>>, vector<64x208xf32>
    %61 = arith.truncf %59 : vector<64x96xf32> to vector<64x96xbf16>
    %c2_63 = arith.constant 2 : index
    %c0_64 = arith.constant 0 : index
    %c0_65 = arith.constant 0 : index
    %62 = vector.load %arg3[%c2_63, %c0_64, %c0_65] : memref<9x96x208xbf16, #tpu.memory_space<vmem>>, vector<1x96x208xbf16>
    %63 = vector.shape_cast %62 : vector<1x96x208xbf16> to vector<96x208xbf16>
    %cst_66 = arith.constant dense<0.000000e+00> : vector<64x208xf32>
    %64 = tpu.matmul %61, %63, %cst_66 {dimension_numbers = #tpu.dot_dimension_numbers<[1], [0], [0], [1], [0, 0, 1, 1], [], []>} : vector<64x96xbf16>, vector<96x208xbf16>, vector<64x208xf32> -> vector<64x208xf32>
    %65 = arith.addf %60, %64 : vector<64x208xf32>
    %c0_67 = arith.constant 0 : index
    %c0_68 = arith.constant 0 : index
    %66 = vector.load %arg12[%c0_67, %c0_68] : memref<64x208xf32, #tpu.memory_space<vmem>>, vector<64x208xf32>
    tpu.vector_store %arg12[%c0_67, %c0_68], %65 {strides = array<i32>} : memref<64x208xf32, #tpu.memory_space<vmem>>, vector<64x208xf32>,
    %c1_69 = arith.constant 1 : index
    %c0_70 = arith.constant 0 : index
    %c0_71 = arith.constant 0 : index
    %67 = vector.load %arg9[%c1_69, %c0_70, %c0_71] : memref<10x10x96xf32, #tpu.memory_space<vmem>>, vector<8x8x96xf32>
    %68 = vector.shape_cast %67 : vector<8x8x96xf32> to vector<64x96xf32>
    %c0_72 = arith.constant 0 : index
    %c0_73 = arith.constant 0 : index
    %69 = vector.load %arg12[%c0_72, %c0_73] : memref<64x208xf32, #tpu.memory_space<vmem>>, vector<64x208xf32>
    %70 = arith.truncf %68 : vector<64x96xf32> to vector<64x96xbf16>
    %c3 = arith.constant 3 : index
    %c0_74 = arith.constant 0 : index
    %c0_75 = arith.constant 0 : index
    %71 = vector.load %arg3[%c3, %c0_74, %c0_75] : memref<9x96x208xbf16, #tpu.memory_space<vmem>>, vector<1x96x208xbf16>
    %72 = vector.shape_cast %71 : vector<1x96x208xbf16> to vector<96x208xbf16>
    %cst_76 = arith.constant dense<0.000000e+00> : vector<64x208xf32>
    %73 = tpu.matmul %70, %72, %cst_76 {dimension_numbers = #tpu.dot_dimension_numbers<[1], [0], [0], [1], [0, 0, 1, 1], [], []>} : vector<64x96xbf16>, vector<96x208xbf16>, vector<64x208xf32> -> vector<64x208xf32>
    %74 = arith.addf %69, %73 : vector<64x208xf32>
    %c0_77 = arith.constant 0 : index
    %c0_78 = arith.constant 0 : index
    %75 = vector.load %arg12[%c0_77, %c0_78] : memref<64x208xf32, #tpu.memory_space<vmem>>, vector<64x208xf32>
    tpu.vector_store %arg12[%c0_77, %c0_78], %74 {strides = array<i32>} : memref<64x208xf32, #tpu.memory_space<vmem>>, vector<64x208xf32>,
    %c1_79 = arith.constant 1 : index
    %c1_80 = arith.constant 1 : index
    %c0_81 = arith.constant 0 : index
    %76 = vector.load %arg9[%c1_79, %c1_80, %c0_81] : memref<10x10x96xf32, #tpu.memory_space<vmem>>, vector<8x8x96xf32>
    %77 = vector.shape_cast %76 : vector<8x8x96xf32> to vector<64x96xf32>
    %c0_82 = arith.constant 0 : index
    %c0_83 = arith.constant 0 : index
    %78 = vector.load %arg12[%c0_82, %c0_83] : memref<64x208xf32, #tpu.memory_space<vmem>>, vector<64x208xf32>
    %79 = arith.truncf %77 : vector<64x96xf32> to vector<64x96xbf16>
    %c4 = arith.constant 4 : index
    %c0_84 = arith.constant 0 : index
    %c0_85 = arith.constant 0 : index
    %80 = vector.load %arg3[%c4, %c0_84, %c0_85] : memref<9x96x208xbf16, #tpu.memory_space<vmem>>, vector<1x96x208xbf16>
    %81 = vector.shape_cast %80 : vector<1x96x208xbf16> to vector<96x208xbf16>
    %cst_86 = arith.constant dense<0.000000e+00> : vector<64x208xf32>
    %82 = tpu.matmul %79, %81, %cst_86 {dimension_numbers = #tpu.dot_dimension_numbers<[1], [0], [0], [1], [0, 0, 1, 1], [], []>} : vector<64x96xbf16>, vector<96x208xbf16>, vector<64x208xf32> -> vector<64x208xf32>
    %83 = arith.addf %78, %82 : vector<64x208xf32>
    %c0_87 = arith.constant 0 : index
    %c0_88 = arith.constant 0 : index
    %84 = vector.load %arg12[%c0_87, %c0_88] : memref<64x208xf32, #tpu.memory_space<vmem>>, vector<64x208xf32>
    tpu.vector_store %arg12[%c0_87, %c0_88], %83 {strides = array<i32>} : memref<64x208xf32, #tpu.memory_space<vmem>>, vector<64x208xf32>,
    %c1_89 = arith.constant 1 : index
    %c2_90 = arith.constant 2 : index
    %c0_91 = arith.constant 0 : index
    %85 = vector.load %arg9[%c1_89, %c2_90, %c0_91] : memref<10x10x96xf32, #tpu.memory_space<vmem>>, vector<8x8x96xf32>
    %86 = vector.shape_cast %85 : vector<8x8x96xf32> to vector<64x96xf32>
    %c0_92 = arith.constant 0 : index
    %c0_93 = arith.constant 0 : index
    %87 = vector.load %arg12[%c0_92, %c0_93] : memref<64x208xf32, #tpu.memory_space<vmem>>, vector<64x208xf32>
    %88 = arith.truncf %86 : vector<64x96xf32> to vector<64x96xbf16>
    %c5 = arith.constant 5 : index
    %c0_94 = arith.constant 0 : index
    %c0_95 = arith.constant 0 : index
    %89 = vector.load %arg3[%c5, %c0_94, %c0_95] : memref<9x96x208xbf16, #tpu.memory_space<vmem>>, vector<1x96x208xbf16>
    %90 = vector.shape_cast %89 : vector<1x96x208xbf16> to vector<96x208xbf16>
    %cst_96 = arith.constant dense<0.000000e+00> : vector<64x208xf32>
    %91 = tpu.matmul %88, %90, %cst_96 {dimension_numbers = #tpu.dot_dimension_numbers<[1], [0], [0], [1], [0, 0, 1, 1], [], []>} : vector<64x96xbf16>, vector<96x208xbf16>, vector<64x208xf32> -> vector<64x208xf32>
    %92 = arith.addf %87, %91 : vector<64x208xf32>
    %c0_97 = arith.constant 0 : index
    %c0_98 = arith.constant 0 : index
    %93 = vector.load %arg12[%c0_97, %c0_98] : memref<64x208xf32, #tpu.memory_space<vmem>>, vector<64x208xf32>
    tpu.vector_store %arg12[%c0_97, %c0_98], %92 {strides = array<i32>} : memref<64x208xf32, #tpu.memory_space<vmem>>, vector<64x208xf32>,
    %c2_99 = arith.constant 2 : index
    %c0_100 = arith.constant 0 : index
    %c0_101 = arith.constant 0 : index
    %94 = vector.load %arg9[%c2_99, %c0_100, %c0_101] : memref<10x10x96xf32, #tpu.memory_space<vmem>>, vector<8x8x96xf32>
    %95 = vector.shape_cast %94 : vector<8x8x96xf32> to vector<64x96xf32>
    %c0_102 = arith.constant 0 : index
    %c0_103 = arith.constant 0 : index
    %96 = vector.load %arg12[%c0_102, %c0_103] : memref<64x208xf32, #tpu.memory_space<vmem>>, vector<64x208xf32>
    %97 = arith.truncf %95 : vector<64x96xf32> to vector<64x96xbf16>
    %c6 = arith.constant 6 : index
    %c0_104 = arith.constant 0 : index
    %c0_105 = arith.constant 0 : index
    %98 = vector.load %arg3[%c6, %c0_104, %c0_105] : memref<9x96x208xbf16, #tpu.memory_space<vmem>>, vector<1x96x208xbf16>
    %99 = vector.shape_cast %98 : vector<1x96x208xbf16> to vector<96x208xbf16>
    %cst_106 = arith.constant dense<0.000000e+00> : vector<64x208xf32>
    %100 = tpu.matmul %97, %99, %cst_106 {dimension_numbers = #tpu.dot_dimension_numbers<[1], [0], [0], [1], [0, 0, 1, 1], [], []>} : vector<64x96xbf16>, vector<96x208xbf16>, vector<64x208xf32> -> vector<64x208xf32>
    %101 = arith.addf %96, %100 : vector<64x208xf32>
    %c0_107 = arith.constant 0 : index
    %c0_108 = arith.constant 0 : index
    %102 = vector.load %arg12[%c0_107, %c0_108] : memref<64x208xf32, #tpu.memory_space<vmem>>, vector<64x208xf32>
    tpu.vector_store %arg12[%c0_107, %c0_108], %101 {strides = array<i32>} : memref<64x208xf32, #tpu.memory_space<vmem>>, vector<64x208xf32>,
    %c2_109 = arith.constant 2 : index
    %c1_110 = arith.constant 1 : index
    %c0_111 = arith.constant 0 : index
    %103 = vector.load %arg9[%c2_109, %c1_110, %c0_111] : memref<10x10x96xf32, #tpu.memory_space<vmem>>, vector<8x8x96xf32>
    %104 = vector.shape_cast %103 : vector<8x8x96xf32> to vector<64x96xf32>
    %c0_112 = arith.constant 0 : index
    %c0_113 = arith.constant 0 : index
    %105 = vector.load %arg12[%c0_112, %c0_113] : memref<64x208xf32, #tpu.memory_space<vmem>>, vector<64x208xf32>
    %106 = arith.truncf %104 : vector<64x96xf32> to vector<64x96xbf16>
    %c7 = arith.constant 7 : index
    %c0_114 = arith.constant 0 : index
    %c0_115 = arith.constant 0 : index
    %107 = vector.load %arg3[%c7, %c0_114, %c0_115] : memref<9x96x208xbf16, #tpu.memory_space<vmem>>, vector<1x96x208xbf16>
    %108 = vector.shape_cast %107 : vector<1x96x208xbf16> to vector<96x208xbf16>
    %cst_116 = arith.constant dense<0.000000e+00> : vector<64x208xf32>
    %109 = tpu.matmul %106, %108, %cst_116 {dimension_numbers = #tpu.dot_dimension_numbers<[1], [0], [0], [1], [0, 0, 1, 1], [], []>} : vector<64x96xbf16>, vector<96x208xbf16>, vector<64x208xf32> -> vector<64x208xf32>
    %110 = arith.addf %105, %109 : vector<64x208xf32>
    %c0_117 = arith.constant 0 : index
    %c0_118 = arith.constant 0 : index
    %111 = vector.load %arg12[%c0_117, %c0_118] : memref<64x208xf32, #tpu.memory_space<vmem>>, vector<64x208xf32>
    tpu.vector_store %arg12[%c0_117, %c0_118], %110 {strides = array<i32>} : memref<64x208xf32, #tpu.memory_space<vmem>>, vector<64x208xf32>,
    %c2_119 = arith.constant 2 : index
    %c2_120 = arith.constant 2 : index
    %c0_121 = arith.constant 0 : index
    %112 = vector.load %arg9[%c2_119, %c2_120, %c0_121] : memref<10x10x96xf32, #tpu.memory_space<vmem>>, vector<8x8x96xf32>
    %113 = vector.shape_cast %112 : vector<8x8x96xf32> to vector<64x96xf32>
    %c0_122 = arith.constant 0 : index
    %c0_123 = arith.constant 0 : index
    %114 = vector.load %arg12[%c0_122, %c0_123] : memref<64x208xf32, #tpu.memory_space<vmem>>, vector<64x208xf32>
    %115 = arith.truncf %113 : vector<64x96xf32> to vector<64x96xbf16>
    %c8 = arith.constant 8 : index
    %c0_124 = arith.constant 0 : index
    %c0_125 = arith.constant 0 : index
    %116 = vector.load %arg3[%c8, %c0_124, %c0_125] : memref<9x96x208xbf16, #tpu.memory_space<vmem>>, vector<1x96x208xbf16>
    %117 = vector.shape_cast %116 : vector<1x96x208xbf16> to vector<96x208xbf16>
    %cst_126 = arith.constant dense<0.000000e+00> : vector<64x208xf32>
    %118 = tpu.matmul %115, %117, %cst_126 {dimension_numbers = #tpu.dot_dimension_numbers<[1], [0], [0], [1], [0, 0, 1, 1], [], []>} : vector<64x96xbf16>, vector<96x208xbf16>, vector<64x208xf32> -> vector<64x208xf32>
    %119 = arith.addf %114, %118 : vector<64x208xf32>
    %c0_127 = arith.constant 0 : index
    %c0_128 = arith.constant 0 : index
    %120 = vector.load %arg12[%c0_127, %c0_128] : memref<64x208xf32, #tpu.memory_space<vmem>>, vector<64x208xf32>
    tpu.vector_store %arg12[%c0_127, %c0_128], %119 {strides = array<i32>} : memref<64x208xf32, #tpu.memory_space<vmem>>, vector<64x208xf32>,
    %c0_129 = arith.constant 0 : index
    %c0_130 = arith.constant 0 : index
    %121 = vector.load %arg12[%c0_129, %c0_130] : memref<64x208xf32, #tpu.memory_space<vmem>>, vector<64x208xf32>
    %c0_131 = arith.constant 0 : index
    %c0_132 = arith.constant 0 : index
    %122 = vector.load %arg6[%c0_131, %c0_132] : memref<1x208xf32, #tpu.memory_space<vmem>>, vector<1x208xf32>
    %123 = vector.broadcast %122 : vector<1x208xf32> to vector<64x208xf32>
    %124 = arith.addf %121, %123 : vector<64x208xf32>
    %cst_133 = arith.constant 0.000000e+00 : f32
    %125 = vector.broadcast %cst_133 : f32 to vector<64x208xf32>
    %126 = arith.maximumf %124, %125 : vector<64x208xf32>
    %c0_134 = arith.constant 0 : index
    %c0_135 = arith.constant 0 : index
    %c192_136 = arith.constant 192 : index
    %127 = vector.load %arg8[%c0_134, %c0_135, %c192_136] : memref<1x64x512xf32, #tpu.memory_space<vmem>>, vector<1x64x208xf32>
    %128 = vector.shape_cast %127 : vector<1x64x208xf32> to vector<64x208xf32>
    %129 = vector.shape_cast %126 : vector<64x208xf32> to vector<1x64x208xf32>
    tpu.vector_store %arg8[%c0_134, %c0_135, %c192_136], %129 {strides = array<i32>} : memref<1x64x512xf32, #tpu.memory_space<vmem>>, vector<1x64x208xf32>,
    %cst_137 = arith.constant 0.000000e+00 : f32
    %130 = vector.broadcast %cst_137 : f32 to vector<64x48xf32>
    %c0_138 = arith.constant 0 : index
    %c0_139 = arith.constant 0 : index
    %131 = vector.load %arg13[%c0_138, %c0_139] : memref<64x48xf32, #tpu.memory_space<vmem>>, vector<64x48xf32>
    tpu.vector_store %arg13[%c0_138, %c0_139], %130 {strides = array<i32>} : memref<64x48xf32, #tpu.memory_space<vmem>>, vector<64x48xf32>,
    %c0_140 = arith.constant 0 : index
    %c0_141 = arith.constant 0 : index
    %c0_142 = arith.constant 0 : index
    %132 = vector.load %arg10[%c0_140, %c0_141, %c0_142] : memref<12x12x16xf32, #tpu.memory_space<vmem>>, vector<8x8x16xf32>
    %133 = vector.shape_cast %132 : vector<8x8x16xf32> to vector<64x16xf32>
    %c0_143 = arith.constant 0 : index
    %c0_144 = arith.constant 0 : index
    %134 = vector.load %arg13[%c0_143, %c0_144] : memref<64x48xf32, #tpu.memory_space<vmem>>, vector<64x48xf32>
    %135 = arith.truncf %133 : vector<64x16xf32> to vector<64x16xbf16>
    %c0_145 = arith.constant 0 : index
    %c0_146 = arith.constant 0 : index
    %c0_147 = arith.constant 0 : index
    %136 = vector.load %arg4[%c0_145, %c0_146, %c0_147] : memref<25x16x48xbf16, #tpu.memory_space<vmem>>, vector<1x16x48xbf16>
    %137 = vector.shape_cast %136 : vector<1x16x48xbf16> to vector<16x48xbf16>
    %cst_148 = arith.constant dense<0.000000e+00> : vector<64x48xf32>
    %138 = tpu.matmul %135, %137, %cst_148 {dimension_numbers = #tpu.dot_dimension_numbers<[1], [0], [0], [1], [0, 0, 1, 1], [], []>} : vector<64x16xbf16>, vector<16x48xbf16>, vector<64x48xf32> -> vector<64x48xf32>
    %139 = arith.addf %134, %138 : vector<64x48xf32>
    %c0_149 = arith.constant 0 : index
    %c0_150 = arith.constant 0 : index
    %140 = vector.load %arg13[%c0_149, %c0_150] : memref<64x48xf32, #tpu.memory_space<vmem>>, vector<64x48xf32>
    tpu.vector_store %arg13[%c0_149, %c0_150], %139 {strides = array<i32>} : memref<64x48xf32, #tpu.memory_space<vmem>>, vector<64x48xf32>,
    %c0_151 = arith.constant 0 : index
    %c1_152 = arith.constant 1 : index
    %c0_153 = arith.constant 0 : index
    %141 = vector.load %arg10[%c0_151, %c1_152, %c0_153] : memref<12x12x16xf32, #tpu.memory_space<vmem>>, vector<8x8x16xf32>
    %142 = vector.shape_cast %141 : vector<8x8x16xf32> to vector<64x16xf32>
    %c0_154 = arith.constant 0 : index
    %c0_155 = arith.constant 0 : index
    %143 = vector.load %arg13[%c0_154, %c0_155] : memref<64x48xf32, #tpu.memory_space<vmem>>, vector<64x48xf32>
    %144 = arith.truncf %142 : vector<64x16xf32> to vector<64x16xbf16>
    %c1_156 = arith.constant 1 : index
    %c0_157 = arith.constant 0 : index
    %c0_158 = arith.constant 0 : index
    %145 = vector.load %arg4[%c1_156, %c0_157, %c0_158] : memref<25x16x48xbf16, #tpu.memory_space<vmem>>, vector<1x16x48xbf16>
    %146 = vector.shape_cast %145 : vector<1x16x48xbf16> to vector<16x48xbf16>
    %cst_159 = arith.constant dense<0.000000e+00> : vector<64x48xf32>
    %147 = tpu.matmul %144, %146, %cst_159 {dimension_numbers = #tpu.dot_dimension_numbers<[1], [0], [0], [1], [0, 0, 1, 1], [], []>} : vector<64x16xbf16>, vector<16x48xbf16>, vector<64x48xf32> -> vector<64x48xf32>
    %148 = arith.addf %143, %147 : vector<64x48xf32>
    %c0_160 = arith.constant 0 : index
    %c0_161 = arith.constant 0 : index
    %149 = vector.load %arg13[%c0_160, %c0_161] : memref<64x48xf32, #tpu.memory_space<vmem>>, vector<64x48xf32>
    tpu.vector_store %arg13[%c0_160, %c0_161], %148 {strides = array<i32>} : memref<64x48xf32, #tpu.memory_space<vmem>>, vector<64x48xf32>,
    %c0_162 = arith.constant 0 : index
    %c2_163 = arith.constant 2 : index
    %c0_164 = arith.constant 0 : index
    %150 = vector.load %arg10[%c0_162, %c2_163, %c0_164] : memref<12x12x16xf32, #tpu.memory_space<vmem>>, vector<8x8x16xf32>
    %151 = vector.shape_cast %150 : vector<8x8x16xf32> to vector<64x16xf32>
    %c0_165 = arith.constant 0 : index
    %c0_166 = arith.constant 0 : index
    %152 = vector.load %arg13[%c0_165, %c0_166] : memref<64x48xf32, #tpu.memory_space<vmem>>, vector<64x48xf32>
    %153 = arith.truncf %151 : vector<64x16xf32> to vector<64x16xbf16>
    %c2_167 = arith.constant 2 : index
    %c0_168 = arith.constant 0 : index
    %c0_169 = arith.constant 0 : index
    %154 = vector.load %arg4[%c2_167, %c0_168, %c0_169] : memref<25x16x48xbf16, #tpu.memory_space<vmem>>, vector<1x16x48xbf16>
    %155 = vector.shape_cast %154 : vector<1x16x48xbf16> to vector<16x48xbf16>
    %cst_170 = arith.constant dense<0.000000e+00> : vector<64x48xf32>
    %156 = tpu.matmul %153, %155, %cst_170 {dimension_numbers = #tpu.dot_dimension_numbers<[1], [0], [0], [1], [0, 0, 1, 1], [], []>} : vector<64x16xbf16>, vector<16x48xbf16>, vector<64x48xf32> -> vector<64x48xf32>
    %157 = arith.addf %152, %156 : vector<64x48xf32>
    %c0_171 = arith.constant 0 : index
    %c0_172 = arith.constant 0 : index
    %158 = vector.load %arg13[%c0_171, %c0_172] : memref<64x48xf32, #tpu.memory_space<vmem>>, vector<64x48xf32>
    tpu.vector_store %arg13[%c0_171, %c0_172], %157 {strides = array<i32>} : memref<64x48xf32, #tpu.memory_space<vmem>>, vector<64x48xf32>,
    %c0_173 = arith.constant 0 : index
    %c3_174 = arith.constant 3 : index
    %c0_175 = arith.constant 0 : index
    %159 = vector.load %arg10[%c0_173, %c3_174, %c0_175] : memref<12x12x16xf32, #tpu.memory_space<vmem>>, vector<8x8x16xf32>
    %160 = vector.shape_cast %159 : vector<8x8x16xf32> to vector<64x16xf32>
    %c0_176 = arith.constant 0 : index
    %c0_177 = arith.constant 0 : index
    %161 = vector.load %arg13[%c0_176, %c0_177] : memref<64x48xf32, #tpu.memory_space<vmem>>, vector<64x48xf32>
    %162 = arith.truncf %160 : vector<64x16xf32> to vector<64x16xbf16>
    %c3_178 = arith.constant 3 : index
    %c0_179 = arith.constant 0 : index
    %c0_180 = arith.constant 0 : index
    %163 = vector.load %arg4[%c3_178, %c0_179, %c0_180] : memref<25x16x48xbf16, #tpu.memory_space<vmem>>, vector<1x16x48xbf16>
    %164 = vector.shape_cast %163 : vector<1x16x48xbf16> to vector<16x48xbf16>
    %cst_181 = arith.constant dense<0.000000e+00> : vector<64x48xf32>
    %165 = tpu.matmul %162, %164, %cst_181 {dimension_numbers = #tpu.dot_dimension_numbers<[1], [0], [0], [1], [0, 0, 1, 1], [], []>} : vector<64x16xbf16>, vector<16x48xbf16>, vector<64x48xf32> -> vector<64x48xf32>
    %166 = arith.addf %161, %165 : vector<64x48xf32>
    %c0_182 = arith.constant 0 : index
    %c0_183 = arith.constant 0 : index
    %167 = vector.load %arg13[%c0_182, %c0_183] : memref<64x48xf32, #tpu.memory_space<vmem>>, vector<64x48xf32>
    tpu.vector_store %arg13[%c0_182, %c0_183], %166 {strides = array<i32>} : memref<64x48xf32, #tpu.memory_space<vmem>>, vector<64x48xf32>,
    %c0_184 = arith.constant 0 : index
    %c4_185 = arith.constant 4 : index
    %c0_186 = arith.constant 0 : index
    %168 = vector.load %arg10[%c0_184, %c4_185, %c0_186] : memref<12x12x16xf32, #tpu.memory_space<vmem>>, vector<8x8x16xf32>
    %169 = vector.shape_cast %168 : vector<8x8x16xf32> to vector<64x16xf32>
    %c0_187 = arith.constant 0 : index
    %c0_188 = arith.constant 0 : index
    %170 = vector.load %arg13[%c0_187, %c0_188] : memref<64x48xf32, #tpu.memory_space<vmem>>, vector<64x48xf32>
    %171 = arith.truncf %169 : vector<64x16xf32> to vector<64x16xbf16>
    %c4_189 = arith.constant 4 : index
    %c0_190 = arith.constant 0 : index
    %c0_191 = arith.constant 0 : index
    %172 = vector.load %arg4[%c4_189, %c0_190, %c0_191] : memref<25x16x48xbf16, #tpu.memory_space<vmem>>, vector<1x16x48xbf16>
    %173 = vector.shape_cast %172 : vector<1x16x48xbf16> to vector<16x48xbf16>
    %cst_192 = arith.constant dense<0.000000e+00> : vector<64x48xf32>
    %174 = tpu.matmul %171, %173, %cst_192 {dimension_numbers = #tpu.dot_dimension_numbers<[1], [0], [0], [1], [0, 0, 1, 1], [], []>} : vector<64x16xbf16>, vector<16x48xbf16>, vector<64x48xf32> -> vector<64x48xf32>
    %175 = arith.addf %170, %174 : vector<64x48xf32>
    %c0_193 = arith.constant 0 : index
    %c0_194 = arith.constant 0 : index
    %176 = vector.load %arg13[%c0_193, %c0_194] : memref<64x48xf32, #tpu.memory_space<vmem>>, vector<64x48xf32>
    tpu.vector_store %arg13[%c0_193, %c0_194], %175 {strides = array<i32>} : memref<64x48xf32, #tpu.memory_space<vmem>>, vector<64x48xf32>,
    %c1_195 = arith.constant 1 : index
    %c0_196 = arith.constant 0 : index
    %c0_197 = arith.constant 0 : index
    %177 = vector.load %arg10[%c1_195, %c0_196, %c0_197] : memref<12x12x16xf32, #tpu.memory_space<vmem>>, vector<8x8x16xf32>
    %178 = vector.shape_cast %177 : vector<8x8x16xf32> to vector<64x16xf32>
    %c0_198 = arith.constant 0 : index
    %c0_199 = arith.constant 0 : index
    %179 = vector.load %arg13[%c0_198, %c0_199] : memref<64x48xf32, #tpu.memory_space<vmem>>, vector<64x48xf32>
    %180 = arith.truncf %178 : vector<64x16xf32> to vector<64x16xbf16>
    %c5_200 = arith.constant 5 : index
    %c0_201 = arith.constant 0 : index
    %c0_202 = arith.constant 0 : index
    %181 = vector.load %arg4[%c5_200, %c0_201, %c0_202] : memref<25x16x48xbf16, #tpu.memory_space<vmem>>, vector<1x16x48xbf16>
    %182 = vector.shape_cast %181 : vector<1x16x48xbf16> to vector<16x48xbf16>
    %cst_203 = arith.constant dense<0.000000e+00> : vector<64x48xf32>
    %183 = tpu.matmul %180, %182, %cst_203 {dimension_numbers = #tpu.dot_dimension_numbers<[1], [0], [0], [1], [0, 0, 1, 1], [], []>} : vector<64x16xbf16>, vector<16x48xbf16>, vector<64x48xf32> -> vector<64x48xf32>
    %184 = arith.addf %179, %183 : vector<64x48xf32>
    %c0_204 = arith.constant 0 : index
    %c0_205 = arith.constant 0 : index
    %185 = vector.load %arg13[%c0_204, %c0_205] : memref<64x48xf32, #tpu.memory_space<vmem>>, vector<64x48xf32>
    tpu.vector_store %arg13[%c0_204, %c0_205], %184 {strides = array<i32>} : memref<64x48xf32, #tpu.memory_space<vmem>>, vector<64x48xf32>,
    %c1_206 = arith.constant 1 : index
    %c1_207 = arith.constant 1 : index
    %c0_208 = arith.constant 0 : index
    %186 = vector.load %arg10[%c1_206, %c1_207, %c0_208] : memref<12x12x16xf32, #tpu.memory_space<vmem>>, vector<8x8x16xf32>
    %187 = vector.shape_cast %186 : vector<8x8x16xf32> to vector<64x16xf32>
    %c0_209 = arith.constant 0 : index
    %c0_210 = arith.constant 0 : index
    %188 = vector.load %arg13[%c0_209, %c0_210] : memref<64x48xf32, #tpu.memory_space<vmem>>, vector<64x48xf32>
    %189 = arith.truncf %187 : vector<64x16xf32> to vector<64x16xbf16>
    %c6_211 = arith.constant 6 : index
    %c0_212 = arith.constant 0 : index
    %c0_213 = arith.constant 0 : index
    %190 = vector.load %arg4[%c6_211, %c0_212, %c0_213] : memref<25x16x48xbf16, #tpu.memory_space<vmem>>, vector<1x16x48xbf16>
    %191 = vector.shape_cast %190 : vector<1x16x48xbf16> to vector<16x48xbf16>
    %cst_214 = arith.constant dense<0.000000e+00> : vector<64x48xf32>
    %192 = tpu.matmul %189, %191, %cst_214 {dimension_numbers = #tpu.dot_dimension_numbers<[1], [0], [0], [1], [0, 0, 1, 1], [], []>} : vector<64x16xbf16>, vector<16x48xbf16>, vector<64x48xf32> -> vector<64x48xf32>
    %193 = arith.addf %188, %192 : vector<64x48xf32>
    %c0_215 = arith.constant 0 : index
    %c0_216 = arith.constant 0 : index
    %194 = vector.load %arg13[%c0_215, %c0_216] : memref<64x48xf32, #tpu.memory_space<vmem>>, vector<64x48xf32>
    tpu.vector_store %arg13[%c0_215, %c0_216], %193 {strides = array<i32>} : memref<64x48xf32, #tpu.memory_space<vmem>>, vector<64x48xf32>,
    %c1_217 = arith.constant 1 : index
    %c2_218 = arith.constant 2 : index
    %c0_219 = arith.constant 0 : index
    %195 = vector.load %arg10[%c1_217, %c2_218, %c0_219] : memref<12x12x16xf32, #tpu.memory_space<vmem>>, vector<8x8x16xf32>
    %196 = vector.shape_cast %195 : vector<8x8x16xf32> to vector<64x16xf32>
    %c0_220 = arith.constant 0 : index
    %c0_221 = arith.constant 0 : index
    %197 = vector.load %arg13[%c0_220, %c0_221] : memref<64x48xf32, #tpu.memory_space<vmem>>, vector<64x48xf32>
    %198 = arith.truncf %196 : vector<64x16xf32> to vector<64x16xbf16>
    %c7_222 = arith.constant 7 : index
    %c0_223 = arith.constant 0 : index
    %c0_224 = arith.constant 0 : index
    %199 = vector.load %arg4[%c7_222, %c0_223, %c0_224] : memref<25x16x48xbf16, #tpu.memory_space<vmem>>, vector<1x16x48xbf16>
    %200 = vector.shape_cast %199 : vector<1x16x48xbf16> to vector<16x48xbf16>
    %cst_225 = arith.constant dense<0.000000e+00> : vector<64x48xf32>
    %201 = tpu.matmul %198, %200, %cst_225 {dimension_numbers = #tpu.dot_dimension_numbers<[1], [0], [0], [1], [0, 0, 1, 1], [], []>} : vector<64x16xbf16>, vector<16x48xbf16>, vector<64x48xf32> -> vector<64x48xf32>
    %202 = arith.addf %197, %201 : vector<64x48xf32>
    %c0_226 = arith.constant 0 : index
    %c0_227 = arith.constant 0 : index
    %203 = vector.load %arg13[%c0_226, %c0_227] : memref<64x48xf32, #tpu.memory_space<vmem>>, vector<64x48xf32>
    tpu.vector_store %arg13[%c0_226, %c0_227], %202 {strides = array<i32>} : memref<64x48xf32, #tpu.memory_space<vmem>>, vector<64x48xf32>,
    %c1_228 = arith.constant 1 : index
    %c3_229 = arith.constant 3 : index
    %c0_230 = arith.constant 0 : index
    %204 = vector.load %arg10[%c1_228, %c3_229, %c0_230] : memref<12x12x16xf32, #tpu.memory_space<vmem>>, vector<8x8x16xf32>
    %205 = vector.shape_cast %204 : vector<8x8x16xf32> to vector<64x16xf32>
    %c0_231 = arith.constant 0 : index
    %c0_232 = arith.constant 0 : index
    %206 = vector.load %arg13[%c0_231, %c0_232] : memref<64x48xf32, #tpu.memory_space<vmem>>, vector<64x48xf32>
    %207 = arith.truncf %205 : vector<64x16xf32> to vector<64x16xbf16>
    %c8_233 = arith.constant 8 : index
    %c0_234 = arith.constant 0 : index
    %c0_235 = arith.constant 0 : index
    %208 = vector.load %arg4[%c8_233, %c0_234, %c0_235] : memref<25x16x48xbf16, #tpu.memory_space<vmem>>, vector<1x16x48xbf16>
    %209 = vector.shape_cast %208 : vector<1x16x48xbf16> to vector<16x48xbf16>
    %cst_236 = arith.constant dense<0.000000e+00> : vector<64x48xf32>
    %210 = tpu.matmul %207, %209, %cst_236 {dimension_numbers = #tpu.dot_dimension_numbers<[1], [0], [0], [1], [0, 0, 1, 1], [], []>} : vector<64x16xbf16>, vector<16x48xbf16>, vector<64x48xf32> -> vector<64x48xf32>
    %211 = arith.addf %206, %210 : vector<64x48xf32>
    %c0_237 = arith.constant 0 : index
    %c0_238 = arith.constant 0 : index
    %212 = vector.load %arg13[%c0_237, %c0_238] : memref<64x48xf32, #tpu.memory_space<vmem>>, vector<64x48xf32>
    tpu.vector_store %arg13[%c0_237, %c0_238], %211 {strides = array<i32>} : memref<64x48xf32, #tpu.memory_space<vmem>>, vector<64x48xf32>,
    %c1_239 = arith.constant 1 : index
    %c4_240 = arith.constant 4 : index
    %c0_241 = arith.constant 0 : index
    %213 = vector.load %arg10[%c1_239, %c4_240, %c0_241] : memref<12x12x16xf32, #tpu.memory_space<vmem>>, vector<8x8x16xf32>
    %214 = vector.shape_cast %213 : vector<8x8x16xf32> to vector<64x16xf32>
    %c0_242 = arith.constant 0 : index
    %c0_243 = arith.constant 0 : index
    %215 = vector.load %arg13[%c0_242, %c0_243] : memref<64x48xf32, #tpu.memory_space<vmem>>, vector<64x48xf32>
    %216 = arith.truncf %214 : vector<64x16xf32> to vector<64x16xbf16>
    %c9 = arith.constant 9 : index
    %c0_244 = arith.constant 0 : index
    %c0_245 = arith.constant 0 : index
    %217 = vector.load %arg4[%c9, %c0_244, %c0_245] : memref<25x16x48xbf16, #tpu.memory_space<vmem>>, vector<1x16x48xbf16>
    %218 = vector.shape_cast %217 : vector<1x16x48xbf16> to vector<16x48xbf16>
    %cst_246 = arith.constant dense<0.000000e+00> : vector<64x48xf32>
    %219 = tpu.matmul %216, %218, %cst_246 {dimension_numbers = #tpu.dot_dimension_numbers<[1], [0], [0], [1], [0, 0, 1, 1], [], []>} : vector<64x16xbf16>, vector<16x48xbf16>, vector<64x48xf32> -> vector<64x48xf32>
    %220 = arith.addf %215, %219 : vector<64x48xf32>
    %c0_247 = arith.constant 0 : index
    %c0_248 = arith.constant 0 : index
    %221 = vector.load %arg13[%c0_247, %c0_248] : memref<64x48xf32, #tpu.memory_space<vmem>>, vector<64x48xf32>
    tpu.vector_store %arg13[%c0_247, %c0_248], %220 {strides = array<i32>} : memref<64x48xf32, #tpu.memory_space<vmem>>, vector<64x48xf32>,
    %c2_249 = arith.constant 2 : index
    %c0_250 = arith.constant 0 : index
    %c0_251 = arith.constant 0 : index
    %222 = vector.load %arg10[%c2_249, %c0_250, %c0_251] : memref<12x12x16xf32, #tpu.memory_space<vmem>>, vector<8x8x16xf32>
    %223 = vector.shape_cast %222 : vector<8x8x16xf32> to vector<64x16xf32>
    %c0_252 = arith.constant 0 : index
    %c0_253 = arith.constant 0 : index
    %224 = vector.load %arg13[%c0_252, %c0_253] : memref<64x48xf32, #tpu.memory_space<vmem>>, vector<64x48xf32>
    %225 = arith.truncf %223 : vector<64x16xf32> to vector<64x16xbf16>
    %c10 = arith.constant 10 : index
    %c0_254 = arith.constant 0 : index
    %c0_255 = arith.constant 0 : index
    %226 = vector.load %arg4[%c10, %c0_254, %c0_255] : memref<25x16x48xbf16, #tpu.memory_space<vmem>>, vector<1x16x48xbf16>
    %227 = vector.shape_cast %226 : vector<1x16x48xbf16> to vector<16x48xbf16>
    %cst_256 = arith.constant dense<0.000000e+00> : vector<64x48xf32>
    %228 = tpu.matmul %225, %227, %cst_256 {dimension_numbers = #tpu.dot_dimension_numbers<[1], [0], [0], [1], [0, 0, 1, 1], [], []>} : vector<64x16xbf16>, vector<16x48xbf16>, vector<64x48xf32> -> vector<64x48xf32>
    %229 = arith.addf %224, %228 : vector<64x48xf32>
    %c0_257 = arith.constant 0 : index
    %c0_258 = arith.constant 0 : index
    %230 = vector.load %arg13[%c0_257, %c0_258] : memref<64x48xf32, #tpu.memory_space<vmem>>, vector<64x48xf32>
    tpu.vector_store %arg13[%c0_257, %c0_258], %229 {strides = array<i32>} : memref<64x48xf32, #tpu.memory_space<vmem>>, vector<64x48xf32>,
    %c2_259 = arith.constant 2 : index
    %c1_260 = arith.constant 1 : index
    %c0_261 = arith.constant 0 : index
    %231 = vector.load %arg10[%c2_259, %c1_260, %c0_261] : memref<12x12x16xf32, #tpu.memory_space<vmem>>, vector<8x8x16xf32>
    %232 = vector.shape_cast %231 : vector<8x8x16xf32> to vector<64x16xf32>
    %c0_262 = arith.constant 0 : index
    %c0_263 = arith.constant 0 : index
    %233 = vector.load %arg13[%c0_262, %c0_263] : memref<64x48xf32, #tpu.memory_space<vmem>>, vector<64x48xf32>
    %234 = arith.truncf %232 : vector<64x16xf32> to vector<64x16xbf16>
    %c11 = arith.constant 11 : index
    %c0_264 = arith.constant 0 : index
    %c0_265 = arith.constant 0 : index
    %235 = vector.load %arg4[%c11, %c0_264, %c0_265] : memref<25x16x48xbf16, #tpu.memory_space<vmem>>, vector<1x16x48xbf16>
    %236 = vector.shape_cast %235 : vector<1x16x48xbf16> to vector<16x48xbf16>
    %cst_266 = arith.constant dense<0.000000e+00> : vector<64x48xf32>
    %237 = tpu.matmul %234, %236, %cst_266 {dimension_numbers = #tpu.dot_dimension_numbers<[1], [0], [0], [1], [0, 0, 1, 1], [], []>} : vector<64x16xbf16>, vector<16x48xbf16>, vector<64x48xf32> -> vector<64x48xf32>
    %238 = arith.addf %233, %237 : vector<64x48xf32>
    %c0_267 = arith.constant 0 : index
    %c0_268 = arith.constant 0 : index
    %239 = vector.load %arg13[%c0_267, %c0_268] : memref<64x48xf32, #tpu.memory_space<vmem>>, vector<64x48xf32>
    tpu.vector_store %arg13[%c0_267, %c0_268], %238 {strides = array<i32>} : memref<64x48xf32, #tpu.memory_space<vmem>>, vector<64x48xf32>,
    %c2_269 = arith.constant 2 : index
    %c2_270 = arith.constant 2 : index
    %c0_271 = arith.constant 0 : index
    %240 = vector.load %arg10[%c2_269, %c2_270, %c0_271] : memref<12x12x16xf32, #tpu.memory_space<vmem>>, vector<8x8x16xf32>
    %241 = vector.shape_cast %240 : vector<8x8x16xf32> to vector<64x16xf32>
    %c0_272 = arith.constant 0 : index
    %c0_273 = arith.constant 0 : index
    %242 = vector.load %arg13[%c0_272, %c0_273] : memref<64x48xf32, #tpu.memory_space<vmem>>, vector<64x48xf32>
    %243 = arith.truncf %241 : vector<64x16xf32> to vector<64x16xbf16>
    %c12 = arith.constant 12 : index
    %c0_274 = arith.constant 0 : index
    %c0_275 = arith.constant 0 : index
    %244 = vector.load %arg4[%c12, %c0_274, %c0_275] : memref<25x16x48xbf16, #tpu.memory_space<vmem>>, vector<1x16x48xbf16>
    %245 = vector.shape_cast %244 : vector<1x16x48xbf16> to vector<16x48xbf16>
    %cst_276 = arith.constant dense<0.000000e+00> : vector<64x48xf32>
    %246 = tpu.matmul %243, %245, %cst_276 {dimension_numbers = #tpu.dot_dimension_numbers<[1], [0], [0], [1], [0, 0, 1, 1], [], []>} : vector<64x16xbf16>, vector<16x48xbf16>, vector<64x48xf32> -> vector<64x48xf32>
    %247 = arith.addf %242, %246 : vector<64x48xf32>
    %c0_277 = arith.constant 0 : index
    %c0_278 = arith.constant 0 : index
    %248 = vector.load %arg13[%c0_277, %c0_278] : memref<64x48xf32, #tpu.memory_space<vmem>>, vector<64x48xf32>
    tpu.vector_store %arg13[%c0_277, %c0_278], %247 {strides = array<i32>} : memref<64x48xf32, #tpu.memory_space<vmem>>, vector<64x48xf32>,
    %c2_279 = arith.constant 2 : index
    %c3_280 = arith.constant 3 : index
    %c0_281 = arith.constant 0 : index
    %249 = vector.load %arg10[%c2_279, %c3_280, %c0_281] : memref<12x12x16xf32, #tpu.memory_space<vmem>>, vector<8x8x16xf32>
    %250 = vector.shape_cast %249 : vector<8x8x16xf32> to vector<64x16xf32>
    %c0_282 = arith.constant 0 : index
    %c0_283 = arith.constant 0 : index
    %251 = vector.load %arg13[%c0_282, %c0_283] : memref<64x48xf32, #tpu.memory_space<vmem>>, vector<64x48xf32>
    %252 = arith.truncf %250 : vector<64x16xf32> to vector<64x16xbf16>
    %c13 = arith.constant 13 : index
    %c0_284 = arith.constant 0 : index
    %c0_285 = arith.constant 0 : index
    %253 = vector.load %arg4[%c13, %c0_284, %c0_285] : memref<25x16x48xbf16, #tpu.memory_space<vmem>>, vector<1x16x48xbf16>
    %254 = vector.shape_cast %253 : vector<1x16x48xbf16> to vector<16x48xbf16>
    %cst_286 = arith.constant dense<0.000000e+00> : vector<64x48xf32>
    %255 = tpu.matmul %252, %254, %cst_286 {dimension_numbers = #tpu.dot_dimension_numbers<[1], [0], [0], [1], [0, 0, 1, 1], [], []>} : vector<64x16xbf16>, vector<16x48xbf16>, vector<64x48xf32> -> vector<64x48xf32>
    %256 = arith.addf %251, %255 : vector<64x48xf32>
    %c0_287 = arith.constant 0 : index
    %c0_288 = arith.constant 0 : index
    %257 = vector.load %arg13[%c0_287, %c0_288] : memref<64x48xf32, #tpu.memory_space<vmem>>, vector<64x48xf32>
    tpu.vector_store %arg13[%c0_287, %c0_288], %256 {strides = array<i32>} : memref<64x48xf32, #tpu.memory_space<vmem>>, vector<64x48xf32>,
    %c2_289 = arith.constant 2 : index
    %c4_290 = arith.constant 4 : index
    %c0_291 = arith.constant 0 : index
    %258 = vector.load %arg10[%c2_289, %c4_290, %c0_291] : memref<12x12x16xf32, #tpu.memory_space<vmem>>, vector<8x8x16xf32>
    %259 = vector.shape_cast %258 : vector<8x8x16xf32> to vector<64x16xf32>
    %c0_292 = arith.constant 0 : index
    %c0_293 = arith.constant 0 : index
    %260 = vector.load %arg13[%c0_292, %c0_293] : memref<64x48xf32, #tpu.memory_space<vmem>>, vector<64x48xf32>
    %261 = arith.truncf %259 : vector<64x16xf32> to vector<64x16xbf16>
    %c14 = arith.constant 14 : index
    %c0_294 = arith.constant 0 : index
    %c0_295 = arith.constant 0 : index
    %262 = vector.load %arg4[%c14, %c0_294, %c0_295] : memref<25x16x48xbf16, #tpu.memory_space<vmem>>, vector<1x16x48xbf16>
    %263 = vector.shape_cast %262 : vector<1x16x48xbf16> to vector<16x48xbf16>
    %cst_296 = arith.constant dense<0.000000e+00> : vector<64x48xf32>
    %264 = tpu.matmul %261, %263, %cst_296 {dimension_numbers = #tpu.dot_dimension_numbers<[1], [0], [0], [1], [0, 0, 1, 1], [], []>} : vector<64x16xbf16>, vector<16x48xbf16>, vector<64x48xf32> -> vector<64x48xf32>
    %265 = arith.addf %260, %264 : vector<64x48xf32>
    %c0_297 = arith.constant 0 : index
    %c0_298 = arith.constant 0 : index
    %266 = vector.load %arg13[%c0_297, %c0_298] : memref<64x48xf32, #tpu.memory_space<vmem>>, vector<64x48xf32>
    tpu.vector_store %arg13[%c0_297, %c0_298], %265 {strides = array<i32>} : memref<64x48xf32, #tpu.memory_space<vmem>>, vector<64x48xf32>,
    %c3_299 = arith.constant 3 : index
    %c0_300 = arith.constant 0 : index
    %c0_301 = arith.constant 0 : index
    %267 = vector.load %arg10[%c3_299, %c0_300, %c0_301] : memref<12x12x16xf32, #tpu.memory_space<vmem>>, vector<8x8x16xf32>
    %268 = vector.shape_cast %267 : vector<8x8x16xf32> to vector<64x16xf32>
    %c0_302 = arith.constant 0 : index
    %c0_303 = arith.constant 0 : index
    %269 = vector.load %arg13[%c0_302, %c0_303] : memref<64x48xf32, #tpu.memory_space<vmem>>, vector<64x48xf32>
    %270 = arith.truncf %268 : vector<64x16xf32> to vector<64x16xbf16>
    %c15 = arith.constant 15 : index
    %c0_304 = arith.constant 0 : index
    %c0_305 = arith.constant 0 : index
    %271 = vector.load %arg4[%c15, %c0_304, %c0_305] : memref<25x16x48xbf16, #tpu.memory_space<vmem>>, vector<1x16x48xbf16>
    %272 = vector.shape_cast %271 : vector<1x16x48xbf16> to vector<16x48xbf16>
    %cst_306 = arith.constant dense<0.000000e+00> : vector<64x48xf32>
    %273 = tpu.matmul %270, %272, %cst_306 {dimension_numbers = #tpu.dot_dimension_numbers<[1], [0], [0], [1], [0, 0, 1, 1], [], []>} : vector<64x16xbf16>, vector<16x48xbf16>, vector<64x48xf32> -> vector<64x48xf32>
    %274 = arith.addf %269, %273 : vector<64x48xf32>
    %c0_307 = arith.constant 0 : index
    %c0_308 = arith.constant 0 : index
    %275 = vector.load %arg13[%c0_307, %c0_308] : memref<64x48xf32, #tpu.memory_space<vmem>>, vector<64x48xf32>
    tpu.vector_store %arg13[%c0_307, %c0_308], %274 {strides = array<i32>} : memref<64x48xf32, #tpu.memory_space<vmem>>, vector<64x48xf32>,
    %c3_309 = arith.constant 3 : index
    %c1_310 = arith.constant 1 : index
    %c0_311 = arith.constant 0 : index
    %276 = vector.load %arg10[%c3_309, %c1_310, %c0_311] : memref<12x12x16xf32, #tpu.memory_space<vmem>>, vector<8x8x16xf32>
    %277 = vector.shape_cast %276 : vector<8x8x16xf32> to vector<64x16xf32>
    %c0_312 = arith.constant 0 : index
    %c0_313 = arith.constant 0 : index
    %278 = vector.load %arg13[%c0_312, %c0_313] : memref<64x48xf32, #tpu.memory_space<vmem>>, vector<64x48xf32>
    %279 = arith.truncf %277 : vector<64x16xf32> to vector<64x16xbf16>
    %c16 = arith.constant 16 : index
    %c0_314 = arith.constant 0 : index
    %c0_315 = arith.constant 0 : index
    %280 = vector.load %arg4[%c16, %c0_314, %c0_315] : memref<25x16x48xbf16, #tpu.memory_space<vmem>>, vector<1x16x48xbf16>
    %281 = vector.shape_cast %280 : vector<1x16x48xbf16> to vector<16x48xbf16>
    %cst_316 = arith.constant dense<0.000000e+00> : vector<64x48xf32>
    %282 = tpu.matmul %279, %281, %cst_316 {dimension_numbers = #tpu.dot_dimension_numbers<[1], [0], [0], [1], [0, 0, 1, 1], [], []>} : vector<64x16xbf16>, vector<16x48xbf16>, vector<64x48xf32> -> vector<64x48xf32>
    %283 = arith.addf %278, %282 : vector<64x48xf32>
    %c0_317 = arith.constant 0 : index
    %c0_318 = arith.constant 0 : index
    %284 = vector.load %arg13[%c0_317, %c0_318] : memref<64x48xf32, #tpu.memory_space<vmem>>, vector<64x48xf32>
    tpu.vector_store %arg13[%c0_317, %c0_318], %283 {strides = array<i32>} : memref<64x48xf32, #tpu.memory_space<vmem>>, vector<64x48xf32>,
    %c3_319 = arith.constant 3 : index
    %c2_320 = arith.constant 2 : index
    %c0_321 = arith.constant 0 : index
    %285 = vector.load %arg10[%c3_319, %c2_320, %c0_321] : memref<12x12x16xf32, #tpu.memory_space<vmem>>, vector<8x8x16xf32>
    %286 = vector.shape_cast %285 : vector<8x8x16xf32> to vector<64x16xf32>
    %c0_322 = arith.constant 0 : index
    %c0_323 = arith.constant 0 : index
    %287 = vector.load %arg13[%c0_322, %c0_323] : memref<64x48xf32, #tpu.memory_space<vmem>>, vector<64x48xf32>
    %288 = arith.truncf %286 : vector<64x16xf32> to vector<64x16xbf16>
    %c17 = arith.constant 17 : index
    %c0_324 = arith.constant 0 : index
    %c0_325 = arith.constant 0 : index
    %289 = vector.load %arg4[%c17, %c0_324, %c0_325] : memref<25x16x48xbf16, #tpu.memory_space<vmem>>, vector<1x16x48xbf16>
    %290 = vector.shape_cast %289 : vector<1x16x48xbf16> to vector<16x48xbf16>
    %cst_326 = arith.constant dense<0.000000e+00> : vector<64x48xf32>
    %291 = tpu.matmul %288, %290, %cst_326 {dimension_numbers = #tpu.dot_dimension_numbers<[1], [0], [0], [1], [0, 0, 1, 1], [], []>} : vector<64x16xbf16>, vector<16x48xbf16>, vector<64x48xf32> -> vector<64x48xf32>
    %292 = arith.addf %287, %291 : vector<64x48xf32>
    %c0_327 = arith.constant 0 : index
    %c0_328 = arith.constant 0 : index
    %293 = vector.load %arg13[%c0_327, %c0_328] : memref<64x48xf32, #tpu.memory_space<vmem>>, vector<64x48xf32>
    tpu.vector_store %arg13[%c0_327, %c0_328], %292 {strides = array<i32>} : memref<64x48xf32, #tpu.memory_space<vmem>>, vector<64x48xf32>,
    %c3_329 = arith.constant 3 : index
    %c3_330 = arith.constant 3 : index
    %c0_331 = arith.constant 0 : index
    %294 = vector.load %arg10[%c3_329, %c3_330, %c0_331] : memref<12x12x16xf32, #tpu.memory_space<vmem>>, vector<8x8x16xf32>
    %295 = vector.shape_cast %294 : vector<8x8x16xf32> to vector<64x16xf32>
    %c0_332 = arith.constant 0 : index
    %c0_333 = arith.constant 0 : index
    %296 = vector.load %arg13[%c0_332, %c0_333] : memref<64x48xf32, #tpu.memory_space<vmem>>, vector<64x48xf32>
    %297 = arith.truncf %295 : vector<64x16xf32> to vector<64x16xbf16>
    %c18 = arith.constant 18 : index
    %c0_334 = arith.constant 0 : index
    %c0_335 = arith.constant 0 : index
    %298 = vector.load %arg4[%c18, %c0_334, %c0_335] : memref<25x16x48xbf16, #tpu.memory_space<vmem>>, vector<1x16x48xbf16>
    %299 = vector.shape_cast %298 : vector<1x16x48xbf16> to vector<16x48xbf16>
    %cst_336 = arith.constant dense<0.000000e+00> : vector<64x48xf32>
    %300 = tpu.matmul %297, %299, %cst_336 {dimension_numbers = #tpu.dot_dimension_numbers<[1], [0], [0], [1], [0, 0, 1, 1], [], []>} : vector<64x16xbf16>, vector<16x48xbf16>, vector<64x48xf32> -> vector<64x48xf32>
    %301 = arith.addf %296, %300 : vector<64x48xf32>
    %c0_337 = arith.constant 0 : index
    %c0_338 = arith.constant 0 : index
    %302 = vector.load %arg13[%c0_337, %c0_338] : memref<64x48xf32, #tpu.memory_space<vmem>>, vector<64x48xf32>
    tpu.vector_store %arg13[%c0_337, %c0_338], %301 {strides = array<i32>} : memref<64x48xf32, #tpu.memory_space<vmem>>, vector<64x48xf32>,
    %c3_339 = arith.constant 3 : index
    %c4_340 = arith.constant 4 : index
    %c0_341 = arith.constant 0 : index
    %303 = vector.load %arg10[%c3_339, %c4_340, %c0_341] : memref<12x12x16xf32, #tpu.memory_space<vmem>>, vector<8x8x16xf32>
    %304 = vector.shape_cast %303 : vector<8x8x16xf32> to vector<64x16xf32>
    %c0_342 = arith.constant 0 : index
    %c0_343 = arith.constant 0 : index
    %305 = vector.load %arg13[%c0_342, %c0_343] : memref<64x48xf32, #tpu.memory_space<vmem>>, vector<64x48xf32>
    %306 = arith.truncf %304 : vector<64x16xf32> to vector<64x16xbf16>
    %c19 = arith.constant 19 : index
    %c0_344 = arith.constant 0 : index
    %c0_345 = arith.constant 0 : index
    %307 = vector.load %arg4[%c19, %c0_344, %c0_345] : memref<25x16x48xbf16, #tpu.memory_space<vmem>>, vector<1x16x48xbf16>
    %308 = vector.shape_cast %307 : vector<1x16x48xbf16> to vector<16x48xbf16>
    %cst_346 = arith.constant dense<0.000000e+00> : vector<64x48xf32>
    %309 = tpu.matmul %306, %308, %cst_346 {dimension_numbers = #tpu.dot_dimension_numbers<[1], [0], [0], [1], [0, 0, 1, 1], [], []>} : vector<64x16xbf16>, vector<16x48xbf16>, vector<64x48xf32> -> vector<64x48xf32>
    %310 = arith.addf %305, %309 : vector<64x48xf32>
    %c0_347 = arith.constant 0 : index
    %c0_348 = arith.constant 0 : index
    %311 = vector.load %arg13[%c0_347, %c0_348] : memref<64x48xf32, #tpu.memory_space<vmem>>, vector<64x48xf32>
    tpu.vector_store %arg13[%c0_347, %c0_348], %310 {strides = array<i32>} : memref<64x48xf32, #tpu.memory_space<vmem>>, vector<64x48xf32>,
    %c4_349 = arith.constant 4 : index
    %c0_350 = arith.constant 0 : index
    %c0_351 = arith.constant 0 : index
    %312 = vector.load %arg10[%c4_349, %c0_350, %c0_351] : memref<12x12x16xf32, #tpu.memory_space<vmem>>, vector<8x8x16xf32>
    %313 = vector.shape_cast %312 : vector<8x8x16xf32> to vector<64x16xf32>
    %c0_352 = arith.constant 0 : index
    %c0_353 = arith.constant 0 : index
    %314 = vector.load %arg13[%c0_352, %c0_353] : memref<64x48xf32, #tpu.memory_space<vmem>>, vector<64x48xf32>
    %315 = arith.truncf %313 : vector<64x16xf32> to vector<64x16xbf16>
    %c20 = arith.constant 20 : index
    %c0_354 = arith.constant 0 : index
    %c0_355 = arith.constant 0 : index
    %316 = vector.load %arg4[%c20, %c0_354, %c0_355] : memref<25x16x48xbf16, #tpu.memory_space<vmem>>, vector<1x16x48xbf16>
    %317 = vector.shape_cast %316 : vector<1x16x48xbf16> to vector<16x48xbf16>
    %cst_356 = arith.constant dense<0.000000e+00> : vector<64x48xf32>
    %318 = tpu.matmul %315, %317, %cst_356 {dimension_numbers = #tpu.dot_dimension_numbers<[1], [0], [0], [1], [0, 0, 1, 1], [], []>} : vector<64x16xbf16>, vector<16x48xbf16>, vector<64x48xf32> -> vector<64x48xf32>
    %319 = arith.addf %314, %318 : vector<64x48xf32>
    %c0_357 = arith.constant 0 : index
    %c0_358 = arith.constant 0 : index
    %320 = vector.load %arg13[%c0_357, %c0_358] : memref<64x48xf32, #tpu.memory_space<vmem>>, vector<64x48xf32>
    tpu.vector_store %arg13[%c0_357, %c0_358], %319 {strides = array<i32>} : memref<64x48xf32, #tpu.memory_space<vmem>>, vector<64x48xf32>,
    %c4_359 = arith.constant 4 : index
    %c1_360 = arith.constant 1 : index
    %c0_361 = arith.constant 0 : index
    %321 = vector.load %arg10[%c4_359, %c1_360, %c0_361] : memref<12x12x16xf32, #tpu.memory_space<vmem>>, vector<8x8x16xf32>
    %322 = vector.shape_cast %321 : vector<8x8x16xf32> to vector<64x16xf32>
    %c0_362 = arith.constant 0 : index
    %c0_363 = arith.constant 0 : index
    %323 = vector.load %arg13[%c0_362, %c0_363] : memref<64x48xf32, #tpu.memory_space<vmem>>, vector<64x48xf32>
    %324 = arith.truncf %322 : vector<64x16xf32> to vector<64x16xbf16>
    %c21 = arith.constant 21 : index
    %c0_364 = arith.constant 0 : index
    %c0_365 = arith.constant 0 : index
    %325 = vector.load %arg4[%c21, %c0_364, %c0_365] : memref<25x16x48xbf16, #tpu.memory_space<vmem>>, vector<1x16x48xbf16>
    %326 = vector.shape_cast %325 : vector<1x16x48xbf16> to vector<16x48xbf16>
    %cst_366 = arith.constant dense<0.000000e+00> : vector<64x48xf32>
    %327 = tpu.matmul %324, %326, %cst_366 {dimension_numbers = #tpu.dot_dimension_numbers<[1], [0], [0], [1], [0, 0, 1, 1], [], []>} : vector<64x16xbf16>, vector<16x48xbf16>, vector<64x48xf32> -> vector<64x48xf32>
    %328 = arith.addf %323, %327 : vector<64x48xf32>
    %c0_367 = arith.constant 0 : index
    %c0_368 = arith.constant 0 : index
    %329 = vector.load %arg13[%c0_367, %c0_368] : memref<64x48xf32, #tpu.memory_space<vmem>>, vector<64x48xf32>
    tpu.vector_store %arg13[%c0_367, %c0_368], %328 {strides = array<i32>} : memref<64x48xf32, #tpu.memory_space<vmem>>, vector<64x48xf32>,
    %c4_369 = arith.constant 4 : index
    %c2_370 = arith.constant 2 : index
    %c0_371 = arith.constant 0 : index
    %330 = vector.load %arg10[%c4_369, %c2_370, %c0_371] : memref<12x12x16xf32, #tpu.memory_space<vmem>>, vector<8x8x16xf32>
    %331 = vector.shape_cast %330 : vector<8x8x16xf32> to vector<64x16xf32>
    %c0_372 = arith.constant 0 : index
    %c0_373 = arith.constant 0 : index
    %332 = vector.load %arg13[%c0_372, %c0_373] : memref<64x48xf32, #tpu.memory_space<vmem>>, vector<64x48xf32>
    %333 = arith.truncf %331 : vector<64x16xf32> to vector<64x16xbf16>
    %c22 = arith.constant 22 : index
    %c0_374 = arith.constant 0 : index
    %c0_375 = arith.constant 0 : index
    %334 = vector.load %arg4[%c22, %c0_374, %c0_375] : memref<25x16x48xbf16, #tpu.memory_space<vmem>>, vector<1x16x48xbf16>
    %335 = vector.shape_cast %334 : vector<1x16x48xbf16> to vector<16x48xbf16>
    %cst_376 = arith.constant dense<0.000000e+00> : vector<64x48xf32>
    %336 = tpu.matmul %333, %335, %cst_376 {dimension_numbers = #tpu.dot_dimension_numbers<[1], [0], [0], [1], [0, 0, 1, 1], [], []>} : vector<64x16xbf16>, vector<16x48xbf16>, vector<64x48xf32> -> vector<64x48xf32>
    %337 = arith.addf %332, %336 : vector<64x48xf32>
    %c0_377 = arith.constant 0 : index
    %c0_378 = arith.constant 0 : index
    %338 = vector.load %arg13[%c0_377, %c0_378] : memref<64x48xf32, #tpu.memory_space<vmem>>, vector<64x48xf32>
    tpu.vector_store %arg13[%c0_377, %c0_378], %337 {strides = array<i32>} : memref<64x48xf32, #tpu.memory_space<vmem>>, vector<64x48xf32>,
    %c4_379 = arith.constant 4 : index
    %c3_380 = arith.constant 3 : index
    %c0_381 = arith.constant 0 : index
    %339 = vector.load %arg10[%c4_379, %c3_380, %c0_381] : memref<12x12x16xf32, #tpu.memory_space<vmem>>, vector<8x8x16xf32>
    %340 = vector.shape_cast %339 : vector<8x8x16xf32> to vector<64x16xf32>
    %c0_382 = arith.constant 0 : index
    %c0_383 = arith.constant 0 : index
    %341 = vector.load %arg13[%c0_382, %c0_383] : memref<64x48xf32, #tpu.memory_space<vmem>>, vector<64x48xf32>
    %342 = arith.truncf %340 : vector<64x16xf32> to vector<64x16xbf16>
    %c23 = arith.constant 23 : index
    %c0_384 = arith.constant 0 : index
    %c0_385 = arith.constant 0 : index
    %343 = vector.load %arg4[%c23, %c0_384, %c0_385] : memref<25x16x48xbf16, #tpu.memory_space<vmem>>, vector<1x16x48xbf16>
    %344 = vector.shape_cast %343 : vector<1x16x48xbf16> to vector<16x48xbf16>
    %cst_386 = arith.constant dense<0.000000e+00> : vector<64x48xf32>
    %345 = tpu.matmul %342, %344, %cst_386 {dimension_numbers = #tpu.dot_dimension_numbers<[1], [0], [0], [1], [0, 0, 1, 1], [], []>} : vector<64x16xbf16>, vector<16x48xbf16>, vector<64x48xf32> -> vector<64x48xf32>
    %346 = arith.addf %341, %345 : vector<64x48xf32>
    %c0_387 = arith.constant 0 : index
    %c0_388 = arith.constant 0 : index
    %347 = vector.load %arg13[%c0_387, %c0_388] : memref<64x48xf32, #tpu.memory_space<vmem>>, vector<64x48xf32>
    tpu.vector_store %arg13[%c0_387, %c0_388], %346 {strides = array<i32>} : memref<64x48xf32, #tpu.memory_space<vmem>>, vector<64x48xf32>,
    %c4_389 = arith.constant 4 : index
    %c4_390 = arith.constant 4 : index
    %c0_391 = arith.constant 0 : index
    %348 = vector.load %arg10[%c4_389, %c4_390, %c0_391] : memref<12x12x16xf32, #tpu.memory_space<vmem>>, vector<8x8x16xf32>
    %349 = vector.shape_cast %348 : vector<8x8x16xf32> to vector<64x16xf32>
    %c0_392 = arith.constant 0 : index
    %c0_393 = arith.constant 0 : index
    %350 = vector.load %arg13[%c0_392, %c0_393] : memref<64x48xf32, #tpu.memory_space<vmem>>, vector<64x48xf32>
    %351 = arith.truncf %349 : vector<64x16xf32> to vector<64x16xbf16>
    %c24 = arith.constant 24 : index
    %c0_394 = arith.constant 0 : index
    %c0_395 = arith.constant 0 : index
    %352 = vector.load %arg4[%c24, %c0_394, %c0_395] : memref<25x16x48xbf16, #tpu.memory_space<vmem>>, vector<1x16x48xbf16>
    %353 = vector.shape_cast %352 : vector<1x16x48xbf16> to vector<16x48xbf16>
    %cst_396 = arith.constant dense<0.000000e+00> : vector<64x48xf32>
    %354 = tpu.matmul %351, %353, %cst_396 {dimension_numbers = #tpu.dot_dimension_numbers<[1], [0], [0], [1], [0, 0, 1, 1], [], []>} : vector<64x16xbf16>, vector<16x48xbf16>, vector<64x48xf32> -> vector<64x48xf32>
    %355 = arith.addf %350, %354 : vector<64x48xf32>
    %c0_397 = arith.constant 0 : index
    %c0_398 = arith.constant 0 : index
    %356 = vector.load %arg13[%c0_397, %c0_398] : memref<64x48xf32, #tpu.memory_space<vmem>>, vector<64x48xf32>
    tpu.vector_store %arg13[%c0_397, %c0_398], %355 {strides = array<i32>} : memref<64x48xf32, #tpu.memory_space<vmem>>, vector<64x48xf32>,
    %c0_399 = arith.constant 0 : index
    %c0_400 = arith.constant 0 : index
    %357 = vector.load %arg13[%c0_399, %c0_400] : memref<64x48xf32, #tpu.memory_space<vmem>>, vector<64x48xf32>
    %c0_401 = arith.constant 0 : index
    %c0_402 = arith.constant 0 : index
    %358 = vector.load %arg7[%c0_401, %c0_402] : memref<1x48xf32, #tpu.memory_space<vmem>>, vector<1x48xf32>
    %359 = vector.broadcast %358 : vector<1x48xf32> to vector<64x48xf32>
    %360 = arith.addf %357, %359 : vector<64x48xf32>
    %cst_403 = arith.constant 0.000000e+00 : f32
    %361 = vector.broadcast %cst_403 : f32 to vector<64x48xf32>
    %362 = arith.maximumf %360, %361 : vector<64x48xf32>
    %c0_404 = arith.constant 0 : index
    %c0_405 = arith.constant 0 : index
    %c400 = arith.constant 400 : index
    %363 = vector.load %arg8[%c0_404, %c0_405, %c400] : memref<1x64x512xf32, #tpu.memory_space<vmem>>, vector<1x64x48xf32>
    %364 = vector.shape_cast %363 : vector<1x64x48xf32> to vector<64x48xf32>
    %365 = vector.shape_cast %362 : vector<64x48xf32> to vector<1x64x48xf32>
    tpu.vector_store %arg8[%c0_404, %c0_405, %c400], %365 {strides = array<i32>} : memref<1x64x512xf32, #tpu.memory_space<vmem>>, vector<1x64x48xf32>,
    %cst_406 = arith.constant 0.000000e+00 : f32
    %366 = vector.broadcast %cst_406 : f32 to vector<8x8x64xf32>
    %c0_407 = arith.constant 0 : index
    %c0_408 = arith.constant 0 : index
    %c0_409 = arith.constant 0 : index
    %367 = vector.load %arg11[%c0_407, %c0_408, %c0_409] : memref<10x10x64xf32, #tpu.memory_space<vmem>>, vector<8x8x64xf32>
    %368 = arith.addf %366, %367 : vector<8x8x64xf32>
    %c0_410 = arith.constant 0 : index
    %c1_411 = arith.constant 1 : index
    %c0_412 = arith.constant 0 : index
    %369 = vector.load %arg11[%c0_410, %c1_411, %c0_412] : memref<10x10x64xf32, #tpu.memory_space<vmem>>, vector<8x8x64xf32>
    %370 = arith.addf %368, %369 : vector<8x8x64xf32>
    %c0_413 = arith.constant 0 : index
    %c2_414 = arith.constant 2 : index
    %c0_415 = arith.constant 0 : index
    %371 = vector.load %arg11[%c0_413, %c2_414, %c0_415] : memref<10x10x64xf32, #tpu.memory_space<vmem>>, vector<8x8x64xf32>
    %372 = arith.addf %370, %371 : vector<8x8x64xf32>
    %c1_416 = arith.constant 1 : index
    %c0_417 = arith.constant 0 : index
    %c0_418 = arith.constant 0 : index
    %373 = vector.load %arg11[%c1_416, %c0_417, %c0_418] : memref<10x10x64xf32, #tpu.memory_space<vmem>>, vector<8x8x64xf32>
    %374 = arith.addf %372, %373 : vector<8x8x64xf32>
    %c1_419 = arith.constant 1 : index
    %c1_420 = arith.constant 1 : index
    %c0_421 = arith.constant 0 : index
    %375 = vector.load %arg11[%c1_419, %c1_420, %c0_421] : memref<10x10x64xf32, #tpu.memory_space<vmem>>, vector<8x8x64xf32>
    %376 = arith.addf %374, %375 : vector<8x8x64xf32>
    %c1_422 = arith.constant 1 : index
    %c2_423 = arith.constant 2 : index
    %c0_424 = arith.constant 0 : index
    %377 = vector.load %arg11[%c1_422, %c2_423, %c0_424] : memref<10x10x64xf32, #tpu.memory_space<vmem>>, vector<8x8x64xf32>
    %378 = arith.addf %376, %377 : vector<8x8x64xf32>
    %c2_425 = arith.constant 2 : index
    %c0_426 = arith.constant 0 : index
    %c0_427 = arith.constant 0 : index
    %379 = vector.load %arg11[%c2_425, %c0_426, %c0_427] : memref<10x10x64xf32, #tpu.memory_space<vmem>>, vector<8x8x64xf32>
    %380 = arith.addf %378, %379 : vector<8x8x64xf32>
    %c2_428 = arith.constant 2 : index
    %c1_429 = arith.constant 1 : index
    %c0_430 = arith.constant 0 : index
    %381 = vector.load %arg11[%c2_428, %c1_429, %c0_430] : memref<10x10x64xf32, #tpu.memory_space<vmem>>, vector<8x8x64xf32>
    %382 = arith.addf %380, %381 : vector<8x8x64xf32>
    %c2_431 = arith.constant 2 : index
    %c2_432 = arith.constant 2 : index
    %c0_433 = arith.constant 0 : index
    %383 = vector.load %arg11[%c2_431, %c2_432, %c0_433] : memref<10x10x64xf32, #tpu.memory_space<vmem>>, vector<8x8x64xf32>
    %384 = arith.addf %382, %383 : vector<8x8x64xf32>
    %cst_434 = arith.constant 0.111111112 : f32
    %385 = vector.broadcast %cst_434 : f32 to vector<8x8x64xf32>
    %386 = arith.mulf %384, %385 : vector<8x8x64xf32>
    %c0_435 = arith.constant 0 : index
    %c304 = arith.constant 304 : index
    %387 = vector.load %arg5[%c0_435, %c304] : memref<1x368xf32, #tpu.memory_space<vmem>>, vector<1x64xf32>
    %388 = vector.shape_cast %387 : vector<1x64xf32> to vector<1x1x64xf32>
    %389 = vector.broadcast %388 : vector<1x1x64xf32> to vector<8x8x64xf32>
    %390 = arith.addf %386, %389 : vector<8x8x64xf32>
    %cst_436 = arith.constant 0.000000e+00 : f32
    %391 = vector.broadcast %cst_436 : f32 to vector<8x8x64xf32>
    %392 = arith.maximumf %390, %391 : vector<8x8x64xf32>
    %393 = vector.shape_cast %392 : vector<8x8x64xf32> to vector<64x64xf32>
    %c0_437 = arith.constant 0 : index
    %c0_438 = arith.constant 0 : index
    %c448 = arith.constant 448 : index
    %394 = vector.load %arg8[%c0_437, %c0_438, %c448] : memref<1x64x512xf32, #tpu.memory_space<vmem>>, vector<1x64x64xf32>
    %395 = vector.shape_cast %394 : vector<1x64x64xf32> to vector<64x64xf32>
    %396 = vector.shape_cast %393 : vector<64x64xf32> to vector<1x64x64xf32>
    tpu.vector_store %arg8[%c0_437, %c0_438, %c448], %396 {strides = array<i32>} : memref<1x64x512xf32, #tpu.memory_space<vmem>>, vector<1x64x64xf32>,
    return
  }
  func.func @transform_0(%arg0: i32) -> (i32, i32, i32) {
    %c0_i32 = arith.constant 0 : i32
    %c0_i32_0 = arith.constant 0 : i32
    %c0_i32_1 = arith.constant 0 : i32
    return %arg0, %c0_i32, %c0_i32_0 : i32, i32, i32
  }
  func.func @transform_1(%arg0: i32) -> (i32, i32) {
    %c0_i32 = arith.constant 0 : i32
    %c0_i32_0 = arith.constant 0 : i32
    %c0_i32_1 = arith.constant 0 : i32
    return %c0_i32, %c0_i32_0 : i32, i32
  }
  func.func @transform_2(%arg0: i32) -> (i32, i32, i32) {
    %c0_i32 = arith.constant 0 : i32
    %c0_i32_0 = arith.constant 0 : i32
    %c0_i32_1 = arith.constant 0 : i32
    %c0_i32_2 = arith.constant 0 : i32
    return %c0_i32, %c0_i32_0, %c0_i32_1 : i32, i32, i32
  }
  func.func @transform_3(%arg0: i32) -> (i32, i32, i32) {
    %c0_i32 = arith.constant 0 : i32
    %c0_i32_0 = arith.constant 0 : i32
    %c0_i32_1 = arith.constant 0 : i32
    %c0_i32_2 = arith.constant 0 : i32
    return %c0_i32, %c0_i32_0, %c0_i32_1 : i32, i32, i32
  }
  func.func @transform_4(%arg0: i32) -> (i32, i32) {
    %c0_i32 = arith.constant 0 : i32
    %c0_i32_0 = arith.constant 0 : i32
    %c0_i32_1 = arith.constant 0 : i32
    return %c0_i32, %c0_i32_0 : i32, i32
  }
  func.func @transform_5(%arg0: i32) -> (i32, i32) {
    %c0_i32 = arith.constant 0 : i32
    %c0_i32_0 = arith.constant 0 : i32
    %c0_i32_1 = arith.constant 0 : i32
    return %c0_i32, %c0_i32_0 : i32, i32
  }
  func.func @transform_6(%arg0: i32) -> (i32, i32) {
    %c0_i32 = arith.constant 0 : i32
    %c0_i32_0 = arith.constant 0 : i32
    %c0_i32_1 = arith.constant 0 : i32
    return %c0_i32, %c0_i32_0 : i32, i32
  }
  func.func @transform_7(%arg0: i32) -> (i32, i32, i32) {
    %c0_i32 = arith.constant 0 : i32
    %c0_i32_0 = arith.constant 0 : i32
    %c0_i32_1 = arith.constant 0 : i32
    return %arg0, %c0_i32, %c0_i32_0 : i32, i32, i32
  }
}

</mosaic_0001>

<bundles_post_ra>
// kernel: inception4a_forward.1
= control target key start
LH: loop header
LB: loop body
LE: loop exit
PB: predicated region body
PF: predicated region fallthrough
CT: control target
= control target key end

     0   :  { %12 = vsyncpa [#allocation8], 0  ;;  %s11221_s0 = inlined_call_operand.vmem [shape: bf16[2,64,480], index: 0, kind: input, shape index: {}]   ;;  %s11222_s1 = inlined_call_operand.vmem [shape: bf16[480,368], index: 1, kind: input, shape index: {}]   ;;  %s11223_s2 = inlined_call_operand.vmem [shape: bf16[9,96,208], index: 2, kind: input, shape index: {}]   ;;  %s11224_s3 = inlined_call_operand.vmem [shape: bf16[25,16,48], index: 3, kind: input, shape index: {}]   ;;  %s11225_s4 = inlined_call_operand.vmem [shape: f32[1,368], index: 4, kind: input, shape index: {}]   ;;  %s11226_s5 = inlined_call_operand.vmem [shape: f32[1,208], index: 5, kind: input, shape index: {}]   ;;  %s11227_s6 = inlined_call_operand.vmem [shape: f32[1,48], index: 6, kind: input, shape index: {}]   ;;  %s11228_s7 = inlined_call_operand.hbm [shape: f32[2,64,512], index: 7, kind: output, shape index: {}]  }
   0x1   :  { %14 = vsyncpa [#allocation8 + $0x1], 0  ;;  %s7931_s24 = smov 0   ;;  %s7933_s25 = smov 0  }
   0x2   :  { %s7935_s26 = smov 0   ;;  %s7937_s27 = smov 0  }
   0x3 LB: > { %s7952_s28 = sadd.s32 4294967295, %s7882_s27   ;;  %s6193_s29 = sadd.s32 4294967294, %s7882_s27   ;;  %s7882_s27 = sphi %s7937_s27, %s11278_s27   ;;  %s7878_s26 = sphi %s7935_s26, %s11277_s26   ;;  %s7874_s25 = sphi %s7933_s25, %s11276_s25   ;;  %s7870_s24 = sphi %s7931_s24, %s11275_s24  }
   0x4   : > { %s7956_s30 = sadd.s32 1, %s7882_s27   ;;  %s179_s8 = sadd.s32 1, %s7878_s26 }
   0x5   : > { %s176_s9 = ssub.s32 %s7882_s27, %s7956_s30  ;;  %p189_p0 = scmp.ne.s32.totalorder %s7878_s26, %s7874_s25 }
   0x6   : > { %p177_p1 = scmp.eq.s32.totalorder %s176_s9, 0  ;;  %p190_p2 = scmp.eq.s32.totalorder %s7952_s28, 1 }
   0x7   : > { %p195_p3 = scmp.ne.s32.totalorder %s7874_s25, %s7870_s24  ;;  %p196_p4 = scmp.eq.s32.totalorder %s6193_s29, 1 }
   0x8   : > { %s7967_s10 = scalar_select %p177_p1, %s7878_s26, %s179_s8  }
   0x9   : > { %p7969_p5 = por %p190_p2, %p189_p0  ;;  %p7973_p6 = por %p196_p4, %p195_p3 }
   0xa   : > { %p6196_p7 = scmp.ge.s32.totalorder %s7882_s27, 1  ;;  %p240_p8 = scmp.lt.s32.totalorder %s7882_s27, 3 }
   0xc   : > { %p241_p9 = pnand %p6196_p7, %p240_p8 }
   0xe   : > { %244 = sbr.rel (%p241_p9) target bundleno = 1459 (0x5b3), region = 48 }
  0x13   : > { %v6350_v0 = vld [vmem:[%s11222_s1 + $0xa8] sm:$0xf]  ;;  %v7528_v1 = vld [vmem:[%s11222_s1 + $0xb0] sm:$0xf0]  ;;  %v6338_v5 = vld [vmem:[%s11222_s1 + $0x90] sm:$0xf] }
  0x14   : > { %v6446_v2 = vld [vmem:[%s11222_s1 + $0x168] sm:$0xf]  ;;  %v6351_v3 = vor.u32 %v7528_v1, %v6350_v0  ;;  %v7552_v4 = vld [vmem:[%s11222_s1 + $0x170] sm:$0xf0]  ;;  %v7525_v6 = vld [vmem:[%s11222_s1 + $0x98] sm:$0xf0] }
  0x15   : > { %v6447_v7 = vor.u32 %v7552_v4, %v6446_v2  ;;  %v6434_v8 = vld [vmem:[%s11222_s1 + $0x150] sm:$0xf]  ;;  %v7549_v9 = vld [vmem:[%s11222_s1 + $0x158] sm:$0xf0]  ;;  %v6339_v10 = vor.u32 %v7525_v6, %v6338_v5  ;;  %v6326_v12 = vld [vmem:[%s11222_s1 + $0x78] sm:$0xf] }
  0x16   : > { %7730 = vmatpush.bf16.msra.mxu2 %v6351_v3  ;;  %983 = vmatpush.bf16.msra.mxu0 %v6351_v3  ;;  %v6435_v11 = vor.u32 %v7549_v9, %v6434_v8  ;;  %v7522_v13 = vld [vmem:[%s11222_s1 + $0x80] sm:$0xf0]  ;;  %v6422_v14 = vld [vmem:[%s11222_s1 + $0x138] sm:$0xf]  ;;  %v6314_v18 = vld [vmem:[%s11222_s1 + $0x60] sm:$0xf] }
  0x17   : > { %1012 = vmatpush.bf16.msra.mxu1 %v6447_v7  ;;  %v7546_v15 = vld [vmem:[%s11222_s1 + $0x140] sm:$0xf0]  ;;  %v6327_v16 = vor.u32 %v7522_v13, %v6326_v12  ;;  %v7519_v19 = vld [vmem:[%s11222_s1 + $0x68] sm:$0xf0]  ;;  %v6410_v20 = vld [vmem:[%s11222_s1 + $0x120] sm:$0xf] }
  0x18   : > { %v6423_v17 = vor.u32 %v7546_v15, %v6422_v14  ;;  %v7543_v21 = vld [vmem:[%s11222_s1 + $0x128] sm:$0xf0]  ;;  %v6614_v22 = vld [vmem:[%s11222_s1 + $0x2b8] sm:$0xf]  ;;  %v6315_v23 = vor.u32 %v7519_v19, %v6314_v18  ;;  %v6302_v24 = vld [vmem:[%s11222_s1 + $0x48] sm:$0xf] }
  0x19   : > { %v7516_v25 = vld [vmem:[%s11222_s1 + $0x50] sm:$0xf0]  ;;  %v7594_v26 = vld [vmem:[%s11222_s1 + $0x2c0] sm:$0xf0]  ;;  %v6411_v27 = vor.u32 %v7543_v21, %v6410_v20  ;;  %p272_p10 = scmp.lt.s32.totalorder %s7952_s28, 1  ;;  %vm970_vm0 = vcmask 785408  }
  0x1a   : > { %7731 = vmatpush.bf16.msra.mxu2 %v6339_v10  ;;  %984 = vmatpush.bf16.msra.mxu0 %v6339_v10  ;;  %v6615_v28 = vor.u32 %v7594_v26, %v6614_v22  ;;  %v6602_v29 = vld [vmem:[%s11222_s1 + $0x2a0] sm:$0xf]  ;;  %v7591_v30 = vld [vmem:[%s11222_s1 + $0x2a8] sm:$0xf0]  ;;  %v6398_v31 = vld [vmem:[%s11222_s1 + $0x108] sm:$0xf]  ;;  %v6303_v34 = vor.u32 %v7516_v25, %v6302_v24 }
  0x1b   : > { %1013 = vmatpush.bf16.msra.mxu1 %v6435_v11  ;;  %v7540_v32 = vld [vmem:[%s11222_s1 + $0x110] sm:$0xf0]  ;;  %v6603_v33 = vor.u32 %v7591_v30, %v6602_v29  ;;  %v6590_v35 = vld [vmem:[%s11222_s1 + $0x288] sm:$0xf]  ;;  %v6290_v38 = vld [vmem:[%s11222_s1 + $0x30] sm:$0xf] }
  0x1c   : > { %1072 = vmatpush.bf16.msra.mxu3 %v6615_v28  ;;  %v7588_v36 = vld [vmem:[%s11222_s1 + $0x290] sm:$0xf0]  ;;  %v6399_v37 = vor.u32 %v7540_v32, %v6398_v31  ;;  %v7513_v39 = vld [vmem:[%s11222_s1 + $0x38] sm:$0xf0]  ;;  %s273_s13 = scalar_select %p272_p10, %s7952_s28, 1  ;;  %vm1370_vm1 = vcmask 523264  }
  0x1d   : > { %v6386_v40 = vld [vmem:[%s11222_s1 + $0xf0] sm:$0xf]  ;;  %v7537_v41 = vld [vmem:[%s11222_s1 + $0xf8] sm:$0xf0]  ;;  %v6591_v42 = vor.u32 %v7588_v36, %v6590_v35  ;;  %v6291_v43 = vor.u32 %v7513_v39, %v6290_v38  ;;  %v6278_v47 = vld [vmem:[%s11222_s1 + $0x18] sm:$0xf] }
  0x1e   : > { %7732 = vmatpush.bf16.msra.mxu2 %v6327_v16  ;;  %985 = vmatpush.bf16.msra.mxu0 %v6327_v16  ;;  %v6578_v44 = vld [vmem:[%s11222_s1 + $0x270] sm:$0xf]  ;;  %v7585_v45 = vld [vmem:[%s11222_s1 + $0x278] sm:$0xf0]  ;;  %v6387_v46 = vor.u32 %v7537_v41, %v6386_v40  ;;  %v7510_v48 = vld [vmem:[%s11222_s1 + $0x20] sm:$0xf0] }
  0x1f   : > { %1014 = vmatpush.bf16.msra.mxu1 %v6423_v17  ;;  %s7489_s9 = sshll.u32 %s273_s13, 7  ;;  %v6374_v49 = vld [vmem:[%s11222_s1 + $0xd8] sm:$0xf]  ;;  %v7534_v50 = vld [vmem:[%s11222_s1 + $0xe0] sm:$0xf0]  ;;  %v6579_v52 = vor.u32 %v7585_v45, %v6578_v44  ;;  %v6279_v53 = vor.u32 %v7510_v48, %v6278_v47  ;;  %s269_s18 = sand.u32 1, %s7874_s25  }
  0x20   : > { %1073 = vmatpush.bf16.msra.mxu3 %v6603_v33  ;;  %v6266_v51 = vld [vmem:[%s11222_s1] sm:$0xf]  ;;  %v7507_v54 = vld [vmem:[%s11222_s1 + $0x8] sm:$0xf0]  ;;  %s8100_s23 = scalar_lea.vmem %s11221_s0, %s7489_s9  ;;  %v6566_v55 = vld [vmem:[%s11222_s1 + $0x258] sm:$0xf]  ;;  %v6375_v57 = vor.u32 %v7534_v50, %v6374_v49 }
  0x21   : > { %v7582_v56 = vld [vmem:[%s11222_s1 + $0x260] sm:$0xf0]  ;;  %v6362_v58 = vld [vmem:[%s11222_s1 + $0xc0] sm:$0xf]  ;;  %v7531_v59 = vld [vmem:[%s11222_s1 + $0xc8] sm:$0xf0]  ;;  %v6267_v1 = vor.u32 %v7507_v54, %v6266_v51 }
  0x22   : > { %7733 = vmatpush.bf16.msra.mxu2 %v6315_v23  ;;  %986 = vmatpush.bf16.msra.mxu0 %v6315_v23  ;;  %v6542_v60 = vld [vmem:[%s11222_s1 + $0x228] sm:$0xf]  ;;  %v7576_v61 = vld [vmem:[%s11222_s1 + $0x230] sm:$0xf0]  ;;  %v6234_v62 = vld [vmem:[%s8100_s23 + $0x40] sm:$0xf]  ;;  %v6567_v0 = vor.u32 %v7582_v56, %v6566_v55  ;;  %v6363_v6 = vor.u32 %v7531_v59, %v6362_v58 }
  0x23   : > { %1015 = vmatpush.bf16.msra.mxu1 %v6411_v27  ;;  %v7500_v63 = vld [vmem:[%s8100_s23 + $0x4c] sm:$0xf0]  ;;  %v7490_v2 = vld [vmem:[%s8100_s23 + $0x4] sm:$0xf]  ;;  %v6554_v4 = vld [vmem:[%s11222_s1 + $0x240] sm:$0xf]  ;;  %v6543_v8 = vor.u32 %v7576_v61, %v6542_v60 }
  0x24   : > { %1074 = vmatpush.bf16.msra.mxu3 %v6591_v42  ;;  %v6530_v3 = vld [vmem:[%s11222_s1 + $0x210] sm:$0xf]  ;;  %v7579_v5 = vld [vmem:[%s11222_s1 + $0x248] sm:$0xf0]  ;;  %v6204_v7 = vld [vmem:[%s8100_s23 + $0x10] sm:$0xf0]  ;;  %v8144_v14 = vor.u32 %v7500_v63, %v6234_v62 }
  0x25   : > { %v6202_v9 = vld [vmem:[%s8100_s23] sm:$0xf]  ;;  %v7492_v10 = vld [vmem:[%s8100_s23 + $0xc] sm:$0xf0]  ;;  %v7573_v11 = vld [vmem:[%s11222_s1 + $0x218] sm:$0xf0]  ;;  %v6555_v15 = vor.u32 %v7579_v5, %v6554_v4  ;;  %v8148_v18 = vor.u32 %v7490_v2, %v6204_v7 }
  0x26   : > { %7734 = vmatpush.bf16.msra.mxu2 %v6303_v34  ;;  %987 = vmatpush.bf16.msra.mxu0 %v6303_v34  ;;  %v7527_v12 = vld [vmem:[%s11222_s1 + $0xac] sm:$0xf]  ;;  %v6352_v13 = vld [vmem:[%s11222_s1 + $0xb4] sm:$0xf0]  ;;  %v6212_v17 = vld [vmem:[%s8100_s23 + $0x18] sm:$0xf0]  ;;  %v8150_v19 = vor.u32 %v7492_v10, %v6202_v9  ;;  %v6531_v20 = vor.u32 %v7573_v11, %v6530_v3 }
  0x27   : > { %1016 = vmatpush.bf16.msra.mxu1 %v6399_v37  ;;  %v7491_v16 = vld [vmem:[%s8100_s23 + $0xc] sm:$0xf]  ;;  %v6355_v21 = vor.u32 %v7527_v12, %v6352_v13  ;;  %v6518_v22 = vld [vmem:[%s11222_s1 + $0x1f8] sm:$0xf]  ;;  %v7570_v23 = vld [vmem:[%s11222_s1 + $0x200] sm:$0xf0] }
  0x28   : > { %1075 = vmatpush.bf16.msra.mxu3 %v6579_v52  ;;  %v8158_v24 = vor.u32 %v7491_v16, %v6212_v17  ;;  %v6519_v25 = vor.u32 %v7570_v23, %v6518_v22  ;;  %v6506_v26 = vld [vmem:[%s11222_s1 + $0x1e0] sm:$0xf]  ;;  %v7524_v27 = vld [vmem:[%s11222_s1 + $0x94] sm:$0xf]  ;;  %v7567_v29 = vld [vmem:[%s11222_s1 + $0x1e8] sm:$0xf0] }
  0x29   : > { %v6340_v28 = vld [vmem:[%s11222_s1 + $0x9c] sm:$0xf0]  ;;  %v7575_v31 = vld [vmem:[%s11222_s1 + $0x22c] sm:$0xf]  ;;  %v6544_v32 = vld [vmem:[%s11222_s1 + $0x234] sm:$0xf0]  ;;  %v6507_v37 = vor.u32 %v7567_v29, %v6506_v26 }
  0x2a   : > { %7735 = vmatpush.bf16.msra.mxu2 %v6291_v43  ;;  %988 = vmatpush.bf16.msra.mxu0 %v6291_v43  ;;  %v6343_v30 = vor.u32 %v7524_v27, %v6340_v28  ;;  %v6547_v33 = vor.u32 %v7575_v31, %v6544_v32  ;;  %v7521_v34 = vld [vmem:[%s11222_s1 + $0x7c] sm:$0xf]  ;;  %v6328_v35 = vld [vmem:[%s11222_s1 + $0x84] sm:$0xf0]  ;;  %v7572_v36 = vld [vmem:[%s11222_s1 + $0x214] sm:$0xf] }
  0x2b   : > { %1017 = vmatpush.bf16.msra.mxu1 %v6387_v46  ;;  %v6331_v38 = vor.u32 %v7521_v34, %v6328_v35  ;;  %v6532_v39 = vld [vmem:[%s11222_s1 + $0x21c] sm:$0xf0]  ;;  %v6494_v40 = vld [vmem:[%s11222_s1 + $0x1c8] sm:$0xf]  ;;  %v7564_v41 = vld [vmem:[%s11222_s1 + $0x1d0] sm:$0xf0] }
  0x2c   : > { %1076 = vmatpush.bf16.msra.mxu3 %v6567_v0  ;;  %v6535_v42 = vor.u32 %v7572_v36, %v6532_v39  ;;  %v6250_v43 = vld [vmem:[%s8100_s23 + $0x60] sm:$0xf]  ;;  %v7504_v44 = vld [vmem:[%s8100_s23 + $0x6c] sm:$0xf0]  ;;  %v7494_v45 = vld [vmem:[%s8100_s23 + $0x24] sm:$0xf]  ;;  %v6495_v47 = vor.u32 %v7564_v41, %v6494_v40 }
  0x2d   : > { %v6220_v46 = vld [vmem:[%s8100_s23 + $0x30] sm:$0xf0]  ;;  %v6218_v48 = vld [vmem:[%s8100_s23 + $0x20] sm:$0xf]  ;;  %v7496_v49 = vld [vmem:[%s8100_s23 + $0x2c] sm:$0xf0]  ;;  %v8213_v52 = vor.u32 %v7504_v44, %v6250_v43 }
  0x2e   : > { %7736 = vmatpush.bf16.msra.mxu2 %v6279_v53  ;;  %989 = vmatpush.bf16.msra.mxu0 %v6279_v53  ;;  %v6482_v50 = vld [vmem:[%s11222_s1 + $0x1b0] sm:$0xf]  ;;  %v7561_v51 = vld [vmem:[%s11222_s1 + $0x1b8] sm:$0xf0]  ;;  %v7495_v53 = vld [vmem:[%s8100_s23 + $0x2c] sm:$0xf]  ;;  %v8217_v55 = vor.u32 %v7494_v45, %v6220_v46  ;;  %v8219_v56 = vor.u32 %v7496_v49, %v6218_v48 }
  0x2f   : > { %1018 = vmatpush.bf16.msra.mxu1 %v6375_v57  ;;  %v6228_v54 = vld [vmem:[%s8100_s23 + $0x38] sm:$0xf0]  ;;  %v6483_v57 = vor.u32 %v7561_v51, %v6482_v50  ;;  %v6470_v58 = vld [vmem:[%s11222_s1 + $0x198] sm:$0xf]  ;;  %v7558_v59 = vld [vmem:[%s11222_s1 + $0x1a0] sm:$0xf0] }
  0x30   : > { %1077 = vmatpush.bf16.msra.mxu3 %v6555_v15  ;;  %v8227_v60 = vor.u32 %v7495_v53, %v6228_v54  ;;  %v6458_v61 = vld [vmem:[%s11222_s1 + $0x180] sm:$0xf]  ;;  %v7555_v62 = vld [vmem:[%s11222_s1 + $0x188] sm:$0xf0]  ;;  %v7518_v63 = vld [vmem:[%s11222_s1 + $0x64] sm:$0xf]  ;;  %v6471_v0 = vor.u32 %v7558_v59, %v6470_v58 }
  0x31   : > { %v7569_v2 = vld [vmem:[%s11222_s1 + $0x1fc] sm:$0xf]  ;;  %v6520_v3 = vld [vmem:[%s11222_s1 + $0x204] sm:$0xf0]  ;;  %v6448_v9 = vld [vmem:[%s11222_s1 + $0x174] sm:$0xf0] }
  0x32   : > { %7737 = vmatpush.bf16.msra.mxu2 %v6267_v1  ;;  %990 = vmatpush.bf16.msra.mxu0 %v6267_v1  ;;  %v6316_v1 = vld [vmem:[%s11222_s1 + $0x6c] sm:$0xf0]  ;;  %v7593_v4 = vld [vmem:[%s11222_s1 + $0x2bc] sm:$0xf]  ;;  %v6616_v5 = vld [vmem:[%s11222_s1 + $0x2c4] sm:$0xf0]  ;;  %v6523_v7 = vor.u32 %v7569_v2, %v6520_v3 }
  0x33   : > { %1019 = vmatpush.bf16.msra.mxu1 %v6363_v6  ;;  %6624 = vmatmul.msk.bf16.vlgmr.msra.gmra.mxu3 %vm970_vm0, %v8158_v24  ;;  %v6319_v6 = vor.u32 %v7518_v63, %v6316_v1  ;;  %v7515_v10 = vld [vmem:[%s11222_s1 + $0x4c] sm:$0xf]  ;;  %v6304_v11 = vld [vmem:[%s11222_s1 + $0x54] sm:$0xf0]  ;;  %v7566_v15 = vld [vmem:[%s11222_s1 + $0x1e4] sm:$0xf]  ;;  %v6619_v23 = vor.u32 %v7593_v4, %v6616_v5 }
  0x34   : > { %1099 = vmatpush.bf16.msrb.mxu3 %v6355_v21  ;;  %v6307_v13 = vor.u32 %v7515_v10, %v6304_v11  ;;  %v6508_v16 = vld [vmem:[%s11222_s1 + $0x1ec] sm:$0xf0]  ;;  %v7548_v17 = vld [vmem:[%s11222_s1 + $0x154] sm:$0xf]  ;;  %v6436_v22 = vld [vmem:[%s11222_s1 + $0x15c] sm:$0xf0] }
  0x35   : > { %1001 = vmatmul.bf16.vlgmr.msra.gmra.mxu2 %v8144_v14  ;;  %991 = vmatmul.bf16.vlgmr.msra.gmra.mxu0 %v8150_v19  ;;  %v6511_v21 = vor.u32 %v7566_v15, %v6508_v16  ;;  %v7590_v26 = vld [vmem:[%s11222_s1 + $0x2a4] sm:$0xf]  ;;  %v6604_v27 = vld [vmem:[%s11222_s1 + $0x2ac] sm:$0xf0]  ;;  %v6210_v28 = vld [vmem:[%s8100_s23 + $0x8] sm:$0xf] }
  0x36   : > { %1041 = vmatpush.bf16.msrb.mxu2 %v6543_v8  ;;  %1020 = vmatmul.bf16.vlgmr.msra.gmra.mxu1 %v8148_v18  ;;  %v7551_v8 = vld [vmem:[%s11222_s1 + $0x16c] sm:$0xf]  ;;  %v7493_v29 = vld [vmem:[%s8100_s23 + $0x14] sm:$0xf0]  ;;  %v6236_v31 = vld [vmem:[%s8100_s23 + $0x50] sm:$0xf0]  ;;  %v6607_v32 = vor.u32 %v7590_v26, %v6604_v27 }
  0x37   : > { %1157 = vmatpush.bf16.msrb.mxu1 %v6547_v33  ;;  %v6451_v12 = vor.u32 %v7551_v8, %v6448_v9  ;;  %v7499_v33 = vld [vmem:[%s8100_s23 + $0x4c] sm:$0xf]  ;;  %v8293_v34 = vor.u32 %v7493_v29, %v6210_v28  ;;  %v6244_v35 = vld [vmem:[%s8100_s23 + $0x58] sm:$0xf0]  ;;  %v7584_v41 = vld [vmem:[%s11222_s1 + $0x274] sm:$0xf] }
  0x38   : > { %1100 = vmatpush.bf16.msrb.mxu3 %v6343_v30  ;;  %v7498_v30 = vld [vmem:[%s8100_s23 + $0x44] sm:$0xf]  ;;  %v7587_v36 = vld [vmem:[%s11222_s1 + $0x28c] sm:$0xf]  ;;  %v8304_v39 = vor.u32 %v7499_v33, %v6244_v35  ;;  %v7545_v43 = vld [vmem:[%s11222_s1 + $0x13c] sm:$0xf] }
  0x39   : > { %1128 = vmatpush.bf16.msrb.mxu0 %v6451_v12  ;;  %v6424_v44 = vld [vmem:[%s11222_s1 + $0x144] sm:$0xf0]  ;;  %v7512_v46 = vld [vmem:[%s11222_s1 + $0x34] sm:$0xf]  ;;  %v7563_v48 = vld [vmem:[%s11222_s1 + $0x1cc] sm:$0xf] }
  0x3a   : > { %1042 = vmatpush.bf16.msrb.mxu2 %v6531_v20  ;;  %v6459_v20 = vor.u32 %v7555_v62, %v6458_v61  ;;  %v6427_v45 = vor.u32 %v7545_v43, %v6424_v44  ;;  %v6496_v51 = vld [vmem:[%s11222_s1 + $0x1d4] sm:$0xf0]  ;;  %v7542_v53 = vld [vmem:[%s11222_s1 + $0x124] sm:$0xf]  ;;  %v6412_v54 = vld [vmem:[%s11222_s1 + $0x12c] sm:$0xf0] }
  0x3b   : > { %1158 = vmatpush.bf16.msrb.mxu1 %v6535_v42  ;;  %v6580_v42 = vld [vmem:[%s11222_s1 + $0x27c] sm:$0xf0]  ;;  %v6415_v58 = vor.u32 %v7542_v53, %v6412_v54  ;;  %v7539_v59 = vld [vmem:[%s11222_s1 + $0x10c] sm:$0xf]  ;;  %v6400_v61 = vld [vmem:[%s11222_s1 + $0x114] sm:$0xf0] }
  0x3c   : > { %1101 = vmatpush.bf16.msrb.mxu3 %v6331_v38  ;;  %v8302_v38 = vor.u32 %v7498_v30, %v6236_v31  ;;  %v6583_v49 = vor.u32 %v7584_v41, %v6580_v42  ;;  %v7581_v62 = vld [vmem:[%s11222_s1 + $0x25c] sm:$0xf]  ;;  %v6568_v63 = vld [vmem:[%s11222_s1 + $0x264] sm:$0xf0]  ;;  %v7560_v3 = vld [vmem:[%s11222_s1 + $0x1b4] sm:$0xf]  ;;  %v6403_v8 = vor.u32 %v7539_v59, %v6400_v61 }
  0x3d   : > { %v6280_v1 = vld [vmem:[%s11222_s1 + $0x24] sm:$0xf0]  ;;  %v6484_v4 = vld [vmem:[%s11222_s1 + $0x1bc] sm:$0xf0]  ;;  %v6571_v5 = vor.u32 %v7581_v62, %v6568_v63  ;;  %v7497_v9 = vld [vmem:[%s8100_s23 + $0x34] sm:$0xf0] }
  0x3e   : > { %1043 = vmatpush.bf16.msrb.mxu2 %v6519_v25  ;;  %v6439_v25 = vor.u32 %v7548_v17, %v6436_v22  ;;  %v7536_v10 = vld [vmem:[%s11222_s1 + $0xf4] sm:$0xf]  ;;  %v6388_v11 = vld [vmem:[%s11222_s1 + $0xfc] sm:$0xf0]  ;;  %v7502_v12 = vld [vmem:[%s8100_s23 + $0x64] sm:$0xf] }
  0x3f   : > { %1159 = vmatpush.bf16.msrb.mxu1 %v6523_v7  ;;  %v6226_v7 = vld [vmem:[%s8100_s23 + $0x28] sm:$0xf]  ;;  %v7503_v16 = vld [vmem:[%s8100_s23 + $0x6c] sm:$0xf]  ;;  %v6260_v17 = vld [vmem:[%s8100_s23 + $0x78] sm:$0xf0] }
  0x40   : > { %1102 = vmatpush.bf16.msrb.mxu3 %v6319_v6  ;;  %1129 = vmatpush.bf16.msrb.mxu0 %v6439_v25  ;;  %v6487_v6 = vor.u32 %v7560_v3, %v6484_v4  ;;  %v8374_v15 = vor.u32 %v7497_v9, %v6226_v7  ;;  %v8380_v22 = vor.u32 %v7503_v16, %v6260_v17  ;;  %v6268_v25 = vld [vmem:[%s11222_s1 + $0xc] sm:$0xf0]  ;;  %v7533_v27 = vld [vmem:[%s11222_s1 + $0xdc] sm:$0xf]  ;;  %v6376_v28 = vld [vmem:[%s11222_s1 + $0xe4] sm:$0xf0] }
  0x41   : > { %v7557_v29 = vld [vmem:[%s11222_s1 + $0x19c] sm:$0xf]  ;;  %v6379_v30 = vor.u32 %v7533_v27, %v6376_v28  ;;  %v6472_v31 = vld [vmem:[%s11222_s1 + $0x1a4] sm:$0xf0]  ;;  %v6556_v33 = vld [vmem:[%s11222_s1 + $0x24c] sm:$0xf0] }
  0x42   : > { %1044 = vmatpush.bf16.msrb.mxu2 %v6507_v37  ;;  %v6592_v37 = vld [vmem:[%s11222_s1 + $0x294] sm:$0xf0]  ;;  %v6475_v35 = vor.u32 %v7557_v29, %v6472_v31  ;;  %v7554_v41 = vld [vmem:[%s11222_s1 + $0x184] sm:$0xf]  ;;  %v6460_v42 = vld [vmem:[%s11222_s1 + $0x18c] sm:$0xf0] }
  0x43   : > { %6625 = vmatmul.msk.bf16.gmra.mxu3 %vm970_vm0, %v8227_v60  ;;  %1160 = vmatpush.bf16.msrb.mxu1 %v6511_v21  ;;  %v6595_v40 = vor.u32 %v7587_v36, %v6592_v37  ;;  %v7530_v37 = vld [vmem:[%s11222_s1 + $0xc4] sm:$0xf]  ;;  %v6358_v43 = vld [vmem:[%s11222_s1 + $0xb0] sm:$0xf]  ;;  %v7529_v44 = vld [vmem:[%s11222_s1 + $0xb8] sm:$0xf0] }
  0x44   : > { %1103 = vmatpush.bf16.msrb.mxu3 %v6307_v13  ;;  %1130 = vmatpush.bf16.msrb.mxu0 %v6427_v45  ;;  %v6252_v13 = vld [vmem:[%s8100_s23 + $0x70] sm:$0xf0]  ;;  %v7595_v53 = vld [vmem:[%s11222_s1 + $0x2c8] sm:$0xf0]  ;;  %v6454_v54 = vld [vmem:[%s11222_s1 + $0x170] sm:$0xf] }
  0x45   : > { %1006 = vmatmul.bf16.gmra.mxu2 %v8213_v52  ;;  %996 = vmatmul.bf16.gmra.mxu0 %v8219_v56  ;;  %v8378_v21 = vor.u32 %v7502_v12, %v6252_v13  ;;  %v6346_v59 = vld [vmem:[%s11222_s1 + $0x98] sm:$0xf]  ;;  %v7526_v61 = vld [vmem:[%s11222_s1 + $0xa0] sm:$0xf0]  ;;  %v6334_v9 = vld [vmem:[%s11222_s1 + $0x80] sm:$0xf] }
  0x46   : > { %1045 = vmatpush.bf16.msrb.mxu2 %v6495_v47  ;;  %1025 = vmatmul.bf16.gmra.mxu1 %v8217_v55  ;;  %v6292_v47 = vld [vmem:[%s11222_s1 + $0x3c] sm:$0xf0]  ;;  %v6347_v63 = vor.u32 %v7526_v61, %v6346_v59  ;;  %v7550_v4 = vld [vmem:[%s11222_s1 + $0x160] sm:$0xf0]  ;;  %v6258_v17 = vld [vmem:[%s8100_s23 + $0x68] sm:$0xf] }
  0x47   : > { %v6295_v50 = vor.u32 %v7512_v46, %v6292_v47  ;;  %v6463_v46 = vor.u32 %v7554_v41, %v6460_v42  ;;  %v6359_v47 = vor.u32 %v7529_v44, %v6358_v43  ;;  %v7574_v13 = vld [vmem:[%s11222_s1 + $0x220] sm:$0xf0]  ;;  %v6322_v27 = vld [vmem:[%s11222_s1 + $0x68] sm:$0xf]  ;;  %v7520_v29 = vld [vmem:[%s11222_s1 + $0x70] sm:$0xf0] }
  0x48   : > { %1131 = vmatpush.bf16.msrb.mxu0 %v6415_v58  ;;  %v7553_v58 = vld [vmem:[%s11222_s1 + $0x178] sm:$0xf0]  ;;  %v7571_v31 = vld [vmem:[%s11222_s1 + $0x208] sm:$0xf0]  ;;  %v7544_v41 = vld [vmem:[%s11222_s1 + $0x130] sm:$0xf0] }
  0x49   : > { %1104 = vmatpush.bf16.msrb.mxu3 %v6295_v50  ;;  %v6455_v62 = vor.u32 %v7553_v58, %v6454_v54  ;;  %v6310_v42 = vld [vmem:[%s11222_s1 + $0x50] sm:$0xf]  ;;  %v7517_v43 = vld [vmem:[%s11222_s1 + $0x58] sm:$0xf0]  ;;  %v6298_v59 = vld [vmem:[%s11222_s1 + $0x38] sm:$0xf] }
  0x4a   : > { %1046 = vmatpush.bf16.msrb.mxu2 %v6483_v57  ;;  %v6499_v57 = vor.u32 %v7563_v48, %v6496_v51  ;;  %v6242_v48 = vld [vmem:[%s8100_s23 + $0x48] sm:$0xf]  ;;  %v6622_v51 = vld [vmem:[%s11222_s1 + $0x2c0] sm:$0xf]  ;;  %v7514_v61 = vld [vmem:[%s11222_s1 + $0x40] sm:$0xf0] }
  0x4b   : > { %s6197_s19 = sshll.u32 %s269_s18, 8  ;;  %s7884_s13 = smov 64   ;;  %vm1445_vm2 = vcmask 779264   ;;  %vm1465_vm3 = vcmask 130048   ;;  %vm1467_vm4 = vcmask 125952   ;;  %vm1492_vm5 = vcmask 517120  }
  0x4c   : > { %1161 = vmatpush.bf16.msrb.mxu1 %v6499_v57  ;;  %1132 = vmatpush.bf16.msrb.mxu0 %v6403_v8  ;;  %v6623_v57 = vor.u32 %v7595_v53, %v6622_v51  ;;  %v7586_v51 = vld [vmem:[%s11222_s1 + $0x280] sm:$0xf0]  ;;  %v6406_v53 = vld [vmem:[%s11222_s1 + $0x110] sm:$0xf]  ;;  %s8664_s20 = scalar_lea.vmem [#allocation7], %s6197_s19  ;;  %s7885_s15 = smov 96  }
  0x4d   : > { %s7887_s14 = smov 80   ;;  %vm1668_vm6 = vcmask 654336   ;;  %vm3670_vm7 = vcmask 392192   ;;  %vm3645_vm8 = vcmask 1048064   ;;  %vm5891_vm9 = vcmask 523392   ;;  %s6128_s9 = sshll.u32 %s8664_s20, 4  ;;  %s6129_s9 = int_to_ptr.vmem [resolvable:$true] %s6128_s9 }
  0x4e   : > { %1047 = vmatpush.bf16.msrb.mxu2 %v6471_v0  ;;  %v7509_v0 = vld [vmem:[%s11222_s1 + $0x1c] sm:$0xf]  ;;  %s7840_s8 = scalar_lea.hbm %s11228_s7, 512 }
  0x4f   : > { %v6283_v2 = vor.u32 %v7509_v0, %v6280_v1  ;;  %v6550_v0 = vld [vmem:[%s11222_s1 + $0x230] sm:$0xf]  ;;  %v7577_v1 = vld [vmem:[%s11222_s1 + $0x238] sm:$0xf0] }
  0x50   : > { %1162 = vmatpush.bf16.msrb.mxu1 %v6487_v6  ;;  %v6551_v3 = vor.u32 %v7577_v1, %v6550_v0  ;;  %v7592_v6 = vld [vmem:[%s11222_s1 + $0x2b0] sm:$0xf0]  ;;  %v7565_v0 = vld [vmem:[%s11222_s1 + $0x1d8] sm:$0xf0] }
  0x51   : > { %1105 = vmatpush.bf16.msrb.mxu3 %v6283_v2  ;;  %v6442_v2 = vld [vmem:[%s11222_s1 + $0x158] sm:$0xf] }
  0x52   : > { %1048 = vmatpush.bf16.msrb.mxu2 %v6459_v20  ;;  %v6391_v20 = vor.u32 %v7536_v10, %v6388_v11  ;;  %v6443_v7 = vor.u32 %v7550_v4, %v6442_v2  ;;  %v7523_v10 = vld [vmem:[%s11222_s1 + $0x88] sm:$0xf0]  ;;  %v6538_v11 = vld [vmem:[%s11222_s1 + $0x218] sm:$0xf] }
  0x53   : > { %6626 = vmatmul.msk.bf16.gmra.mxu3 %vm970_vm0, %v8304_v39  ;;  %v6335_v12 = vor.u32 %v7523_v10, %v6334_v9  ;;  %v6539_v16 = vor.u32 %v7574_v13, %v6538_v11  ;;  %v6394_v2 = vld [vmem:[%s11222_s1 + $0xf8] sm:$0xf]  ;;  %v7511_v9 = vld [vmem:[%s11222_s1 + $0x28] sm:$0xf0]  ;;  %v7562_v11 = vld [vmem:[%s11222_s1 + $0x1c0] sm:$0xf0] }
  0x54   : > { %1133 = vmatpush.bf16.msrb.mxu0 %v6391_v20  ;;  %1163 = vmatpush.bf16.msrb.mxu1 %v6475_v35  ;;  %v7505_v20 = vld [vmem:[%s8100_s23 + $0x74] sm:$0xf0]  ;;  %v6598_v35 = vld [vmem:[%s11222_s1 + $0x290] sm:$0xf] }
  0x55   : > { %1049 = vmatmul.bf16.vlgmr.msrb.gmra.mxu2 %v8293_v34  ;;  %v6490_v10 = vld [vmem:[%s11222_s1 + $0x1b8] sm:$0xf] }
  0x56   : > { %1188 = vmatpush.bf16.msra.mxu2 %v6619_v23  ;;  %1030 = vmatmul.bf16.gmra.mxu1 %v8302_v38  ;;  %v7506_v23 = vld [vmem:[%s11222_s1 + $0x4] sm:$0xf]  ;;  %v6491_v13 = vor.u32 %v7562_v11, %v6490_v10 }
  0x57   : > { %v6271_v26 = vor.u32 %v7506_v23, %v6268_v25  ;;  %v8487_v23 = vor.u32 %v7505_v20, %v6258_v17  ;;  %v6430_v25 = vld [vmem:[%s11222_s1 + $0x140] sm:$0xf]  ;;  %v7508_v17 = vld [vmem:[%s11222_s1 + $0x10] sm:$0xf0] }
  0x58   : > { %1134 = vmatpush.bf16.msrb.mxu0 %v6379_v30  ;;  %1164 = vmatpush.bf16.msrb.mxu1 %v6463_v46  ;;  %v6526_v30 = vld [vmem:[%s11222_s1 + $0x200] sm:$0xf]  ;;  %v6514_v46 = vld [vmem:[%s11222_s1 + $0x1e8] sm:$0xf] }
  0x59   : > { %1106 = vmatpush.bf16.msrb.mxu3 %v6271_v26  ;;  %v7547_v26 = vld [vmem:[%s11222_s1 + $0x148] sm:$0xf0] }
  0x5a   : > { %1189 = vmatpush.bf16.msra.mxu2 %v6607_v32  ;;  %v7578_v32 = vld [vmem:[%s11222_s1 + $0x244] sm:$0xf]  ;;  %v6431_v28 = vor.u32 %v7547_v26, %v6430_v25  ;;  %v6382_v25 = vld [vmem:[%s11222_s1 + $0xe0] sm:$0xf]  ;;  %v7535_v26 = vld [vmem:[%s11222_s1 + $0xe8] sm:$0xf0] }
  0x5b   : > { %v6559_v36 = vor.u32 %v7578_v32, %v6556_v33  ;;  %v6323_v32 = vor.u32 %v7520_v29, %v6322_v27  ;;  %v6527_v33 = vor.u32 %v7571_v31, %v6526_v30  ;;  %v6383_v27 = vor.u32 %v7535_v26, %v6382_v25  ;;  %v7559_v29 = vld [vmem:[%s11222_s1 + $0x1a8] sm:$0xf0]  ;;  %v6370_v31 = vld [vmem:[%s11222_s1 + $0xc8] sm:$0xf] }
  0x5c   : > { %1273 = vmatpush.bf16.msra.mxu1 %v6551_v3  ;;  %v7538_v3 = vld [vmem:[%s11222_s1 + $0x100] sm:$0xf0] }
  0x5d   : > { %1215 = vmatpush.bf16.msra.mxu3 %v6359_v47  ;;  %v7568_v47 = vld [vmem:[%s11222_s1 + $0x1f0] sm:$0xf0]  ;;  %v6395_v4 = vor.u32 %v7538_v3, %v6394_v2 }
  0x5e   : > { %1190 = vmatpush.bf16.msra.mxu2 %v6595_v40  ;;  %v6364_v40 = vld [vmem:[%s11222_s1 + $0xcc] sm:$0xf0] }
  0x5f   : > { %v6367_v45 = vor.u32 %v7530_v37, %v6364_v40  ;;  %v6418_v37 = vld [vmem:[%s11222_s1 + $0x128] sm:$0xf] }
  0x60   : > { %1274 = vmatpush.bf16.msra.mxu1 %v6539_v16  ;;  %v6419_v44 = vor.u32 %v7544_v41, %v6418_v37  ;;  %v6274_v16 = vld [vmem:[%s11222_s1 + $0x8] sm:$0xf]  ;;  %v7556_v41 = vld [vmem:[%s11222_s1 + $0x190] sm:$0xf0] }
  0x61   : > { %1135 = vmatpush.bf16.msrb.mxu0 %v6367_v45  ;;  %1216 = vmatpush.bf16.msra.mxu3 %v6347_v63  ;;  %v6311_v45 = vor.u32 %v7517_v43, %v6310_v42  ;;  %v6299_v63 = vor.u32 %v7514_v61, %v6298_v59  ;;  %v6275_v20 = vor.u32 %v7508_v17, %v6274_v16  ;;  %v6466_v37 = vld [vmem:[%s11222_s1 + $0x188] sm:$0xf] }
  0x62   : > { %1191 = vmatpush.bf16.msra.mxu2 %v6583_v49  ;;  %v7501_v49 = vld [vmem:[%s8100_s23 + $0x54] sm:$0xf0]  ;;  %v6467_v42 = vor.u32 %v7556_v41, %v6466_v37 }
  0x63   : > { %6627 = vmatmul.msk.bf16.gmra.mxu3 %vm970_vm0, %v8380_v22  ;;  %v8431_v50 = vor.u32 %v7501_v49, %v6242_v48  ;;  %v6515_v48 = vor.u32 %v7568_v47, %v6514_v46  ;;  %v6586_v49 = vld [vmem:[%s11222_s1 + $0x278] sm:$0xf] }
  0x64   : > { %1136 = vmatmul.bf16.vlgmr.msrb.gmra.mxu0 %v8148_v18  ;;  %1275 = vmatpush.bf16.msra.mxu1 %v6527_v33  ;;  %v6587_v54 = vor.u32 %v7586_v51, %v6586_v49  ;;  %v6562_v33 = vld [vmem:[%s11222_s1 + $0x248] sm:$0xf] }
  0x65   : > { %1054 = vmatmul.bf16.gmra.mxu2 %v8374_v15  ;;  %1244 = vmatpush.bf16.msra.mxu0 %v6455_v62  ;;  %v6502_v62 = vld [vmem:[%s11222_s1 + $0x1d0] sm:$0xf] }
  0x66   : > { %1192 = vmatpush.bf16.msra.mxu2 %v6571_v5  ;;  %1035 = vmatmul.bf16.gmra.mxu1 %v8378_v21  ;;  %v6610_v5 = vld [vmem:[%s11222_s1 + $0x2a8] sm:$0xf]  ;;  %v6503_v1 = vor.u32 %v7565_v0, %v6502_v62 }
  0x67   : > { %v6611_v8 = vor.u32 %v7592_v6, %v6610_v5  ;;  %1217 = vmatpush.bf16.msra.mxu3 %v6335_v12  ;;  %v6574_v5 = vld [vmem:[%s11222_s1 + $0x260] sm:$0xf]  ;;  %v7583_v6 = vld [vmem:[%s11222_s1 + $0x268] sm:$0xf0] }
  0x68   : > { %1276 = vmatpush.bf16.msra.mxu1 %v6515_v48 }
  0x69   : > { %1245 = vmatpush.bf16.msra.mxu0 %v6443_v7  ;;  %v6286_v7 = vld [vmem:[%s11222_s1 + $0x20] sm:$0xf] }
  0x6a   : > { %1193 = vmatpush.bf16.msra.mxu2 %v6559_v36  ;;  %v7589_v36 = vld [vmem:[%s11222_s1 + $0x298] sm:$0xf0]  ;;  %v6287_v12 = vor.u32 %v7511_v9, %v6286_v7 }
  0x6b   : > { %v6599_v40 = vor.u32 %v7589_v36, %v6598_v35  ;;  %1218 = vmatpush.bf16.msra.mxu3 %v6323_v32  ;;  %v7532_v32 = vld [vmem:[%s11222_s1 + $0xd0] sm:$0xf0] }
  0x6c   : > { %1277 = vmatpush.bf16.msra.mxu1 %v6503_v1  ;;  %v7580_v35 = vld [vmem:[%s11222_s1 + $0x250] sm:$0xf0]  ;;  %v6371_v36 = vor.u32 %v7532_v32, %v6370_v31 }
  0x6d   : > { %1246 = vmatpush.bf16.msra.mxu0 %v6431_v28  ;;  %v6478_v28 = vld [vmem:[%s11222_s1 + $0x1a0] sm:$0xf] }
  0x6e   : > { %1304 = vmatpush.bf16.msrb.mxu2 %v6623_v57  ;;  %v7541_v57 = vld [vmem:[%s11222_s1 + $0x118] sm:$0xf0]  ;;  %v6479_v30 = vor.u32 %v7559_v29, %v6478_v28 }
  0x6f   : > { %1219 = vmatpush.bf16.msra.mxu3 %v6311_v45  ;;  %v6407_v58 = vor.u32 %v7541_v57, %v6406_v53 }
  0x70   : > { %1278 = vmatpush.bf16.msra.mxu1 %v6491_v13 }
  0x71   : > { %1247 = vmatpush.bf16.msra.mxu0 %v6419_v44 }
  0x72   : > { %1305 = vmatpush.bf16.msrb.mxu2 %v6611_v8  ;;  %v6575_v8 = vor.u32 %v7583_v6, %v6574_v5 }
  0x73   : > { %1107 = vmatmul.bf16.vlgmr.msrb.gmra.mxu3 %v8150_v19 }
  0x74   : > { %1141 = vmatmul.bf16.gmra.mxu0 %v8217_v55  ;;  %1220 = vmatpush.bf16.msra.mxu3 %v6299_v63 }
  0x75   : > { %1059 = vmatmul.bf16.gmra.mxu2 %v8431_v50  ;;  %1248 = vmatpush.bf16.msra.mxu0 %v6407_v58 }
  0x76   : > { %1165 = vmatmul.bf16.vlgmr.msrb.gmra.mxu1 %v8293_v34  ;;  %1306 = vmatpush.bf16.msrb.mxu2 %v6599_v40  ;;  %v6563_v40 = vor.u32 %v7580_v35, %v6562_v33 }
  0x77   : > { %1279 = vmatpush.bf16.msra.mxu1 %v6479_v30 }
  0x78   : > { %1221 = vmatpush.bf16.msra.mxu3 %v6287_v12 }
  0x79   : > { %1249 = vmatpush.bf16.msra.mxu0 %v6395_v4 }
  0x7a   : > { %1307 = vmatpush.bf16.msrb.mxu2 %v6587_v54 }
  0x7b   : > { %1280 = vmatpush.bf16.msra.mxu1 %v6467_v42 }
  0x7c   : > { %1222 = vmatpush.bf16.msra.mxu3 %v6275_v20 }
  0x7d   : > { %1250 = vmatpush.bf16.msra.mxu0 %v6383_v27 }
  0x7e   : > { %1308 = vmatpush.bf16.msrb.mxu2 %v6575_v8 }
  0x81   : > { %1251 = vmatpush.bf16.msra.mxu0 %v6371_v36 }
  0x82   : > { %1309 = vmatpush.bf16.msrb.mxu2 %v6563_v40 }
  0x83   : > { %1112 = vmatmul.bf16.gmra.mxu3 %v8219_v56 }
  0x84   : > { %1146 = vmatmul.bf16.gmra.mxu0 %v8302_v38 }
  0x85   : > { %1064 = vmatmul.bf16.gmra.mxu2 %v8487_v23 }
  0x86   : > { %1170 = vmatmul.bf16.gmra.mxu1 %v8374_v15 }
  0x93   : > { %1117 = vmatmul.bf16.gmra.mxu3 %v8144_v14 }
  0x94   : > { %1151 = vmatmul.bf16.gmra.mxu0 %v8378_v21 }
  0x95   : > { %6628 = vmatmul.msk.bf16.vlgmr.msra.gmra.mxu2 %vm970_vm0, %v8158_v24 }
  0x96   : > { %1175 = vmatmul.bf16.gmra.mxu1 %v8431_v50 }
  0xa3   : > { %1122 = vmatmul.bf16.gmra.mxu3 %v8213_v52 }
  0xa4   : > { %1252 = vmatmul.bf16.vlgmr.msra.gmra.mxu0 %v8148_v18 }
  0xa5   : > { %6629 = vmatmul.msk.bf16.gmra.mxu2 %vm970_vm0, %v8227_v60 }
  0xa6   : > { %1180 = vmatmul.bf16.gmra.mxu1 %v8487_v23 }
  0xb3   : > { %v1021_v43 = vpop.f32.mrf.mxu1  ;;  %1223 = vmatmul.bf16.vlgmr.msra.gmra.mxu3 %v8150_v19 }
  0xb4   : > { %1257 = vmatmul.bf16.gmra.mxu0 %v8217_v55 }
  0xb5   : > { %6630 = vmatmul.msk.bf16.gmra.mxu2 %vm970_vm0, %v8304_v39 }
  0xb6   : > { %1281 = vmatmul.bf16.vlgmr.msra.gmra.mxu1 %v8293_v34  ;;  %v1079_v46 = vpop.f32.mrf.mxu3  ;;  %v992_v34 = vpop.f32.mrf.mxu0 }
  0xb7   : > { %v1022_v57 = vadd.f32 %v1021_v43, %v992_v34 }
  0xb8   : > { %v8632_v44 = vpop.f32.mrf.mxu2 }
  0xbb   : > { %v1023_v45 = vpop.f32.mrf.mxu1 }
  0xbe   : > { %v1081_v49 = vpop.f32.mrf.mxu3  ;;  %v994_v58 = vpop.f32.mrf.mxu0 }
  0xbf   : > { %v1024_v0 = vadd.f32 %v1023_v45, %v994_v58 }
  0xc0   : > { %v8635_v47 = vpop.f32.mrf.mxu2 }
  0xc3   : > { %v1026_v48 = vpop.f32.mrf.mxu1  ;;  %1228 = vmatmul.bf16.gmra.mxu3 %v8219_v56 }
  0xc4   : > { %1262 = vmatmul.bf16.gmra.mxu0 %v8302_v38 }
  0xc5   : > { %6631 = vmatmul.msk.bf16.gmra.mxu2 %vm970_vm0, %v8380_v22 }
  0xc6   : > { %1286 = vmatmul.bf16.gmra.mxu1 %v8374_v15  ;;  %v1084_v51 = vpop.f32.mrf.mxu3  ;;  %v8652_v15 = vld [vmem:[%s11225_s4] sm:$0x3]  ;;  %v997_v2 = vpop.f32.mrf.mxu0 }
  0xc7   : > { %v8658_v38 = vperm.slane %v8652_v15, 0  ;;  %v1027_v6 = vadd.f32 %v1026_v48, %v997_v2 }
  0xc8   : > { %v8641_v18 = vpop.f32.mrf.mxu2 }
  0xcb   : > { %v1028_v19 = vpop.f32.mrf.mxu1 }
  0xce   : > { %v1086_v54 = vpop.f32.mrf.mxu3  ;;  %v999_v9 = vpop.f32.mrf.mxu0 }
  0xcf   : > { %v1029_v17 = vadd.f32 %v1028_v19, %v999_v9 }
  0xd0   : > { %v8644_v53 = vpop.f32.mrf.mxu2 }
  0xd3   : > { %v1031_v55 = vpop.f32.mrf.mxu1  ;;  %1233 = vmatmul.bf16.gmra.mxu3 %v8144_v14 }
  0xd4   : > { %1267 = vmatmul.bf16.gmra.mxu0 %v8378_v21  ;;  %v1032_v29 = vadd.f32 %v1031_v55, %v8632_v44 }
  0xd5   : > { %6632 = vmatmul.msk.bf16.vlgmr.msrb.gmra.mxu2 %vm970_vm0, %v8158_v24 }
  0xd6   : > { %1291 = vmatmul.bf16.gmra.mxu1 %v8431_v50  ;;  %v1089_v62 = vpop.f32.mrf.mxu3 }
  0xd8   : > { %v1050_v56 = vpop.f32.mrf.mxu2 }
  0xd9   : > { %v1051_v59 = vadd.f32 %v1050_v56, %v1022_v57 }
  0xdb   : > { %v1080_v61 = vadd.f32 %v1079_v46, %v1051_v59  ;;  %v1033_v24 = vpop.f32.mrf.mxu1 }
  0xdc   : > { %v1034_v40 = vadd.f32 %v1033_v24, %v8635_v47 }
  0xdd   : > { %v1337_v63 = vadd.f32 %v8658_v38, %v1080_v61 }
  0xde   : > { %v1091_v4 = vpop.f32.mrf.mxu3 }
  0xdf   : > { %v1353_v1 = vmax.f32 %v1337_v63, 0.0  ;;  %v8694_v63 = vld [vmem:[%s11225_s4 + $0x1] sm:$0x3] }
  0xe0   : > { %v1052_v3 = vpop.f32.mrf.mxu2 }
  0xe1   : > { %1369 = vst [vmem:[%s8664_s20] sm:$0xff] %v1353_v1  ;;  %v1053_v14 = vadd.f32 %v1052_v3, %v1024_v0  ;;  %v1137_v26 = vpop.f32.mrf.mxu0 }
  0xe3   : > { %v1082_v50 = vadd.f32 %v1081_v49, %v1053_v14  ;;  %v1036_v5 = vpop.f32.mrf.mxu1  ;;  %1238 = vmatmul.bf16.gmra.mxu3 %v8213_v52  ;;  %v8701_v14 = vperm.slane %v8694_v63, 0 }
  0xe4   : > { %v1037_v49 = vadd.f32 %v1036_v5, %v8641_v18 }
  0xe5   : > { %v1339_v7 = vadd.f32 %v8658_v38, %v1082_v50  ;;  %6633 = vmatmul.msk.bf16.gmra.mxu2 %vm970_vm0, %v8227_v60 }
  0xe6   : > { %1296 = vmatmul.bf16.gmra.mxu1 %v8487_v23  ;;  %v1094_v12 = vpop.f32.mrf.mxu3 }
  0xe7   : > { %v1355_v8 = vmax.f32 %v1339_v7, 0.0 }
  0xe8   : > { %v1055_v21 = vpop.f32.mrf.mxu2 }
  0xe9   : > { %1372 = vst [vmem:[%s8664_s20 + $0x20] sm:$0xff] %v1355_v8  ;;  %v1056_v10 = vadd.f32 %v1055_v21, %v1027_v6  ;;  %v1139_v36 = vpop.f32.mrf.mxu0 }
  0xeb   : > { %v1085_v11 = vadd.f32 %v1084_v51, %v1056_v10  ;;  %v1038_v16 = vpop.f32.mrf.mxu1 }
  0xec   : > { %v1039_v58 = vadd.f32 %v1038_v16, %v8644_v53  ;;  %v8698_v53 = vperm.slane %v8652_v15, 1 }
  0xed   : > { %v1341_v13 = vadd.f32 %v8658_v38, %v1085_v11 }
  0xee   : > { %v1096_v27 = vpop.f32.mrf.mxu3 }
  0xef   : > { %v1357_v20 = vmax.f32 %v1341_v13, 0.0 }
  0xf0   : > { %v1057_v25 = vpop.f32.mrf.mxu2 }
  0xf1   : > { %1374 = vst [vmem:[%s8664_s20 + $0x40] sm:$0xff] %v1357_v20  ;;  %v1058_v60 = vadd.f32 %v1057_v25, %v1029_v17  ;;  %v1142_v48 = vpop.f32.mrf.mxu0 }
  0xf3   : > { %v1087_v23 = vadd.f32 %v1086_v54, %v1058_v60  ;;  %v1166_v52 = vpop.f32.mrf.mxu1 }
  0xf5   : > { %v1343_v28 = vadd.f32 %v8658_v38, %v1087_v23  ;;  %6634 = vmatmul.msk.bf16.gmra.mxu2 %vm970_vm0, %v8304_v39 }
  0xf6   : > { %v1108_v35 = vpop.f32.mrf.mxu3 }
  0xf7   : > { %v1359_v30 = vmax.f32 %v1343_v28, 0.0 }
  0xf8   : > { %v1060_v31 = vpop.f32.mrf.mxu2 }
  0xf9   : > { %1376 = vst [vmem:[%s8664_s20 + $0x60] sm:$0xff] %v1359_v30  ;;  %v1061_v32 = vadd.f32 %v1060_v31, %v1032_v29  ;;  %v1144_v59 = vpop.f32.mrf.mxu0 }
  0xfb   : > { %v1090_v33 = vadd.f32 %v1089_v62, %v1061_v32  ;;  %v1168_v43 = vpop.f32.mrf.mxu1 }
  0xfd   : > { %v1345_v37 = vadd.f32 %v8658_v38, %v1090_v33 }
  0xfe   : > { %v1110_v46 = vpop.f32.mrf.mxu3 }
  0xff   : > { %v1361_v41 = vmax.f32 %v1345_v37, 0.0  ;;  %v1140_v6 = vadd.f32 %v1139_v36, %v1110_v46 }
 0x100   : > { %v1062_v42 = vpop.f32.mrf.mxu2 }
 0x101   : > { %1378 = vst [vmem:[%s8664_s20 + $0x80] sm:$0xff] %v1361_v41  ;;  %v1063_v39 = vadd.f32 %v1062_v42, %v1034_v40  ;;  %v1147_v5 = vpop.f32.mrf.mxu0  ;;  %v1169_v15 = vadd.f32 %v1168_v43, %v1140_v6 }
 0x103   : > { %v1092_v45 = vadd.f32 %v1091_v4, %v1063_v39  ;;  %v1171_v51 = vpop.f32.mrf.mxu1 }
 0x105   : > { %v1347_v44 = vadd.f32 %v8658_v38, %v1092_v45  ;;  %6635 = vmatmul.msk.bf16.gmra.mxu2 %vm970_vm0, %v8380_v22  ;;  %v1138_v22 = vadd.f32 %v1137_v26, %v1108_v35 }
 0x106   : > { %v1113_v54 = vpop.f32.mrf.mxu3 }
 0x107   : > { %v1363_v34 = vmax.f32 %v1347_v44, 0.0  ;;  %v1167_v1 = vadd.f32 %v1166_v52, %v1138_v22 }
 0x108   : > { %v1065_v19 = vpop.f32.mrf.mxu2 }
 0x109   : > { %1380 = vst [vmem:[%s8664_s20 + $0xa0] sm:$0xff] %v1363_v34  ;;  %v1066_v47 = vadd.f32 %v1065_v19, %v1037_v49  ;;  %v1149_v20 = vpop.f32.mrf.mxu0 }
 0x10b   : > { %v1095_v55 = vadd.f32 %v1094_v12, %v1066_v47  ;;  %v1173_v0 = vpop.f32.mrf.mxu1  ;;  %v1143_v12 = vadd.f32 %v1142_v48, %v1113_v54 }
 0x10d   : > { %v1349_v57 = vadd.f32 %v8658_v38, %v1095_v55  ;;  %v1172_v60 = vadd.f32 %v1171_v51, %v1143_v12 }
 0x10e   : > { %v1115_v18 = vpop.f32.mrf.mxu3 }
 0x10f   : > { %v1365_v56 = vmax.f32 %v1349_v57, 0.0  ;;  %v1145_v29 = vadd.f32 %v1144_v59, %v1115_v18 }
 0x110   : > { %v1067_v61 = vpop.f32.mrf.mxu2 }
 0x111   : > { %1382 = vst [vmem:[%s8664_s20 + $0xc0] sm:$0xff] %v1365_v56  ;;  %v1068_v24 = vadd.f32 %v1067_v61, %v1039_v58  ;;  %v1152_v35 = vpop.f32.mrf.mxu0  ;;  %v1174_v37 = vadd.f32 %v1173_v0, %v1145_v29 }
 0x113   : > { %v1097_v62 = vadd.f32 %v1096_v27, %v1068_v24  ;;  %v1176_v10 = vpop.f32.mrf.mxu1 }
 0x115   : > { %v1351_v2 = vadd.f32 %v8658_v38, %v1097_v62 }
 0x116   : > { %v1118_v21 = vpop.f32.mrf.mxu3 }
 0x117   : > { %v1367_v3 = vmax.f32 %v1351_v2, 0.0  ;;  %v1148_v41 = vadd.f32 %v1147_v5, %v1118_v21 }
 0x118   : > { %v1195_v50 = vpop.f32.mrf.mxu2 }
 0x119   : > { %1384 = vst [vmem:[%s8664_s20 + $0xe0] sm:$0xff] %v1367_v3  ;;  %v1196_v4 = vadd.f32 %v1195_v50, %v1167_v1  ;;  %v1177_v45 = vadd.f32 %v1176_v10, %v1148_v41  ;;  %v1154_v44 = vpop.f32.mrf.mxu0 }
 0x11b   : > { %v1338_v7 = vadd.f32 %v8698_v53, %v1196_v4  ;;  %v1392_v8 = vadd.f32 %v8701_v14, %v1196_v4  ;;  %v1178_v28 = vpop.f32.mrf.mxu1 }
 0x11d   : > { %v1354_v38 = vmax.f32 %v1338_v7, 0.0  ;;  %v1408_v9 = vmax.f32 %v1392_v8, 0.0 }
 0x11e   : > { %v1120_v25 = vpop.f32.mrf.mxu3 }
 0x11f   : > { %1528 = vrot.lane.b32.xlu0 %v1408_v9, %s7884_s13  ;;  %1371 = vst.msk [vmem:[%s8664_s20 + $0x8] sm:$0xff] %vm1370_vm1, %v1354_v38  ;;  %v1150_v19 = vadd.f32 %v1149_v20, %v1120_v25 }
 0x120   : > { %v1197_v11 = vpop.f32.mrf.mxu2 }
 0x121   : > { %v1198_v13 = vadd.f32 %v1197_v11, %v1169_v15  ;;  %v1179_v54 = vadd.f32 %v1178_v28, %v1150_v19  ;;  %v1253_v59 = vpop.f32.mrf.mxu0 }
 0x123   : > { %v1340_v16 = vadd.f32 %v8698_v53, %v1198_v13  ;;  %v1394_v17 = vadd.f32 %v8701_v14, %v1198_v13  ;;  %v1181_v43 = vpop.f32.mrf.mxu1  ;;  %v8745_v13 = vperm.slane %v8694_v63, 1 }
 0x125   : > { %v1356_v26 = vmax.f32 %v1340_v16, 0.0  ;;  %v1410_v23 = vmax.f32 %v1394_v17, 0.0 }
 0x126   : > { %v1123_v36 = vpop.f32.mrf.mxu3 }
 0x127   : > { %1532 = vrot.lane.b32.xlu1 %v1410_v23, %s7884_s13  ;;  %1373 = vst.msk [vmem:[%s8664_s20 + $0x28] sm:$0xff] %vm1370_vm1, %v1356_v26  ;;  %v1153_v58 = vadd.f32 %v1152_v35, %v1123_v36 }
 0x128   : > { %v1200_v27 = vpop.f32.mrf.mxu2 }
 0x129   : > { %v1201_v52 = vadd.f32 %v1200_v27, %v1172_v60  ;;  %v1182_v24 = vadd.f32 %v1181_v43, %v1153_v58  ;;  %v1255_v50 = vpop.f32.mrf.mxu0 }
 0x12b   : > { %v1342_v30 = vadd.f32 %v8698_v53, %v1201_v52  ;;  %v1396_v31 = vadd.f32 %v8701_v14, %v1201_v52  ;;  %v1183_v51 = vpop.f32.mrf.mxu1 }
 0x12d   : > { %v1358_v32 = vmax.f32 %v1342_v30, 0.0  ;;  %v1412_v33 = vmax.f32 %v1396_v31, 0.0 }
 0x12e   : > { %v1125_v49 = vpop.f32.mrf.mxu3 }
 0x12f   : > { %1536 = vrot.lane.b32.xlu2 %v1412_v33, %s7884_s13  ;;  %1375 = vst.msk [vmem:[%s8664_s20 + $0x48] sm:$0xff] %vm1370_vm1, %v1358_v32  ;;  %v1155_v2 = vadd.f32 %v1154_v44, %v1125_v49 }
 0x130   : > { %v1202_v40 = vpop.f32.mrf.mxu2 }
 0x131   : > { %v1203_v42 = vadd.f32 %v1202_v40, %v1174_v37  ;;  %v1184_v6 = vadd.f32 %v1183_v51, %v1155_v2  ;;  %v1258_v11 = vpop.f32.mrf.mxu0  ;;  %v6680_v2 = vld [vmem:[%s11223_s2 + $0x58] sm:$0xf0] }
 0x133   : > { %v1344_v39 = vadd.f32 %v8698_v53, %v1203_v42  ;;  %v1282_v18 = vpop.f32.mrf.mxu1  ;;  %v1398_v63 = vadd.f32 %v8701_v14, %v1203_v42 }
 0x135   : > { %v1360_v46 = vmax.f32 %v1344_v39, 0.0  ;;  %v1414_v35 = vmax.f32 %v1398_v63, 0.0 }
 0x136   : > { %v1224_v61 = vpop.f32.mrf.mxu3 }
 0x137   : > { %1377 = vst.msk [vmem:[%s8664_s20 + $0x68] sm:$0xff] %vm1370_vm1, %v1360_v46  ;;  %v1254_v21 = vadd.f32 %v1253_v59, %v1224_v61 }
 0x138   : > { %v1205_v48 = vpop.f32.mrf.mxu2 }
 0x139   : > { %v8722_v34 = vadd.f32 %v1205_v48, %v1177_v45  ;;  %v1283_v10 = vadd.f32 %v1282_v18, %v1254_v21  ;;  %v7606_v18 = vld [vmem:[%s11223_s2 + $0x54] sm:$0xf] }
 0x13b   : > { %v1346_v47 = vadd.f32 %v8698_v53, %v8722_v34  ;;  %v1284_v8 = vpop.f32.mrf.mxu1  ;;  %v1400_v48 = vadd.f32 %v8701_v14, %v8722_v34 }
 0x13d   : > { %v1362_v55 = vmax.f32 %v1346_v47, 0.0 }
 0x13e   : > { %v1226_v4 = vpop.f32.mrf.mxu3 }
 0x13f   : > { %1379 = vst.msk [vmem:[%s8664_s20 + $0x88] sm:$0xff] %vm1370_vm1, %v1362_v55  ;;  %v1256_v25 = vadd.f32 %v1255_v50, %v1226_v4  ;;  %v6683_v50 = vor.u32 %v7606_v18, %v6680_v2 }
 0x140   : > { %v1207_v57 = vpop.f32.mrf.mxu2 }
 0x141   : > { %v8728_v56 = vadd.f32 %v1207_v57, %v1179_v54  ;;  %v1285_v23 = vadd.f32 %v1284_v8, %v1256_v25  ;;  %v1416_v54 = vmax.f32 %v1400_v48, 0.0  ;;  %1827 = vmatpush.bf16.msrb.mxu0 %v6683_v50  ;;  %v6746_v50 = vld [vmem:[%s11223_s2 + $0xb0] sm:$0xf] }
 0x143   : > { %v1348_v22 = vadd.f32 %v8698_v53, %v8728_v56  ;;  %v1287_v20 = vpop.f32.mrf.mxu1  ;;  %v1402_v34 = vadd.f32 %v8701_v14, %v8728_v56 }
 0x145   : > { %v1364_v62 = vmax.f32 %v1348_v22, 0.0 }
 0x146   : > { %v1229_v12 = vpop.f32.mrf.mxu3 }
 0x147   : > { %1381 = vst.msk [vmem:[%s8664_s20 + $0xa8] sm:$0xff] %vm1370_vm1, %v1364_v62  ;;  %v1259_v52 = vadd.f32 %v1258_v11, %v1229_v12  ;;  %v7607_v62 = vld [vmem:[%s11223_s2 + $0x54] sm:$0xf0] }
 0x148   : > { %v1210_v0 = vpop.f32.mrf.mxu2 }
 0x149   : > { %v8734_v1 = vadd.f32 %v1210_v0, %v1182_v24  ;;  %v1288_v32 = vadd.f32 %v1287_v20, %v1259_v52  ;;  %v6678_v24 = vld [vmem:[%s11223_s2 + $0x50] sm:$0xf] }
 0x14a   : > { %v6679_v0 = vor.u32 %v7607_v62, %v6678_v24  ;;  %v6656_v62 = vld [vmem:[%s11223_s2 + $0x28] sm:$0xf0] }
 0x14b   : > { %v1350_v3 = vadd.f32 %v8698_v53, %v8734_v1  ;;  %v1289_v31 = vpop.f32.mrf.mxu1 }
 0x14c   : > { %1798 = vmatpush.bf16.msrb.mxu3 %v6679_v0 }
 0x14d   : > { %v1366_v5 = vmax.f32 %v1350_v3, 0.0 }
 0x14e   : > { %v1231_v28 = vpop.f32.mrf.mxu3 }
 0x14f   : > { %1383 = vst.msk [vmem:[%s8664_s20 + $0xc8] sm:$0xff] %vm1370_vm1, %v1366_v5  ;;  %v1418_v5 = vmax.f32 %v1402_v34, 0.0 }
 0x150   : > { %v1212_v7 = vpop.f32.mrf.mxu2 }
 0x151   : > { %v8740_v38 = vadd.f32 %v1212_v7, %v1184_v6 }
 0x153   : > { %v1352_v9 = vadd.f32 %v8698_v53, %v8740_v38  ;;  %v1260_v53 = vpop.f32.mrf.mxu0  ;;  %v1292_v45 = vpop.f32.mrf.mxu1 }
 0x154   : > { %v1261_v42 = vadd.f32 %v1260_v53, %v1231_v28  ;;  %v7605_v53 = vld [vmem:[%s11223_s2 + $0x44] sm:$0xf0]  ;;  %v1406_v28 = vadd.f32 %v8701_v14, %v8740_v38 }
 0x155   : > { %v1368_v15 = vmax.f32 %v1352_v9, 0.0  ;;  %v1404_v9 = vadd.f32 %v8701_v14, %v8734_v1  ;;  %v6670_v1 = vld [vmem:[%s11223_s2 + $0x40] sm:$0xf] }
 0x156   : > { %v1234_v41 = vpop.f32.mrf.mxu3  ;;  %v1290_v46 = vadd.f32 %v1289_v31, %v1261_v42  ;;  %v6671_v52 = vor.u32 %v7605_v53, %v6670_v1  ;;  %v7785_v14 = vld [vmem:[%s11225_s4 + $0x2] ss:$0 sm:$0xff]  ;;  %v6662_v42 = vld [vmem:[%s11223_s2 + $0x30] sm:$0xf] }
 0x157   : > { %1385 = vst.msk [vmem:[%s8664_s20 + $0xe8] sm:$0xff] %vm1370_vm1, %v1368_v15 }
 0x158   : > { %v1311_v16 = vpop.f32.mrf.mxu2  ;;  %1799 = vmatpush.bf16.msrb.mxu3 %v6671_v52 }
 0x159   : > { %v8749_v17 = vadd.f32 %v1311_v16, %v1283_v10  ;;  %v1420_v16 = vmax.f32 %v1404_v9, 0.0  ;;  %v6748_v9 = vld [vmem:[%s11223_s2 + $0xb8] sm:$0xf0] }
 0x15b   : > { %v1393_v60 = vadd.f32 %v8745_v13, %v8749_v17  ;;  %v1263_v40 = vpop.f32.mrf.mxu0  ;;  %v1294_v59 = vpop.f32.mrf.mxu1 }
 0x15c   : > { %v1264_v49 = vadd.f32 %v1263_v40, %v1234_v41 }
 0x15d   : > { %v1409_v26 = vmax.f32 %v1393_v60, 0.0 }
 0x15e   : > { %v1236_v55 = vpop.f32.mrf.mxu3  ;;  %v1293_v57 = vadd.f32 %v1292_v45, %v1264_v49  ;;  %v6664_v49 = vld [vmem:[%s11223_s2 + $0x38] sm:$0xf0] }
 0x15f   : > { %1530 = vrot.lane.b32.xlu0 %v1409_v26, %s7884_s13 }
 0x160   : > { %v1313_v27 = vpop.f32.mrf.mxu2 }
 0x161   : > { %v8755_v29 = vadd.f32 %v1313_v27, %v1285_v23  ;;  %v7604_v27 = vld [vmem:[%s11223_s2 + $0x44] sm:$0xf] }
 0x163   : > { %v1395_v30 = vadd.f32 %v8745_v13, %v8755_v29  ;;  %v1265_v47 = vpop.f32.mrf.mxu0  ;;  %v1297_v11 = vpop.f32.mrf.mxu1 }
 0x164   : > { %v1266_v56 = vadd.f32 %v1265_v47, %v1236_v55 }
 0x165   : > { %v1411_v33 = vmax.f32 %v1395_v30, 0.0  ;;  %v6672_v30 = vld [vmem:[%s11223_s2 + $0x48] sm:$0xf0] }
 0x166   : > { %v1239_v7 = vpop.f32.mrf.mxu3  ;;  %v1295_v8 = vadd.f32 %v1294_v59, %v1266_v56  ;;  %v6675_v31 = vor.u32 %v7604_v27, %v6672_v30  ;;  %v7600_v59 = vld [vmem:[%s11223_s2 + $0x24] sm:$0xf]  ;;  %v6738_v27 = vld [vmem:[%s11223_s2 + $0xa0] sm:$0xf] }
 0x167   : > { %1534 = vrot.lane.b32.xlu1 %v1411_v33, %s7884_s13  ;;  %1540 = vrot.lane.b32.xlu0 %v1414_v35, %s7884_s13  ;;  %v6659_v0 = vor.u32 %v7600_v59, %v6656_v62  ;;  %v7616_v30 = vld [vmem:[%s11223_s2 + $0xa4] sm:$0xf]  ;;  %v6706_v59 = vld [vmem:[%s11223_s2 + $0x60] sm:$0xf] }
 0x168   : > { %v1316_v36 = vpop.f32.mrf.mxu2  ;;  %1828 = vmatpush.bf16.msrb.mxu0 %v6675_v31  ;;  %v6740_v31 = vld [vmem:[%s11223_s2 + $0xa8] sm:$0xf0]  ;;  %v7631_v62 = vld [vmem:[%s11223_s2 + $0x114] sm:$0xf0] }
 0x169   : > { %v8761_v37 = vadd.f32 %v1316_v36, %v1288_v32  ;;  %v1422_v36 = vmax.f32 %v1406_v28, 0.0  ;;  %v7617_v28 = vld [vmem:[%s11223_s2 + $0xa4] sm:$0xf0] }
 0x16a   : > { %v6739_v52 = vor.u32 %v7617_v28, %v6738_v27 }
 0x16b   : > { %v1397_v43 = vadd.f32 %v8745_v13, %v8761_v37  ;;  %v1268_v4 = vpop.f32.mrf.mxu0  ;;  %v1299_v35 = vpop.f32.mrf.mxu1  ;;  %v1430_v18 = vadd.f32 %v7785_v14, %v8761_v37 }
 0x16c   : > { %v1269_v10 = vadd.f32 %v1268_v4, %v1239_v7  ;;  %v7619_v4 = vld [vmem:[%s11223_s2 + $0xb4] sm:$0xf0] }
 0x16d   : > { %v1413_v39 = vmax.f32 %v1397_v43, 0.0  ;;  %v7603_v43 = vld [vmem:[%s11223_s2 + $0x34] sm:$0xf0] }
 0x16e   : > { %v1298_v20 = vadd.f32 %v1297_v11, %v1269_v10  ;;  %v1241_v26 = vpop.f32.mrf.mxu3  ;;  %v6663_v48 = vor.u32 %v7603_v43, %v6662_v42  ;;  %v6646_v10 = vld [vmem:[%s11223_s2 + $0x10] sm:$0xf]  ;;  %v7599_v11 = vld [vmem:[%s11223_s2 + $0x14] sm:$0xf0]  ;;  %v6724_v42 = vld [vmem:[%s11223_s2 + $0x88] sm:$0xf0] }
 0x16f   : > { %1538 = vrot.lane.b32.xlu2 %v1413_v39, %s7884_s13  ;;  %v7602_v39 = vld [vmem:[%s11223_s2 + $0x34] sm:$0xf] }
 0x170   : > { %v1318_v44 = vpop.f32.mrf.mxu2  ;;  %v6667_v47 = vor.u32 %v7602_v39, %v6664_v49  ;;  %1800 = vmatpush.bf16.msrb.mxu3 %v6663_v48  ;;  %v6638_v39 = vld [vmem:[%s11223_s2] sm:$0xf]  ;;  %v7596_v48 = vld [vmem:[%s11223_s2 + $0x4] sm:$0xf]  ;;  %v6640_v49 = vld [vmem:[%s11223_s2 + $0x8] sm:$0xf0] }
 0x171   : > { %v8768_v19 = vadd.f32 %v1318_v44, %v1290_v46  ;;  %v1429_v46 = vadd.f32 %v7785_v14, %v8755_v29  ;;  %v1428_v44 = vadd.f32 %v7785_v14, %v8749_v17 }
 0x172   : > { %1829 = vmatpush.bf16.msrb.mxu0 %v6667_v47  ;;  %v6643_v47 = vor.u32 %v7596_v48, %v6640_v49 }
 0x173   : > { %v1399_v51 = vadd.f32 %v8745_v13, %v8768_v19  ;;  %v1270_v60 = vpop.f32.mrf.mxu0  ;;  %v1437_v55 = vmax.f32 %v1429_v46, 0.0  ;;  %v1431_v34 = vadd.f32 %v7785_v14, %v8768_v19  ;;  %v7597_v46 = vld [vmem:[%s11223_s2 + $0x4] sm:$0xf0] }
 0x174   : > { %v1271_v32 = vadd.f32 %v1270_v60, %v1241_v26  ;;  %v11229_v26 = vmov 0.0  }
 0x175   : > { %v1415_v58 = vmax.f32 %v1399_v51, 0.0  ;;  %v1439_v56 = vmax.f32 %v1431_v34, 0.0  ;;  %1451 = vst.msk [vmem:[#allocation2 + $0x30] sm:$0xff] %vm970_vm0, %v11229_v26 }
 0x176   : > { %v1300_v38 = vadd.f32 %v1299_v35, %v1271_v32  ;;  %1830 = vmatpush.bf16.msrb.mxu0 %v6659_v0  ;;  %1452 = vst.msk [vmem:[#allocation2 + $0x38] sm:$0x3] %vm1445_vm2, %v11229_v26  ;;  %v6743_v32 = vor.u32 %v7616_v30, %v6740_v31  ;;  %v7615_v35 = vld [vmem:[%s11223_s2 + $0x94] sm:$0xf0]  ;;  %v7630_v0 = vld [vmem:[%s11223_s2 + $0x114] sm:$0xf] }
 0x177   : > { %1544 = vrot.lane.b32.xlu2 %v1416_v54, %s7884_s13  ;;  %1542 = vrot.lane.b32.xlu1 %v1415_v58, %s7884_s13  ;;  %v1436_v54 = vmax.f32 %v1428_v44, 0.0  ;;  %v6654_v58 = vld [vmem:[%s11223_s2 + $0x20] sm:$0xf]  ;;  %1444 = vst.msk [vmem:[#allocation2] sm:$0xff] %vm970_vm0, %v11229_v26  ;;  %v6639_v44 = vor.u32 %v7597_v46, %v6638_v39  ;;  %v7642_v46 = vld [vmem:[%s11223_s2 + $0x174] sm:$0xf] }
 0x178   : > { %v1321_v61 = vpop.f32.mrf.mxu2  ;;  %1446 = vst.msk [vmem:[#allocation2 + $0x8] sm:$0x3] %vm1445_vm2, %v11229_v26 }
 0x179   : > { %v8776_v22 = vadd.f32 %v1321_v61, %v1293_v57  ;;  %1447 = vst.msk [vmem:[#allocation2 + $0x10] sm:$0xff] %vm970_vm0, %v11229_v26 }
 0x17a   : > { %1448 = vst.msk [vmem:[#allocation2 + $0x18] sm:$0x3] %vm1445_vm2, %v11229_v26 }
 0x17b   : > { %v1401_v3 = vadd.f32 %v8745_v13, %v8776_v22  ;;  %v1432_v61 = vadd.f32 %v7785_v14, %v8776_v22  ;;  %1449 = vst.msk [vmem:[#allocation2 + $0x20] sm:$0xff] %vm970_vm0, %v11229_v26 }
 0x17c   : > { %1450 = vst.msk [vmem:[#allocation2 + $0x28] sm:$0x3] %vm1445_vm2, %v11229_v26 }
 0x17d   : > { %v1417_v6 = vmax.f32 %v1401_v3, 0.0  ;;  %v1440_v2 = vmax.f32 %v1432_v61, 0.0  ;;  %v1438_v3 = vmax.f32 %v1430_v18, 0.0  ;;  %1453 = vst.msk [vmem:[#allocation2 + $0x40] sm:$0xff] %vm970_vm0, %v11229_v26  ;;  %v6708_v61 = vld [vmem:[%s11223_s2 + $0x68] sm:$0xf0] }
 0x17e   : > { %1454 = vst.msk [vmem:[#allocation2 + $0x48] sm:$0x3] %vm1445_vm2, %v11229_v26 }
 0x17f   : > { %1548 = vrot.lane.b32.xlu1 %v1418_v5, %s7884_s13  ;;  %1546 = vrot.lane.b32.xlu0 %v1417_v6, %s7884_s13  ;;  %v7618_v5 = vld [vmem:[%s11223_s2 + $0xb4] sm:$0xf]  ;;  %1455 = vst.msk [vmem:[#allocation2 + $0x50] sm:$0xff] %vm970_vm0, %v11229_v26  ;;  %v1886_v27 = vld [vmem:[#allocation2 + $0x1] sm:$0xff] }
 0x180   : > { %v1323_v21 = vpop.f32.mrf.mxu2  ;;  %1456 = vst.msk [vmem:[#allocation2 + $0x58] sm:$0x3] %vm1445_vm2, %v11229_v26 }
 0x181   : > { %v8796_v15 = vadd.f32 %v1323_v21, %v1295_v8  ;;  %v6747_v21 = vor.u32 %v7619_v4, %v6746_v50  ;;  %1457 = vst.msk [vmem:[#allocation2 + $0x60] sm:$0xff] %vm970_vm0, %v11229_v26  ;;  %v6806_v4 = vld [vmem:[%s11223_s2 + $0x100] sm:$0xf] }
 0x182   : > { %1458 = vst.msk [vmem:[#allocation2 + $0x68] sm:$0x3] %vm1445_vm2, %v11229_v26 }
 0x183   : > { %v1403_v12 = vadd.f32 %v8745_v13, %v8796_v15  ;;  %v1433_v8 = vadd.f32 %v7785_v14, %v8796_v15  ;;  %2001 = vmatpush.bf16.msrb.mxu1 %v6747_v21  ;;  %1459 = vst.msk [vmem:[#allocation2 + $0x70] sm:$0xff] %vm970_vm0, %v11229_v26 }
 0x184   : > { %1460 = vst.msk [vmem:[#allocation2 + $0x78] sm:$0x3] %vm1445_vm2, %v11229_v26 }
 0x185   : > { %v1419_v25 = vmax.f32 %v1403_v12, 0.0  ;;  %v6751_v12 = vor.u32 %v7618_v5, %v6748_v9  ;;  %v1441_v53 = vmax.f32 %v1433_v8, 0.0  ;;  %1461 = vst.msk [vmem:[#allocation2 + $0x80] sm:$0xff] %vm970_vm0, %v11229_v26  ;;  %v7628_v5 = vld [vmem:[%s11223_s2 + $0x104] sm:$0xf] }
 0x186   : > { %1462 = vst.msk [vmem:[#allocation2 + $0x88] sm:$0x3] %vm1445_vm2, %v11229_v26 }
 0x187   : > { %1550 = vrot.lane.b32.xlu2 %v1419_v25, %s7884_s13  ;;  %1552 = vrot.lane.b32.xlu0 %v1420_v16, %s7884_s13  ;;  %v6647_v16 = vor.u32 %v7599_v11, %v6646_v10  ;;  %v6648_v25 = vld [vmem:[%s11223_s2 + $0x18] sm:$0xf0]  ;;  %1463 = vst.msk [vmem:[#allocation2 + $0x90] sm:$0xff] %vm970_vm0, %v11229_v26 }
 0x188   : > { %v1326_v23 = vpop.f32.mrf.mxu2  ;;  %2030 = vmatpush.bf16.msra.mxu2 %v6751_v12  ;;  %2002 = vmatpush.bf16.msrb.mxu1 %v6739_v52  ;;  %1464 = vst.msk [vmem:[#allocation2 + $0x98] sm:$0x3] %vm1445_vm2, %v11229_v26 }
 0x189   : > { %v8813_v63 = vadd.f32 %v1326_v23, %v1298_v20  ;;  %v7598_v20 = vld [vmem:[%s11223_s2 + $0x14] sm:$0xf]  ;;  %1491 = vst.msk [vmem:[#allocation4] sm:$0xff] %vm1370_vm1, %v11229_v26  ;;  %v1537_v50 = vpop.permute.xlu2 %1536 }
 0x18a   : > { %v6651_v60 = vor.u32 %v7598_v20, %v6648_v25  ;;  %1494 = vst.msk [vmem:[#allocation4 + $0x10] sm:$0xff] %vm1370_vm1, %v11229_v26  ;;  %v7627_v20 = vld [vmem:[%s11223_s2 + $0xf4] sm:$0xf0] }
 0x18b   : > { %v1405_v33 = vadd.f32 %v8745_v13, %v8813_v63  ;;  %v1434_v7 = vadd.f32 %v7785_v14, %v8813_v63  ;;  %1496 = vst.msk [vmem:[#allocation4 + $0x20] sm:$0xff] %vm1370_vm1, %v11229_v26 }
 0x18c   : > { %1831 = vmatpush.bf16.msrb.mxu0 %v6651_v60  ;;  %2031 = vmatpush.bf16.msra.mxu2 %v6743_v32  ;;  %1498 = vst.msk [vmem:[#allocation4 + $0x30] sm:$0xff] %vm1370_vm1, %v11229_v26  ;;  %v7626_v60 = vld [vmem:[%s11223_s2 + $0xf4] sm:$0xf] }
 0x18d   : > { %v1421_v40 = vmax.f32 %v1405_v33, 0.0  ;;  %v1442_v1 = vmax.f32 %v1434_v7, 0.0  ;;  %v6730_v33 = vld [vmem:[%s11223_s2 + $0x90] sm:$0xf]  ;;  %1500 = vst.msk [vmem:[#allocation4 + $0x40] sm:$0xff] %vm1370_vm1, %v11229_v26 }
 0x18e   : > { %1502 = vst.msk [vmem:[#allocation4 + $0x50] sm:$0xff] %vm1370_vm1, %v11229_v26 }
 0x18f   : > { %1556 = vrot.lane.b32.xlu2 %v1422_v36, %s7884_s13  ;;  %1554 = vrot.lane.b32.xlu1 %v1421_v40, %s7884_s13  ;;  %v6731_v36 = vor.u32 %v7615_v35, %v6730_v33  ;;  %v7614_v40 = vld [vmem:[%s11223_s2 + $0x94] sm:$0xf]  ;;  %1504 = vst.msk [vmem:[#allocation4 + $0x60] sm:$0xff] %vm1370_vm1, %v11229_v26 }
 0x190   : > { %v1328_v41 = vpop.f32.mrf.mxu2  ;;  %1832 = vmatpush.bf16.msrb.mxu0 %v6643_v47  ;;  %1506 = vst.msk [vmem:[#allocation4 + $0x70] sm:$0xff] %vm1370_vm1, %v11229_v26  ;;  %v6782_v47 = vld [vmem:[%s11223_s2 + $0xd0] sm:$0xf] }
 0x191   : > { %v8834_v45 = vadd.f32 %v1328_v41, %v1300_v38  ;;  %2003 = vmatpush.bf16.msrb.mxu1 %v6731_v36  ;;  %v6722_v41 = vld [vmem:[%s11223_s2 + $0x80] sm:$0xf]  ;;  %1508 = vst.msk [vmem:[#allocation4 + $0x80] sm:$0xff] %vm1370_vm1, %v11229_v26  ;;  %v1529_v8 = vpop.permute.xlu0 %1528 }
 0x192   : > { %1510 = vst.msk [vmem:[#allocation4 + $0x90] sm:$0xff] %vm1370_vm1, %v11229_v26  ;;  %v6790_v36 = vld [vmem:[%s11223_s2 + $0xe0] sm:$0xf] }
 0x193   : > { %v1407_v51 = vadd.f32 %v8745_v13, %v8834_v45  ;;  %v7601_v13 = vld [vmem:[%s11223_s2 + $0x24] sm:$0xf0]  ;;  %v1435_v6 = vadd.f32 %v7785_v14, %v8834_v45  ;;  %v6732_v14 = vld [vmem:[%s11223_s2 + $0x98] sm:$0xf0]  ;;  %1473 = vst.msk [vmem:[#allocation3 + $0x30] sm:$0xff] %vm1465_vm3, %v11229_v26 }
 0x194   : > { %v6655_v24 = vor.u32 %v7601_v13, %v6654_v58  ;;  %v6735_v38 = vor.u32 %v7614_v40, %v6732_v14  ;;  %v6716_v58 = vld [vmem:[%s11223_s2 + $0x78] sm:$0xf0]  ;;  %1474 = vst.msk [vmem:[#allocation3 + $0x38] sm:$0xf] %vm1467_vm4, %v11229_v26  ;;  %v7625_v40 = vld [vmem:[%s11223_s2 + $0xe4] sm:$0xf0] }
 0x195   : > { %v1423_v57 = vmax.f32 %v1407_v51, 0.0  ;;  %v1443_v23 = vmax.f32 %v1435_v6, 0.0  ;;  %v6714_v51 = vld [vmem:[%s11223_s2 + $0x70] sm:$0xf]  ;;  %1466 = vst.msk [vmem:[#allocation3] sm:$0xff] %vm1465_vm3, %v11229_v26  ;;  %v6791_v14 = vor.u32 %v7625_v40, %v6790_v36 }
 0x196   : > { %1801 = vmatpush.bf16.msrb.mxu3 %v6655_v24  ;;  %2032 = vmatpush.bf16.msra.mxu2 %v6735_v38  ;;  %v6814_v24 = vld [vmem:[%s11223_s2 + $0x110] sm:$0xf]  ;;  %1468 = vst.msk [vmem:[#allocation3 + $0x8] sm:$0xf] %vm1467_vm4, %v11229_v26  ;;  %v7624_v38 = vld [vmem:[%s11223_s2 + $0xe4] sm:$0xf] }
 0x197   : > { %1595 = vrot.lane.b32.xlu2 %v1437_v55, %s7885_s15  ;;  %1593 = vrot.lane.b32.xlu1 %v1436_v54, %s7885_s15  ;;  %v7611_v55 = vld [vmem:[%s11223_s2 + $0x74] sm:$0xf0]  ;;  %v6815_v18 = vor.u32 %v7631_v62, %v6814_v24  ;;  %1469 = vst.msk [vmem:[#allocation3 + $0x10] sm:$0xff] %vm1465_vm3, %v11229_v26 }
 0x198   : > { %1558 = vrot.lane.b32.xlu0 %v1423_v57, %s7884_s13  ;;  %v6715_v54 = vor.u32 %v7611_v55, %v6714_v51  ;;  %v7610_v57 = vld [vmem:[%s11223_s2 + $0x74] sm:$0xf]  ;;  %1470 = vst.msk [vmem:[#allocation3 + $0x18] sm:$0xf] %vm1467_vm4, %v11229_v26  ;;  %v7623_v51 = vld [vmem:[%s11223_s2 + $0xd4] sm:$0xf0] }
 0x199   : > { %v6719_v13 = vor.u32 %v7610_v57, %v6716_v58  ;;  %v1533_v10 = vpop.permute.xlu1 %1532  ;;  %1471 = vst.msk [vmem:[#allocation3 + $0x20] sm:$0xff] %vm1465_vm3, %v11229_v26  ;;  %v6783_v55 = vor.u32 %v7623_v51, %v6782_v47  ;;  %v6784_v57 = vld [vmem:[%s11223_s2 + $0xd8] sm:$0xf0]  ;;  %v7635_v36 = vld [vmem:[%s11223_s2 + $0x134] sm:$0xf0] }
 0x19a   : > { %1802 = vmatpush.bf16.msrb.mxu3 %v6647_v16  ;;  %v6798_v16 = vld [vmem:[%s11223_s2 + $0xf0] sm:$0xf]  ;;  %1472 = vst.msk [vmem:[#allocation3 + $0x28] sm:$0xf] %vm1467_vm4, %v11229_v26 }
 0x19b   : > { %v6799_v25 = vor.u32 %v7627_v20, %v6798_v16  ;;  %1475 = vst.msk [vmem:[#allocation3 + $0x40] sm:$0xff] %vm1465_vm3, %v11229_v26 }
 0x19c   : > { %1476 = vst.msk [vmem:[#allocation3 + $0x48] sm:$0xf] %vm1467_vm4, %v11229_v26 }
 0x19d   : > { %1477 = vst.msk [vmem:[#allocation3 + $0x50] sm:$0xff] %vm1465_vm3, %v11229_v26 }
 0x19e   : > { %1803 = vmatpush.bf16.msrb.mxu3 %v6639_v44  ;;  %1478 = vst.msk [vmem:[#allocation3 + $0x58] sm:$0xf] %vm1467_vm4, %v11229_v26  ;;  %v6884_v44 = vld [vmem:[%s11223_s2 + $0x178] sm:$0xf0] }
 0x19f   : > { %1601 = vrot.lane.b32.xlu2 %v1440_v2, %s7885_s15  ;;  %1599 = vrot.lane.b32.xlu1 %v1439_v56, %s7885_s15  ;;  %v6816_v2 = vld [vmem:[%s11223_s2 + $0x118] sm:$0xf0]  ;;  %1479 = vst.msk [vmem:[#allocation3 + $0x60] sm:$0xff] %vm1465_vm3, %v11229_v26  ;;  %v6887_v49 = vor.u32 %v7642_v46, %v6884_v44  ;;  %v6844_v46 = vld [vmem:[%s11223_s2 + $0x128] sm:$0xf0] }
 0x1a0   : > { %1597 = vrot.lane.b32.xlu0 %v1438_v3, %s7885_s15  ;;  %v6819_v56 = vor.u32 %v7630_v0, %v6816_v2  ;;  %v7786_v3 = vld [vmem:[%s11225_s4 + $0x2] ss:$0 sm:$0xff]  ;;  %1480 = vst.msk [vmem:[#allocation3 + $0x68] sm:$0xf] %vm1467_vm4, %v11229_v26  ;;  %v6876_v0 = vld [vmem:[%s11223_s2 + $0x168] sm:$0xf0] }
 0x1a1   : > { %1481 = vst.msk [vmem:[#allocation3 + $0x70] sm:$0xff] %vm1465_vm3, %v11229_v26 }
 0x1a2   : > { %2204 = vmatpush.bf16.msra.mxu3 %v6815_v18  ;;  %2233 = vmatpush.bf16.msra.mxu0 %v6819_v56  ;;  %1482 = vst.msk [vmem:[#allocation3 + $0x78] sm:$0xf] %vm1467_vm4, %v11229_v26  ;;  %v7640_v18 = vld [vmem:[%s11223_s2 + $0x164] sm:$0xf] }
 0x1a3   : > { %1483 = vst.msk [vmem:[#allocation3 + $0x80] sm:$0xff] %vm1465_vm3, %v11229_v26 }
 0x1a4   : > { %1484 = vst.msk [vmem:[#allocation3 + $0x88] sm:$0xf] %vm1467_vm4, %v11229_v26 }
 0x1a5   : > { %1485 = vst.msk [vmem:[#allocation3 + $0x90] sm:$0xff] %vm1465_vm3, %v11229_v26 }
 0x1a6   : > { %1486 = vst.msk [vmem:[#allocation3 + $0x98] sm:$0xf] %vm1467_vm4, %v11229_v26 }
 0x1a7   : > { %1607 = vrot.lane.b32.xlu2 %v1443_v23, %s7885_s15  ;;  %1605 = vrot.lane.b32.xlu1 %v1442_v1, %s7885_s15  ;;  %v6800_v23 = vld [vmem:[%s11223_s2 + $0xf8] sm:$0xf0]  ;;  %1487 = vst.msk [vmem:[#allocation3 + $0xa0] sm:$0xff] %vm1465_vm3, %v11229_v26 }
 0x1a8   : > { %1603 = vrot.lane.b32.xlu0 %v1441_v53, %s7885_s15  ;;  %v6803_v1 = vor.u32 %v7626_v60, %v6800_v23  ;;  %v1684_v53 = vld [vmem:[#allocation2] sm:$0xff]  ;;  %1488 = vst.msk [vmem:[#allocation3 + $0xa8] sm:$0xf] %vm1467_vm4, %v11229_v26  ;;  %v6860_v23 = vld [vmem:[%s11223_s2 + $0x148] sm:$0xf0] }
 0x1a9   : > { %1489 = vst.msk [vmem:[#allocation3 + $0xb0] sm:$0xff] %vm1465_vm3, %v11229_v26 }
 0x1aa   : > { %1490 = vst.msk [vmem:[#allocation3 + $0xb8] sm:$0xf] %vm1467_vm4, %v11229_v26 }
 0x1ab   : > { %1499 = vst.msk [vmem:[#allocation4 + $0x38] sm:$0x3] %vm1492_vm5, %v11229_v26 }
 0x1ac   : > { %1493 = vst.msk [vmem:[#allocation4 + $0x8] sm:$0x3] %vm1492_vm5, %v11229_v26 }
 0x1ad   : > { %1495 = vst.msk [vmem:[#allocation4 + $0x18] sm:$0x3] %vm1492_vm5, %v11229_v26 }
 0x1ae   : > { %1497 = vst.msk [vmem:[#allocation4 + $0x28] sm:$0x3] %vm1492_vm5, %v11229_v26 }
 0x1af   : > { %1638 = vrot.lane.b32.xlu2 %v8761_v37, %s7887_s14  ;;  %1636 = vrot.lane.b32.xlu1 %v8755_v29, %s7887_s14  ;;  %v7613_v37 = vld [vmem:[%s11223_s2 + $0x84] sm:$0xf0]  ;;  %1501 = vst.msk [vmem:[#allocation4 + $0x48] sm:$0x3] %vm1492_vm5, %v11229_v26 }
 0x1b0   : > { %1634 = vrot.lane.b32.xlu0 %v8749_v17, %s7887_s14  ;;  %v6723_v29 = vor.u32 %v7613_v37, %v6722_v41  ;;  %v7612_v17 = vld [vmem:[%s11223_s2 + $0x84] sm:$0xf]  ;;  %v6792_v41 = vld [vmem:[%s11223_s2 + $0xe8] sm:$0xf0]  ;;  %1503 = vst.msk [vmem:[#allocation4 + $0x58] sm:$0x3] %vm1492_vm5, %v11229_v26 }
 0x1b1   : > { %v6727_v43 = vor.u32 %v7612_v17, %v6724_v42  ;;  %v6882_v42 = vld [vmem:[%s11223_s2 + $0x170] sm:$0xf]  ;;  %1505 = vst.msk [vmem:[#allocation4 + $0x68] sm:$0x3] %vm1492_vm5, %v11229_v26 }
 0x1b2   : > { %2004 = vmatpush.bf16.msrb.mxu1 %v6723_v29  ;;  %v6795_v29 = vor.u32 %v7624_v38, %v6792_v41  ;;  %1507 = vst.msk [vmem:[#allocation4 + $0x78] sm:$0x3] %vm1492_vm5, %v11229_v26  ;;  %v6852_v38 = vld [vmem:[%s11223_s2 + $0x138] sm:$0xf0] }
 0x1b3   : > { %2033 = vmatpush.bf16.msra.mxu2 %v6727_v43  ;;  %v7643_v43 = vld [vmem:[%s11223_s2 + $0x174] sm:$0xf0]  ;;  %1509 = vst.msk [vmem:[#allocation4 + $0x88] sm:$0x3] %vm1492_vm5, %v11229_v26 }
 0x1b4   : > { %v6883_v39 = vor.u32 %v7643_v43, %v6882_v42  ;;  %1511 = vst.msk [vmem:[#allocation4 + $0x98] sm:$0x3] %vm1492_vm5, %v11229_v26  ;;  %v7632_v42 = vld [vmem:[%s11223_s2 + $0x124] sm:$0xf] }
 0x1b6   : > { %2005 = vmatpush.bf16.msrb.mxu1 %v6715_v54  ;;  %v7622_v54 = vld [vmem:[%s11223_s2 + $0xd4] sm:$0xf] }
 0x1b7   : > { %1644 = vrot.lane.b32.xlu2 %v8796_v15, %s7887_s14  ;;  %1642 = vrot.lane.b32.xlu1 %v8776_v22, %s7887_s14  ;;  %v7609_v15 = vld [vmem:[%s11223_s2 + $0x64] sm:$0xf0]  ;;  %v6787_v58 = vor.u32 %v7622_v54, %v6784_v57  ;;  %v6847_v54 = vor.u32 %v7632_v42, %v6844_v46  ;;  %v7012_v46 = vld [vmem:[%s11223_s2 + $0x228] sm:$0xf0] }
 0x1b8   : > { %1640 = vrot.lane.b32.xlu0 %v8768_v19, %s7887_s14  ;;  %2034 = vmatpush.bf16.msra.mxu2 %v6719_v13  ;;  %v6707_v22 = vor.u32 %v7609_v15, %v6706_v59  ;;  %v7608_v19 = vld [vmem:[%s11223_s2 + $0x64] sm:$0xf] }
 0x1b9   : > { %v6711_v34 = vor.u32 %v7608_v19, %v6708_v61  ;;  %v6874_v61 = vld [vmem:[%s11223_s2 + $0x160] sm:$0xf] }
 0x1ba   : > { %2006 = vmatpush.bf16.msrb.mxu1 %v6707_v22 }
 0x1bc   : > { %2035 = vmatpush.bf16.msra.mxu2 %v6711_v34  ;;  %v7641_v34 = vld [vmem:[%s11223_s2 + $0x164] sm:$0xf0] }
 0x1bd   : > { %v6875_v62 = vor.u32 %v7641_v34, %v6874_v61 }
 0x1be   : > { %2407 = vmatpush.bf16.msra.mxu1 %v6883_v39 }
 0x1bf   : > { %1648 = vrot.lane.b32.xlu1 %v8834_v45, %s7887_s14  ;;  %6056 = vrot.lane.b32.xlu2 %v7786_v3, %s7887_s14  ;;  %v7629_v45 = vld [vmem:[%s11223_s2 + $0x104] sm:$0xf0]  ;;  %v6879_v3 = vor.u32 %v7640_v18, %v6876_v0 }
 0x1c0   : > { %1646 = vrot.lane.b32.xlu0 %v8813_v63, %s7887_s14  ;;  %v6807_v6 = vor.u32 %v7629_v45, %v6806_v4  ;;  %v6808_v63 = vld [vmem:[%s11223_s2 + $0x108] sm:$0xf0]  ;;  %2436 = vmatpush.bf16.msrb.mxu2 %v6887_v49  ;;  %v6866_v4 = vld [vmem:[%s11223_s2 + $0x150] sm:$0xf]  ;;  %v7639_v45 = vld [vmem:[%s11223_s2 + $0x154] sm:$0xf0] }
 0x1c1   : > { %v6811_v7 = vor.u32 %v7628_v5, %v6808_v63  ;;  %v6867_v5 = vor.u32 %v7639_v45, %v6866_v4  ;;  %v6868_v63 = vld [vmem:[%s11223_s2 + $0x158] sm:$0xf0]  ;;  %v7652_v4 = vld [vmem:[%s11223_s2 + $0x1c4] sm:$0xf]  ;;  %v6944_v45 = vld [vmem:[%s11223_s2 + $0x1c8] sm:$0xf0] }
 0x1c2   : > { %2205 = vmatpush.bf16.msra.mxu3 %v6807_v6  ;;  %2408 = vmatpush.bf16.msra.mxu1 %v6875_v62  ;;  %v7638_v6 = vld [vmem:[%s11223_s2 + $0x154] sm:$0xf]  ;;  %s7888_s14 = smov 16  }
 0x1c3   : > { %2234 = vmatpush.bf16.msra.mxu0 %v6811_v7  ;;  %v6871_v7 = vor.u32 %v7638_v6, %v6868_v63 }
 0x1c4   : > { %2437 = vmatpush.bf16.msrb.mxu2 %v6879_v3  ;;  %v7653_v3 = vld [vmem:[%s11223_s2 + $0x1c4] sm:$0xf0] }
 0x1c6   : > { %2206 = vmatpush.bf16.msra.mxu3 %v6799_v25  ;;  %2409 = vmatpush.bf16.msra.mxu1 %v6867_v5  ;;  %v7636_v25 = vld [vmem:[%s11223_s2 + $0x144] sm:$0xf]  ;;  %v6947_v5 = vor.u32 %v7652_v4, %v6944_v45 }
 0x1c7   : > { %2235 = vmatpush.bf16.msra.mxu0 %v6803_v1  ;;  %v5900_v45 = vld [vmem:[#allocation4] sm:$0xff] }
 0x1c8   : > { %2438 = vmatpush.bf16.msrb.mxu2 %v6871_v7 }
 0x1c9   : > { %v1539_v21 = vpop.permute.xlu2 %1538 }
 0x1ca   : > { %v1562_v9 = vsel %vm1370_vm1, %v1537_v50, %v1539_v21  ;;  %2207 = vmatpush.bf16.msra.mxu3 %v6791_v14  ;;  %v7634_v14 = vld [vmem:[%s11223_s2 + $0x134] sm:$0xf] }
 0x1cb   : > { %1579 = vst.msk [vmem:[#allocation2 + $0x31] sm:$0xff] %vm970_vm0, %v1562_v9  ;;  %2236 = vmatpush.bf16.msra.mxu0 %v6795_v29  ;;  %v6858_v9 = vld [vmem:[%s11223_s2 + $0x140] sm:$0xf]  ;;  %v6855_v41 = vor.u32 %v7634_v14, %v6852_v38 }
 0x1cc   : > { %v6842_v29 = vld [vmem:[%s11223_s2 + $0x120] sm:$0xf] }
 0x1ce   : > { %2208 = vmatpush.bf16.msra.mxu3 %v6783_v55 }
 0x1cf   : > { %2237 = vmatpush.bf16.msra.mxu0 %v6787_v58  ;;  %v6950_v58 = vld [vmem:[%s11223_s2 + $0x1d0] sm:$0xf] }
 0x1d1   : > { %v1531_v11 = vpop.permute.xlu0 %1530  ;;  %v9104_v28 = vpop.permute.xlu2 %1544 }
 0x1d2   : > { %v1560_v12 = vsel %vm1370_vm1, %v1529_v8, %v1531_v11  ;;  %v9185_v15 = vld [vmem:[#allocation2 + $0x30] sm:$0xff] }
 0x1d3   : > { %1577 = vst.msk [vmem:[#allocation2 + $0x11] sm:$0xff] %vm970_vm0, %v1560_v12  ;;  %v1889_v56 = vld [vmem:[#allocation2 + $0x31] sm:$0xff] }
 0x1d9   : > { %v1535_v52 = vpop.permute.xlu1 %1534  ;;  %v1541_v13 = vpop.permute.xlu0 %1540 }
 0x1da   : > { %v1561_v30 = vsel %vm1370_vm1, %v1533_v10, %v1535_v52  ;;  %v9109_v31 = vld [vmem:[#allocation2 + $0x10] sm:$0xff]  ;;  %v7637_v10 = vld [vmem:[%s11223_s2 + $0x144] sm:$0xf0] }
 0x1db   : > { %v1887_v32 = vld [vmem:[#allocation2 + $0x11] sm:$0xff]  ;;  %1578 = vst.msk [vmem:[#allocation2 + $0x21] sm:$0xff] %vm970_vm0, %v1561_v30  ;;  %v1708_v33 = vpack.c.bf16 %v9109_v31, %v1684_v53  ;;  %v6859_v20 = vor.u32 %v7637_v10, %v6858_v9  ;;  %v6863_v53 = vor.u32 %v7636_v25, %v6860_v23  ;;  %v7621_v52 = vld [vmem:[%s11223_s2 + $0xc4] sm:$0xf0]  ;;  %v7620_v30 = vld [vmem:[%s11223_s2 + $0xc4] sm:$0xf] }
 0x1dc   : > { %v1910_v35 = vpack.c.bf16 %v1887_v32, %v1886_v27  ;;  %v6774_v27 = vld [vmem:[%s11223_s2 + $0xc0] sm:$0xf]  ;;  %v6934_v25 = vld [vmem:[%s11223_s2 + $0x1b0] sm:$0xf] }
 0x1dd   : > { %6684 = vmatmul.msk.bf16.vlgmr.msrb.gmra.mxu3 %vm970_vm0, %v1708_v33  ;;  %6688 = vmatmul.msk.bf16.vlgmr.msrb.gmra.mxu0 %vm970_vm0, %v1708_v33 }
 0x1de   : > { %6752 = vmatmul.msk.bf16.vlgmr.msrb.gmra.mxu1 %vm970_vm0, %v1910_v35  ;;  %6756 = vmatmul.msk.bf16.vlgmr.msra.gmra.mxu2 %vm970_vm0, %v1910_v35  ;;  %v6850_v35 = vld [vmem:[%s11223_s2 + $0x130] sm:$0xf] }
 0x1df   : > { %2410 = vmatpush.bf16.msra.mxu1 %v6859_v20  ;;  %2439 = vmatpush.bf16.msrb.mxu2 %v6863_v53  ;;  %v6851_v40 = vor.u32 %v7635_v36, %v6850_v35  ;;  %v7650_v53 = vld [vmem:[%s11223_s2 + $0x1b4] sm:$0xf] }
 0x1e1   : > { %v9141_v37 = vpop.permute.xlu2 %1550 }
 0x1e2   : > { %v1888_v17 = vld [vmem:[#allocation2 + $0x21] sm:$0xff] }
 0x1e3   : > { %v9163_v48 = vpack.c.bf16 %v1888_v17, %v1887_v32  ;;  %v9183_v59 = vld [vmem:[#allocation2 + $0x20] sm:$0xff]  ;;  %v1911_v50 = vpack.c.bf16 %v1889_v56, %v1888_v17  ;;  %v6776_v32 = vld [vmem:[%s11223_s2 + $0xc8] sm:$0xf0]  ;;  %2411 = vmatpush.bf16.msra.mxu1 %v6851_v40  ;;  %v7633_v17 = vld [vmem:[%s11223_s2 + $0x124] sm:$0xf0]  ;;  %2440 = vmatpush.bf16.msrb.mxu2 %v6855_v41 }
 0x1e4   : > { %v1709_v2 = vpack.c.bf16 %v9185_v15, %v9183_v59  ;;  %v6779_v33 = vor.u32 %v7620_v30, %v6776_v32  ;;  %v6843_v39 = vor.u32 %v7633_v17, %v6842_v29  ;;  %v9373_v30 = vld [vmem:[#allocation2 + $0x12] sm:$0xff] }
 0x1e6   : > { %2238 = vmatpush.bf16.msra.mxu0 %v6779_v33 }
 0x1e7   : > { %2412 = vmatpush.bf16.msra.mxu1 %v6843_v39  ;;  %2441 = vmatpush.bf16.msrb.mxu2 %v6847_v54 }
 0x1e9   : > { %v9189_v22 = vpop.permute.xlu2 %1556  ;;  %v1543_v19 = vpop.permute.xlu1 %1542 }
 0x1ea   : > { %v1563_v24 = vsel %vm1370_vm1, %v1541_v13, %v1543_v19  ;;  %v7655_v13 = vld [vmem:[%s11223_s2 + $0x1d4] sm:$0xf0]  ;;  %v7654_v19 = vld [vmem:[%s11223_s2 + $0x1d4] sm:$0xf] }
 0x1eb   : > { %1580 = vst.msk [vmem:[#allocation2 + $0x41] sm:$0xff] %vm970_vm0, %v1563_v24  ;;  %v6951_v34 = vor.u32 %v7655_v13, %v6950_v58  ;;  %v6952_v24 = vld [vmem:[%s11223_s2 + $0x1d8] sm:$0xf0] }
 0x1ec   : > { %v6955_v0 = vor.u32 %v7654_v19, %v6952_v24  ;;  %v2316_v19 = vpack.c.bf16 %v9183_v59, %v9109_v31 }
 0x1ed   : > { %6685 = vmatmul.msk.bf16.gmra.mxu3 %vm970_vm0, %v1709_v2  ;;  %6689 = vmatmul.msk.bf16.gmra.mxu0 %vm970_vm0, %v1709_v2 }
 0x1ee   : > { %6753 = vmatmul.msk.bf16.gmra.mxu1 %vm970_vm0, %v1911_v50  ;;  %6757 = vmatmul.msk.bf16.gmra.mxu2 %vm970_vm0, %v1911_v50 }
 0x1ef   : > { %2639 = vmatpush.bf16.msrb.mxu0 %v6955_v0 }
 0x1f1   : > { %v1596_v8 = vpop.permute.xlu2 %1595  ;;  %v1549_v21 = vpop.permute.xlu1 %1548 }
 0x1f2   : > { %1619 = vst.msk [vmem:[#allocation3 + $0x32] sm:$0xff] %vm1465_vm3, %v1596_v8  ;;  %v1565_v11 = vsel %vm1370_vm1, %v1549_v21, %v9141_v37  ;;  %v1547_v12 = vpop.permute.xlu0 %1546  ;;  %v1890_v16 = vld [vmem:[#allocation2 + $0x41] sm:$0xff] }
 0x1f3   : > { %1582 = vst.msk [vmem:[#allocation2 + $0x61] sm:$0xff] %vm970_vm0, %v1565_v11  ;;  %v1564_v60 = vsel %vm1370_vm1, %v9104_v28, %v1547_v12  ;;  %v9257_v1 = vpack.c.bf16 %v1890_v16, %v1889_v56  ;;  %v6775_v28 = vor.u32 %v7621_v52, %v6774_v27  ;;  %v9301_v44 = vld [vmem:[#allocation2 + $0x40] sm:$0xff]  ;;  %2640 = vmatpush.bf16.msrb.mxu0 %v6947_v5  ;;  %v6936_v27 = vld [vmem:[%s11223_s2 + $0x1b8] sm:$0xf0] }
 0x1f4   : > { %1581 = vst.msk [vmem:[#allocation2 + $0x51] sm:$0xff] %vm970_vm0, %v1564_v60  ;;  %v6942_v56 = vld [vmem:[%s11223_s2 + $0x1c0] sm:$0xf]  ;;  %v7651_v60 = vld [vmem:[%s11223_s2 + $0x1b4] sm:$0xf0]  ;;  %v6939_v52 = vor.u32 %v7650_v53, %v6936_v27 }
 0x1f5   : > { %2209 = vmatpush.bf16.msra.mxu3 %v6775_v28  ;;  %v6943_v50 = vor.u32 %v7653_v3, %v6942_v56  ;;  %v6935_v23 = vor.u32 %v7651_v60, %v6934_v25  ;;  %v2089_v28 = vld [vmem:[#allocation2 + $0x2] sm:$0xff]  ;;  %v7018_v27 = vld [vmem:[%s11223_s2 + $0x230] sm:$0xf] }
 0x1f6   : > { %v6926_v56 = vld [vmem:[%s11223_s2 + $0x1a0] sm:$0xf]  ;;  %v7649_v3 = vld [vmem:[%s11223_s2 + $0x1a4] sm:$0xf0] }
 0x1f7   : > { %2641 = vmatpush.bf16.msrb.mxu0 %v6939_v52  ;;  %v5916_v5 = vld [vmem:[#allocation4 + $0x1] sm:$0xff]  ;;  %v7667_v52 = vld [vmem:[%s11223_s2 + $0x234] sm:$0xf0] }
 0x1f9   : > { %v1602_v37 = vpop.permute.xlu2 %1601  ;;  %2610 = vmatpush.bf16.msrb.mxu3 %v6951_v34  ;;  %v9375_v33 = vld [vmem:[#allocation3 + $0x30] sm:$0xff] }
 0x1fa   : > { %1622 = vst.msk [vmem:[#allocation3 + $0x62] sm:$0xff] %vm1465_vm3, %v1602_v37  ;;  %v1892_v43 = vld [vmem:[#allocation2 + $0x61] sm:$0xff]  ;;  %v1553_v61 = vpop.permute.xlu0 %1552  ;;  %v9386_v41 = vld [vmem:[#allocation3 + $0x31] sm:$0xff] }
 0x1fb   : > { %v9303_v49 = vld [vmem:[#allocation2 + $0x50] sm:$0xff]  ;;  %v9341_v8 = vld [vmem:[#allocation2 + $0x60] sm:$0xff] }
 0x1fc   : > { %v1891_v47 = vld [vmem:[#allocation2 + $0x51] sm:$0xff]  ;;  %v1710_v51 = vpack.c.bf16 %v9303_v49, %v9301_v44 }
 0x1fd   : > { %v1912_v55 = vpack.c.bf16 %v1891_v47, %v1890_v16  ;;  %v9307_v57 = vpack.c.bf16 %v1892_v43, %v1891_v47  ;;  %2611 = vmatpush.bf16.msrb.mxu3 %v6943_v50  ;;  %v9428_v0 = vld [vmem:[#allocation3 + $0x30] sm:$0xff]  ;;  %v7648_v50 = vld [vmem:[%s11223_s2 + $0x1a4] sm:$0xf] }
 0x1fe   : > { %6686 = vmatmul.msk.bf16.gmra.mxu3 %vm970_vm0, %v1710_v51  ;;  %6690 = vmatmul.msk.bf16.gmra.mxu0 %vm970_vm0, %v1710_v51  ;;  %v2113_v51 = vpack.c.bf16 %v9373_v30, %v2089_v28  ;;  %v9458_v25 = vld [vmem:[#allocation3 + $0x34] sm:$0xff] }
 0x1ff   : > { %6754 = vmatmul.msk.bf16.gmra.mxu1 %vm970_vm0, %v1912_v55  ;;  %6758 = vmatmul.msk.bf16.gmra.mxu2 %vm970_vm0, %v1912_v55  ;;  %v9406_v55 = vld [vmem:[#allocation3 + $0x34] sm:$0xff] }
 0x200   : > { %v7666_v28 = vld [vmem:[%s11223_s2 + $0x234] sm:$0xf] }
 0x201   : > { %v1608_v62 = vpop.permute.xlu2 %1607  ;;  %v1555_v18 = vpop.permute.xlu1 %1554  ;;  %2612 = vmatpush.bf16.msrb.mxu3 %v6935_v23  ;;  %v9377_v35 = vld [vmem:[#allocation3 + $0x60] sm:$0xff] }
 0x202   : > { %1625 = vst.msk [vmem:[#allocation3 + $0x92] sm:$0xff] %vm1465_vm3, %v1608_v62  ;;  %v1566_v2 = vsel %vm1370_vm1, %v1553_v61, %v1555_v18  ;;  %v9379_v36 = vld [vmem:[#allocation3 + $0x61] sm:$0xff]  ;;  %v9416_v61 = vld [vmem:[#allocation3 + $0x32] sm:$0xff] }
 0x203   : > { %1583 = vst.msk [vmem:[#allocation2 + $0x71] sm:$0xff] %vm970_vm0, %v1566_v2  ;;  %v9381_v40 = vld [vmem:[#allocation3 + $0x64] sm:$0xff] }
 0x204   : > { %v9418_v34 = vld [vmem:[#allocation3 + $0x62] sm:$0xff] }
 0x205   : > { %v9434_v2 = vld [vmem:[#allocation3 + $0x60] sm:$0xff] }
 0x209   : > { %v1639_v6 = vpop.permute.xlu2 %1638  ;;  %v1594_v63 = vpop.permute.xlu1 %1593 }
 0x20a   : > { %1661 = vst.msk [vmem:[#allocation4 + $0x31] sm:$0xff] %vm1370_vm1, %v1639_v6  ;;  %v1559_v7 = vpop.permute.xlu0 %1558  ;;  %v9343_v21 = vld [vmem:[#allocation2 + $0x70] sm:$0xff]  ;;  %v6927_v6 = vor.u32 %v7649_v3, %v6926_v56  ;;  %v7647_v56 = vld [vmem:[%s11223_s2 + $0x194] sm:$0xf0]  ;;  %v9486_v3 = vld [vmem:[#allocation2 + $0x22] sm:$0xff] }
 0x20b   : > { %v9345_v9 = vld [vmem:[#allocation2 + $0x71] sm:$0xff]  ;;  %1618 = vst.msk [vmem:[#allocation3 + $0x22] sm:$0xff] %vm1465_vm3, %v1594_v63  ;;  %v1567_v10 = vsel %vm1370_vm1, %v9189_v22, %v1559_v7  ;;  %v1711_v11 = vpack.c.bf16 %v9343_v21, %v9341_v8  ;;  %v6928_v63 = vld [vmem:[%s11223_s2 + $0x1a8] sm:$0xf0] }
 0x20c   : > { %v1913_v12 = vpack.c.bf16 %v9345_v9, %v1892_v43  ;;  %1584 = vst.msk [vmem:[#allocation2 + $0x81] sm:$0xff] %vm970_vm0, %v1567_v10  ;;  %v6931_v10 = vor.u32 %v7648_v50, %v6928_v63  ;;  %2613 = vmatpush.bf16.msrb.mxu3 %v6927_v6  ;;  %v7646_v6 = vld [vmem:[%s11223_s2 + $0x194] sm:$0xf]  ;;  %v6920_v63 = vld [vmem:[%s11223_s2 + $0x198] sm:$0xf0] }
 0x20e   : > { %6687 = vmatmul.msk.bf16.gmra.mxu3 %vm970_vm0, %v1711_v11  ;;  %6691 = vmatmul.msk.bf16.gmra.mxu0 %vm970_vm0, %v1711_v11 }
 0x20f   : > { %6755 = vmatmul.msk.bf16.gmra.mxu1 %vm970_vm0, %v1913_v12  ;;  %6759 = vmatmul.msk.bf16.gmra.mxu2 %vm970_vm0, %v1913_v12 }
 0x210   : > { %2642 = vmatpush.bf16.msrb.mxu0 %v6931_v10  ;;  %v9496_v10 = vld [vmem:[#allocation3 + $0x62] sm:$0xff] }
 0x211   : > { %v1645_v16 = vpop.permute.xlu2 %1644  ;;  %v1600_v20 = vpop.permute.xlu1 %1599  ;;  %11243 = vst [vmem:[#allocation11_spill] sm:$0xff] %v9496_v10 }
 0x212   : > { %1664 = vst.msk [vmem:[#allocation4 + $0x61] sm:$0xff] %vm1370_vm1, %v1645_v16  ;;  %v1598_v22 = vpop.permute.xlu0 %1597 }
 0x213   : > { %1621 = vst.msk [vmem:[#allocation3 + $0x52] sm:$0xff] %vm1465_vm3, %v1600_v20  ;;  %v5924_v20 = vadd.f32 %v5916_v5, %v5900_v45 }
 0x214   : > { %1620 = vst.msk [vmem:[#allocation3 + $0x42] sm:$0xff] %vm1465_vm3, %v1598_v22  ;;  %v5932_v22 = vld [vmem:[#allocation4 + $0x2] sm:$0xff] }
 0x215   : > { %v5940_v50 = vadd.f32 %v5932_v22, %v5924_v20  ;;  %v9502_v20 = vld [vmem:[#allocation4 + $0x31] sm:$0xff]  ;;  %v6923_v22 = vor.u32 %v7646_v6, %v6920_v63 }
 0x217   : > { %2643 = vmatpush.bf16.msrb.mxu0 %v6923_v22 }
 0x219   : > { %v1606_v32 = vpop.permute.xlu1 %1605 }
 0x21a   : > { %1624 = vst.msk [vmem:[#allocation3 + $0x82] sm:$0xff] %vm1465_vm3, %v1606_v32  ;;  %v1604_v14 = vpop.permute.xlu0 %1603  ;;  %v9384_v38 = vld [vmem:[#allocation3 + $0x50] sm:$0xff]  ;;  %v9475_v32 = vld [vmem:[#allocation3 + $0x64] sm:$0xff] }
 0x21b   : > { %v9388_v37 = vld [vmem:[#allocation3 + $0x51] sm:$0xff]  ;;  %1623 = vst.msk [vmem:[#allocation3 + $0x72] sm:$0xff] %vm1465_vm3, %v1604_v14  ;;  %v9393_v17 = vld [vmem:[#allocation3 + $0x40] sm:$0xff]  ;;  %v7019_v14 = vor.u32 %v7667_v52, %v7018_v27 }
 0x21c   : > { %v9390_v29 = vld [vmem:[#allocation3 + $0x54] sm:$0xff]  ;;  %v9395_v42 = vld [vmem:[#allocation3 + $0x41] sm:$0xff] }
 0x21d   : > { %v9397_v43 = vld [vmem:[#allocation3 + $0x44] sm:$0xff]  ;;  %v9412_v13 = vld [vmem:[#allocation3 + $0x52] sm:$0xff]  ;;  %2813 = vmatpush.bf16.msrb.mxu1 %v7019_v14 }
 0x21e   : > { %v9410_v58 = vld [vmem:[#allocation3 + $0x42] sm:$0xff]  ;;  %6820 = vmatmul.msk.bf16.vlgmr.msra.gmra.mxu3 %vm970_vm0, %v2113_v51  ;;  %6824 = vmatmul.msk.bf16.vlgmr.msra.gmra.mxu0 %vm970_vm0, %v2113_v51  ;;  %v9432_v59 = vld [vmem:[#allocation3 + $0x50] sm:$0xff]  ;;  %v7020_v51 = vld [vmem:[%s11223_s2 + $0x238] sm:$0xf0] }
 0x21f   : > { %v9430_v31 = vld [vmem:[#allocation3 + $0x40] sm:$0xff]  ;;  %6888 = vmatmul.msk.bf16.vlgmr.msra.gmra.mxu1 %vm970_vm0, %v2316_v19  ;;  %6892 = vmatmul.msk.bf16.vlgmr.msrb.gmra.mxu2 %vm970_vm0, %v2316_v19  ;;  %v9464_v53 = vld [vmem:[#allocation3 + $0x54] sm:$0xff]  ;;  %v6918_v19 = vld [vmem:[%s11223_s2 + $0x190] sm:$0xf]  ;;  %v7023_v45 = vor.u32 %v7666_v28, %v7020_v51  ;;  %v2317_v51 = vpack.c.bf16 %v9301_v44, %v9185_v15 }
 0x220   : > { %v9460_v60 = vld [vmem:[#allocation3 + $0x42] sm:$0xff]  ;;  %v6919_v5 = vor.u32 %v7647_v56, %v6918_v19  ;;  %v9500_v27 = vld [vmem:[#allocation4 + $0x30] sm:$0xff]  ;;  %v7663_v44 = vld [vmem:[%s11223_s2 + $0x214] sm:$0xf0] }
 0x221   : > { %v1637_v7 = vpop.permute.xlu1 %1636  ;;  %11242 = vst [vmem:[#allocation10_spill] sm:$0xff] %v9460_v60  ;;  %v9462_v23 = vld [vmem:[#allocation3 + $0x44] sm:$0xff]  ;;  %v9510_v56 = vld [vmem:[#allocation2 + $0x32] sm:$0xff]  ;;  %2842 = vmatpush.bf16.msra.mxu2 %v7023_v45  ;;  %v7010_v45 = vld [vmem:[%s11223_s2 + $0x220] sm:$0xf]  ;;  %v5927_v54 = vadd.f32 %v9502_v20, %v9500_v27 }
 0x222   : > { %1660 = vst.msk [vmem:[#allocation4 + $0x21] sm:$0xff] %vm1370_vm1, %v1637_v7  ;;  %v1635_v16 = vpop.permute.xlu0 %1634  ;;  %v9494_v7 = vld [vmem:[#allocation3 + $0x52] sm:$0xff]  ;;  %2614 = vmatpush.bf16.msrb.mxu3 %v6919_v5  ;;  %v7665_v5 = vld [vmem:[%s11223_s2 + $0x224] sm:$0xf0]  ;;  %v2114_v22 = vpack.c.bf16 %v9510_v56, %v9486_v3 }
 0x223   : > { %1659 = vst.msk [vmem:[#allocation4 + $0x11] sm:$0xff] %vm1370_vm1, %v1635_v16  ;;  %v9504_v52 = vld [vmem:[#allocation3 + $0x72] sm:$0xff] }
 0x224   : > { %11244 = vst [vmem:[#allocation12_spill] sm:$0xff] %v9504_v52  ;;  %v9540_v62 = vld [vmem:[#allocation3 + $0x53] sm:$0xff] }
 0x225   : > { %11246 = vst [vmem:[#allocation14_spill] sm:$0xff] %v9540_v62  ;;  %v7002_v15 = vld [vmem:[%s11223_s2 + $0x210] sm:$0xf] }
 0x229   : > { %v1643_v19 = vpop.permute.xlu1 %1642  ;;  %v5997_v12 = vld [vmem:[#allocation4 + $0x20] sm:$0xff] }
 0x22a   : > { %v9512_v11 = vld [vmem:[#allocation4 + $0x21] sm:$0xff]  ;;  %1663 = vst.msk [vmem:[#allocation4 + $0x51] sm:$0xff] %vm1370_vm1, %v1643_v19  ;;  %v1641_v14 = vpop.permute.xlu0 %1640  ;;  %v5948_v6 = vld [vmem:[#allocation4 + $0x10] sm:$0xff] }
 0x22b   : > { %v9514_v16 = vld [vmem:[#allocation4 + $0x22] sm:$0xff]  ;;  %v5964_v63 = vld [vmem:[#allocation4 + $0x11] sm:$0xff]  ;;  %v5926_v28 = vadd.f32 %v9512_v11, %v5997_v12  ;;  %1662 = vst.msk [vmem:[#allocation4 + $0x41] sm:$0xff] %vm1370_vm1, %v1641_v14  ;;  %v5956_v47 = vadd.f32 %v5948_v6, %v5940_v50  ;;  %v7011_v50 = vor.u32 %v7665_v5, %v7010_v45 }
 0x22c   : > { %v5980_v4 = vld [vmem:[#allocation4 + $0x12] sm:$0xff]  ;;  %v5925_v18 = vadd.f32 %v5964_v63, %v5948_v6  ;;  %v9527_v19 = vld [vmem:[#allocation3 + $0x43] sm:$0xff] }
 0x22d   : > { %11245 = vst [vmem:[#allocation13_spill] sm:$0xff] %v9527_v19  ;;  %v5942_v14 = vadd.f32 %v9514_v16, %v5926_v28  ;;  %v7664_v6 = vld [vmem:[%s11223_s2 + $0x224] sm:$0xf]  ;;  %v5972_v24 = vadd.f32 %v5964_v63, %v5956_v47  ;;  %v7662_v28 = vld [vmem:[%s11223_s2 + $0x214] sm:$0xf]  ;;  %2814 = vmatpush.bf16.msrb.mxu1 %v7011_v50  ;;  %v7003_v19 = vor.u32 %v7663_v44, %v7002_v15 }
 0x22e   : > { %v5941_v39 = vadd.f32 %v5980_v4, %v5925_v18  ;;  %v7015_v26 = vor.u32 %v7664_v6, %v7012_v46  ;;  %6821 = vmatmul.msk.bf16.gmra.mxu3 %vm970_vm0, %v2114_v22  ;;  %6825 = vmatmul.msk.bf16.gmra.mxu0 %vm970_vm0, %v2114_v22  ;;  %v7004_v46 = vld [vmem:[%s11223_s2 + $0x218] sm:$0xf0]  ;;  %v6994_v5 = vld [vmem:[%s11223_s2 + $0x200] sm:$0xf]  ;;  %v7661_v22 = vld [vmem:[%s11223_s2 + $0x204] sm:$0xf0] }
 0x22f   : > { %v5958_v47 = vadd.f32 %v9500_v27, %v5942_v14  ;;  %6889 = vmatmul.msk.bf16.gmra.mxu1 %vm970_vm0, %v2317_v51  ;;  %6893 = vmatmul.msk.bf16.gmra.mxu2 %vm970_vm0, %v2317_v51  ;;  %v5988_v63 = vadd.f32 %v5980_v4, %v5972_v24  ;;  %v9569_v14 = vld [vmem:[#allocation3 + $0x73] sm:$0xff]  ;;  %v7007_v51 = vor.u32 %v7662_v28, %v7004_v46  ;;  %v7645_v24 = vld [vmem:[%s11223_s2 + $0x184] sm:$0xf0]  ;;  %v6996_v50 = vld [vmem:[%s11223_s2 + $0x208] sm:$0xf0] }
 0x230   : > { %v5957_v45 = vadd.f32 %v5997_v12, %v5941_v39  ;;  %11247 = vst [vmem:[#allocation15_spill] sm:$0xff] %v9569_v14  ;;  %v9571_v6 = vld [vmem:[#allocation4 + $0x32] sm:$0xff]  ;;  %2843 = vmatpush.bf16.msra.mxu2 %v7015_v26  ;;  %v6910_v39 = vld [vmem:[%s11223_s2 + $0x180] sm:$0xf]  ;;  %v7660_v26 = vld [vmem:[%s11223_s2 + $0x204] sm:$0xf] }
 0x231   : > { %v5974_v18 = vadd.f32 %v9502_v20, %v5958_v47  ;;  %v1649_v4 = vpop.permute.xlu1 %1648  ;;  %v6005_v62 = vadd.f32 %v5997_v12, %v5988_v63  ;;  %v5943_v52 = vadd.f32 %v9571_v6, %v5927_v54  ;;  %v6911_v15 = vor.u32 %v7645_v24, %v6910_v39  ;;  %v9588_v44 = vld [vmem:[#allocation3 + $0x63] sm:$0xff]  ;;  %2815 = vmatpush.bf16.msrb.mxu1 %v7003_v19  ;;  %v7658_v19 = vld [vmem:[%s11223_s2 + $0x1f4] sm:$0xf] }
 0x232   : > { %v5973_v10 = vadd.f32 %v9512_v11, %v5957_v45  ;;  %11248 = vst [vmem:[#allocation16_spill] sm:$0xff] %v9588_v44  ;;  %v1647_v28 = vpop.permute.xlu0 %1646  ;;  %v5999_v47 = vld [vmem:[#allocation4 + $0x40] sm:$0xff]  ;;  %v6995_v63 = vor.u32 %v7661_v22, %v6994_v5  ;;  %v6999_v54 = vor.u32 %v7660_v26, %v6996_v50  ;;  %v9617_v26 = vpop.permute.xlu2 %6056  ;;  %v6000_v50 = vld [vmem:[#allocation4 + $0x50] sm:$0xff] }
 0x233   : > { %1666 = vst.msk [vmem:[#allocation4 + $0x81] sm:$0xff] %vm1370_vm1, %v1649_v4  ;;  %v5990_v12 = vadd.f32 %v9571_v6, %v5974_v18  ;;  %v6015_v46 = vld [vmem:[#allocation4 + $0x41] sm:$0xff]  ;;  %v6021_v45 = vadd.f32 %v9512_v11, %v6005_v62  ;;  %v5959_v24 = vadd.f32 %v5999_v47, %v5943_v52  ;;  %v6912_v18 = vld [vmem:[%s11223_s2 + $0x188] sm:$0xf0]  ;;  %v6986_v62 = vld [vmem:[%s11223_s2 + $0x1f0] sm:$0xf]  ;;  %2615 = vmatpush.bf16.msrb.mxu3 %v6911_v15 }
 0x234   : > { %1665 = vst.msk [vmem:[#allocation4 + $0x71] sm:$0xff] %vm1370_vm1, %v1647_v28  ;;  %v5989_v39 = vadd.f32 %v9514_v16, %v5973_v10  ;;  %v5928_v60 = vadd.f32 %v6015_v46, %v5999_v47  ;;  %v7644_v4 = vld [vmem:[%s11223_s2 + $0x184] sm:$0xf]  ;;  %2844 = vmatpush.bf16.msra.mxu2 %v7007_v51  ;;  %v6988_v51 = vld [vmem:[%s11223_s2 + $0x1f8] sm:$0xf0]  ;;  %v9621_v15 = vld [vmem:[#allocation2 + $0x52] sm:$0xff] }
 0x235   : > { %v6007_v5 = vadd.f32 %v5999_v47, %v5990_v12  ;;  %v6031_v22 = vld [vmem:[#allocation4 + $0x42] sm:$0xff]  ;;  %v6915_v28 = vor.u32 %v7644_v4, %v6912_v18  ;;  %v6037_v11 = vadd.f32 %v9514_v16, %v6021_v45  ;;  %v5975_v52 = vadd.f32 %v6015_v46, %v5959_v24  ;;  %v7659_v12 = vld [vmem:[%s11223_s2 + $0x1f4] sm:$0xf0]  ;;  %11249 = vst [vmem:[#allocation17_spill] sm:$0xff] %v9617_v26 }
 0x236   : > { %v6006_v10 = vadd.f32 %v9500_v27, %v5989_v39  ;;  %v5944_v44 = vadd.f32 %v6031_v22, %v5928_v60  ;;  %v11250_v27 = vmov 0.0   ;;  %v6016_v4 = vld [vmem:[#allocation4 + $0x51] sm:$0xff]  ;;  %2816 = vmatpush.bf16.msrb.mxu1 %v6995_v63  ;;  %v6991_v18 = vor.u32 %v7658_v19, %v6988_v51  ;;  %v6978_v63 = vld [vmem:[%s11223_s2 + $0x1e0] sm:$0xf] }
 0x237   : > { %v6023_v16 = vadd.f32 %v6015_v46, %v6007_v5  ;;  %2644 = vmatpush.bf16.msrb.mxu0 %v6915_v28  ;;  %1669 = vst.msk [vmem:[#allocation5 + $0x8] sm:$0xff] %vm1668_vm6, %v11250_v27  ;;  %v6045_v60 = vmul.f32 0.11111111, %v6037_v11  ;;  %v5991_v45 = vadd.f32 %v6031_v22, %v5975_v52  ;;  %v6987_v46 = vor.u32 %v7659_v12, %v6986_v62  ;;  %v9629_v28 = vld [vmem:[#allocation2 + $0x42] sm:$0xff] }
 0x238   : > { %v6022_v47 = vadd.f32 %v9502_v20, %v6006_v10  ;;  %v5960_v39 = vadd.f32 %v6000_v50, %v5944_v44  ;;  %1671 = vst.msk [vmem:[#allocation5 + $0x18] sm:$0xff] %vm1668_vm6, %v11250_v27  ;;  %2845 = vmatpush.bf16.msra.mxu2 %v6999_v54  ;;  %v7657_v54 = vld [vmem:[%s11223_s2 + $0x1e4] sm:$0xf0]  ;;  %v2318_v62 = vpack.c.bf16 %v9341_v8, %v9303_v49  ;;  %v6032_v10 = vld [vmem:[#allocation4 + $0x52] sm:$0xff]  ;;  %v7656_v52 = vld [vmem:[%s11223_s2 + $0x1e4] sm:$0xf] }
 0x239   : > { %v6039_v24 = vadd.f32 %v6031_v22, %v6023_v16  ;;  %1673 = vst.msk [vmem:[#allocation5 + $0x28] sm:$0xff] %vm1668_vm6, %v11250_v27  ;;  %v6059_v5 = vadd.f32 %v9617_v26, %v6045_v60  ;;  %v6008_v11 = vadd.f32 %v6000_v50, %v5991_v45  ;;  %v2115_v22 = vpack.c.bf16 %v9621_v15, %v9629_v28  ;;  %v6980_v49 = vld [vmem:[%s11223_s2 + $0x1e8] sm:$0xf0]  ;;  %v6001_v50 = vld [vmem:[#allocation4 + $0x60] sm:$0xff] }
 0x23a   : > { %v6038_v20 = vadd.f32 %v9571_v6, %v6022_v47  ;;  %v5976_v44 = vadd.f32 %v6016_v4, %v5960_v39  ;;  %1675 = vst.msk [vmem:[#allocation5 + $0x38] sm:$0xff] %vm1668_vm6, %v11250_v27  ;;  %2817 = vmatpush.bf16.msrb.mxu1 %v6987_v46  ;;  %v6979_v60 = vor.u32 %v7657_v54, %v6978_v63  ;;  %v6017_v46 = vld [vmem:[#allocation4 + $0x61] sm:$0xff]  ;;  %v7679_v63 = vld [vmem:[%s11223_s2 + $0x294] sm:$0xf0]  ;;  %v7678_v54 = vld [vmem:[%s11223_s2 + $0x294] sm:$0xf] }
 0x23b   : > { %v6047_v6 = vmul.f32 0.11111111, %v6039_v24  ;;  %1677 = vst.msk [vmem:[#allocation5 + $0x48] sm:$0xff] %vm1668_vm6, %v11250_v27  ;;  %v6067_v12 = vmax.f32 %v6059_v5, 0.0  ;;  %v6024_v51 = vadd.f32 %v6016_v4, %v6008_v11  ;;  %v6983_v47 = vor.u32 %v7656_v52, %v6980_v49  ;;  %v6033_v11 = vld [vmem:[#allocation4 + $0x62] sm:$0xff]  ;;  %v9683_v49 = vld [vmem:[#allocation2 + $0x72] sm:$0xff] }
 0x23c   : > { %v6046_v19 = vmul.f32 0.11111111, %v6038_v20  ;;  %v5992_v16 = vadd.f32 %v6032_v10, %v5976_v44  ;;  %1679 = vst.msk [vmem:[#allocation5 + $0x58] sm:$0xff] %vm1668_vm6, %v11250_v27  ;;  %2846 = vmatpush.bf16.msra.mxu2 %v6991_v18  ;;  %v7086_v44 = vld [vmem:[%s11223_s2 + $0x290] sm:$0xf] }
 0x23d   : > { %v6061_v8 = vadd.f32 %v9617_v26, %v6047_v6  ;;  %1681 = vst.msk [vmem:[#allocation5 + $0x68] sm:$0xff] %vm1668_vm6, %v11250_v27  ;;  %6083 = vrot.lane.b32.xlu0 %v6067_v12, %s7884_s13  ;;  %v6040_v39 = vadd.f32 %v6032_v10, %v6024_v51  ;;  %v7087_v10 = vor.u32 %v7679_v63, %v7086_v44  ;;  %v7072_v63 = vld [vmem:[%s11223_s2 + $0x278] sm:$0xf0] }
 0x23e   : > { %v6060_v45 = vadd.f32 %v9617_v26, %v6046_v19  ;;  %v6009_v24 = vadd.f32 %v6001_v50, %v5992_v16  ;;  %1683 = vst.msk [vmem:[#allocation5 + $0x78] sm:$0xff] %vm1668_vm6, %v11250_v27  ;;  %6822 = vmatmul.msk.bf16.gmra.mxu3 %vm970_vm0, %v2115_v22  ;;  %6826 = vmatmul.msk.bf16.gmra.mxu0 %vm970_vm0, %v2115_v22  ;;  %v7088_v22 = vld [vmem:[%s11223_s2 + $0x298] sm:$0xf0]  ;;  %v9687_v50 = vld [vmem:[#allocation2 + $0x62] sm:$0xff] }
 0x23f   : > { %v6069_v4 = vmax.f32 %v6061_v8, 0.0  ;;  %6890 = vmatmul.msk.bf16.gmra.mxu1 %vm970_vm0, %v2318_v62  ;;  %6894 = vmatmul.msk.bf16.gmra.mxu2 %vm970_vm0, %v2318_v62  ;;  %v6048_v5 = vmul.f32 0.11111111, %v6040_v39  ;;  %v7091_v52 = vor.u32 %v7678_v54, %v7088_v22  ;;  %v9685_v8 = vld [vmem:[#allocation2 + $0x80] sm:$0xff]  ;;  %v7677_v39 = vld [vmem:[%s11223_s2 + $0x284] sm:$0xf0] }
 0x240   : > { %v6068_v18 = vmax.f32 %v6060_v45, 0.0  ;;  %v6025_v20 = vadd.f32 %v6017_v46, %v6009_v24  ;;  %2818 = vmatpush.bf16.msrb.mxu1 %v6979_v60  ;;  %2847 = vmatpush.bf16.msra.mxu2 %v6983_v47  ;;  %v2116_v60 = vpack.c.bf16 %v9683_v49, %v9687_v50  ;;  %v2319_v47 = vpack.c.bf16 %v9685_v8, %v9343_v21  ;;  %v7078_v45 = vld [vmem:[%s11223_s2 + $0x280] sm:$0xf]  ;;  %v7676_v21 = vld [vmem:[%s11223_s2 + $0x284] sm:$0xf] }
 0x241   : > { %6087 = vrot.lane.b32.xlu2 %v6069_v4, %s7884_s13  ;;  %v6062_v62 = vadd.f32 %v9617_v26, %v6048_v5  ;;  %3017 = vmatpush.bf16.msra.mxu3 %v7087_v10  ;;  %v7079_v24 = vor.u32 %v7677_v39, %v7078_v45  ;;  %v7080_v4 = vld [vmem:[%s11223_s2 + $0x288] sm:$0xf0]  ;;  %v7675_v5 = vld [vmem:[%s11223_s2 + $0x274] sm:$0xf0]  ;;  %v2722_v10 = vpack.c.bf16 %v9486_v3, %v9373_v30  ;;  %v7672_v30 = vld [vmem:[%s11223_s2 + $0x264] sm:$0xf] }
 0x242   : > { %6085 = vrot.lane.b32.xlu1 %v6068_v18, %s7884_s13  ;;  %v6041_v6 = vadd.f32 %v6033_v11, %v6025_v20  ;;  %3046 = vmatpush.bf16.msra.mxu0 %v7091_v52  ;;  %v7083_v46 = vor.u32 %v7676_v21, %v7080_v4  ;;  %v7070_v18 = vld [vmem:[%s11223_s2 + $0x270] sm:$0xf]  ;;  %v7674_v20 = vld [vmem:[%s11223_s2 + $0x274] sm:$0xf]  ;;  %v1693_v11 = vld [vmem:[#allocation5 + $0x8] sm:$0xff]  ;;  %3673 = vst.msk [vmem:[#allocation6 + $0x10] sm:$0xff] %vm3670_vm7, %v11250_v27 }
 0x243   : > { %v6070_v12 = vmax.f32 %v6062_v62, 0.0  ;;  %v7071_v44 = vor.u32 %v7675_v5, %v7070_v18  ;;  %v7075_v54 = vor.u32 %v7674_v20, %v7072_v63  ;;  %v7062_v52 = vld [vmem:[%s11223_s2 + $0x260] sm:$0xf]  ;;  %v7691_v18 = vld [vmem:[%s11223_s2 + $0x2f4] sm:$0xf0]  ;;  %3671 = vst.msk [vmem:[#allocation6] sm:$0xff] %vm3670_vm7, %v11250_v27 }
 0x244   : > { %v6049_v19 = vmul.f32 0.11111111, %v6041_v6  ;;  %v7690_v20 = vld [vmem:[%s11223_s2 + $0x2f4] sm:$0xf]  ;;  %3672 = vst.msk [vmem:[#allocation6 + $0x8] sm:$0xff] %vm3670_vm7, %v11250_v27 }
 0x245   : > { %6089 = vrot.lane.b32.xlu0 %v6070_v12, %s7884_s13  ;;  %3018 = vmatpush.bf16.msra.mxu3 %v7079_v24  ;;  %v7673_v12 = vld [vmem:[%s11223_s2 + $0x264] sm:$0xf0]  ;;  %3674 = vst.msk [vmem:[#allocation6 + $0x18] sm:$0xff] %vm3670_vm7, %v11250_v27 }
 0x246   : > { %v6063_v51 = vadd.f32 %v9617_v26, %v6049_v19  ;;  %3047 = vmatpush.bf16.msra.mxu0 %v7083_v46  ;;  %v1695_v19 = vld [vmem:[#allocation5 + $0x18] sm:$0xff]  ;;  %v7154_v46 = vld [vmem:[%s11223_s2 + $0x2f0] sm:$0xf]  ;;  %3675 = vst.msk [vmem:[#allocation6 + $0x20] sm:$0xff] %vm3670_vm7, %v11250_v27 }
 0x247   : > { %v7155_v5 = vor.u32 %v7691_v18, %v7154_v46  ;;  %v7054_v46 = vld [vmem:[%s11223_s2 + $0x250] sm:$0xf]  ;;  %v7671_v18 = vld [vmem:[%s11223_s2 + $0x254] sm:$0xf0]  ;;  %3676 = vst.msk [vmem:[#allocation6 + $0x28] sm:$0xff] %vm3670_vm7, %v11250_v27 }
 0x248   : > { %v6071_v16 = vmax.f32 %v6063_v51, 0.0  ;;  %v7063_v51 = vor.u32 %v7673_v12, %v7062_v52  ;;  %3677 = vst.msk [vmem:[#allocation6 + $0x30] sm:$0xff] %vm3670_vm7, %v11250_v27 }
 0x249   : > { %3019 = vmatpush.bf16.msra.mxu3 %v7071_v44  ;;  %3220 = vmatpush.bf16.msra.mxu1 %v7155_v5  ;;  %v7670_v5 = vld [vmem:[%s11223_s2 + $0x254] sm:$0xf]  ;;  %3678 = vst.msk [vmem:[#allocation6 + $0x38] sm:$0xff] %vm3670_vm7, %v11250_v27 }
 0x24a   : > { %6091 = vrot.lane.b32.xlu1 %v6071_v16, %s7884_s13  ;;  %3048 = vmatpush.bf16.msra.mxu0 %v7075_v54  ;;  %v1697_v54 = vld [vmem:[#allocation5 + $0x28] sm:$0xff] }
 0x24d   : > { %3020 = vmatpush.bf16.msra.mxu3 %v7063_v51 }
 0x24e   : > { %6823 = vmatmul.msk.bf16.gmra.mxu3 %vm970_vm0, %v2116_v60  ;;  %6827 = vmatmul.msk.bf16.gmra.mxu0 %vm970_vm0, %v2116_v60 }
 0x24f   : > { %6891 = vmatmul.msk.bf16.gmra.mxu1 %vm970_vm0, %v2319_v47  ;;  %6895 = vmatmul.msk.bf16.gmra.mxu2 %vm970_vm0, %v2319_v47 }
 0x25a   : > { %v1834_v22 = vpop.f32.mrf.mxu0 }
 0x25b   : > { %v1855_v62 = vadd.f32 %v1834_v22, %v1693_v11  ;;  %v2008_v6 = vpop.f32.mrf.mxu1  ;;  %v7156_v11 = vld [vmem:[%s11223_s2 + $0x2f8] sm:$0xf0] }
 0x25c   : > { %v7159_v44 = vor.u32 %v7690_v20, %v7156_v11 }
 0x25d   : > { %1871 = vst.msk [vmem:[#allocation5 + $0x8] sm:$0xff] %vm1668_vm6, %v1855_v62  ;;  %v7146_v62 = vld [vmem:[%s11223_s2 + $0x2e0] sm:$0xf] }
 0x25e   : > { %6956 = vmatmul.msk.bf16.vlgmr.msrb.gmra.mxu3 %vm970_vm0, %v9163_v48  ;;  %6960 = vmatmul.msk.bf16.vlgmr.msrb.gmra.mxu0 %vm970_vm0, %v9163_v48  ;;  %v7064_v48 = vld [vmem:[%s11223_s2 + $0x268] sm:$0xf0] }
 0x25f   : > { %7024 = vmatmul.msk.bf16.vlgmr.msrb.gmra.mxu1 %vm970_vm0, %v2722_v10  ;;  %7028 = vmatmul.msk.bf16.vlgmr.msra.gmra.mxu2 %vm970_vm0, %v2722_v10  ;;  %v7067_v60 = vor.u32 %v7672_v30, %v7064_v48  ;;  %v7688_v10 = vld [vmem:[%s11223_s2 + $0x2e4] sm:$0xf]  ;;  %v7148_v30 = vld [vmem:[%s11223_s2 + $0x2e8] sm:$0xf0] }
 0x260   : > { %v1805_v3 = vpop.f32.mrf.mxu3  ;;  %3249 = vmatpush.bf16.msrb.mxu2 %v7159_v44  ;;  %v7151_v51 = vor.u32 %v7688_v10, %v7148_v30  ;;  %v7055_v44 = vor.u32 %v7671_v18, %v7054_v46  ;;  %v7684_v10 = vld [vmem:[%s11223_s2 + $0x2c4] sm:$0xf] }
 0x261   : > { %v2037_v16 = vpop.f32.mrf.mxu2  ;;  %3049 = vmatpush.bf16.msra.mxu0 %v7067_v60  ;;  %v9742_v21 = vadd.f32 %v2008_v6, %v1805_v3  ;;  %v7689_v6 = vld [vmem:[%s11223_s2 + $0x2e4] sm:$0xf0]  ;;  %v7668_v46 = vld [vmem:[%s11223_s2 + $0x244] sm:$0xf] }
 0x262   : > { %v1836_v47 = vpop.f32.mrf.mxu0  ;;  %v7147_v12 = vor.u32 %v7689_v6, %v7146_v62  ;;  %v7130_v62 = vld [vmem:[%s11223_s2 + $0x2c0] sm:$0xf]  ;;  %v7685_v6 = vld [vmem:[%s11223_s2 + $0x2c4] sm:$0xf0]  ;;  %3021 = vmatpush.bf16.msra.mxu3 %v7055_v44  ;;  %v7048_v44 = vld [vmem:[%s11223_s2 + $0x248] sm:$0xf0] }
 0x263   : > { %v1857_v45 = vadd.f32 %v1836_v47, %v1695_v19  ;;  %v2010_v39 = vpop.f32.mrf.mxu1  ;;  %v2723_v47 = vpack.c.bf16 %v9629_v28, %v9510_v56  ;;  %v1699_v56 = vld [vmem:[#allocation5 + $0x38] sm:$0xff]  ;;  %v7131_v30 = vor.u32 %v7685_v6, %v7130_v62  ;;  %v7680_v62 = vld [vmem:[%s11223_s2 + $0x2a4] sm:$0xf] }
 0x264   : > { %v1895_v24 = vld [vmem:[#allocation5 + $0x8] sm:$0xff]  ;;  %3221 = vmatpush.bf16.msra.mxu1 %v7147_v12  ;;  %3250 = vmatpush.bf16.msrb.mxu2 %v7151_v51  ;;  %v7140_v28 = vld [vmem:[%s11223_s2 + $0x2d8] sm:$0xf0] }
 0x265   : > { %v2058_v4 = vadd.f32 %v2037_v16, %v1895_v24  ;;  %1873 = vst.msk [vmem:[#allocation5 + $0x18] sm:$0xff] %vm1668_vm6, %v1857_v45  ;;  %v7138_v45 = vld [vmem:[%s11223_s2 + $0x2d0] sm:$0xf]  ;;  %v7686_v24 = vld [vmem:[%s11223_s2 + $0x2d4] sm:$0xf] }
 0x266   : > { %v7143_v20 = vor.u32 %v7686_v24, %v7140_v28  ;;  %v7046_v28 = vld [vmem:[%s11223_s2 + $0x240] sm:$0xf] }
 0x267   : > { %2074 = vst.msk [vmem:[#allocation5 + $0x8] sm:$0xff] %vm1668_vm6, %v2058_v4 }
 0x268   : > { %v1807_v63 = vpop.f32.mrf.mxu3  ;;  %3251 = vmatpush.bf16.msrb.mxu2 %v7143_v20  ;;  %v1701_v20 = vld [vmem:[#allocation5 + $0x48] sm:$0xff] }
 0x269   : > { %v2039_v22 = vpop.f32.mrf.mxu2  ;;  %v9770_v48 = vadd.f32 %v2010_v39, %v1807_v63  ;;  %v7687_v39 = vld [vmem:[%s11223_s2 + $0x2d4] sm:$0xf0]  ;;  %v7056_v63 = vld [vmem:[%s11223_s2 + $0x258] sm:$0xf0] }
 0x26a   : > { %v1839_v52 = vpop.f32.mrf.mxu0 }
 0x26b   : > { %v1859_v3 = vadd.f32 %v1839_v52, %v1697_v54  ;;  %v2013_v19 = vpop.f32.mrf.mxu1 }
 0x26c   : > { %v1897_v16 = vld [vmem:[#allocation5 + $0x18] sm:$0xff] }
 0x26d   : > { %v2060_v60 = vadd.f32 %v2039_v22, %v1897_v16  ;;  %1875 = vst.msk [vmem:[#allocation5 + $0x28] sm:$0xff] %vm1668_vm6, %v1859_v3  ;;  %v7059_v22 = vor.u32 %v7670_v5, %v7056_v63  ;;  %v7132_v3 = vld [vmem:[%s11223_s2 + $0x2c8] sm:$0xf0]  ;;  %v7051_v63 = vor.u32 %v7668_v46, %v7048_v44 }
 0x26e   : > { %6957 = vmatmul.msk.bf16.gmra.mxu3 %vm970_vm0, %v9257_v1  ;;  %6961 = vmatmul.msk.bf16.gmra.mxu0 %vm970_vm0, %v9257_v1  ;;  %v7139_v1 = vor.u32 %v7687_v39, %v7138_v45  ;;  %v7122_v45 = vld [vmem:[%s11223_s2 + $0x2b0] sm:$0xf]  ;;  %v7683_v39 = vld [vmem:[%s11223_s2 + $0x2b4] sm:$0xf0] }
 0x26f   : > { %2076 = vst.msk [vmem:[#allocation5 + $0x18] sm:$0xff] %vm1668_vm6, %v2060_v60  ;;  %7025 = vmatmul.msk.bf16.gmra.mxu1 %vm970_vm0, %v2723_v47  ;;  %7029 = vmatmul.msk.bf16.gmra.mxu2 %vm970_vm0, %v2723_v47  ;;  %v7135_v60 = vor.u32 %v7684_v10, %v7132_v3  ;;  %v7123_v24 = vor.u32 %v7683_v39, %v7122_v45 }
 0x270   : > { %v1810_v4 = vpop.f32.mrf.mxu3  ;;  %3222 = vmatpush.bf16.msra.mxu1 %v7139_v1  ;;  %3050 = vmatpush.bf16.msra.mxu0 %v7059_v22  ;;  %v7681_v22 = vld [vmem:[%s11223_s2 + $0x2a4] sm:$0xf0]  ;;  %v2724_v39 = vpack.c.bf16 %v9687_v50, %v9621_v15  ;;  %v7222_v15 = vld [vmem:[%s11223_s2 + $0x350] sm:$0xf]  ;;  %v7703_v50 = vld [vmem:[%s11223_s2 + $0x354] sm:$0xf0] }
 0x271   : > { %v2042_v11 = vpop.f32.mrf.mxu2  ;;  %v9818_v51 = vadd.f32 %v2013_v19, %v1810_v4  ;;  %3252 = vmatpush.bf16.msrb.mxu2 %v7135_v60  ;;  %v7682_v19 = vld [vmem:[%s11223_s2 + $0x2b4] sm:$0xf]  ;;  %v7669_v4 = vld [vmem:[%s11223_s2 + $0x244] sm:$0xf0] }
 0x272   : > { %v1841_v54 = vpop.f32.mrf.mxu0 }
 0x273   : > { %v1861_v52 = vadd.f32 %v1841_v54, %v1699_v56  ;;  %v2015_v12 = vpop.f32.mrf.mxu1  ;;  %v7124_v56 = vld [vmem:[%s11223_s2 + $0x2b8] sm:$0xf0]  ;;  %v7114_v54 = vld [vmem:[%s11223_s2 + $0x2a0] sm:$0xf] }
 0x274   : > { %v1899_v16 = vld [vmem:[#allocation5 + $0x28] sm:$0xff]  ;;  %3223 = vmatpush.bf16.msra.mxu1 %v7131_v30  ;;  %v7127_v18 = vor.u32 %v7682_v19, %v7124_v56  ;;  %v7115_v10 = vor.u32 %v7681_v22, %v7114_v54  ;;  %3051 = vmatpush.bf16.msra.mxu0 %v7051_v63  ;;  %v1703_v19 = vld [vmem:[#allocation5 + $0x58] sm:$0xff] }
 0x275   : > { %v2062_v47 = vadd.f32 %v2042_v11, %v1899_v16  ;;  %1877 = vst.msk [vmem:[#allocation5 + $0x38] sm:$0xff] %vm1668_vm6, %v1861_v52  ;;  %v7047_v11 = vor.u32 %v7669_v4, %v7046_v28  ;;  %v7116_v52 = vld [vmem:[%s11223_s2 + $0x2a8] sm:$0xf0]  ;;  %v7224_v56 = vld [vmem:[%s11223_s2 + $0x358] sm:$0xf0]  ;;  %v9886_v54 = vld [vmem:[#allocation2 + $0x81] sm:$0xff] }
 0x276   : > { %3253 = vmatpush.bf16.msrb.mxu2 %v7127_v18  ;;  %v1705_v63 = vld [vmem:[#allocation5 + $0x68] sm:$0xff] }
 0x277   : > { %2078 = vst.msk [vmem:[#allocation5 + $0x28] sm:$0xff] %vm1668_vm6, %v2062_v47  ;;  %3022 = vmatpush.bf16.msra.mxu3 %v7047_v11  ;;  %v7119_v47 = vor.u32 %v7680_v62, %v7116_v52  ;;  %v9888_v62 = vld [vmem:[#allocation2 + $0x82] sm:$0xff] }
 0x278   : > { %v1812_v1 = vpop.f32.mrf.mxu3  ;;  %3224 = vmatpush.bf16.msra.mxu1 %v7123_v24  ;;  %v7223_v24 = vor.u32 %v7703_v50, %v7222_v15  ;;  %v1707_v15 = vld [vmem:[#allocation5 + $0x78] sm:$0xff] }
 0x279   : > { %v2044_v5 = vpop.f32.mrf.mxu2  ;;  %v9858_v30 = vadd.f32 %v2015_v12, %v1812_v1  ;;  %v7702_v12 = vld [vmem:[%s11223_s2 + $0x354] sm:$0xf] }
 0x27a   : > { %3254 = vmatpush.bf16.msrb.mxu2 %v7119_v47  ;;  %v7227_v28 = vor.u32 %v7702_v12, %v7224_v56  ;;  %v2725_v47 = vpack.c.bf16 %v9888_v62, %v9683_v49  ;;  %v7701_v49 = vld [vmem:[%s11223_s2 + $0x344] sm:$0xf0]  ;;  %v7700_v12 = vld [vmem:[%s11223_s2 + $0x344] sm:$0xf] }
 0x27b   : > { %v1844_v6 = vpop.f32.mrf.mxu0  ;;  %3423 = vmatpush.bf16.msrb.mxu3 %v7223_v24 }
 0x27c   : > { %v1901_v3 = vld [vmem:[#allocation5 + $0x38] sm:$0xff]  ;;  %v1863_v16 = vadd.f32 %v1844_v6, %v1701_v20  ;;  %v2018_v60 = vpop.f32.mrf.mxu1  ;;  %3225 = vmatpush.bf16.msra.mxu1 %v7115_v10  ;;  %3452 = vmatpush.bf16.msrb.mxu0 %v7227_v28 }
 0x27d   : > { %v2064_v45 = vadd.f32 %v2044_v5, %v1901_v3  ;;  %v2522_v3 = vpack.c.bf16 %v9886_v54, %v9345_v9  ;;  %v7214_v9 = vld [vmem:[%s11223_s2 + $0x340] sm:$0xf] }
 0x27e   : > { %1879 = vst.msk [vmem:[#allocation5 + $0x48] sm:$0xff] %vm1668_vm6, %v1863_v16  ;;  %6958 = vmatmul.msk.bf16.gmra.mxu3 %vm970_vm0, %v9307_v57  ;;  %6962 = vmatmul.msk.bf16.gmra.mxu0 %vm970_vm0, %v9307_v57  ;;  %v7215_v50 = vor.u32 %v7701_v49, %v7214_v9  ;;  %v2903_v9 = vld [vmem:[#allocation2 + $0x30] sm:$0xff] }
 0x27f   : > { %2080 = vst.msk [vmem:[#allocation5 + $0x38] sm:$0xff] %vm1668_vm6, %v2064_v45  ;;  %7026 = vmatmul.msk.bf16.gmra.mxu1 %vm970_vm0, %v2724_v39  ;;  %7030 = vmatmul.msk.bf16.gmra.mxu2 %vm970_vm0, %v2724_v39 }
 0x280   : > { %3424 = vmatpush.bf16.msrb.mxu3 %v7215_v50  ;;  %v3106_v50 = vld [vmem:[#allocation2 + $0x31] sm:$0xff] }
 0x281   : > { %v1815_v57 = vpop.f32.mrf.mxu3 }
 0x282   : > { %v2047_v1 = vpop.f32.mrf.mxu2  ;;  %v9882_v5 = vadd.f32 %v2018_v60, %v1815_v57  ;;  %v7216_v57 = vld [vmem:[%s11223_s2 + $0x348] sm:$0xf0] }
 0x283   : > { %v1846_v4 = vpop.f32.mrf.mxu0  ;;  %v7219_v24 = vor.u32 %v7700_v12, %v7216_v57 }
 0x284   : > { %v1865_v46 = vadd.f32 %v1846_v4, %v1703_v19  ;;  %v2020_v18 = vpop.f32.mrf.mxu1 }
 0x285   : > { %v1903_v20 = vld [vmem:[#allocation5 + $0x48] sm:$0xff]  ;;  %3453 = vmatpush.bf16.msrb.mxu0 %v7219_v24 }
 0x286   : > { %v2066_v11 = vadd.f32 %v2047_v1, %v1903_v20  ;;  %1881 = vst.msk [vmem:[#allocation5 + $0x58] sm:$0xff] %vm1668_vm6, %v1865_v46  ;;  %v7206_v20 = vld [vmem:[%s11223_s2 + $0x330] sm:$0xf] }
 0x288   : > { %2082 = vst.msk [vmem:[#allocation5 + $0x48] sm:$0xff] %vm1668_vm6, %v2066_v11  ;;  %v7699_v11 = vld [vmem:[%s11223_s2 + $0x334] sm:$0xf0] }
 0x289   : > { %v1817_v44 = vpop.f32.mrf.mxu3 }
 0x28a   : > { %v2049_v22 = vpop.f32.mrf.mxu2  ;;  %v9892_v16 = vadd.f32 %v2020_v18, %v1817_v44 }
 0x28b   : > { %v1849_v6 = vpop.f32.mrf.mxu0 }
 0x28c   : > { %v1867_v10 = vadd.f32 %v1849_v6, %v1705_v63  ;;  %v2023_v52 = vpop.f32.mrf.mxu1  ;;  %v2902_v63 = vld [vmem:[#allocation2 + $0x20] sm:$0xff]  ;;  %v7698_v6 = vld [vmem:[%s11223_s2 + $0x334] sm:$0xf] }
 0x28d   : > { %v1905_v60 = vld [vmem:[#allocation5 + $0x58] sm:$0xff] }
 0x28e   : > { %v2068_v45 = vadd.f32 %v2049_v22, %v1905_v60  ;;  %1883 = vst.msk [vmem:[#allocation5 + $0x68] sm:$0xff] %vm1668_vm6, %v1867_v10  ;;  %6959 = vmatmul.msk.bf16.gmra.mxu3 %vm970_vm0, %v2522_v3  ;;  %6963 = vmatmul.msk.bf16.gmra.mxu0 %vm970_vm0, %v2522_v3  ;;  %v7207_v22 = vor.u32 %v7699_v11, %v7206_v20  ;;  %v7208_v10 = vld [vmem:[%s11223_s2 + $0x338] sm:$0xf0]  ;;  %v3105_v3 = vld [vmem:[#allocation2 + $0x21] sm:$0xff]  ;;  %v7200_v20 = vld [vmem:[%s11223_s2 + $0x328] sm:$0xf0] }
 0x28f   : > { %7027 = vmatmul.msk.bf16.gmra.mxu1 %vm970_vm0, %v2725_v47  ;;  %7031 = vmatmul.msk.bf16.gmra.mxu2 %vm970_vm0, %v2725_v47  ;;  %v7211_v60 = vor.u32 %v7698_v6, %v7208_v10  ;;  %v2098_v47 = vld [vmem:[#allocation5 + $0x8] sm:$0xff] }
 0x290   : > { %2084 = vst.msk [vmem:[#allocation5 + $0x58] sm:$0xff] %vm1668_vm6, %v2068_v45  ;;  %3425 = vmatpush.bf16.msrb.mxu3 %v7207_v22  ;;  %v2100_v22 = vld [vmem:[#allocation5 + $0x18] sm:$0xff] }
 0x291   : > { %v1820_v39 = vpop.f32.mrf.mxu3  ;;  %3454 = vmatpush.bf16.msrb.mxu0 %v7211_v60 }
 0x292   : > { %v2052_v19 = vpop.f32.mrf.mxu2  ;;  %v9914_v4 = vadd.f32 %v2023_v52, %v1820_v39 }
 0x293   : > { %v1851_v56 = vpop.f32.mrf.mxu0 }
 0x294   : > { %v1869_v1 = vadd.f32 %v1851_v56, %v1707_v15  ;;  %v2025_v28 = vpop.f32.mrf.mxu1  ;;  %v2926_v15 = vpack.c.bf16 %v2903_v9, %v2902_v63  ;;  %v7198_v56 = vld [vmem:[%s11223_s2 + $0x320] sm:$0xf]  ;;  %v2905_v9 = vld [vmem:[#allocation2 + $0x50] sm:$0xff] }
 0x295   : > { %v1907_v46 = vld [vmem:[#allocation5 + $0x68] sm:$0xff] }
 0x296   : > { %v2070_v18 = vadd.f32 %v2052_v19, %v1907_v46  ;;  %1885 = vst.msk [vmem:[#allocation5 + $0x78] sm:$0xff] %vm1668_vm6, %v1869_v1  ;;  %v3129_v19 = vpack.c.bf16 %v3106_v50, %v3105_v3  ;;  %v7697_v1 = vld [vmem:[%s11223_s2 + $0x324] sm:$0xf0]  ;;  %v3108_v50 = vld [vmem:[#allocation2 + $0x51] sm:$0xff] }
 0x297   : > { %v7199_v46 = vor.u32 %v7697_v1, %v7198_v56 }
 0x298   : > { %2086 = vst.msk [vmem:[#allocation5 + $0x68] sm:$0xff] %vm1668_vm6, %v2070_v18  ;;  %v7696_v18 = vld [vmem:[%s11223_s2 + $0x324] sm:$0xf] }
 0x299   : > { %v1822_v44 = vpop.f32.mrf.mxu3  ;;  %v7203_v63 = vor.u32 %v7696_v18, %v7200_v20  ;;  %3426 = vmatpush.bf16.msrb.mxu3 %v7199_v46 }
 0x29a   : > { %v2054_v52 = vpop.f32.mrf.mxu2  ;;  %v9930_v12 = vadd.f32 %v2025_v28, %v1822_v44 }
 0x29b   : > { %v2240_v45 = vpop.f32.mrf.mxu0  ;;  %3455 = vmatpush.bf16.msrb.mxu0 %v7203_v63 }
 0x29c   : > { %v2261_v49 = vadd.f32 %v2240_v45, %v2098_v47  ;;  %v2414_v39 = vpop.f32.mrf.mxu1 }
 0x29d   : > { %v1909_v57 = vld [vmem:[#allocation5 + $0x78] sm:$0xff] }
 0x29e   : > { %v2072_v24 = vadd.f32 %v2054_v52, %v1909_v57  ;;  %2277 = vst.msk [vmem:[#allocation5 + $0x8] sm:$0xff] %vm1668_vm6, %v2261_v49  ;;  %7092 = vmatmul.msk.bf16.vlgmr.msra.gmra.mxu3 %vm970_vm0, %v2926_v15  ;;  %7096 = vmatmul.msk.bf16.vlgmr.msra.gmra.mxu0 %vm970_vm0, %v2926_v15 }
 0x29f   : > { %7160 = vmatmul.msk.bf16.vlgmr.msra.gmra.mxu1 %vm970_vm0, %v3129_v19  ;;  %7164 = vmatmul.msk.bf16.vlgmr.msrb.gmra.mxu2 %vm970_vm0, %v3129_v19  ;;  %v2904_v19 = vld [vmem:[#allocation2 + $0x40] sm:$0xff] }
 0x2a0   : > { %2088 = vst.msk [vmem:[#allocation5 + $0x78] sm:$0xff] %vm1668_vm6, %v2072_v24  ;;  %v2927_v1 = vpack.c.bf16 %v2905_v9, %v2904_v19  ;;  %v7693_v19 = vld [vmem:[%s11223_s2 + $0x304] sm:$0xf0] }
 0x2a1   : > { %v2211_v28 = vpop.f32.mrf.mxu3 }
 0x2a2   : > { %v2260_v11 = vadd.f32 %v2211_v28, %v9742_v21  ;;  %v2443_v44 = vpop.f32.mrf.mxu2  ;;  %v9958_v21 = vld [vmem:[%s11224_s3] sm:$0xff] }
 0x2a3   : > { %v2242_v6 = vpop.f32.mrf.mxu0  ;;  %7738 = vmatpush.bf16.msrb.mxu1 %v9958_v21  ;;  %v3107_v28 = vld [vmem:[#allocation2 + $0x41] sm:$0xff] }
 0x2a4   : > { %v2263_v10 = vadd.f32 %v2242_v6, %v2100_v22  ;;  %v2416_v52 = vpop.f32.mrf.mxu1  ;;  %v9951_v3 = vadd.f32 %v2414_v39, %v2260_v11  ;;  %v2102_v39 = vld [vmem:[#allocation5 + $0x28] sm:$0xff]  ;;  %v3130_v20 = vpack.c.bf16 %v3108_v50, %v3107_v28  ;;  %v7694_v6 = vld [vmem:[%s11223_s2 + $0x314] sm:$0xf] }
 0x2a5   : > { %v2301_v60 = vld [vmem:[#allocation5 + $0x8] sm:$0xff] }
 0x2a6   : > { %v2464_v47 = vadd.f32 %v2443_v44, %v2301_v60  ;;  %2279 = vst.msk [vmem:[#allocation5 + $0x18] sm:$0xff] %vm1668_vm6, %v2263_v10  ;;  %v7695_v44 = vld [vmem:[%s11223_s2 + $0x314] sm:$0xf0]  ;;  %v7192_v10 = vld [vmem:[%s11223_s2 + $0x318] sm:$0xf0] }
 0x2a8   : > { %2480 = vst.msk [vmem:[#allocation5 + $0x8] sm:$0xff] %vm1668_vm6, %v2464_v47  ;;  %v7195_v47 = vor.u32 %v7694_v6, %v7192_v10  ;;  %v2906_v10 = vld [vmem:[#allocation2 + $0x60] sm:$0xff] }
 0x2a9   : > { %v2213_v45 = vpop.f32.mrf.mxu3 }
 0x2aa   : > { %v2262_v49 = vadd.f32 %v2213_v45, %v9770_v48  ;;  %v2445_v15 = vpop.f32.mrf.mxu2  ;;  %v7190_v48 = vld [vmem:[%s11223_s2 + $0x310] sm:$0xf]  ;;  %v2104_v45 = vld [vmem:[#allocation5 + $0x38] sm:$0xff]  ;;  %3456 = vmatpush.bf16.msrb.mxu0 %v7195_v47 }
 0x2ab   : > { %v2245_v57 = vpop.f32.mrf.mxu0  ;;  %v7191_v22 = vor.u32 %v7695_v44, %v7190_v48  ;;  %v3110_v44 = vld [vmem:[#allocation2 + $0x71] sm:$0xff] }
 0x2ac   : > { %v2265_v24 = vadd.f32 %v2245_v57, %v2102_v39  ;;  %v2419_v56 = vpop.f32.mrf.mxu1  ;;  %v9962_v46 = vadd.f32 %v2416_v52, %v2262_v49 }
 0x2ad   : > { %v2303_v18 = vld [vmem:[#allocation5 + $0x18] sm:$0xff]  ;;  %3427 = vmatpush.bf16.msrb.mxu3 %v7191_v22  ;;  %v2106_v22 = vld [vmem:[#allocation5 + $0x48] sm:$0xff] }
 0x2ae   : > { %v2466_v11 = vadd.f32 %v2445_v15, %v2303_v18  ;;  %2281 = vst.msk [vmem:[#allocation5 + $0x28] sm:$0xff] %vm1668_vm6, %v2265_v24  ;;  %7093 = vmatmul.msk.bf16.gmra.mxu3 %vm970_vm0, %v2927_v1  ;;  %7097 = vmatmul.msk.bf16.gmra.mxu0 %vm970_vm0, %v2927_v1  ;;  %v7705_v24 = vld [vmem:[%s11224_s3 + $0x8] sm:$0xff]  ;;  %v2907_v1 = vld [vmem:[#allocation2 + $0x70] sm:$0xff]  ;;  %v7692_v18 = vld [vmem:[%s11223_s2 + $0x304] sm:$0xf] }
 0x2af   : > { %7161 = vmatmul.msk.bf16.gmra.mxu1 %vm970_vm0, %v3130_v20  ;;  %7165 = vmatmul.msk.bf16.gmra.mxu2 %vm970_vm0, %v3130_v20  ;;  %v7184_v20 = vld [vmem:[%s11223_s2 + $0x308] sm:$0xf0]  ;;  %v2928_v47 = vpack.c.bf16 %v2907_v1, %v2906_v10 }
 0x2b0   : > { %2482 = vst.msk [vmem:[#allocation5 + $0x18] sm:$0xff] %vm1668_vm6, %v2466_v11  ;;  %3812 = vmatpush.bf16.msra.mxu2 %v7705_v24 }
 0x2b1   : > { %v2216_v63 = vpop.f32.mrf.mxu3 }
 0x2b2   : > { %v2264_v52 = vadd.f32 %v2216_v63, %v9818_v51  ;;  %v2448_v60 = vpop.f32.mrf.mxu2  ;;  %v7182_v51 = vld [vmem:[%s11223_s2 + $0x300] sm:$0xf]  ;;  %v7187_v63 = vor.u32 %v7692_v18, %v7184_v20 }
 0x2b3   : > { %v2247_v9 = vpop.f32.mrf.mxu0  ;;  %v7183_v28 = vor.u32 %v7693_v19, %v7182_v51  ;;  %v2108_v19 = vld [vmem:[#allocation5 + $0x58] sm:$0xff] }
 0x2b4   : > { %v2267_v49 = vadd.f32 %v2247_v9, %v2104_v45  ;;  %v2421_v15 = vpop.f32.mrf.mxu1  ;;  %v9983_v50 = vadd.f32 %v2419_v56, %v2264_v52  ;;  %v3109_v45 = vld [vmem:[#allocation2 + $0x61] sm:$0xff]  ;;  %3457 = vmatpush.bf16.msrb.mxu0 %v7187_v63 }
 0x2b5   : > { %v2305_v39 = vld [vmem:[#allocation5 + $0x28] sm:$0xff]  ;;  %3428 = vmatpush.bf16.msrb.mxu3 %v7183_v28 }
 0x2b6   : > { %v2468_v57 = vadd.f32 %v2448_v60, %v2305_v39  ;;  %2283 = vst.msk [vmem:[#allocation5 + $0x38] sm:$0xff] %vm1668_vm6, %v2267_v49  ;;  %v3131_v39 = vpack.c.bf16 %v3110_v44, %v3109_v45 }
 0x2b8   : > { %2484 = vst.msk [vmem:[#allocation5 + $0x28] sm:$0xff] %vm1668_vm6, %v2468_v57  ;;  %3726 = vmatpush.bf16.msra.mxu0 %v9958_v21 }
 0x2b9   : > { %v2218_v56 = vpop.f32.mrf.mxu3 }
 0x2ba   : > { %v2266_v11 = vadd.f32 %v2218_v56, %v9858_v30  ;;  %v2450_v48 = vpop.f32.mrf.mxu2 }
 0x2bb   : > { %v2250_v6 = vpop.f32.mrf.mxu0 }
 0x2bc   : > { %v2269_v52 = vadd.f32 %v2250_v6, %v2106_v22  ;;  %v2424_v60 = vpop.f32.mrf.mxu1  ;;  %v10003_v9 = vadd.f32 %v2421_v15, %v2266_v11  ;;  %v7706_v15 = vld [vmem:[%s11224_s3 + $0x10] sm:$0xff]  ;;  %v2110_v22 = vld [vmem:[#allocation5 + $0x68] sm:$0xff] }
 0x2bd   : > { %v2307_v49 = vld [vmem:[#allocation5 + $0x38] sm:$0xff]  ;;  %3898 = vmatpush.bf16.msra.mxu3 %v7706_v15 }
 0x2be   : > { %v2470_v30 = vadd.f32 %v2450_v48, %v2307_v49  ;;  %2285 = vst.msk [vmem:[#allocation5 + $0x48] sm:$0xff] %vm1668_vm6, %v2269_v52  ;;  %7094 = vmatmul.msk.bf16.gmra.mxu3 %vm970_vm0, %v2928_v47  ;;  %7098 = vmatmul.msk.bf16.gmra.mxu0 %vm970_vm0, %v2928_v47  ;;  %v2909_v48 = vld [vmem:[#allocation2 + $0x90] sm:$0xff]  ;;  %v2112_v15 = vld [vmem:[#allocation5 + $0x78] sm:$0xff] }
 0x2bf   : > { %7162 = vmatmul.msk.bf16.gmra.mxu1 %vm970_vm0, %v3131_v39  ;;  %7166 = vmatmul.msk.bf16.gmra.mxu2 %vm970_vm0, %v3131_v39  ;;  %v2929_v47 = vpack.c.bf16 %v2909_v48, %v9685_v8  ;;  %v10039_v48 = vld [vmem:[#allocation3 + $0x11] sm:$0xff] }
 0x2c0   : > { %2486 = vst.msk [vmem:[#allocation5 + $0x38] sm:$0xff] %vm1668_vm6, %v2470_v30 }
 0x2c1   : > { %v2221_v57 = vpop.f32.mrf.mxu3 }
 0x2c2   : > { %v2268_v21 = vadd.f32 %v2221_v57, %v9882_v5  ;;  %v2453_v51 = vpop.f32.mrf.mxu2  ;;  %v3112_v5 = vld [vmem:[#allocation2 + $0x91] sm:$0xff] }
 0x2c3   : > { %v2252_v24 = vpop.f32.mrf.mxu0  ;;  %v3132_v49 = vpack.c.bf16 %v3112_v5, %v9886_v54  ;;  %v3309_v5 = vld [vmem:[#allocation2 + $0x32] sm:$0xff] }
 0x2c4   : > { %v2271_v56 = vadd.f32 %v2252_v24, %v2108_v19  ;;  %v2426_v1 = vpop.f32.mrf.mxu1  ;;  %v10016_v28 = vadd.f32 %v2424_v60, %v2268_v21 }
 0x2c5   : > { %v2309_v18 = vld [vmem:[#allocation5 + $0x48] sm:$0xff] }
 0x2c6   : > { %v2472_v20 = vadd.f32 %v2453_v51, %v2309_v18  ;;  %2287 = vst.msk [vmem:[#allocation5 + $0x58] sm:$0xff] %vm1668_vm6, %v2271_v56  ;;  %v3764_v56 = vld [vmem:[#allocation3 + $0x1] sm:$0xff] }
 0x2c7   : > { %v3308_v18 = vld [vmem:[#allocation2 + $0x22] sm:$0xff] }
 0x2c8   : > { %2488 = vst.msk [vmem:[#allocation5 + $0x48] sm:$0xff] %vm1668_vm6, %v2472_v20 }
 0x2c9   : > { %v2223_v11 = vpop.f32.mrf.mxu3 }
 0x2ca   : > { %v2270_v44 = vadd.f32 %v2223_v11, %v9892_v16  ;;  %v2455_v63 = vpop.f32.mrf.mxu2 }
 0x2cb   : > { %v2255_v6 = vpop.f32.mrf.mxu0 }
 0x2cc   : > { %v2273_v10 = vadd.f32 %v2255_v6, %v2110_v22  ;;  %v2429_v52 = vpop.f32.mrf.mxu1  ;;  %v10022_v60 = vadd.f32 %v2426_v1, %v2270_v44  ;;  %v2504_v44 = vld [vmem:[#allocation5 + $0x8] sm:$0xff]  ;;  %v3780_v22 = vpack.c.bf16 %v10039_v48, %v3764_v56 }
 0x2cd   : > { %v2311_v45 = vld [vmem:[#allocation5 + $0x58] sm:$0xff] }
 0x2ce   : > { %v2474_v39 = vadd.f32 %v2455_v63, %v2311_v45  ;;  %2289 = vst.msk [vmem:[#allocation5 + $0x68] sm:$0xff] %vm1668_vm6, %v2273_v10  ;;  %7095 = vmatmul.msk.bf16.gmra.mxu3 %vm970_vm0, %v2929_v47  ;;  %7099 = vmatmul.msk.bf16.gmra.mxu0 %vm970_vm0, %v2929_v47 }
 0x2cf   : > { %7163 = vmatmul.msk.bf16.gmra.mxu1 %vm970_vm0, %v3132_v49  ;;  %7167 = vmatmul.msk.bf16.gmra.mxu2 %vm970_vm0, %v3132_v49  ;;  %v7788_v49 = vld [vmem:[#allocation3 + $0x30] sm:$0xff] }
 0x2d0   : > { %2490 = vst.msk [vmem:[#allocation5 + $0x58] sm:$0xff] %vm1668_vm6, %v2474_v39 }
 0x2d1   : > { %v2226_v16 = vpop.f32.mrf.mxu3 }
 0x2d2   : > { %v2272_v8 = vadd.f32 %v2226_v16, %v9914_v4  ;;  %v2458_v30 = vpop.f32.mrf.mxu2  ;;  %v10037_v4 = vld [vmem:[#allocation3 + $0x20] sm:$0xff] }
 0x2d3   : > { %v2257_v57 = vpop.f32.mrf.mxu0  ;;  %v3696_v39 = vpack.c.bf16 %v7788_v49, %v10037_v4 }
 0x2d4   : > { %v2275_v54 = vadd.f32 %v2257_v57, %v2112_v15  ;;  %v2431_v21 = vpop.f32.mrf.mxu1  ;;  %v10032_v51 = vadd.f32 %v2429_v52, %v2272_v8  ;;  %v3332_v52 = vpack.c.bf16 %v3309_v5, %v3308_v18  ;;  %v2506_v15 = vld [vmem:[#allocation5 + $0x18] sm:$0xff] }
 0x2d5   : > { %v2313_v19 = vld [vmem:[#allocation5 + $0x68] sm:$0xff] }
 0x2d6   : > { %v2476_v24 = vadd.f32 %v2458_v30, %v2313_v19  ;;  %2291 = vst.msk [vmem:[#allocation5 + $0x78] sm:$0xff] %vm1668_vm6, %v2275_v54 }
 0x2d8   : > { %2492 = vst.msk [vmem:[#allocation5 + $0x68] sm:$0xff] %vm1668_vm6, %v2476_v24 }
 0x2d9   : > { %v2228_v1 = vpop.f32.mrf.mxu3 }
 0x2da   : > { %v2274_v20 = vadd.f32 %v2228_v1, %v9930_v12  ;;  %v2460_v11 = vpop.f32.mrf.mxu2  ;;  %v7708_v1 = vld [vmem:[%s11224_s3 + $0x20] sm:$0xff] }
 0x2db   : > { %v2646_v63 = vpop.f32.mrf.mxu0  ;;  %4070 = vmatpush.bf16.msra.mxu1 %v7708_v1 }
 0x2dc   : > { %v2667_v6 = vadd.f32 %v2646_v63, %v2504_v44  ;;  %v2820_v10 = vpop.f32.mrf.mxu1  ;;  %v10042_v47 = vadd.f32 %v2431_v21, %v2274_v20  ;;  %v3311_v20 = vld [vmem:[#allocation2 + $0x52] sm:$0xff]  ;;  %v10060_v44 = vld [vmem:[#allocation3 + $0x21] sm:$0xff] }
 0x2dd   : > { %v2315_v45 = vld [vmem:[#allocation5 + $0x78] sm:$0xff]  ;;  %v2508_v63 = vld [vmem:[#allocation5 + $0x28] sm:$0xff] }
 0x2de   : > { %v2478_v12 = vadd.f32 %v2460_v11, %v2315_v45  ;;  %2683 = vst.msk [vmem:[#allocation5 + $0x8] sm:$0xff] %vm1668_vm6, %v2667_v6  ;;  %7228 = vmatmul.msk.bf16.vlgmr.msrb.gmra.mxu3 %vm970_vm0, %v3332_v52  ;;  %7232 = vmatmul.msk.bf16.vlgmr.msrb.gmra.mxu0 %vm970_vm0, %v3332_v52 }
 0x2df   : > { %7241 = vmatmul.msk.bf16.vlgmr.msrb.gmra.mxu1 %vm1465_vm3, %v3696_v39  ;;  %7250 = vmatmul.msk.bf16.vlgmr.msra.gmra.mxu2 %vm1465_vm3, %v3780_v22  ;;  %v3310_v22 = vld [vmem:[#allocation2 + $0x42] sm:$0xff]  ;;  %v7789_v39 = vld [vmem:[#allocation3 + $0x50] sm:$0xff] }
 0x2e0   : > { %2494 = vst.msk [vmem:[#allocation5 + $0x78] sm:$0xff] %vm1668_vm6, %v2478_v12  ;;  %v3333_v52 = vpack.c.bf16 %v3311_v20, %v3310_v22  ;;  %v7790_v12 = vld [vmem:[#allocation3 + $0x40] sm:$0xff] }
 0x2e1   : > { %v2617_v16 = vpop.f32.mrf.mxu3 }
 0x2e2   : > { %v2666_v8 = vadd.f32 %v2617_v16, %v9951_v3  ;;  %v2849_v30 = vpop.f32.mrf.mxu2  ;;  %v3697_v16 = vpack.c.bf16 %v7789_v39, %v7790_v12 }
 0x2e3   : > { %v2648_v57 = vpop.f32.mrf.mxu0 }
 0x2e4   : > { %v2669_v54 = vadd.f32 %v2648_v57, %v2506_v15  ;;  %v2822_v21 = vpop.f32.mrf.mxu1  ;;  %v10052_v19 = vadd.f32 %v2820_v10, %v2666_v8  ;;  %v7791_v8 = vld [vmem:[#allocation3 + $0x31] sm:$0xff] }
 0x2e5   : > { %v2707_v24 = vld [vmem:[#allocation5 + $0x8] sm:$0xff] }
 0x2e6   : > { %v2870_v56 = vadd.f32 %v2849_v30, %v2707_v24  ;;  %2685 = vst.msk [vmem:[#allocation5 + $0x18] sm:$0xff] %vm1668_vm6, %v2669_v54  ;;  %v3781_v30 = vpack.c.bf16 %v7791_v8, %v10060_v44 }
 0x2e8   : > { %2886 = vst.msk [vmem:[#allocation5 + $0x8] sm:$0xff] %vm1668_vm6, %v2870_v56 }
 0x2e9   : > { %v2619_v18 = vpop.f32.mrf.mxu3 }
 0x2ea   : > { %v2668_v3 = vadd.f32 %v2619_v18, %v9962_v46  ;;  %v2851_v11 = vpop.f32.mrf.mxu2 }
 0x2eb   : > { %v2651_v5 = vpop.f32.mrf.mxu0 }
 0x2ec   : > { %v2671_v6 = vadd.f32 %v2651_v5, %v2508_v63  ;;  %v2825_v10 = vpop.f32.mrf.mxu1  ;;  %v10062_v45 = vadd.f32 %v2822_v21, %v2668_v3  ;;  %v2510_v21 = vld [vmem:[#allocation5 + $0x38] sm:$0xff] }
 0x2ed   : > { %v2709_v49 = vld [vmem:[#allocation5 + $0x18] sm:$0xff] }
 0x2ee   : > { %v2872_v46 = vadd.f32 %v2851_v11, %v2709_v49  ;;  %2687 = vst.msk [vmem:[#allocation5 + $0x28] sm:$0xff] %vm1668_vm6, %v2671_v6  ;;  %7229 = vmatmul.msk.bf16.gmra.mxu3 %vm970_vm0, %v3333_v52  ;;  %7233 = vmatmul.msk.bf16.gmra.mxu0 %vm970_vm0, %v3333_v52  ;;  %v7709_v11 = vld [vmem:[%s11224_s3 + $0x28] sm:$0xff]  ;;  %v3313_v5 = vld [vmem:[#allocation2 + $0x72] sm:$0xff] }
 0x2ef   : > { %7242 = vmatmul.msk.bf16.gmra.mxu1 %vm1465_vm3, %v3697_v16  ;;  %7251 = vmatmul.msk.bf16.gmra.mxu2 %vm1465_vm3, %v3781_v30  ;;  %v10080_v6 = vld [vmem:[#allocation3 + $0x70] sm:$0xff]  ;;  %v3312_v49 = vld [vmem:[#allocation2 + $0x62] sm:$0xff] }
 0x2f0   : > { %2888 = vst.msk [vmem:[#allocation5 + $0x18] sm:$0xff] %vm1668_vm6, %v2872_v46  ;;  %4157 = vmatpush.bf16.msrb.mxu2 %v7709_v11  ;;  %v3334_v16 = vpack.c.bf16 %v3313_v5, %v3312_v49  ;;  %v7792_v46 = vld [vmem:[#allocation3 + $0x60] sm:$0xff]  ;;  %v2514_v11 = vld [vmem:[#allocation5 + $0x58] sm:$0xff] }
 0x2f1   : > { %v2622_v15 = vpop.f32.mrf.mxu3  ;;  %v4022_v49 = vld [vmem:[#allocation3 + $0x4] sm:$0xff] }
 0x2f2   : > { %v2670_v57 = vadd.f32 %v2622_v15, %v9983_v50  ;;  %v2854_v54 = vpop.f32.mrf.mxu2  ;;  %v3698_v15 = vpack.c.bf16 %v10080_v6, %v7792_v46  ;;  %v10103_v46 = vld [vmem:[#allocation3 + $0x71] sm:$0xff] }
 0x2f3   : > { %v2653_v24 = vpop.f32.mrf.mxu0 }
 0x2f4   : > { %v2673_v56 = vadd.f32 %v2653_v24, %v2510_v21  ;;  %v2827_v1 = vpop.f32.mrf.mxu1  ;;  %v10072_v18 = vadd.f32 %v2825_v10, %v2670_v57  ;;  %v2512_v10 = vld [vmem:[#allocation5 + $0x48] sm:$0xff]  ;;  %v7793_v57 = vld [vmem:[#allocation3 + $0x51] sm:$0xff] }
 0x2f5   : > { %v2711_v20 = vld [vmem:[#allocation5 + $0x28] sm:$0xff]  ;;  %v7707_v24 = vld [vmem:[%s11224_s3 + $0x18] sm:$0xff] }
 0x2f6   : > { %v2874_v3 = vadd.f32 %v2854_v54, %v2711_v20  ;;  %2689 = vst.msk [vmem:[#allocation5 + $0x38] sm:$0xff] %vm1668_vm6, %v2673_v56  ;;  %v7794_v54 = vld [vmem:[#allocation3 + $0x41] sm:$0xff]  ;;  %3984 = vmatpush.bf16.msrb.mxu0 %v7707_v24 }
 0x2f7   : > { %v3782_v21 = vpack.c.bf16 %v7793_v57, %v7794_v54  ;;  %v2516_v57 = vld [vmem:[#allocation5 + $0x68] sm:$0xff] }
 0x2f8   : > { %2890 = vst.msk [vmem:[#allocation5 + $0x28] sm:$0xff] %vm1668_vm6, %v2874_v3 }
 0x2f9   : > { %v2624_v63 = vpop.f32.mrf.mxu3 }
 0x2fa   : > { %v2672_v50 = vadd.f32 %v2624_v63, %v10003_v9  ;;  %v2856_v22 = vpop.f32.mrf.mxu2 }
 0x2fb   : > { %v2656_v52 = vpop.f32.mrf.mxu0 }
 0x2fc   : > { %v2675_v39 = vadd.f32 %v2656_v52, %v2512_v10  ;;  %v2830_v12 = vpop.f32.mrf.mxu1  ;;  %v10082_v8 = vadd.f32 %v2827_v1, %v2672_v50  ;;  %v7710_v1 = vld [vmem:[%s11224_s3 + $0x30] sm:$0xff] }
 0x2fd   : > { %v2713_v30 = vld [vmem:[#allocation5 + $0x38] sm:$0xff]  ;;  %4243 = vmatpush.bf16.msrb.mxu3 %v7710_v1 }
 0x2fe   : > { %v2876_v9 = vadd.f32 %v2856_v22, %v2713_v30  ;;  %2691 = vst.msk [vmem:[#allocation5 + $0x48] sm:$0xff] %vm1668_vm6, %v2675_v39  ;;  %7230 = vmatmul.msk.bf16.gmra.mxu3 %vm970_vm0, %v3334_v16  ;;  %7234 = vmatmul.msk.bf16.gmra.mxu0 %vm970_vm0, %v3334_v16  ;;  %v3315_v16 = vld [vmem:[#allocation2 + $0x92] sm:$0xff] }
 0x2ff   : > { %7243 = vmatmul.msk.bf16.gmra.mxu1 %vm1465_vm3, %v3698_v15  ;;  %7252 = vmatmul.msk.bf16.gmra.mxu2 %vm1465_vm3, %v3782_v21  ;;  %v10105_v15 = vld [vmem:[#allocation3 + $0x14] sm:$0xff]  ;;  %v3335_v24 = vpack.c.bf16 %v3315_v16, %v9888_v62 }
 0x300   : > { %2892 = vst.msk [vmem:[#allocation5 + $0x38] sm:$0xff] %vm1668_vm6, %v2876_v9 }
 0x301   : > { %v2627_v56 = vpop.f32.mrf.mxu3 }
 0x302   : > { %v2674_v20 = vadd.f32 %v2627_v56, %v10016_v28  ;;  %v2859_v3 = vpop.f32.mrf.mxu2 }
 0x303   : > { %v2658_v63 = vpop.f32.mrf.mxu0 }
 0x304   : > { %v2677_v5 = vadd.f32 %v2658_v63, %v2514_v11  ;;  %v2832_v50 = vpop.f32.mrf.mxu1  ;;  %v10098_v22 = vadd.f32 %v2830_v12, %v2674_v20  ;;  %v4038_v12 = vpack.c.bf16 %v10105_v15, %v4022_v49  ;;  %v7795_v20 = vld [vmem:[#allocation3 + $0x61] sm:$0xff] }
 0x305   : > { %v2715_v10 = vld [vmem:[#allocation5 + $0x48] sm:$0xff] }
 0x306   : > { %v2878_v52 = vadd.f32 %v2859_v3, %v2715_v10  ;;  %2693 = vst.msk [vmem:[#allocation5 + $0x58] sm:$0xff] %vm1668_vm6, %v2677_v5  ;;  %v3783_v3 = vpack.c.bf16 %v10103_v46, %v7795_v20  ;;  %v2518_v5 = vld [vmem:[#allocation5 + $0x78] sm:$0xff]  ;;  %v10130_v20 = vld [vmem:[#allocation3 + $0x24] sm:$0xff] }
 0x308   : > { %2894 = vst.msk [vmem:[#allocation5 + $0x48] sm:$0xff] %vm1668_vm6, %v2878_v52 }
 0x309   : > { %v2629_v39 = vpop.f32.mrf.mxu3 }
 0x30a   : > { %v2676_v28 = vadd.f32 %v2629_v39, %v10022_v60  ;;  %v2861_v30 = vpop.f32.mrf.mxu2 }
 0x30b   : > { %v2661_v54 = vpop.f32.mrf.mxu0 }
 0x30c   : > { %v2679_v21 = vadd.f32 %v2661_v54, %v2516_v57  ;;  %v2835_v9 = vpop.f32.mrf.mxu1  ;;  %v10109_v56 = vadd.f32 %v2832_v50, %v2676_v28  ;;  %v3679_v28 = vld [vmem:[#allocation3] sm:$0xff]  ;;  %v3680_v54 = vld [vmem:[#allocation3 + $0x10] sm:$0xff] }
 0x30d   : > { %v2717_v1 = vld [vmem:[#allocation5 + $0x58] sm:$0xff]  ;;  %v7712_v57 = vld [vmem:[%s11224_s3 + $0x40] sm:$0xff] }
 0x30e   : > { %v2880_v60 = vadd.f32 %v2861_v30, %v2717_v1  ;;  %2695 = vst.msk [vmem:[#allocation5 + $0x68] sm:$0xff] %vm1668_vm6, %v2679_v21  ;;  %7231 = vmatmul.msk.bf16.gmra.mxu3 %vm970_vm0, %v3335_v24  ;;  %7235 = vmatmul.msk.bf16.gmra.mxu0 %vm970_vm0, %v3335_v24  ;;  %v3850_v30 = vld [vmem:[#allocation3 + $0x2] sm:$0xff]  ;;  %v3695_v24 = vpack.c.bf16 %v3680_v54, %v3679_v28 }
 0x30f   : > { %7253 = vmatmul.msk.bf16.gmra.mxu2 %vm1465_vm3, %v3783_v3  ;;  %7280 = vmatmul.msk.bf16.vlgmr.msra.gmra.mxu1 %vm1465_vm3, %v4038_v12  ;;  %v10126_v12 = vld [vmem:[#allocation3 + $0x12] sm:$0xff]  ;;  %v2911_v3 = vld [vmem:[#allocation5 + $0x8] sm:$0xff] }
 0x310   : > { %2896 = vst.msk [vmem:[#allocation5 + $0x58] sm:$0xff] %vm1668_vm6, %v2880_v60  ;;  %v3866_v1 = vpack.c.bf16 %v10126_v12, %v3850_v30  ;;  %4415 = vmatpush.bf16.msrb.mxu1 %v7712_v57  ;;  %v2913_v57 = vld [vmem:[#allocation5 + $0x18] sm:$0xff] }
 0x311   : > { %v2632_v62 = vpop.f32.mrf.mxu3 }
 0x312   : > { %v2678_v11 = vadd.f32 %v2632_v62, %v10032_v51  ;;  %v2864_v63 = vpop.f32.mrf.mxu2 }
 0x313   : > { %v2663_v50 = vpop.f32.mrf.mxu0 }
 0x314   : > { %v2681_v10 = vadd.f32 %v2663_v50, %v2518_v5  ;;  %v2837_v52 = vpop.f32.mrf.mxu1  ;;  %v10119_v49 = vadd.f32 %v2835_v9, %v2678_v11 }
 0x315   : > { %v2719_v39 = vld [vmem:[#allocation5 + $0x68] sm:$0xff] }
 0x316   : > { %v2882_v16 = vadd.f32 %v2864_v63, %v2719_v39  ;;  %2697 = vst.msk [vmem:[#allocation5 + $0x78] sm:$0xff] %vm1668_vm6, %v2681_v10  ;;  %v7711_v63 = vld [vmem:[%s11224_s3 + $0x38] sm:$0xff]  ;;  %v4125_v39 = vpack.c.bf16 %v10037_v4, %v3680_v54 }
 0x317   : > { %v7796_v10 = vld [vmem:[#allocation3 + $0x34] sm:$0xff] }
 0x318   : > { %2898 = vst.msk [vmem:[#allocation5 + $0x68] sm:$0xff] %vm1668_vm6, %v2882_v16 }
 0x319   : > { %v2634_v51 = vpop.f32.mrf.mxu3 }
 0x31a   : > { %v2680_v21 = vadd.f32 %v2634_v51, %v10042_v47  ;;  %v2866_v9 = vpop.f32.mrf.mxu2  ;;  %v4039_v47 = vpack.c.bf16 %v7796_v10, %v10130_v20  ;;  %v2915_v10 = vld [vmem:[#allocation5 + $0x28] sm:$0xff] }
 0x31b   : > { %v3053_v60 = vpop.f32.mrf.mxu0 }
 0x31c   : > { %v3074_v62 = vadd.f32 %v3053_v60, %v2911_v3  ;;  %v3227_v11 = vpop.f32.mrf.mxu1  ;;  %v10135_v5 = vadd.f32 %v2837_v52, %v2680_v21  ;;  %v10150_v60 = vld [vmem:[#allocation3 + $0x22] sm:$0xff] }
 0x31d   : > { %v2721_v50 = vld [vmem:[#allocation5 + $0x78] sm:$0xff] }
 0x31e   : > { %v2884_v16 = vadd.f32 %v2866_v9, %v2721_v50  ;;  %3090 = vst.msk [vmem:[#allocation5 + $0x8] sm:$0xff] %vm1668_vm6, %v3074_v62  ;;  %7240 = vmatmul.msk.bf16.vlgmr.msra.gmra.mxu0 %vm1465_vm3, %v3695_v24  ;;  %7260 = vmatmul.msk.bf16.vlgmr.msra.gmra.mxu3 %vm1465_vm3, %v3866_v1  ;;  %v3936_v1 = vld [vmem:[#allocation3 + $0x3] sm:$0xff]  ;;  %v10152_v62 = vld [vmem:[#allocation3 + $0x13] sm:$0xff] }
 0x31f   : > { %7281 = vmatmul.msk.bf16.gmra.mxu1 %vm1465_vm3, %v4039_v47  ;;  %7290 = vmatmul.msk.bf16.vlgmr.msrb.gmra.mxu2 %vm1465_vm3, %v4125_v39  ;;  %v3952_v50 = vpack.c.bf16 %v10152_v62, %v3936_v1 }
 0x320   : > { %2900 = vst.msk [vmem:[#allocation5 + $0x78] sm:$0xff] %vm1668_vm6, %v2884_v16  ;;  %4329 = vmatpush.bf16.msra.mxu0 %v7711_v63  ;;  %v7797_v16 = vld [vmem:[#allocation3 + $0x32] sm:$0xff] }
 0x321   : > { %v3024_v52 = vpop.f32.mrf.mxu3 }
 0x322   : > { %v3073_v28 = vadd.f32 %v3024_v52, %v10052_v19  ;;  %v3256_v30 = vpop.f32.mrf.mxu2  ;;  %v10157_v52 = vpack.c.bf16 %v7797_v16, %v10150_v60  ;;  %v10179_v16 = vld [vmem:[#allocation3 + $0x23] sm:$0xff] }
 0x323   : > { %v3055_v4 = vpop.f32.mrf.mxu0 }
 0x324   : > { %v3076_v51 = vadd.f32 %v3055_v4, %v2913_v57  ;;  %v3229_v54 = vpop.f32.mrf.mxu1  ;;  %v10146_v21 = vadd.f32 %v3227_v11, %v3073_v28  ;;  %v7798_v57 = vld [vmem:[#allocation3 + $0x54] sm:$0xff]  ;;  %v7799_v4 = vld [vmem:[#allocation3 + $0x44] sm:$0xff] }
 0x325   : > { %v3114_v9 = vld [vmem:[#allocation5 + $0x8] sm:$0xff] }
 0x326   : > { %v3277_v24 = vadd.f32 %v3256_v30, %v3114_v9  ;;  %3092 = vst.msk [vmem:[#allocation5 + $0x18] sm:$0xff] %vm1668_vm6, %v3076_v51  ;;  %v4040_v51 = vpack.c.bf16 %v7798_v57, %v7799_v4  ;;  %v10182_v57 = vld [vmem:[#allocation3 + $0x74] sm:$0xff] }
 0x328   : > { %3293 = vst.msk [vmem:[#allocation5 + $0x8] sm:$0xff] %vm1668_vm6, %v3277_v24 }
 0x329   : > { %v3026_v3 = vpop.f32.mrf.mxu3 }
 0x32a   : > { %v3075_v19 = vadd.f32 %v3026_v3, %v10062_v45  ;;  %v3258_v63 = vpop.f32.mrf.mxu2  ;;  %v11251_v45 = vpack.c.bf16 %v9393_v17, %v9375_v33  ;;  %v2917_v3 = vld [vmem:[#allocation5 + $0x38] sm:$0xff]  ;;  %v7713_v33 = vld [vmem:[%s11224_s3 + $0x48] sm:$0xff] }
 0x32b   : > { %v3058_v11 = vpop.f32.mrf.mxu0  ;;  %4501 = vmatpush.bf16.msra.mxu2 %v7713_v33  ;;  %v7714_v33 = vld [vmem:[%s11224_s3 + $0x50] sm:$0xff] }
 0x32c   : > { %v3078_v47 = vadd.f32 %v3058_v11, %v2915_v10  ;;  %v3232_v39 = vpop.f32.mrf.mxu1  ;;  %v10159_v28 = vadd.f32 %v3229_v54, %v3075_v19  ;;  %4587 = vmatpush.bf16.msra.mxu3 %v7714_v33  ;;  %v2923_v33 = vld [vmem:[#allocation5 + $0x68] sm:$0xff] }
 0x32d   : > { %v3116_v30 = vld [vmem:[#allocation5 + $0x18] sm:$0xff] }
 0x32e   : > { %v3279_v9 = vadd.f32 %v3258_v63, %v3116_v30  ;;  %3094 = vst.msk [vmem:[#allocation5 + $0x28] sm:$0xff] %vm1668_vm6, %v3078_v47  ;;  %7261 = vmatmul.msk.bf16.gmra.mxu3 %vm1465_vm3, %v10157_v52  ;;  %7270 = vmatmul.msk.bf16.vlgmr.msrb.gmra.mxu0 %vm1465_vm3, %v3952_v50 }
 0x32f   : > { %7282 = vmatmul.msk.bf16.gmra.mxu1 %vm1465_vm3, %v4040_v51  ;;  %7291 = vmatmul.msk.bf16.gmra.mxu2 %vm1465_vm3, %v11251_v45  ;;  %v10184_v51 = vld [vmem:[#allocation3 + $0x33] sm:$0xff] }
 0x330   : > { %3295 = vst.msk [vmem:[#allocation5 + $0x18] sm:$0xff] %vm1668_vm6, %v3279_v9 }
 0x331   : > { %v3029_v54 = vpop.f32.mrf.mxu3 }
 0x332   : > { %v3077_v24 = vadd.f32 %v3029_v54, %v10072_v18  ;;  %v3261_v1 = vpop.f32.mrf.mxu2  ;;  %v7800_v54 = vld [vmem:[#allocation3 + $0x42] sm:$0xff] }
 0x333   : > { %v3060_v19 = vpop.f32.mrf.mxu0 }
 0x334   : > { %v3080_v63 = vadd.f32 %v3060_v19, %v2917_v3  ;;  %v3234_v10 = vpop.f32.mrf.mxu1  ;;  %v10172_v11 = vadd.f32 %v3232_v39, %v3077_v24  ;;  %v2919_v39 = vld [vmem:[#allocation5 + $0x48] sm:$0xff]  ;;  %v7801_v24 = vld [vmem:[#allocation3 + $0x52] sm:$0xff]  ;;  %v10190_v3 = vpack.c.bf16 %v10184_v51, %v10179_v16 }
 0x335   : > { %v3118_v50 = vld [vmem:[#allocation5 + $0x28] sm:$0xff] }
 0x336   : > { %v3281_v47 = vadd.f32 %v3261_v1, %v3118_v50  ;;  %3096 = vst.msk [vmem:[#allocation5 + $0x38] sm:$0xff] %vm1668_vm6, %v3080_v63  ;;  %v10186_v1 = vpack.c.bf16 %v7801_v24, %v7800_v54  ;;  %v7802_v63 = vld [vmem:[#allocation3 + $0x64] sm:$0xff] }
 0x337   : > { %v4041_v50 = vpack.c.bf16 %v10182_v57, %v7802_v63  ;;  %v10230_v63 = vld [vmem:[#allocation3 + $0x43] sm:$0xff] }
 0x338   : > { %3297 = vst.msk [vmem:[#allocation5 + $0x28] sm:$0xff] %vm1668_vm6, %v3281_v47 }
 0x339   : > { %v3031_v17 = vpop.f32.mrf.mxu3 }
 0x33a   : > { %v3079_v18 = vadd.f32 %v3031_v17, %v10082_v8  ;;  %v3263_v30 = vpop.f32.mrf.mxu2 }
 0x33b   : > { %v3063_v4 = vpop.f32.mrf.mxu0 }
 0x33c   : > { %v3082_v9 = vadd.f32 %v3063_v4, %v2919_v39  ;;  %v3237_v45 = vpop.f32.mrf.mxu1  ;;  %v10192_v19 = vadd.f32 %v3234_v10, %v3079_v18  ;;  %v11252_v10 = vpack.c.bf16 %v9377_v35, %v9384_v38  ;;  %v2921_v35 = vld [vmem:[#allocation5 + $0x58] sm:$0xff] }
 0x33d   : > { %v3120_v8 = vld [vmem:[#allocation5 + $0x38] sm:$0xff] }
 0x33e   : > { %v3283_v47 = vadd.f32 %v3263_v30, %v3120_v8  ;;  %3098 = vst.msk [vmem:[#allocation5 + $0x48] sm:$0xff] %vm1668_vm6, %v3082_v9  ;;  %7262 = vmatmul.msk.bf16.gmra.mxu3 %vm1465_vm3, %v10186_v1  ;;  %7271 = vmatmul.msk.bf16.gmra.mxu0 %vm1465_vm3, %v10190_v3  ;;  %v10228_v8 = vld [vmem:[#allocation3 + $0x72] sm:$0xff] }
 0x33f   : > { %7283 = vmatmul.msk.bf16.gmra.mxu1 %vm1465_vm3, %v4041_v50  ;;  %7292 = vmatmul.msk.bf16.gmra.mxu2 %vm1465_vm3, %v11252_v10  ;;  %v10232_v50 = vld [vmem:[#allocation3 + $0x53] sm:$0xff]  ;;  %v10237_v10 = vld [vmem:[#allocation3 + $0x80] sm:$0xff] }
 0x340   : > { %3299 = vst.msk [vmem:[#allocation5 + $0x38] sm:$0xff] %vm1668_vm6, %v3283_v47 }
 0x341   : > { %v3034_v17 = vpop.f32.mrf.mxu3 }
 0x342   : > { %v3081_v18 = vadd.f32 %v3034_v17, %v10098_v22  ;;  %v3266_v30 = vpop.f32.mrf.mxu2 }
 0x343   : > { %v3065_v38 = vpop.f32.mrf.mxu0 }
 0x344   : > { %v3084_v39 = vadd.f32 %v3065_v38, %v2921_v35  ;;  %v3239_v4 = vpop.f32.mrf.mxu1  ;;  %v10220_v9 = vadd.f32 %v3237_v45, %v3081_v18  ;;  %v7803_v35 = vld [vmem:[#allocation3 + $0x62] sm:$0xff] }
 0x345   : > { %v3122_v54 = vld [vmem:[#allocation5 + $0x48] sm:$0xff]  ;;  %v10240_v38 = vpack.c.bf16 %v10228_v8, %v7803_v35 }
 0x346   : > { %v3285_v22 = vadd.f32 %v3266_v30, %v3122_v54  ;;  %3100 = vst.msk [vmem:[#allocation5 + $0x58] sm:$0xff] %vm1668_vm6, %v3084_v39  ;;  %v10244_v39 = vpack.c.bf16 %v10232_v50, %v10230_v63 }
 0x348   : > { %3301 = vst.msk [vmem:[#allocation5 + $0x48] sm:$0xff] %vm1668_vm6, %v3285_v22  ;;  %v4383_v22 = vpack.c.bf16 %v10179_v16, %v10152_v62 }
 0x349   : > { %v3036_v24 = vpop.f32.mrf.mxu3 }
 0x34a   : > { %v3083_v45 = vadd.f32 %v3036_v24, %v10109_v56  ;;  %v3268_v47 = vpop.f32.mrf.mxu2  ;;  %v4128_v56 = vpack.c.bf16 %v10237_v10, %v10080_v6  ;;  %v7715_v6 = vld [vmem:[%s11224_s3 + $0x58] sm:$0xff] }
 0x34b   : > { %v3068_v17 = vpop.f32.mrf.mxu0  ;;  %4673 = vmatpush.bf16.msrb.mxu0 %v7715_v6 }
 0x34c   : > { %v3086_v18 = vadd.f32 %v3068_v17, %v2923_v33  ;;  %v3242_v30 = vpop.f32.mrf.mxu1  ;;  %v10246_v54 = vadd.f32 %v3239_v4, %v3083_v45  ;;  %v2925_v45 = vld [vmem:[#allocation5 + $0x78] sm:$0xff] }
 0x34d   : > { %v3124_v27 = vld [vmem:[#allocation5 + $0x58] sm:$0xff] }
 0x34e   : > { %v3287_v24 = vadd.f32 %v3268_v47, %v3124_v27  ;;  %3102 = vst.msk [vmem:[#allocation5 + $0x68] sm:$0xff] %vm1668_vm6, %v3086_v18  ;;  %7263 = vmatmul.msk.bf16.gmra.mxu3 %vm1465_vm3, %v10240_v38  ;;  %7272 = vmatmul.msk.bf16.gmra.mxu0 %vm1465_vm3, %v10244_v39 }
 0x34f   : > { %7293 = vmatmul.msk.bf16.gmra.mxu2 %vm1465_vm3, %v4128_v56  ;;  %7320 = vmatmul.msk.bf16.vlgmr.msrb.gmra.mxu1 %vm1465_vm3, %v4383_v22  ;;  %v7716_v56 = vld [vmem:[%s11224_s3 + $0x60] sm:$0xff] }
 0x350   : > { %3303 = vst.msk [vmem:[#allocation5 + $0x58] sm:$0xff] %vm1668_vm6, %v3287_v24  ;;  %v10271_v24 = vld [vmem:[#allocation3 + $0x73] sm:$0xff]  ;;  %4759 = vmatpush.bf16.msra.mxu1 %v7716_v56  ;;  %v4469_v56 = vpack.c.bf16 %v10130_v20, %v10105_v15 }
 0x351   : > { %v3039_v62 = vpop.f32.mrf.mxu3  ;;  %v3690_v20 = vld [vmem:[#allocation6 + $0x18] sm:$0xff] }
 0x352   : > { %v3085_v16 = vadd.f32 %v3039_v62, %v10119_v49  ;;  %v3271_v4 = vpop.f32.mrf.mxu2  ;;  %v3689_v62 = vld [vmem:[#allocation6 + $0x10] sm:$0xff] }
 0x353   : > { %v3070_v47 = vpop.f32.mrf.mxu0 }
 0x354   : > { %v3088_v33 = vadd.f32 %v3070_v47, %v2925_v45  ;;  %v3244_v17 = vpop.f32.mrf.mxu1  ;;  %v10264_v18 = vadd.f32 %v3242_v30, %v3085_v16  ;;  %v3317_v30 = vld [vmem:[#allocation5 + $0x8] sm:$0xff] }
 0x355   : > { %v3126_v35 = vld [vmem:[#allocation5 + $0x68] sm:$0xff] }
 0x356   : > { %v3289_v27 = vadd.f32 %v3271_v4, %v3126_v35  ;;  %3104 = vst.msk [vmem:[#allocation5 + $0x78] sm:$0xff] %vm1668_vm6, %v3088_v33  ;;  %v3942_v45 = vld [vmem:[#allocation3 + $0x63] sm:$0xff]  ;;  %v4211_v35 = vpack.c.bf16 %v10060_v44, %v10039_v48 }
 0x357   : > { %v10275_v33 = vpack.c.bf16 %v10271_v24, %v3942_v45 }
 0x358   : > { %3305 = vst.msk [vmem:[#allocation5 + $0x68] sm:$0xff] %vm1668_vm6, %v3289_v27 }
 0x359   : > { %v3041_v22 = vpop.f32.mrf.mxu3 }
 0x35a   : > { %v3087_v49 = vadd.f32 %v3041_v22, %v10135_v5  ;;  %v3273_v6 = vpop.f32.mrf.mxu2  ;;  %v4384_v5 = vpack.c.bf16 %v10230_v63, %v10184_v51  ;;  %v3527_v22 = vld [vmem:[%s11226_s5] sm:$0x3]  ;;  %v3319_v63 = vld [vmem:[#allocation5 + $0x18] sm:$0xff] }
 0x35b   : > { %v3459_v16 = vpop.f32.mrf.mxu0  ;;  %v10296_v48 = vperm.slane %v3527_v22, 0  ;;  %v10301_v51 = vperm.slane %v3527_v22, 1  ;;  %v3691_v22 = vld [vmem:[#allocation6 + $0x20] sm:$0xff] }
 0x35c   : > { %v3480_v4 = vadd.f32 %v3459_v16, %v3317_v30  ;;  %v3733_v47 = vpop.f32.mrf.mxu1  ;;  %v10279_v27 = vadd.f32 %v3244_v17, %v3087_v49 }
 0x35d   : > { %v3128_v26 = vld [vmem:[#allocation5 + $0x78] sm:$0xff]  ;;  %v3750_v14 = vadd.f32 %v3733_v47, %v3689_v62 }
 0x35e   : > { %v3291_v30 = vadd.f32 %v3273_v6, %v3128_v26  ;;  %3496 = vst.msk [vmem:[#allocation5 + $0x8] sm:$0xff] %vm1668_vm6, %v3480_v4  ;;  %7273 = vmatmul.msk.bf16.gmra.mxu0 %vm1465_vm3, %v10275_v33  ;;  %7300 = vmatmul.msk.bf16.vlgmr.msrb.gmra.mxu3 %vm1465_vm3, %v4211_v35 }
 0x35f   : > { %3758 = vst.msk [vmem:[#allocation6 + $0x10] sm:$0xff] %vm3670_vm7, %v3750_v14  ;;  %7321 = vmatmul.msk.bf16.gmra.mxu1 %vm1465_vm3, %v4384_v5  ;;  %7330 = vmatmul.msk.bf16.vlgmr.msra.gmra.mxu2 %vm1465_vm3, %v4469_v56 }
 0x360   : > { %3307 = vst.msk [vmem:[#allocation5 + $0x78] sm:$0xff] %vm1668_vm6, %v3291_v30  ;;  %v3321_v30 = vld [vmem:[#allocation5 + $0x28] sm:$0xff] }
 0x361   : > { %v3430_v44 = vpop.f32.mrf.mxu3 }
 0x362   : > { %v3479_v26 = vadd.f32 %v3430_v44, %v10146_v21  ;;  %v10299_v15 = vpop.f32.mrf.mxu2 }
 0x363   : > { %v3461_v17 = vpop.f32.mrf.mxu0 }
 0x364   : > { %v3482_v49 = vadd.f32 %v3461_v17, %v3319_v63  ;;  %v3735_v14 = vpop.f32.mrf.mxu1  ;;  %v3533_v6 = vadd.f32 %v10296_v48, %v3479_v26  ;;  %v4297_v63 = vpack.c.bf16 %v10150_v60, %v10126_v12  ;;  %v11254_v12 = vpack.c.bf16 %v9397_v43, %v9406_v55 }
 0x365   : > { %v3751_v62 = vadd.f32 %v3735_v14, %v3690_v20  ;;  %v3512_v16 = vld [vmem:[#allocation5 + $0x8] sm:$0xff]  ;;  %v4385_v14 = vpack.c.bf16 %v3942_v45, %v10232_v50 }
 0x366   : > { %3498 = vst.msk [vmem:[#allocation5 + $0x18] sm:$0xff] %vm1668_vm6, %v3482_v49  ;;  %v3534_v4 = vadd.f32 %v10301_v51, %v3512_v16  ;;  %v3549_v47 = vmax.f32 %v3533_v6, 0.0  ;;  %v3774_v50 = vld [vmem:[#allocation6 + $0x10] sm:$0xff] }
 0x367   : > { %3759 = vst.msk [vmem:[#allocation6 + $0x18] sm:$0xff] %vm3670_vm7, %v3751_v62 }
 0x368   : > { %v3550_v21 = vmax.f32 %v3534_v4, 0.0  ;;  %3581 = vrot.lane.b32.xlu2 %v3549_v47, %s7884_s13  ;;  %v3692_v4 = vld [vmem:[#allocation6 + $0x28] sm:$0xff] }
 0x369   : > { %v3432_v35 = vpop.f32.mrf.mxu3 }
 0x36a   : > { %v3481_v5 = vadd.f32 %v3432_v35, %v10159_v28  ;;  %v10309_v56 = vpop.f32.mrf.mxu2  ;;  %3583 = vrot.lane.b32.xlu0 %v3550_v21, %s7884_s13  ;;  %v11253_v28 = vpack.c.bf16 %v9395_v42, %v9386_v41  ;;  %v3323_v21 = vld [vmem:[#allocation5 + $0x38] sm:$0xff] }
 0x36b   : > { %v3464_v44 = vpop.f32.mrf.mxu0 }
 0x36c   : > { %v3484_v26 = vadd.f32 %v3464_v44, %v3321_v30  ;;  %v3738_v20 = vpop.f32.mrf.mxu1  ;;  %v3535_v17 = vadd.f32 %v10296_v48, %v3481_v5 }
 0x36d   : > { %v3752_v49 = vadd.f32 %v3738_v20, %v3691_v22  ;;  %v3514_v6 = vld [vmem:[#allocation5 + $0x18] sm:$0xff] }
 0x36e   : > { %3500 = vst.msk [vmem:[#allocation5 + $0x28] sm:$0xff] %vm1668_vm6, %v3484_v26  ;;  %7301 = vmatmul.msk.bf16.gmra.mxu3 %vm1465_vm3, %v11253_v28  ;;  %7310 = vmatmul.msk.bf16.vlgmr.msra.gmra.mxu0 %vm1465_vm3, %v4297_v63  ;;  %v3536_v62 = vadd.f32 %v10301_v51, %v3514_v6  ;;  %v3551_v16 = vmax.f32 %v3535_v17, 0.0  ;;  %v7717_v26 = vld [vmem:[%s11224_s3 + $0x68] sm:$0xff]  ;;  %v3693_v6 = vld [vmem:[#allocation6 + $0x30] sm:$0xff] }
 0x36f   : > { %3760 = vst.msk [vmem:[#allocation6 + $0x20] sm:$0xff] %vm3670_vm7, %v3752_v49  ;;  %7322 = vmatmul.msk.bf16.gmra.mxu1 %vm1465_vm3, %v4385_v14  ;;  %7331 = vmatmul.msk.bf16.gmra.mxu2 %vm1465_vm3, %v11254_v12  ;;  %v3775_v49 = vld [vmem:[#allocation6 + $0x18] sm:$0xff]  ;;  %v10342_v28 = vld [vmem:[#allocation3 + $0x83] sm:$0xff] }
 0x370   : > { %v3552_v60 = vmax.f32 %v3536_v62, 0.0  ;;  %3585 = vrot.lane.b32.xlu1 %v3551_v16, %s7884_s13  ;;  %4845 = vmatpush.bf16.msrb.mxu2 %v7717_v26  ;;  %v3325_v16 = vld [vmem:[#allocation5 + $0x48] sm:$0xff] }
 0x371   : > { %v3435_v41 = vpop.f32.mrf.mxu3 }
 0x372   : > { %v3483_v42 = vadd.f32 %v3435_v41, %v10172_v11  ;;  %v3819_v45 = vpop.f32.mrf.mxu2  ;;  %3587 = vrot.lane.b32.xlu2 %v3552_v60, %s7884_s13 }
 0x373   : > { %v3836_v47 = vadd.f32 %v3819_v45, %v3774_v50  ;;  %v3466_v35 = vpop.f32.mrf.mxu0 }
 0x374   : > { %v3486_v5 = vadd.f32 %v3466_v35, %v3323_v21  ;;  %v3740_v22 = vpop.f32.mrf.mxu1  ;;  %v3537_v43 = vadd.f32 %v10296_v48, %v3483_v42 }
 0x375   : > { %3844 = vst.msk [vmem:[#allocation6 + $0x10] sm:$0xff] %vm3670_vm7, %v3836_v47  ;;  %v3753_v55 = vadd.f32 %v3740_v22, %v3692_v4  ;;  %v3516_v30 = vld [vmem:[#allocation5 + $0x28] sm:$0xff]  ;;  %v11255_v4 = vpack.c.bf16 %v9379_v36, %v9388_v37  ;;  %v11256_v47 = vpack.c.bf16 %v9410_v58, %v9416_v61  ;;  %v7718_v36 = vld [vmem:[%s11224_s3 + $0x70] sm:$0xff] }
 0x376   : > { %3502 = vst.msk [vmem:[#allocation5 + $0x38] sm:$0xff] %vm1668_vm6, %v3486_v5  ;;  %v3553_v44 = vmax.f32 %v3537_v43, 0.0  ;;  %v3538_v11 = vadd.f32 %v10301_v51, %v3516_v30  ;;  %4931 = vmatpush.bf16.msrb.mxu3 %v7718_v36  ;;  %v3776_v5 = vld [vmem:[#allocation6 + $0x20] sm:$0xff]  ;;  %v3694_v43 = vld [vmem:[#allocation6 + $0x38] sm:$0xff] }
 0x377   : > { %3761 = vst.msk [vmem:[#allocation6 + $0x28] sm:$0xff] %vm3670_vm7, %v3753_v55 }
 0x378   : > { %3589 = vrot.lane.b32.xlu0 %v3553_v44, %s7884_s13  ;;  %v3554_v20 = vmax.f32 %v3538_v11, 0.0 }
 0x379   : > { %v3437_v63 = vpop.f32.mrf.mxu3 }
 0x37a   : > { %v3485_v17 = vadd.f32 %v3437_v63, %v10192_v19  ;;  %v3821_v14 = vpop.f32.mrf.mxu2  ;;  %3591 = vrot.lane.b32.xlu1 %v3554_v20, %s7884_s13  ;;  %v4386_v19 = vpack.c.bf16 %v10342_v28, %v10271_v24  ;;  %v11257_v24 = vpack.c.bf16 %v9381_v40, %v9390_v29  ;;  %v3327_v40 = vld [vmem:[#allocation5 + $0x58] sm:$0xff] }
 0x37b   : > { %v3837_v62 = vadd.f32 %v3821_v14, %v3775_v49  ;;  %v3469_v12 = vpop.f32.mrf.mxu0  ;;  %v10377_v14 = vld [vmem:[#allocation3 + $0x81] sm:$0xff] }
 0x37c   : > { %v3488_v60 = vadd.f32 %v3469_v12, %v3325_v16  ;;  %v3743_v41 = vpop.f32.mrf.mxu1  ;;  %v3539_v42 = vadd.f32 %v10296_v48, %v3485_v17  ;;  %v10380_v12 = vld [vmem:[#allocation3 + $0x84] sm:$0xff] }
 0x37d   : > { %3845 = vst.msk [vmem:[#allocation6 + $0x18] sm:$0xff] %vm3670_vm7, %v3837_v62  ;;  %v3754_v50 = vadd.f32 %v3743_v41, %v3693_v6  ;;  %v3518_v45 = vld [vmem:[#allocation5 + $0x38] sm:$0xff]  ;;  %v3329_v41 = vld [vmem:[#allocation5 + $0x68] sm:$0xff] }
 0x37e   : > { %3504 = vst.msk [vmem:[#allocation5 + $0x48] sm:$0xff] %vm1668_vm6, %v3488_v60  ;;  %7302 = vmatmul.msk.bf16.gmra.mxu3 %vm1465_vm3, %v11255_v4  ;;  %7311 = vmatmul.msk.bf16.gmra.mxu0 %vm1465_vm3, %v11256_v47  ;;  %v3555_v21 = vmax.f32 %v3539_v42, 0.0  ;;  %v3540_v35 = vadd.f32 %v10301_v51, %v3518_v45  ;;  %v3777_v62 = vld [vmem:[#allocation6 + $0x28] sm:$0xff]  ;;  %v4214_v45 = vpack.c.bf16 %v10377_v14, %v10103_v46 }
 0x37f   : > { %3762 = vst.msk [vmem:[#allocation6 + $0x30] sm:$0xff] %vm3670_vm7, %v3754_v50  ;;  %7323 = vmatmul.msk.bf16.gmra.mxu1 %vm1465_vm3, %v4386_v19  ;;  %7332 = vmatmul.msk.bf16.gmra.mxu2 %vm1465_vm3, %v11257_v24 }
 0x380   : > { %3593 = vrot.lane.b32.xlu0 %v3555_v21, %s7884_s13  ;;  %v3556_v37 = vmax.f32 %v3540_v35, 0.0  ;;  %v11258_v21 = vpack.c.bf16 %v9418_v34, %v9412_v13  ;;  %v3331_v34 = vld [vmem:[#allocation5 + $0x78] sm:$0xff] }
 0x381   : > { %v3440_v58 = vpop.f32.mrf.mxu3 }
 0x382   : > { %v3487_v61 = vadd.f32 %v3440_v58, %v10220_v9  ;;  %v3824_v22 = vpop.f32.mrf.mxu2  ;;  %3595 = vrot.lane.b32.xlu1 %v3556_v37, %s7884_s13 }
 0x383   : > { %v3838_v55 = vadd.f32 %v3824_v22, %v3776_v5  ;;  %v3471_v29 = vpop.f32.mrf.mxu0 }
 0x384   : > { %v3490_v30 = vadd.f32 %v3471_v29, %v3327_v40  ;;  %v3745_v44 = vpop.f32.mrf.mxu1  ;;  %v3541_v11 = vadd.f32 %v10296_v48, %v3487_v61 }
 0x385   : > { %3846 = vst.msk [vmem:[#allocation6 + $0x20] sm:$0xff] %vm3670_vm7, %v3838_v55  ;;  %v3755_v26 = vadd.f32 %v3745_v44, %v3694_v43  ;;  %v3520_v20 = vld [vmem:[#allocation5 + $0x48] sm:$0xff] }
 0x386   : > { %3506 = vst.msk [vmem:[#allocation5 + $0x58] sm:$0xff] %vm1668_vm6, %v3490_v30  ;;  %v3557_v63 = vmax.f32 %v3541_v11, 0.0  ;;  %v3542_v9 = vadd.f32 %v10301_v51, %v3520_v20  ;;  %v3778_v37 = vld [vmem:[#allocation6 + $0x30] sm:$0xff]  ;;  %v3687_v30 = vld [vmem:[#allocation6] sm:$0xff] }
 0x387   : > { %3763 = vst.msk [vmem:[#allocation6 + $0x38] sm:$0xff] %vm3670_vm7, %v3755_v26  ;;  %v10411_v44 = vld [vmem:[#allocation3 + $0x82] sm:$0xff] }
 0x388   : > { %3597 = vrot.lane.b32.xlu2 %v3557_v63, %s7884_s13  ;;  %v3558_v17 = vmax.f32 %v3542_v9, 0.0  ;;  %v4539_v11 = vld [vmem:[#allocation3 + $0x20] sm:$0xff] }
 0x389   : > { %v3442_v49 = vpop.f32.mrf.mxu3 }
 0x38a   : > { %v3489_v6 = vadd.f32 %v3442_v49, %v10246_v54  ;;  %v3826_v16 = vpop.f32.mrf.mxu2  ;;  %3599 = vrot.lane.b32.xlu0 %v3558_v17, %s7884_s13  ;;  %v4472_v54 = vpack.c.bf16 %v10380_v12, %v10182_v57 }
 0x38b   : > { %v3839_v60 = vadd.f32 %v3826_v16, %v3777_v62  ;;  %v3474_v42 = vpop.f32.mrf.mxu0  ;;  %v4300_v62 = vpack.c.bf16 %v10411_v44, %v10228_v8  ;;  %v7804_v16 = vld [vmem:[#allocation3 + $0x30] sm:$0xff] }
 0x38c   : > { %v3492_v50 = vadd.f32 %v3474_v42, %v3329_v41  ;;  %v10383_v19 = vpop.f32.mrf.mxu1  ;;  %v3543_v4 = vadd.f32 %v10296_v48, %v3489_v6 }
 0x38d   : > { %3847 = vst.msk [vmem:[#allocation6 + $0x28] sm:$0xff] %vm3670_vm7, %v3839_v60  ;;  %v3522_v47 = vld [vmem:[#allocation5 + $0x58] sm:$0xff]  ;;  %v4555_v60 = vpack.c.bf16 %v7804_v16, %v4539_v11 }
 0x38e   : > { %3508 = vst.msk [vmem:[#allocation5 + $0x68] sm:$0xff] %vm1668_vm6, %v3492_v50  ;;  %7303 = vmatmul.msk.bf16.gmra.mxu3 %vm1465_vm3, %v4214_v45  ;;  %7312 = vmatmul.msk.bf16.gmra.mxu0 %vm1465_vm3, %v11258_v21  ;;  %v3544_v35 = vadd.f32 %v10301_v51, %v3522_v47  ;;  %v3559_v46 = vmax.f32 %v3543_v4, 0.0  ;;  %v3779_v20 = vld [vmem:[#allocation6 + $0x38] sm:$0xff]  ;;  %v3688_v45 = vld [vmem:[#allocation6 + $0x8] sm:$0xff] }
 0x38f   : > { %7333 = vmatmul.msk.bf16.gmra.mxu2 %vm1465_vm3, %v4472_v54  ;;  %7360 = vmatmul.msk.bf16.vlgmr.msra.gmra.mxu1 %vm1465_vm3, %v10157_v52 }
 0x390   : > { %v3560_v24 = vmax.f32 %v3544_v35, 0.0  ;;  %3601 = vrot.lane.b32.xlu1 %v3559_v46, %s7884_s13  ;;  %v4625_v46 = vld [vmem:[#allocation3 + $0x21] sm:$0xff] }
 0x391   : > { %v3445_v57 = vpop.f32.mrf.mxu3 }
 0x392   : > { %v3491_v36 = vadd.f32 %v3445_v57, %v10264_v18  ;;  %v3829_v58 = vpop.f32.mrf.mxu2  ;;  %3603 = vrot.lane.b32.xlu2 %v3560_v24, %s7884_s13 }
 0x393   : > { %v3840_v13 = vadd.f32 %v3829_v58, %v3778_v37  ;;  %v3476_v61 = vpop.f32.mrf.mxu0  ;;  %v7805_v58 = vld [vmem:[#allocation3 + $0x40] sm:$0xff] }
 0x394   : > { %v3494_v5 = vadd.f32 %v3476_v61, %v3331_v34  ;;  %v10404_v22 = vpop.f32.mrf.mxu1  ;;  %v3545_v43 = vadd.f32 %v10296_v48, %v3491_v36  ;;  %v10443_v36 = vld [vmem:[#allocation3 + $0x31] sm:$0xff] }
 0x395   : > { %3848 = vst.msk [vmem:[#allocation6 + $0x30] sm:$0xff] %vm3670_vm7, %v3840_v13  ;;  %v3524_v52 = vld [vmem:[#allocation5 + $0x68] sm:$0xff]  ;;  %v4641_v34 = vpack.c.bf16 %v10443_v36, %v4625_v46 }
 0x396   : > { %3510 = vst.msk [vmem:[#allocation5 + $0x78] sm:$0xff] %vm1668_vm6, %v3494_v5  ;;  %v3561_v55 = vmax.f32 %v3545_v43, 0.0  ;;  %v3546_v18 = vadd.f32 %v10301_v51, %v3524_v52  ;;  %v7720_v43 = vld [vmem:[%s11224_s3 + $0x80] sm:$0xff] }
 0x397   : > { %5104 = vmatpush.bf16.msrb.mxu1 %v7720_v43 }
 0x398   : > { %3605 = vrot.lane.b32.xlu0 %v3561_v55, %s7884_s13  ;;  %v3562_v40 = vmax.f32 %v3546_v18, 0.0 }
 0x399   : > { %v3447_v29 = vpop.f32.mrf.mxu3 }
 0x39a   : > { %v3493_v26 = vadd.f32 %v3447_v29, %v10279_v27  ;;  %v3831_v63 = vpop.f32.mrf.mxu2  ;;  %3607 = vrot.lane.b32.xlu1 %v3562_v40, %s7884_s13 }
 0x39b   : > { %v3841_v9 = vadd.f32 %v3831_v63, %v3779_v20  ;;  %v3728_v17 = vpop.f32.mrf.mxu0  ;;  %v10468_v20 = vld [vmem:[#allocation3 + $0x41] sm:$0xff] }
 0x39c   : > { %v3748_v49 = vadd.f32 %v3728_v17, %v3687_v30  ;;  %v10415_v6 = vpop.f32.mrf.mxu1  ;;  %v3547_v41 = vadd.f32 %v10296_v48, %v3493_v26 }
 0x39d   : > { %3849 = vst.msk [vmem:[#allocation6 + $0x38] sm:$0xff] %vm3670_vm7, %v3841_v9  ;;  %v3526_v42 = vld [vmem:[#allocation5 + $0x78] sm:$0xff] }
 0x39e   : > { %3756 = vst.msk [vmem:[#allocation6] sm:$0xff] %vm3670_vm7, %v3748_v49  ;;  %7313 = vmatmul.msk.bf16.gmra.mxu0 %vm1465_vm3, %v4300_v62  ;;  %7340 = vmatmul.msk.bf16.vlgmr.msra.gmra.mxu3 %vm1465_vm3, %v4555_v60  ;;  %v3563_v27 = vmax.f32 %v3547_v41, 0.0  ;;  %v3548_v50 = vadd.f32 %v10301_v51, %v3526_v42  ;;  %v3861_v9 = vld [vmem:[#allocation6 + $0x18] sm:$0xff]  ;;  %v10472_v49 = vld [vmem:[#allocation3 + $0x70] sm:$0xff]  ;;  %v10474_v62 = vpop.permute.xlu2 %6087 }
 0x39f   : > { %7361 = vmatmul.msk.bf16.gmra.mxu1 %vm1465_vm3, %v10186_v1  ;;  %7370 = vmatmul.msk.bf16.vlgmr.msrb.gmra.mxu2 %vm1465_vm3, %v10190_v3  ;;  %v7719_v1 = vld [vmem:[%s11224_s3 + $0x78] sm:$0xff] }
 0x3a0   : > { %3609 = vrot.lane.b32.xlu2 %v3563_v27, %s7884_s13  ;;  %v3564_v8 = vmax.f32 %v3548_v50, 0.0  ;;  %5018 = vmatpush.bf16.msra.mxu0 %v7719_v1 }
 0x3a1   : > { %v3900_v48 = vpop.f32.mrf.mxu3 }
 0x3a2   : > { %v10430_v4 = vpop.f32.mrf.mxu2  ;;  %3611 = vrot.lane.b32.xlu0 %v3564_v8, %s7884_s13 }
 0x3a3   : > { %v3730_v54 = vpop.f32.mrf.mxu0 }
 0x3a4   : > { %v3749_v47 = vadd.f32 %v3730_v54, %v3688_v45  ;;  %v10433_v21 = vpop.f32.mrf.mxu1 }
 0x3a5   : > { %v3772_v51 = vld [vmem:[#allocation6] sm:$0xff] }
 0x3a6   : > { %v3834_v35 = vadd.f32 %v10299_v15, %v3772_v51  ;;  %3757 = vst.msk [vmem:[#allocation6 + $0x8] sm:$0xff] %vm3670_vm7, %v3749_v47  ;;  %v7806_v15 = vld [vmem:[#allocation3 + $0x50] sm:$0xff] }
 0x3a7   : > { %v10447_v13 = vpack.c.bf16 %v7806_v15, %v7805_v58  ;;  %v10489_v47 = vld [vmem:[#allocation3 + $0x92] sm:$0xff] }
 0x3a8   : > { %3842 = vst.msk [vmem:[#allocation6] sm:$0xff] %vm3670_vm7, %v3834_v35  ;;  %v4730_v51 = vpack.c.bf16 %v10489_v47, %v10411_v44  ;;  %v7721_v35 = vld [vmem:[%s11224_s3 + $0x88] sm:$0xff] }
 0x3a9   : > { %v3902_v3 = vpop.f32.mrf.mxu3  ;;  %5190 = vmatpush.bf16.msra.mxu2 %v7721_v35  ;;  %v10544_v35 = vld [vmem:[#allocation3 + $0x93] sm:$0xff] }
 0x3aa   : > { %v10441_v24 = vpop.f32.mrf.mxu2 }
 0x3ab   : > { %v3986_v57 = vpop.f32.mrf.mxu0 }
 0x3ac   : > { %v10445_v37 = vpop.f32.mrf.mxu1 }
 0x3ad   : > { %v3773_v61 = vld [vmem:[#allocation6 + $0x8] sm:$0xff] }
 0x3ae   : > { %v3835_v5 = vadd.f32 %v10309_v56, %v3773_v61  ;;  %7341 = vmatmul.msk.bf16.gmra.mxu3 %vm1465_vm3, %v10447_v13  ;;  %7350 = vmatmul.msk.bf16.vlgmr.msrb.gmra.mxu0 %vm1465_vm3, %v4641_v34  ;;  %v3860_v56 = vld [vmem:[#allocation6 + $0x10] sm:$0xff] }
 0x3af   : > { %v3858_v52 = vld [vmem:[#allocation6] sm:$0xff]  ;;  %7362 = vmatmul.msk.bf16.gmra.mxu1 %vm1465_vm3, %v10240_v38  ;;  %7371 = vmatmul.msk.bf16.gmra.mxu2 %vm1465_vm3, %v10244_v39  ;;  %v10470_v39 = vld [vmem:[#allocation3 + $0x51] sm:$0xff] }
 0x3b0   : > { %v3920_v55 = vadd.f32 %v3900_v48, %v3858_v52  ;;  %3843 = vst.msk [vmem:[#allocation6 + $0x8] sm:$0xff] %vm3670_vm7, %v3835_v5  ;;  %v7807_v48 = vld [vmem:[#allocation3 + $0x60] sm:$0xff]  ;;  %v10487_v54 = vpack.c.bf16 %v10470_v39, %v10468_v20 }
 0x3b1   : > { %v3905_v18 = vpop.f32.mrf.mxu3  ;;  %v10483_v45 = vpack.c.bf16 %v10472_v49, %v7807_v48 }
 0x3b2   : > { %3928 = vst.msk [vmem:[#allocation6] sm:$0xff] %vm3670_vm7, %v3920_v55  ;;  %v3922_v40 = vadd.f32 %v3905_v18, %v3860_v56  ;;  %v10463_v29 = vpop.f32.mrf.mxu2 }
 0x3b3   : > { %v3988_v30 = vpop.f32.mrf.mxu0 }
 0x3b4   : > { %3930 = vst.msk [vmem:[#allocation6 + $0x10] sm:$0xff] %vm3670_vm7, %v3922_v40  ;;  %v10466_v11 = vpop.f32.mrf.mxu1  ;;  %v3863_v40 = vld [vmem:[#allocation6 + $0x28] sm:$0xff] }
 0x3b7   : > { %v3859_v38 = vld [vmem:[#allocation6 + $0x8] sm:$0xff] }
 0x3b8   : > { %v3921_v26 = vadd.f32 %v3902_v3, %v3859_v38  ;;  %v3862_v3 = vld [vmem:[#allocation6 + $0x20] sm:$0xff]  ;;  %v10524_v38 = vld [vmem:[#allocation3 + $0x71] sm:$0xff] }
 0x3b9   : > { %v3944_v63 = vld [vmem:[#allocation6] sm:$0xff]  ;;  %v3907_v17 = vpop.f32.mrf.mxu3 }
 0x3ba   : > { %3929 = vst.msk [vmem:[#allocation6 + $0x8] sm:$0xff] %vm3670_vm7, %v3921_v26  ;;  %v4006_v16 = vadd.f32 %v3986_v57, %v3944_v63  ;;  %v3923_v60 = vadd.f32 %v3907_v17, %v3861_v9  ;;  %v10477_v41 = vpop.f32.mrf.mxu2  ;;  %v10526_v26 = vpop.permute.xlu0 %6083 }
 0x3bb   : > { %v3946_v42 = vld [vmem:[#allocation6 + $0x10] sm:$0xff]  ;;  %v3991_v27 = vpop.f32.mrf.mxu0 }
 0x3bc   : > { %4014 = vst.msk [vmem:[#allocation6] sm:$0xff] %vm3670_vm7, %v4006_v16  ;;  %v4008_v50 = vadd.f32 %v3991_v27, %v3946_v42  ;;  %v10480_v8 = vpop.f32.mrf.mxu1  ;;  %v10530_v16 = vld [vmem:[#allocation3 + $0x90] sm:$0xff] }
 0x3bd   : > { %3931 = vst.msk [vmem:[#allocation6 + $0x18] sm:$0xff] %vm3670_vm7, %v3923_v60  ;;  %v10532_v60 = vld [vmem:[#allocation3 + $0x61] sm:$0xff]  ;;  %v4558_v48 = vpack.c.bf16 %v10530_v16, %v10237_v10 }
 0x3be   : > { %4016 = vst.msk [vmem:[#allocation6 + $0x10] sm:$0xff] %vm3670_vm7, %v4008_v50  ;;  %7342 = vmatmul.msk.bf16.gmra.mxu3 %vm1465_vm3, %v10483_v45  ;;  %7351 = vmatmul.msk.bf16.gmra.mxu0 %vm1465_vm3, %v10487_v54 }
 0x3bf   : > { %7363 = vmatmul.msk.bf16.gmra.mxu1 %vm1465_vm3, %v4730_v51  ;;  %7372 = vmatmul.msk.bf16.gmra.mxu2 %vm1465_vm3, %v10275_v33  ;;  %v10542_v51 = vpack.c.bf16 %v10524_v38, %v10532_v60 }
 0x3c1   : > { %v3945_v1 = vld [vmem:[#allocation6 + $0x8] sm:$0xff]  ;;  %v3910_v46 = vpop.f32.mrf.mxu3 }
 0x3c2   : > { %v4007_v57 = vadd.f32 %v3988_v30, %v3945_v1  ;;  %v3924_v58 = vadd.f32 %v3910_v46, %v3862_v3  ;;  %v10505_v15 = vpop.f32.mrf.mxu2  ;;  %v10507_v34 = vpop.permute.xlu2 %3581  ;;  %v5072_v46 = vpack.c.bf16 %v10468_v20, %v10443_v36 }
 0x3c3   : > { %v4030_v61 = vld [vmem:[#allocation6] sm:$0xff]  ;;  %v3993_v5 = vpop.f32.mrf.mxu0  ;;  %3646 = vst.msk [vmem:[%s8664_s20 + $0x8] sm:$0xff] %vm3645_vm8, %v10507_v34  ;;  %v10566_v20 = vpop.permute.xlu1 %6085 }
 0x3c4   : > { %v4092_v33 = vadd.f32 %v10383_v19, %v4030_v61  ;;  %4015 = vst.msk [vmem:[#allocation6 + $0x8] sm:$0xff] %vm3670_vm7, %v4007_v57  ;;  %v3947_v43 = vld [vmem:[#allocation6 + $0x18] sm:$0xff]  ;;  %v10514_v52 = vpop.f32.mrf.mxu1  ;;  %v7722_v19 = vld [vmem:[%s11224_s3 + $0x90] sm:$0xff] }
 0x3c5   : > { %v4032_v55 = vld [vmem:[#allocation6 + $0x10] sm:$0xff]  ;;  %3932 = vst.msk [vmem:[#allocation6 + $0x20] sm:$0xff] %vm3670_vm7, %v3924_v58  ;;  %v4009_v56 = vadd.f32 %v3993_v5, %v3947_v43  ;;  %5276 = vmatpush.bf16.msra.mxu3 %v7722_v19 }
 0x3c6   : > { %4100 = vst.msk [vmem:[#allocation6] sm:$0xff] %vm3670_vm7, %v4092_v33  ;;  %v4094_v18 = vadd.f32 %v10415_v6, %v4032_v55  ;;  %v3864_v5 = vld [vmem:[#allocation6 + $0x30] sm:$0xff] }
 0x3c7   : > { %4017 = vst.msk [vmem:[#allocation6 + $0x18] sm:$0xff] %vm3670_vm7, %v4009_v56  ;;  %v10572_v56 = vpop.permute.xlu0 %6089 }
 0x3c8   : > { %4102 = vst.msk [vmem:[#allocation6 + $0x10] sm:$0xff] %vm3670_vm7, %v4094_v18 }
 0x3c9   : > { %v3912_v30 = vpop.f32.mrf.mxu3 }
 0x3ca   : > { %v3925_v63 = vadd.f32 %v3912_v30, %v3863_v40  ;;  %v10528_v9 = vpop.f32.mrf.mxu2 }
 0x3cb   : > { %v4031_v6 = vld [vmem:[#allocation6 + $0x8] sm:$0xff]  ;;  %v3996_v17 = vpop.f32.mrf.mxu0 }
 0x3cc   : > { %v4093_v42 = vadd.f32 %v10404_v22, %v4031_v6  ;;  %3933 = vst.msk [vmem:[#allocation6 + $0x28] sm:$0xff] %vm3670_vm7, %v3925_v63  ;;  %v3948_v27 = vld [vmem:[#allocation6 + $0x20] sm:$0xff]  ;;  %v10536_v50 = vpop.f32.mrf.mxu1  ;;  %v10546_v1 = vpop.permute.xlu2 %3587  ;;  %v4816_v22 = vpack.c.bf16 %v10544_v35, %v10342_v28  ;;  %v7723_v6 = vld [vmem:[%s11224_s3 + $0x98] sm:$0xff] }
 0x3cd   : > { %v4010_v3 = vadd.f32 %v3996_v17, %v3948_v27  ;;  %3651 = vst.msk [vmem:[%s8664_s20 + $0x38] sm:$0xff] %vm1465_vm3, %v10546_v1  ;;  %v4117_v57 = vld [vmem:[#allocation6] sm:$0xff]  ;;  %5362 = vmatpush.bf16.msrb.mxu0 %v7723_v6 }
 0x3ce   : > { %4101 = vst.msk [vmem:[#allocation6 + $0x8] sm:$0xff] %vm3670_vm7, %v4093_v42  ;;  %v4033_v10 = vld [vmem:[#allocation6 + $0x18] sm:$0xff]  ;;  %7343 = vmatmul.msk.bf16.gmra.mxu3 %vm1465_vm3, %v4558_v48  ;;  %7352 = vmatmul.msk.bf16.gmra.mxu0 %vm1465_vm3, %v10542_v51  ;;  %v4179_v58 = vadd.f32 %v10430_v4, %v4117_v57  ;;  %v4883_v48 = vld [vmem:[#allocation3 + $0x24] sm:$0xff] }
 0x3cf   : > { %v4095_v61 = vadd.f32 %v10433_v21, %v4033_v10  ;;  %4018 = vst.msk [vmem:[#allocation6 + $0x20] sm:$0xff] %vm3670_vm7, %v4010_v3  ;;  %7373 = vmatmul.msk.bf16.gmra.mxu2 %vm1465_vm3, %v4816_v22  ;;  %7400 = vmatmul.msk.bf16.vlgmr.msrb.gmra.mxu1 %vm1465_vm3, %v5072_v46  ;;  %v4119_v28 = vld [vmem:[#allocation6 + $0x10] sm:$0xff]  ;;  %v3865_v42 = vld [vmem:[#allocation6 + $0x38] sm:$0xff] }
 0x3d0   : > { %4187 = vst.msk [vmem:[#allocation6] sm:$0xff] %vm3670_vm7, %v4179_v58  ;;  %v4181_v36 = vadd.f32 %v10463_v29, %v4119_v28  ;;  %v10590_v10 = vld [vmem:[#allocation3 + $0x91] sm:$0xff] }
 0x3d1   : > { %4103 = vst.msk [vmem:[#allocation6 + $0x18] sm:$0xff] %vm3670_vm7, %v4095_v61  ;;  %v3915_v33 = vpop.f32.mrf.mxu3  ;;  %v4644_v28 = vpack.c.bf16 %v10590_v10, %v10377_v14 }
 0x3d2   : > { %v3926_v4 = vadd.f32 %v3915_v33, %v3864_v5  ;;  %v10569_v43 = vpop.f32.mrf.mxu2  ;;  %4189 = vst.msk [vmem:[#allocation6 + $0x10] sm:$0xff] %vm3670_vm7, %v4181_v36  ;;  %v7808_v36 = vld [vmem:[#allocation3 + $0x34] sm:$0xff] }
 0x3d3   : > { %v3949_v21 = vld [vmem:[#allocation6 + $0x28] sm:$0xff]  ;;  %v3998_v55 = vpop.f32.mrf.mxu0  ;;  %v4899_v5 = vpack.c.bf16 %v7808_v36, %v4883_v48  ;;  %v5142_v33 = vld [vmem:[#allocation3 + $0x32] sm:$0xff] }
 0x3d4   : > { %3934 = vst.msk [vmem:[#allocation6 + $0x30] sm:$0xff] %vm3670_vm7, %v3926_v4  ;;  %v4011_v18 = vadd.f32 %v3998_v55, %v3949_v21  ;;  %v10575_v19 = vpop.f32.mrf.mxu1  ;;  %v5073_v55 = vpack.c.bf16 %v10532_v60, %v10470_v39  ;;  %v7724_v39 = vld [vmem:[%s11224_s3 + $0xa0] sm:$0xff] }
 0x3d5   : > { %v4118_v29 = vld [vmem:[#allocation6 + $0x8] sm:$0xff]  ;;  %5449 = vmatpush.bf16.msra.mxu1 %v7724_v39 }
 0x3d6   : > { %v4034_v40 = vld [vmem:[#allocation6 + $0x20] sm:$0xff]  ;;  %4019 = vst.msk [vmem:[#allocation6 + $0x28] sm:$0xff] %vm3670_vm7, %v4011_v18  ;;  %v4180_v30 = vadd.f32 %v10441_v24, %v4118_v29  ;;  %v10588_v24 = vpop.permute.xlu1 %6091 }
 0x3d7   : > { %v4096_v63 = vadd.f32 %v10445_v37, %v4034_v40  ;;  %v7809_v18 = vld [vmem:[#allocation3 + $0x42] sm:$0xff] }
 0x3d8   : > { %4188 = vst.msk [vmem:[#allocation6 + $0x8] sm:$0xff] %vm3670_vm7, %v4180_v30  ;;  %v4120_v17 = vld [vmem:[#allocation6 + $0x18] sm:$0xff]  ;;  %v5158_v29 = vpack.c.bf16 %v7809_v18, %v5142_v33 }
 0x3d9   : > { %4104 = vst.msk [vmem:[#allocation6 + $0x20] sm:$0xff] %vm3670_vm7, %v4096_v63  ;;  %v3917_v27 = vpop.f32.mrf.mxu3  ;;  %v4182_v3 = vadd.f32 %v10477_v41, %v4120_v17  ;;  %v7811_v18 = vld [vmem:[#allocation3 + $0x54] sm:$0xff] }
 0x3da   : > { %v3927_v22 = vadd.f32 %v3917_v27, %v3865_v42  ;;  %v10586_v46 = vpop.f32.mrf.mxu2 }
 0x3db   : > { %v3950_v37 = vld [vmem:[#allocation6 + $0x30] sm:$0xff]  ;;  %v4001_v57 = vpop.f32.mrf.mxu0  ;;  %4190 = vst.msk [vmem:[#allocation6 + $0x18] sm:$0xff] %vm3670_vm7, %v4182_v3 }
 0x3dc   : > { %3935 = vst.msk [vmem:[#allocation6 + $0x38] sm:$0xff] %vm3670_vm7, %v3927_v22  ;;  %v4012_v58 = vadd.f32 %v4001_v57, %v3950_v37  ;;  %v10594_v61 = vpop.f32.mrf.mxu1  ;;  %v3584_v41 = vpop.permute.xlu0 %3583 }
 0x3dd   : > { %v4035_v4 = vld [vmem:[#allocation6 + $0x28] sm:$0xff]  ;;  %v3613_v21 = vsel %vm1370_vm1, %v10507_v34, %v3584_v41  ;;  %3648 = vst.msk [vmem:[%s8664_s20 + $0x18] sm:$0xff] %vm1465_vm3, %v3584_v41  ;;  %v4203_v34 = vld [vmem:[#allocation6] sm:$0xff] }
 0x3de   : > { %v4097_v40 = vadd.f32 %v10466_v11, %v4035_v4  ;;  %4020 = vst.msk [vmem:[#allocation6 + $0x30] sm:$0xff] %vm3670_vm7, %v4012_v58  ;;  %7353 = vmatmul.msk.bf16.gmra.mxu0 %vm1465_vm3, %v4644_v28  ;;  %7380 = vmatmul.msk.bf16.vlgmr.msrb.gmra.mxu3 %vm1465_vm3, %v4899_v5 }
 0x3df   : > { %3647 = vst [vmem:[%s8664_s20 + $0x10] sm:$0xff] %v3613_v21  ;;  %7401 = vmatmul.msk.bf16.gmra.mxu1 %vm1465_vm3, %v5073_v55  ;;  %7410 = vmatmul.msk.bf16.vlgmr.msra.gmra.mxu2 %vm1465_vm3, %v5158_v29  ;;  %v4204_v36 = vld [vmem:[#allocation6 + $0x8] sm:$0xff] }
 0x3e0   : > { %4105 = vst.msk [vmem:[#allocation6 + $0x28] sm:$0xff] %vm3670_vm7, %v4097_v40  ;;  %v4121_v6 = vld [vmem:[#allocation6 + $0x20] sm:$0xff] }
 0x3e1   : > { %v4245_v11 = vpop.f32.mrf.mxu3  ;;  %v4183_v57 = vadd.f32 %v10505_v15, %v4121_v6 }
 0x3e2   : > { %v4265_v60 = vadd.f32 %v4245_v11, %v4203_v34  ;;  %v10615_v30 = vpop.f32.mrf.mxu2  ;;  %v10617_v63 = vpop.permute.xlu2 %3597  ;;  %v5074_v34 = vpack.c.bf16 %v10377_v14, %v10524_v38  ;;  %v7812_v11 = vld [vmem:[#allocation3 + $0x52] sm:$0xff] }
 0x3e3   : > { %v3951_v17 = vld [vmem:[#allocation6 + $0x38] sm:$0xff]  ;;  %v4003_v42 = vpop.f32.mrf.mxu0  ;;  %3658 = vst.msk [vmem:[%s8664_s20 + $0x88] sm:$0xff] %vm3645_vm8, %v10617_v63  ;;  %v3586_v27 = vpop.permute.xlu1 %3585 }
 0x3e4   : > { %4273 = vst.msk [vmem:[#allocation6] sm:$0xff] %vm3670_vm7, %v4265_v60  ;;  %v4013_v48 = vadd.f32 %v4003_v42, %v3951_v17  ;;  %v10623_v3 = vpop.f32.mrf.mxu1  ;;  %v3614_v22 = vsel %vm1370_vm1, %v3586_v27, %v10546_v1  ;;  %v7813_v60 = vld [vmem:[#allocation3 + $0x62] sm:$0xff] }
 0x3e5   : > { %v4036_v37 = vld [vmem:[#allocation6 + $0x30] sm:$0xff]  ;;  %3649 = vst.msk [vmem:[%s8664_s20 + $0x28] sm:$0xff] %vm3645_vm8, %v3586_v27  ;;  %v5159_v6 = vpack.c.bf16 %v7813_v60, %v7812_v11  ;;  %v11259_v27 = vpack.c.bf16 %v9430_v31, %v9428_v0 }
 0x3e6   : > { %v4098_v58 = vadd.f32 %v10480_v8, %v4036_v37  ;;  %4021 = vst.msk [vmem:[#allocation6 + $0x38] sm:$0xff] %vm3670_vm7, %v4013_v48  ;;  %v4205_v48 = vld [vmem:[#allocation6 + $0x10] sm:$0xff] }
 0x3e7   : > { %3650 = vst [vmem:[%s8664_s20 + $0x30] sm:$0xff] %v3614_v22  ;;  %v4122_v41 = vld [vmem:[#allocation6 + $0x28] sm:$0xff] }
 0x3e8   : > { %4106 = vst.msk [vmem:[#allocation6 + $0x30] sm:$0xff] %vm3670_vm7, %v4098_v58  ;;  %v4184_v28 = vadd.f32 %v10528_v9, %v4122_v41  ;;  %v7810_v9 = vld [vmem:[#allocation3 + $0x44] sm:$0xff] }
 0x3e9   : > { %v4247_v5 = vpop.f32.mrf.mxu3  ;;  %4191 = vst.msk [vmem:[#allocation6 + $0x20] sm:$0xff] %vm3670_vm7, %v4183_v57  ;;  %v10644_v29 = vpack.c.bf16 %v7811_v18, %v7810_v9  ;;  %v10685_v9 = vld [vmem:[#allocation3 + $0x74] sm:$0xff] }
 0x3ea   : > { %v4266_v1 = vadd.f32 %v4247_v5, %v4204_v36  ;;  %v10636_v33 = vpop.f32.mrf.mxu2  ;;  %v3590_v4 = vpop.permute.xlu0 %3589  ;;  %4192 = vst.msk [vmem:[#allocation6 + $0x28] sm:$0xff] %vm3670_vm7, %v4184_v28 }
 0x3eb   : > { %v4289_v8 = vld [vmem:[#allocation6] sm:$0xff]  ;;  %v4331_v15 = vpop.f32.mrf.mxu0  ;;  %3652 = vst.msk [vmem:[%s8664_s20 + $0x48] sm:$0xff] %vm3645_vm8, %v3590_v4 }
 0x3ec   : > { %4274 = vst.msk [vmem:[#allocation6 + $0x8] sm:$0xff] %vm3670_vm7, %v4266_v1  ;;  %v4351_v21 = vadd.f32 %v4331_v15, %v4289_v8  ;;  %v10642_v55 = vpop.f32.mrf.mxu1  ;;  %v10646_v40 = vpop.permute.xlu2 %3603  ;;  %v4206_v15 = vld [vmem:[#allocation6 + $0x18] sm:$0xff] }
 0x3ed   : > { %v4037_v39 = vld [vmem:[#allocation6 + $0x38] sm:$0xff]  ;;  %3663 = vst.msk [vmem:[%s8664_s20 + $0xb8] sm:$0xff] %vm1465_vm3, %v10646_v40  ;;  %v3592_v17 = vpop.permute.xlu1 %3591 }
 0x3ee   : > { %v4099_v42 = vadd.f32 %v10514_v52, %v4037_v39  ;;  %4359 = vst.msk [vmem:[#allocation6] sm:$0xff] %vm3670_vm7, %v4351_v21  ;;  %7381 = vmatmul.msk.bf16.gmra.mxu3 %vm1465_vm3, %v10644_v29  ;;  %7390 = vmatmul.msk.bf16.vlgmr.msra.gmra.mxu0 %vm1465_vm3, %v11259_v27  ;;  %v3615_v14 = vsel %vm1370_vm1, %v3590_v4, %v3592_v17 }
 0x3ef   : > { %7402 = vmatmul.msk.bf16.gmra.mxu1 %vm1465_vm3, %v5074_v34  ;;  %7411 = vmatmul.msk.bf16.gmra.mxu2 %vm1465_vm3, %v5159_v6  ;;  %3654 = vst.msk [vmem:[%s8664_s20 + $0x58] sm:$0xff] %vm1465_vm3, %v3592_v17  ;;  %v4123_v52 = vld [vmem:[#allocation6 + $0x30] sm:$0xff]  ;;  %v7814_v17 = vld [vmem:[#allocation3 + $0x64] sm:$0xff] }
 0x3f0   : > { %4107 = vst.msk [vmem:[#allocation6 + $0x38] sm:$0xff] %vm3670_vm7, %v4099_v42  ;;  %v4185_v38 = vadd.f32 %v10569_v43, %v4123_v52  ;;  %v10701_v42 = vpack.c.bf16 %v10685_v9, %v7814_v17 }
 0x3f1   : > { %v4250_v22 = vpop.f32.mrf.mxu3  ;;  %3653 = vst [vmem:[%s8664_s20 + $0x50] sm:$0xff] %v3615_v14 }
 0x3f2   : > { %v4267_v0 = vadd.f32 %v4250_v22, %v4205_v48  ;;  %v10669_v31 = vpop.f32.mrf.mxu2  ;;  %v3594_v37 = vpop.permute.xlu0 %3593  ;;  %4193 = vst.msk [vmem:[#allocation6 + $0x30] sm:$0xff] %vm3670_vm7, %v4185_v38  ;;  %v7815_v38 = vld [vmem:[#allocation3 + $0x72] sm:$0xff] }
 0x3f3   : > { %v4290_v57 = vld [vmem:[#allocation6 + $0x8] sm:$0xff]  ;;  %v4333_v58 = vpop.f32.mrf.mxu0  ;;  %3655 = vst.msk [vmem:[%s8664_s20 + $0x68] sm:$0xff] %vm3645_vm8, %v3594_v37  ;;  %v5160_v48 = vpack.c.bf16 %v10411_v44, %v7815_v38  ;;  %v10751_v38 = vld [vmem:[#allocation3 + $0x94] sm:$0xff] }
 0x3f4   : > { %4275 = vst.msk [vmem:[#allocation6 + $0x10] sm:$0xff] %vm3670_vm7, %v4267_v0  ;;  %v4352_v41 = vadd.f32 %v4333_v58, %v4290_v57  ;;  %v10675_v28 = vpop.f32.mrf.mxu1  ;;  %v4207_v57 = vld [vmem:[#allocation6 + $0x20] sm:$0xff] }
 0x3f5   : > { %v4375_v43 = vld [vmem:[#allocation6] sm:$0xff]  ;;  %v3596_v36 = vpop.permute.xlu1 %3595 }
 0x3f6   : > { %v4437_v5 = vadd.f32 %v10536_v50, %v4375_v43  ;;  %4360 = vst.msk [vmem:[#allocation6 + $0x8] sm:$0xff] %vm3670_vm7, %v4352_v41  ;;  %v3616_v1 = vsel %vm1370_vm1, %v3594_v37, %v3596_v36  ;;  %v10689_v50 = vld [vmem:[#allocation3 + $0xa1] sm:$0xff]  ;;  %v11260_v37 = vpack.c.bf16 %v9434_v2, %v9432_v59 }
 0x3f7   : > { %3657 = vst.msk [vmem:[%s8664_s20 + $0x78] sm:$0xff] %vm1465_vm3, %v3596_v36  ;;  %v4124_v4 = vld [vmem:[#allocation6 + $0x38] sm:$0xff]  ;;  %v5075_v52 = vpack.c.bf16 %v10689_v50, %v10590_v10 }
 0x3f8   : > { %4445 = vst.msk [vmem:[#allocation6] sm:$0xff] %vm3670_vm7, %v4437_v5  ;;  %v4186_v8 = vadd.f32 %v10586_v46, %v4124_v4 }
 0x3f9   : > { %v4252_v21 = vpop.f32.mrf.mxu3  ;;  %3656 = vst [vmem:[%s8664_s20 + $0x70] sm:$0xff] %v3616_v1 }
 0x3fa   : > { %v4268_v18 = vadd.f32 %v4252_v21, %v4206_v15  ;;  %v10687_v39 = vpop.f32.mrf.mxu2  ;;  %v10691_v34 = vpop.permute.xlu2 %3609  ;;  %4194 = vst.msk [vmem:[#allocation6 + $0x38] sm:$0xff] %vm3670_vm7, %v4186_v8 }
 0x3fb   : > { %v4291_v11 = vld [vmem:[#allocation6 + $0x10] sm:$0xff]  ;;  %v4336_v60 = vpop.f32.mrf.mxu0  ;;  %3667 = vst.msk [vmem:[%s8664_s20 + $0xe8] sm:$0xff] %vm3645_vm8, %v10691_v34 }
 0x3fc   : > { %4276 = vst.msk [vmem:[#allocation6 + $0x18] sm:$0xff] %vm3670_vm7, %v4268_v18  ;;  %v4353_v46 = vadd.f32 %v4336_v60, %v4291_v11  ;;  %v10698_v6 = vpop.f32.mrf.mxu1  ;;  %v3600_v27 = vpop.permute.xlu0 %3599  ;;  %v4208_v18 = vld [vmem:[#allocation6 + $0x28] sm:$0xff]  ;;  %v10744_v60 = vld [vmem:[#allocation3 + $0x80] sm:$0xff] }
 0x3fd   : > { %v4376_v14 = vld [vmem:[#allocation6 + $0x8] sm:$0xff]  ;;  %v3617_v22 = vsel %vm1370_vm1, %v10617_v63, %v3600_v27  ;;  %3660 = vst.msk [vmem:[%s8664_s20 + $0x98] sm:$0xff] %vm1465_vm3, %v3600_v27 }
 0x3fe   : > { %v4438_v0 = vadd.f32 %v10575_v19, %v4376_v14  ;;  %4361 = vst.msk [vmem:[#allocation6 + $0x10] sm:$0xff] %vm3670_vm7, %v4353_v46  ;;  %7382 = vmatmul.msk.bf16.gmra.mxu3 %vm1465_vm3, %v10701_v42  ;;  %7391 = vmatmul.msk.bf16.gmra.mxu0 %vm1465_vm3, %v11260_v37  ;;  %v7725_v19 = vld [vmem:[%s11224_s3 + $0xa8] sm:$0xff] }
 0x3ff   : > { %7403 = vmatmul.msk.bf16.gmra.mxu1 %vm1465_vm3, %v5075_v52  ;;  %7412 = vmatmul.msk.bf16.gmra.mxu2 %vm1465_vm3, %v5160_v48  ;;  %3659 = vst [vmem:[%s8664_s20 + $0x90] sm:$0xff] %v3617_v22  ;;  %v4461_v44 = vld [vmem:[#allocation6] sm:$0xff]  ;;  %v4902_v22 = vpack.c.bf16 %v10751_v38, %v10380_v12 }
 0x400   : > { %4446 = vst.msk [vmem:[#allocation6 + $0x8] sm:$0xff] %vm3670_vm7, %v4438_v0  ;;  %v4523_v63 = vadd.f32 %v10615_v30, %v4461_v44  ;;  %5535 = vmatpush.bf16.msrb.mxu2 %v7725_v19  ;;  %v4988_v0 = vpack.c.bf16 %v10744_v60, %v10472_v49 }
 0x401   : > { %v4255_v59 = vpop.f32.mrf.mxu3 }
 0x402   : > { %v4269_v2 = vadd.f32 %v4255_v59, %v4207_v57  ;;  %v10726_v58 = vpop.f32.mrf.mxu2  ;;  %v3602_v41 = vpop.permute.xlu1 %3601  ;;  %4531 = vst.msk [vmem:[#allocation6] sm:$0xff] %vm3670_vm7, %v4523_v63 }
 0x403   : > { %v4292_v43 = vld [vmem:[#allocation6 + $0x18] sm:$0xff]  ;;  %v4338_v36 = vpop.f32.mrf.mxu0  ;;  %v3618_v5 = vsel %vm1370_vm1, %v3602_v41, %v10646_v40  ;;  %3661 = vst.msk [vmem:[%s8664_s20 + $0xa8] sm:$0xff] %vm3645_vm8, %v3602_v41  ;;  %v7726_v40 = vld [vmem:[%s11224_s3 + $0xb0] sm:$0xff] }
 0x404   : > { %4277 = vst.msk [vmem:[#allocation6 + $0x20] sm:$0xff] %vm3670_vm7, %v4269_v2  ;;  %v4354_v30 = vadd.f32 %v4338_v36, %v4292_v43  ;;  %v10734_v1 = vpop.f32.mrf.mxu1  ;;  %5621 = vmatpush.bf16.msrb.mxu3 %v7726_v40 }
 0x405   : > { %v4377_v4 = vld [vmem:[#allocation6 + $0x10] sm:$0xff]  ;;  %3662 = vst [vmem:[%s8664_s20 + $0xb0] sm:$0xff] %v3618_v5 }
 0x406   : > { %v4439_v8 = vadd.f32 %v10594_v61, %v4377_v4  ;;  %4362 = vst.msk [vmem:[#allocation6 + $0x18] sm:$0xff] %vm3670_vm7, %v4354_v30  ;;  %v10748_v61 = vld [vmem:[#allocation3 + $0xa2] sm:$0xff] }
 0x407   : > { %v4462_v15 = vld [vmem:[#allocation6 + $0x8] sm:$0xff]  ;;  %v5161_v19 = vpack.c.bf16 %v10748_v61, %v10489_v47  ;;  %v4209_v47 = vld [vmem:[#allocation6 + $0x30] sm:$0xff] }
 0x408   : > { %4447 = vst.msk [vmem:[#allocation6 + $0x10] sm:$0xff] %vm3670_vm7, %v4439_v8  ;;  %v4524_v21 = vadd.f32 %v10636_v33, %v4462_v15  ;;  %v7727_v15 = vld [vmem:[%s11224_s3 + $0xb8] sm:$0xff] }
 0x409   : > { %v4257_v11 = vpop.f32.mrf.mxu3  ;;  %5707 = vmatpush.bf16.msra.mxu0 %v7727_v15 }
 0x40a   : > { %v4270_v46 = vadd.f32 %v4257_v11, %v4208_v18  ;;  %v10746_v17 = vpop.f32.mrf.mxu2  ;;  %v3606_v27 = vpop.permute.xlu0 %3605  ;;  %4532 = vst.msk [vmem:[#allocation6 + $0x8] sm:$0xff] %vm3670_vm7, %v4524_v21  ;;  %v4210_v21 = vld [vmem:[#allocation6 + $0x38] sm:$0xff]  ;;  %v10795_v11 = vld [vmem:[#allocation3 + $0xa0] sm:$0xff] }
 0x40b   : > { %v4293_v14 = vld [vmem:[#allocation6 + $0x20] sm:$0xff]  ;;  %v4341_v52 = vpop.f32.mrf.mxu0  ;;  %3664 = vst.msk [vmem:[%s8664_s20 + $0xc8] sm:$0xff] %vm3645_vm8, %v3606_v27 }
 0x40c   : > { %4278 = vst.msk [vmem:[#allocation6 + $0x28] sm:$0xff] %vm3670_vm7, %v4270_v46  ;;  %v4355_v33 = vadd.f32 %v4341_v52, %v4293_v14  ;;  %v10756_v48 = vpop.f32.mrf.mxu1  ;;  %v3608_v37 = vpop.permute.xlu1 %3607  ;;  %v5228_v14 = vld [vmem:[#allocation3 + $0x33] sm:$0xff] }
 0x40d   : > { %v4378_v44 = vld [vmem:[#allocation6 + $0x18] sm:$0xff]  ;;  %3666 = vst.msk [vmem:[%s8664_s20 + $0xd8] sm:$0xff] %vm1465_vm3, %v3608_v37  ;;  %v3619_v63 = vsel %vm1370_vm1, %v3606_v27, %v3608_v37 }
 0x40e   : > { %v4440_v57 = vadd.f32 %v10623_v3, %v4378_v44  ;;  %4363 = vst.msk [vmem:[#allocation6 + $0x20] sm:$0xff] %vm3670_vm7, %v4355_v33  ;;  %7383 = vmatmul.msk.bf16.gmra.mxu3 %vm1465_vm3, %v4902_v22  ;;  %7392 = vmatmul.msk.bf16.gmra.mxu0 %vm1465_vm3, %v4988_v0  ;;  %v7816_v22 = vld [vmem:[#allocation3 + $0x43] sm:$0xff] }
 0x40f   : > { %7413 = vmatmul.msk.bf16.gmra.mxu2 %vm1465_vm3, %v5161_v19  ;;  %7440 = vmatmul.msk.bf16.vlgmr.msra.gmra.mxu1 %vm1465_vm3, %v10447_v13  ;;  %3665 = vst [vmem:[%s8664_s20 + $0xd0] sm:$0xff] %v3619_v63  ;;  %v4463_v12 = vld [vmem:[#allocation6 + $0x10] sm:$0xff]  ;;  %v5244_v0 = vpack.c.bf16 %v7816_v22, %v5228_v14  ;;  %v7728_v63 = vld [vmem:[%s11224_s3 + $0xc0] sm:$0xff]  ;;  %v11261_v14 = vpack.c.bf16 %v9462_v23, %v9458_v25 }
 0x410   : > { %4448 = vst.msk [vmem:[#allocation6 + $0x18] sm:$0xff] %vm3670_vm7, %v4440_v57  ;;  %v4525_v49 = vadd.f32 %v10669_v31, %v4463_v12  ;;  %v4547_v57 = vld [vmem:[#allocation6] sm:$0xff]  ;;  %5793 = vmatpush.bf16.msrb.mxu1 %v7728_v63 }
 0x411   : > { %v4260_v3 = vpop.f32.mrf.mxu3 }
 0x412   : > { %v4271_v59 = vadd.f32 %v4260_v3, %v4209_v47  ;;  %v10777_v2 = vpop.f32.mrf.mxu2  ;;  %4533 = vst.msk [vmem:[#allocation6 + $0x10] sm:$0xff] %vm3670_vm7, %v4525_v49 }
 0x413   : > { %v4294_v41 = vld [vmem:[#allocation6 + $0x28] sm:$0xff]  ;;  %v4343_v43 = vpop.f32.mrf.mxu0 }
 0x414   : > { %4279 = vst.msk [vmem:[#allocation6 + $0x30] sm:$0xff] %vm3670_vm7, %v4271_v59  ;;  %v4356_v13 = vadd.f32 %v4343_v43, %v4294_v41  ;;  %v10781_v36 = vpop.f32.mrf.mxu1  ;;  %v3612_v5 = vpop.permute.xlu0 %3611 }
 0x415   : > { %v4379_v30 = vld [vmem:[#allocation6 + $0x20] sm:$0xff]  ;;  %v3620_v31 = vsel %vm1370_vm1, %v10691_v34, %v3612_v5  ;;  %3669 = vst.msk [vmem:[%s8664_s20 + $0xf8] sm:$0xff] %vm1465_vm3, %v3612_v5  ;;  %v4548_v5 = vld [vmem:[#allocation6 + $0x8] sm:$0xff] }
 0x416   : > { %v4441_v4 = vadd.f32 %v10642_v55, %v4379_v30  ;;  %4364 = vst.msk [vmem:[#allocation6 + $0x28] sm:$0xff] %vm3670_vm7, %v4356_v13 }
 0x417   : > { %3668 = vst [vmem:[%s8664_s20 + $0xf0] sm:$0xff] %v3620_v31  ;;  %v4464_v8 = vld [vmem:[#allocation6 + $0x18] sm:$0xff] }
 0x418   : > { %4449 = vst.msk [vmem:[#allocation6 + $0x20] sm:$0xff] %vm3670_vm7, %v4441_v4  ;;  %v4526_v40 = vadd.f32 %v10687_v39, %v4464_v8  ;;  %v4989_v39 = vpack.c.bf16 %v10795_v11, %v10530_v16 }
 0x419   : > { %v4262_v18 = vpop.f32.mrf.mxu3 }
 0x41a   : > { %v4272_v34 = vadd.f32 %v4262_v18, %v4210_v21  ;;  %v10797_v46 = vpop.f32.mrf.mxu2  ;;  %4534 = vst.msk [vmem:[#allocation6 + $0x18] sm:$0xff] %vm3670_vm7, %v4526_v40  ;;  %v7817_v21 = vld [vmem:[#allocation3 + $0x53] sm:$0xff]  ;;  %v7818_v18 = vld [vmem:[#allocation3 + $0x63] sm:$0xff] }
 0x41b   : > { %v4295_v55 = vld [vmem:[#allocation6 + $0x30] sm:$0xff]  ;;  %v4346_v27 = vpop.f32.mrf.mxu0 }
 0x41c   : > { %4280 = vst.msk [vmem:[#allocation6 + $0x38] sm:$0xff] %vm3670_vm7, %v4272_v34  ;;  %v4357_v52 = vadd.f32 %v4346_v27, %v4295_v55  ;;  %v10801_v33 = vpop.f32.mrf.mxu1  ;;  %v5245_v34 = vpack.c.bf16 %v7818_v18, %v7817_v21 }
 0x41d   : > { %v4380_v37 = vld [vmem:[#allocation6 + $0x28] sm:$0xff] }
 0x41e   : > { %v4442_v44 = vadd.f32 %v10675_v28, %v4380_v37  ;;  %4365 = vst.msk [vmem:[#allocation6 + $0x30] sm:$0xff] %vm3670_vm7, %v4357_v52  ;;  %7393 = vmatmul.msk.bf16.gmra.mxu0 %vm1465_vm3, %v4989_v39  ;;  %7420 = vmatmul.msk.bf16.vlgmr.msra.gmra.mxu3 %vm1465_vm3, %v5244_v0 }
 0x41f   : > { %7441 = vmatmul.msk.bf16.gmra.mxu1 %vm1465_vm3, %v10483_v45  ;;  %7450 = vmatmul.msk.bf16.vlgmr.msrb.gmra.mxu2 %vm1465_vm3, %v10487_v54  ;;  %v4465_v19 = vld [vmem:[#allocation6 + $0x20] sm:$0xff] }
 0x420   : > { %4450 = vst.msk [vmem:[#allocation6 + $0x28] sm:$0xff] %vm3670_vm7, %v4442_v44  ;;  %v4527_v28 = vadd.f32 %v10726_v58, %v4465_v19  ;;  %v5408_v19 = vld [vmem:[#allocation3 + $0xb0] sm:$0xff] }
 0x421   : > { %v4589_v12 = vpop.f32.mrf.mxu3 }
 0x422   : > { %v4609_v49 = vadd.f32 %v4589_v12, %v4547_v57  ;;  %v10818_v47 = vpop.f32.mrf.mxu2  ;;  %4535 = vst.msk [vmem:[#allocation6 + $0x20] sm:$0xff] %vm3670_vm7, %v4527_v28  ;;  %v4550_v28 = vld [vmem:[#allocation6 + $0x18] sm:$0xff]  ;;  %v10858_v12 = vld [vmem:[#allocation3 + $0x83] sm:$0xff] }
 0x423   : > { %v4296_v45 = vld [vmem:[#allocation6 + $0x38] sm:$0xff]  ;;  %v4348_v3 = vpop.f32.mrf.mxu0 }
 0x424   : > { %4617 = vst.msk [vmem:[#allocation6] sm:$0xff] %vm3670_vm7, %v4609_v49  ;;  %v4358_v54 = vadd.f32 %v4348_v3, %v4296_v45  ;;  %v10822_v59 = vpop.f32.mrf.mxu1  ;;  %v5491_v3 = vld [vmem:[#allocation3 + $0x81] sm:$0xff] }
 0x425   : > { %v4381_v41 = vld [vmem:[#allocation6 + $0x30] sm:$0xff] }
 0x426   : > { %v4443_v43 = vadd.f32 %v10698_v6, %v4381_v41  ;;  %4366 = vst.msk [vmem:[#allocation6 + $0x38] sm:$0xff] %vm3670_vm7, %v4358_v54  ;;  %v5420_v41 = vpack.c.bf16 %v5408_v19, %v10795_v11  ;;  %v11262_v11 = vpack.c.bf16 %v9475_v32, %v9464_v53 }
 0x427   : > { %v4466_v58 = vld [vmem:[#allocation6 + $0x28] sm:$0xff] }
 0x428   : > { %4451 = vst.msk [vmem:[#allocation6 + $0x30] sm:$0xff] %vm3670_vm7, %v4443_v43  ;;  %v4528_v13 = vadd.f32 %v10746_v17, %v4466_v58  ;;  %v5419_v17 = vpack.c.bf16 %v10530_v16, %v10744_v60 }
 0x429   : > { %v4591_v30 = vpop.f32.mrf.mxu3 }
 0x42a   : > { %v4610_v31 = vadd.f32 %v4591_v30, %v4548_v5  ;;  %v10828_v4 = vpop.f32.mrf.mxu2  ;;  %4536 = vst.msk [vmem:[#allocation6 + $0x28] sm:$0xff] %vm3670_vm7, %v4528_v13  ;;  %v5505_v30 = vpack.c.bf16 %v10590_v10, %v5491_v3 }
 0x42b   : > { %v4633_v8 = vld [vmem:[#allocation6] sm:$0xff]  ;;  %v4675_v15 = vpop.f32.mrf.mxu0 }
 0x42c   : > { %4618 = vst.msk [vmem:[#allocation6 + $0x8] sm:$0xff] %vm3670_vm7, %v4610_v31  ;;  %v4695_v40 = vadd.f32 %v4675_v15, %v4633_v8  ;;  %v10832_v6 = vpop.f32.mrf.mxu1  ;;  %v4551_v15 = vld [vmem:[#allocation6 + $0x20] sm:$0xff] }
 0x42d   : > { %v4382_v55 = vld [vmem:[#allocation6 + $0x38] sm:$0xff] }
 0x42e   : > { %v4444_v27 = vadd.f32 %v10734_v1, %v4382_v55  ;;  %4703 = vst.msk [vmem:[#allocation6] sm:$0xff] %vm3670_vm7, %v4695_v40  ;;  %7421 = vmatmul.msk.bf16.gmra.mxu3 %vm1465_vm3, %v5245_v34  ;;  %7430 = vmatmul.msk.bf16.vlgmr.msrb.gmra.mxu0 %vm1465_vm3, %v11261_v14  ;;  %v4549_v1 = vld [vmem:[#allocation6 + $0x10] sm:$0xff] }
 0x42f   : > { %7442 = vmatmul.msk.bf16.gmra.mxu1 %vm1465_vm3, %v5419_v17  ;;  %7451 = vmatmul.msk.bf16.gmra.mxu2 %vm1465_vm3, %v10542_v51  ;;  %v4467_v52 = vld [vmem:[#allocation6 + $0x30] sm:$0xff] }
 0x430   : > { %4452 = vst.msk [vmem:[#allocation6 + $0x38] sm:$0xff] %vm3670_vm7, %v4444_v27  ;;  %v4529_v16 = vadd.f32 %v10777_v2, %v4467_v52 }
 0x431   : > { %v4594_v60 = vpop.f32.mrf.mxu3  ;;  %v4552_v14 = vld [vmem:[#allocation6 + $0x28] sm:$0xff] }
 0x432   : > { %v4611_v39 = vadd.f32 %v4594_v60, %v4549_v1  ;;  %v10848_v22 = vpop.f32.mrf.mxu2  ;;  %4537 = vst.msk [vmem:[#allocation6 + $0x30] sm:$0xff] %vm3670_vm7, %v4529_v16  ;;  %v10890_v16 = vld [vmem:[#allocation3 + $0xa3] sm:$0xff] }
 0x433   : > { %v4634_v25 = vld [vmem:[#allocation6 + $0x8] sm:$0xff]  ;;  %v4677_v23 = vpop.f32.mrf.mxu0 }
 0x434   : > { %4619 = vst.msk [vmem:[#allocation6 + $0x10] sm:$0xff] %vm3670_vm7, %v4611_v39  ;;  %v4696_v0 = vadd.f32 %v4677_v23, %v4634_v25  ;;  %v10852_v37 = vpop.f32.mrf.mxu1  ;;  %v10892_v1 = vld [vmem:[#allocation3 + $0x84] sm:$0xff] }
 0x435   : > { %v4719_v51 = vld [vmem:[#allocation6] sm:$0xff] }
 0x436   : > { %v4781_v44 = vadd.f32 %v10756_v48, %v4719_v51  ;;  %4704 = vst.msk [vmem:[#allocation6 + $0x8] sm:$0xff] %vm3670_vm7, %v4696_v0  ;;  %v5332_v51 = vpack.c.bf16 %v10892_v1, %v10685_v9 }
 0x437   : > { %v4468_v2 = vld [vmem:[#allocation6 + $0x38] sm:$0xff] }
 0x438   : > { %4789 = vst.msk [vmem:[#allocation6] sm:$0xff] %vm3670_vm7, %v4781_v44  ;;  %v4530_v63 = vadd.f32 %v10797_v46, %v4468_v2  ;;  %v7819_v46 = vld [vmem:[#allocation3 + $0x73] sm:$0xff] }
 0x439   : > { %v4596_v57 = vpop.f32.mrf.mxu3  ;;  %v5246_v13 = vpack.c.bf16 %v10858_v12, %v7819_v46 }
 0x43a   : > { %v4612_v49 = vadd.f32 %v4596_v57, %v4550_v28  ;;  %v10860_v45 = vpop.f32.mrf.mxu2  ;;  %4538 = vst.msk [vmem:[#allocation6 + $0x38] sm:$0xff] %vm3670_vm7, %v4530_v63  ;;  %v4553_v63 = vld [vmem:[#allocation6 + $0x30] sm:$0xff] }
 0x43b   : > { %v4635_v54 = vld [vmem:[#allocation6 + $0x10] sm:$0xff]  ;;  %v4680_v48 = vpop.f32.mrf.mxu0 }
 0x43c   : > { %4620 = vst.msk [vmem:[#allocation6 + $0x18] sm:$0xff] %vm3670_vm7, %v4612_v49  ;;  %v4697_v43 = vadd.f32 %v4680_v48, %v4635_v54  ;;  %v10865_v58 = vpop.f32.mrf.mxu1 }
 0x43d   : > { %v4720_v5 = vld [vmem:[#allocation6 + $0x8] sm:$0xff] }
 0x43e   : > { %v4782_v31 = vadd.f32 %v10781_v36, %v4720_v5  ;;  %4705 = vst.msk [vmem:[#allocation6 + $0x10] sm:$0xff] %vm3670_vm7, %v4697_v43  ;;  %7422 = vmatmul.msk.bf16.gmra.mxu3 %vm1465_vm3, %v5246_v13  ;;  %7431 = vmatmul.msk.bf16.gmra.mxu0 %vm1465_vm3, %v11262_v11  ;;  %v10922_v5 = vld [vmem:[#allocation3 + $0xa4] sm:$0xff] }
 0x43f   : > { %7443 = vmatmul.msk.bf16.gmra.mxu1 %vm1465_vm3, %v5420_v41  ;;  %7452 = vmatmul.msk.bf16.gmra.mxu2 %vm1465_vm3, %v5505_v30  ;;  %v4805_v8 = vld [vmem:[#allocation6] sm:$0xff]  ;;  %v5494_v41 = vld [vmem:[#allocation3 + $0xb1] sm:$0xff] }
 0x440   : > { %4790 = vst.msk [vmem:[#allocation6 + $0x8] sm:$0xff] %vm3670_vm7, %v4782_v31  ;;  %v4867_v10 = vadd.f32 %v10818_v47, %v4805_v8  ;;  %v5506_v30 = vpack.c.bf16 %v5494_v41, %v10689_v50 }
 0x441   : > { %v4599_v36 = vpop.f32.mrf.mxu3  ;;  %v4554_v46 = vld [vmem:[#allocation6 + $0x38] sm:$0xff] }
 0x442   : > { %v4613_v40 = vadd.f32 %v4599_v36, %v4551_v15  ;;  %v10880_v21 = vpop.f32.mrf.mxu2  ;;  %4875 = vst.msk [vmem:[#allocation6] sm:$0xff] %vm3670_vm7, %v4867_v10 }
 0x443   : > { %v4636_v18 = vld [vmem:[#allocation6 + $0x18] sm:$0xff]  ;;  %v4682_v53 = vpop.f32.mrf.mxu0 }
 0x444   : > { %4621 = vst.msk [vmem:[#allocation6 + $0x20] sm:$0xff] %vm3670_vm7, %v4613_v40  ;;  %v4698_v32 = vadd.f32 %v4682_v53, %v4636_v18  ;;  %v10884_v34 = vpop.f32.mrf.mxu1  ;;  %v11263_v40 = vld [vmem:[#allocation10_spill] sm:$0xff] }
 0x445   : > { %v4721_v55 = vld [vmem:[#allocation6 + $0x10] sm:$0xff]  ;;  %v11264_v18 = vpack.c.bf16 %v9494_v7, %v11263_v40 }
 0x446   : > { %v4783_v17 = vadd.f32 %v10801_v33, %v4721_v55  ;;  %4706 = vst.msk [vmem:[#allocation6 + $0x18] sm:$0xff] %vm3670_vm7, %v4698_v32 }
 0x447   : > { %v4806_v47 = vld [vmem:[#allocation6 + $0x8] sm:$0xff] }
 0x448   : > { %4791 = vst.msk [vmem:[#allocation6 + $0x10] sm:$0xff] %vm3670_vm7, %v4783_v17  ;;  %v4868_v27 = vadd.f32 %v10828_v4, %v4806_v47  ;;  %v5247_v4 = vpack.c.bf16 %v10890_v16, %v10544_v35 }
 0x449   : > { %v4601_v52 = vpop.f32.mrf.mxu3  ;;  %v4891_v55 = vld [vmem:[#allocation6] sm:$0xff] }
 0x44a   : > { %v4614_v60 = vadd.f32 %v4601_v52, %v4552_v14  ;;  %v10894_v39 = vpop.f32.mrf.mxu2  ;;  %4876 = vst.msk [vmem:[#allocation6 + $0x8] sm:$0xff] %vm3670_vm7, %v4868_v27 }
 0x44b   : > { %v4637_v25 = vld [vmem:[#allocation6 + $0x20] sm:$0xff]  ;;  %v4685_v33 = vpop.f32.mrf.mxu0 }
 0x44c   : > { %4622 = vst.msk [vmem:[#allocation6 + $0x28] sm:$0xff] %vm3670_vm7, %v4614_v60  ;;  %v4699_v23 = vadd.f32 %v4685_v33, %v4637_v25  ;;  %v10898_v0 = vpop.f32.mrf.mxu1 }
 0x44d   : > { %v4722_v44 = vld [vmem:[#allocation6 + $0x18] sm:$0xff] }
 0x44e   : > { %v4784_v2 = vadd.f32 %v10822_v59, %v4722_v44  ;;  %4707 = vst.msk [vmem:[#allocation6 + $0x20] sm:$0xff] %vm3670_vm7, %v4699_v23  ;;  %7423 = vmatmul.msk.bf16.gmra.mxu3 %vm1465_vm3, %v5247_v4  ;;  %7432 = vmatmul.msk.bf16.gmra.mxu0 %vm1465_vm3, %v5332_v51 }
 0x44f   : > { %7480 = vmatmul.msk.bf16.vlgmr.msrb.gmra.mxu1 %vm1465_vm3, %v10644_v29  ;;  %v4807_v19 = vld [vmem:[#allocation6 + $0x10] sm:$0xff]  ;;  %7453 = vmatmul.msk.bf16.gmra.mxu2 %vm1465_vm3, %v5506_v30 }
 0x450   : > { %4792 = vst.msk [vmem:[#allocation6 + $0x18] sm:$0xff] %vm3670_vm7, %v4784_v2  ;;  %v4869_v35 = vadd.f32 %v10848_v22, %v4807_v19 }
 0x451   : > { %v4604_v28 = vpop.f32.mrf.mxu3  ;;  %v4892_v33 = vld [vmem:[#allocation6 + $0x8] sm:$0xff] }
 0x452   : > { %v4615_v9 = vadd.f32 %v4604_v28, %v4553_v63  ;;  %v10912_v57 = vpop.f32.mrf.mxu2  ;;  %4877 = vst.msk [vmem:[#allocation6 + $0x10] sm:$0xff] %vm3670_vm7, %v4869_v35  ;;  %v5763_v35 = vpack.c.bf16 %v10751_v38, %v10892_v1  ;;  %v11266_v28 = vld [vmem:[#allocation11_spill] sm:$0xff] }
 0x453   : > { %v4638_v59 = vld [vmem:[#allocation6 + $0x28] sm:$0xff]  ;;  %v4687_v49 = vpop.f32.mrf.mxu0 }
 0x454   : > { %4623 = vst.msk [vmem:[#allocation6 + $0x30] sm:$0xff] %vm3670_vm7, %v4615_v9  ;;  %v4700_v3 = vadd.f32 %v4687_v49, %v4638_v59  ;;  %v10916_v54 = vpop.f32.mrf.mxu1  ;;  %v11268_v59 = vld [vmem:[#allocation14_spill] sm:$0xff]  ;;  %v11269_v49 = vld [vmem:[#allocation13_spill] sm:$0xff] }
 0x455   : > { %v4723_v29 = vld [vmem:[#allocation6 + $0x20] sm:$0xff] }
 0x456   : > { %v4785_v48 = vadd.f32 %v10832_v6, %v4723_v29  ;;  %4708 = vst.msk [vmem:[#allocation6 + $0x28] sm:$0xff] %vm3670_vm7, %v4700_v3  ;;  %v11270_v3 = vpack.c.bf16 %v11268_v59, %v11269_v49 }
 0x457   : > { %v4808_v22 = vld [vmem:[#allocation6 + $0x18] sm:$0xff] }
 0x458   : > { %4793 = vst.msk [vmem:[#allocation6 + $0x20] sm:$0xff] %vm3670_vm7, %v4785_v48  ;;  %v4870_v43 = vadd.f32 %v10860_v45, %v4808_v22  ;;  %v5333_v45 = vpack.c.bf16 %v10922_v5, %v10751_v38 }
 0x459   : > { %v4606_v13 = vpop.f32.mrf.mxu3  ;;  %v4893_v1 = vld [vmem:[#allocation6 + $0x10] sm:$0xff] }
 0x45a   : > { %v4616_v31 = vadd.f32 %v4606_v13, %v4554_v46  ;;  %v10925_v11 = vpop.f32.mrf.mxu2  ;;  %4878 = vst.msk [vmem:[#allocation6 + $0x18] sm:$0xff] %vm3670_vm7, %v4870_v43 }
 0x45b   : > { %v4639_v6 = vld [vmem:[#allocation6 + $0x30] sm:$0xff]  ;;  %v4690_v8 = vpop.f32.mrf.mxu0 }
 0x45c   : > { %4624 = vst.msk [vmem:[#allocation6 + $0x38] sm:$0xff] %vm3670_vm7, %v4616_v31  ;;  %v4701_v10 = vadd.f32 %v4690_v8, %v4639_v6  ;;  %v10932_v36 = vpop.f32.mrf.mxu1 }
 0x45d   : > { %v4724_v15 = vld [vmem:[#allocation6 + $0x28] sm:$0xff] }
 0x45e   : > { %v4786_v50 = vadd.f32 %v10852_v37, %v4724_v15  ;;  %4709 = vst.msk [vmem:[#allocation6 + $0x30] sm:$0xff] %vm3670_vm7, %v4701_v10  ;;  %7433 = vmatmul.msk.bf16.gmra.mxu0 %vm1465_vm3, %v5333_v45  ;;  %7460 = vmatmul.msk.bf16.vlgmr.msrb.gmra.mxu3 %vm1465_vm3, %v11264_v18  ;;  %v5577_v45 = vld [vmem:[#allocation3 + $0x82] sm:$0xff] }
 0x45f   : > { %7481 = vmatmul.msk.bf16.gmra.mxu1 %vm1465_vm3, %v10701_v42  ;;  %v4809_v53 = vld [vmem:[#allocation6 + $0x20] sm:$0xff] }
 0x460   : > { %4794 = vst.msk [vmem:[#allocation6 + $0x28] sm:$0xff] %vm3670_vm7, %v4786_v50  ;;  %v4871_v32 = vadd.f32 %v10880_v21, %v4809_v53  ;;  %v5578_v53 = vld [vmem:[#allocation3 + $0x92] sm:$0xff] }
 0x461   : > { %v4933_v17 = vpop.f32.mrf.mxu3  ;;  %v4894_v8 = vld [vmem:[#allocation6 + $0x18] sm:$0xff] }
 0x462   : > { %v4953_v37 = vadd.f32 %v4933_v17, %v4891_v55  ;;  %v10945_v47 = vpop.f32.mrf.mxu2  ;;  %4879 = vst.msk [vmem:[#allocation6 + $0x20] sm:$0xff] %vm3670_vm7, %v4871_v32  ;;  %v5591_v32 = vpack.c.bf16 %v5578_v53, %v5577_v45 }
 0x463   : > { %v4640_v27 = vld [vmem:[#allocation6 + $0x38] sm:$0xff]  ;;  %v4692_v14 = vpop.f32.mrf.mxu0 }
 0x464   : > { %4961 = vst.msk [vmem:[#allocation6] sm:$0xff] %vm3670_vm7, %v4953_v37  ;;  %v4702_v7 = vadd.f32 %v4692_v14, %v4640_v27  ;;  %v10951_v60 = vpop.f32.mrf.mxu1  ;;  %v11272_v37 = vld [vmem:[#allocation16_spill] sm:$0xff] }
 0x465   : > { %v4725_v52 = vld [vmem:[#allocation6 + $0x30] sm:$0xff] }
 0x466   : > { %v4787_v42 = vadd.f32 %v10865_v58, %v4725_v52  ;;  %4710 = vst.msk [vmem:[#allocation6 + $0x38] sm:$0xff] %vm3670_vm7, %v4702_v7 }
 0x467   : > { %v4810_v21 = vld [vmem:[#allocation6 + $0x28] sm:$0xff] }
 0x468   : > { %4795 = vst.msk [vmem:[#allocation6 + $0x30] sm:$0xff] %vm3670_vm7, %v4787_v42  ;;  %v4872_v25 = vadd.f32 %v10894_v39, %v4810_v21  ;;  %v11265_v39 = vld [vmem:[#allocation12_spill] sm:$0xff] }
 0x469   : > { %v4935_v23 = vpop.f32.mrf.mxu3  ;;  %v11267_v9 = vpack.c.bf16 %v11265_v39, %v11266_v28  ;;  %v4895_v42 = vld [vmem:[#allocation6 + $0x20] sm:$0xff] }
 0x46a   : > { %v4954_v4 = vadd.f32 %v4935_v23, %v4892_v33  ;;  %4880 = vst.msk [vmem:[#allocation6 + $0x28] sm:$0xff] %vm3670_vm7, %v4872_v25  ;;  %v10956_v51 = vpop.f32.mrf.mxu2 }
 0x46b   : > { %v4978_v44 = vld [vmem:[#allocation6] sm:$0xff]  ;;  %v5020_v2 = vpop.f32.mrf.mxu0 }
 0x46c   : > { %4962 = vst.msk [vmem:[#allocation6 + $0x8] sm:$0xff] %vm3670_vm7, %v4954_v4  ;;  %v5040_v58 = vadd.f32 %v5020_v2, %v4978_v44 }
 0x46d   : > { %v4726_v19 = vld [vmem:[#allocation6 + $0x38] sm:$0xff] }
 0x46e   : > { %v4788_v63 = vadd.f32 %v10884_v34, %v4726_v19  ;;  %5048 = vst.msk [vmem:[#allocation6] sm:$0xff] %vm3670_vm7, %v5040_v58  ;;  %7461 = vmatmul.msk.bf16.gmra.mxu3 %vm1465_vm3, %v11267_v9  ;;  %7470 = vmatmul.msk.bf16.vlgmr.msra.gmra.mxu0 %vm1465_vm3, %v11270_v3  ;;  %v10974_v34 = vpop.f32.mrf.mxu1  ;;  %v5580_v58 = vld [vmem:[#allocation3 + $0xb2] sm:$0xff] }
 0x46f   : > { %7482 = vmatmul.msk.bf16.gmra.mxu1 %vm1465_vm3, %v5763_v35  ;;  %v4811_v29 = vld [vmem:[#allocation6 + $0x30] sm:$0xff]  ;;  %v5592_v49 = vpack.c.bf16 %v5580_v58, %v10748_v61 }
 0x470   : > { %4796 = vst.msk [vmem:[#allocation6 + $0x38] sm:$0xff] %vm3670_vm7, %v4788_v63  ;;  %v4873_v38 = vadd.f32 %v10912_v57, %v4811_v29  ;;  %v5664_v29 = vld [vmem:[#allocation3 + $0x93] sm:$0xff] }
 0x471   : > { %v4938_v48 = vpop.f32.mrf.mxu3  ;;  %v4896_v39 = vld [vmem:[#allocation6 + $0x28] sm:$0xff] }
 0x472   : > { %v4955_v22 = vadd.f32 %v4938_v48, %v4893_v1  ;;  %4881 = vst.msk [vmem:[#allocation6 + $0x30] sm:$0xff] %vm3670_vm7, %v4873_v38  ;;  %v10978_v30 = vpop.f32.mrf.mxu2 }
 0x473   : > { %v4979_v41 = vld [vmem:[#allocation6 + $0x8] sm:$0xff]  ;;  %v5022_v43 = vpop.f32.mrf.mxu0 }
 0x474   : > { %4963 = vst.msk [vmem:[#allocation6 + $0x10] sm:$0xff] %vm3670_vm7, %v4955_v22  ;;  %v5041_v46 = vadd.f32 %v5022_v43, %v4979_v41 }
 0x475   : > { %v5064_v13 = vld [vmem:[#allocation6] sm:$0xff] }
 0x476   : > { %v5126_v31 = vadd.f32 %v10898_v0, %v5064_v13  ;;  %5049 = vst.msk [vmem:[#allocation6 + $0x8] sm:$0xff] %vm3670_vm7, %v5041_v46  ;;  %v10985_v50 = vpop.f32.mrf.mxu1 }
 0x477   : > { %v4812_v57 = vld [vmem:[#allocation6 + $0x38] sm:$0xff] }
 0x478   : > { %5134 = vst.msk [vmem:[#allocation6] sm:$0xff] %vm3670_vm7, %v5126_v31  ;;  %v4874_v6 = vadd.f32 %v10925_v11, %v4812_v57  ;;  %v11271_v11 = vld [vmem:[#allocation15_spill] sm:$0xff] }
 0x479   : > { %v4940_v10 = vpop.f32.mrf.mxu3  ;;  %v11273_v27 = vpack.c.bf16 %v11271_v11, %v11272_v37  ;;  %v4897_v41 = vld [vmem:[#allocation6 + $0x30] sm:$0xff] }
 0x47a   : > { %v4956_v15 = vadd.f32 %v4940_v10, %v4894_v8  ;;  %4882 = vst.msk [vmem:[#allocation6 + $0x38] sm:$0xff] %vm3670_vm7, %v4874_v6  ;;  %v5199_v14 = vpop.f32.mrf.mxu2  ;;  %v5666_v8 = vld [vmem:[#allocation3 + $0xb3] sm:$0xff] }
 0x47b   : > { %v4980_v40 = vld [vmem:[#allocation6 + $0x10] sm:$0xff]  ;;  %v5025_v18 = vpop.f32.mrf.mxu0  ;;  %v5678_v53 = vpack.c.bf16 %v5666_v8, %v10890_v16 }
 0x47c   : > { %4964 = vst.msk [vmem:[#allocation6 + $0x18] sm:$0xff] %vm3670_vm7, %v4956_v15  ;;  %v5042_v0 = vadd.f32 %v5025_v18, %v4980_v40 }
 0x47d   : > { %v5065_v55 = vld [vmem:[#allocation6 + $0x8] sm:$0xff] }
 0x47e   : > { %v5127_v17 = vadd.f32 %v10916_v54, %v5065_v55  ;;  %5050 = vst.msk [vmem:[#allocation6 + $0x10] sm:$0xff] %vm3670_vm7, %v5042_v0  ;;  %7462 = vmatmul.msk.bf16.gmra.mxu3 %vm1465_vm3, %v5591_v32  ;;  %7471 = vmatmul.msk.bf16.gmra.mxu0 %vm1465_vm3, %v11273_v27  ;;  %v10999_v44 = vpop.f32.mrf.mxu1 }
 0x47f   : > { %v5150_v7 = vld [vmem:[#allocation6] sm:$0xff] }
 0x480   : > { %5135 = vst.msk [vmem:[#allocation6 + $0x8] sm:$0xff] %vm3670_vm7, %v5127_v17  ;;  %v5212_v52 = vadd.f32 %v10945_v47, %v5150_v7  ;;  %v5752_v47 = vld [vmem:[#allocation3 + $0xb4] sm:$0xff] }
 0x481   : > { %v4943_v21 = vpop.f32.mrf.mxu3  ;;  %v5764_v9 = vpack.c.bf16 %v5752_v47, %v10922_v5  ;;  %v4898_v15 = vld [vmem:[#allocation6 + $0x38] sm:$0xff] }
 0x482   : > { %v4957_v25 = vadd.f32 %v4943_v21, %v4895_v42  ;;  %5220 = vst.msk [vmem:[#allocation6] sm:$0xff] %vm3670_vm7, %v5212_v52  ;;  %v5202_v63 = vpop.f32.mrf.mxu2 }
 0x483   : > { %v4981_v54 = vld [vmem:[#allocation6 + $0x18] sm:$0xff]  ;;  %v5027_v33 = vpop.f32.mrf.mxu0  ;;  %7483 = vmatmul.msk.bf16.gmra.mxu1 %vm1465_vm3, %v5764_v9 }
 0x484   : > { %4965 = vst.msk [vmem:[#allocation6 + $0x20] sm:$0xff] %vm3670_vm7, %v4957_v25  ;;  %v5043_v23 = vadd.f32 %v5027_v33, %v4981_v54 }
 0x485   : > { %v5066_v4 = vld [vmem:[#allocation6 + $0x10] sm:$0xff] }
 0x486   : > { %v5128_v2 = vadd.f32 %v10932_v36, %v5066_v4  ;;  %5051 = vst.msk [vmem:[#allocation6 + $0x18] sm:$0xff] %vm3670_vm7, %v5043_v23  ;;  %v11015_v61 = vpop.f32.mrf.mxu1 }
 0x487   : > { %v5151_v19 = vld [vmem:[#allocation6 + $0x8] sm:$0xff] }
 0x488   : > { %5136 = vst.msk [vmem:[#allocation6 + $0x10] sm:$0xff] %vm3670_vm7, %v5128_v2  ;;  %v5213_v35 = vadd.f32 %v10956_v51, %v5151_v19  ;;  %v5677_v51 = vpack.c.bf16 %v5664_v29, %v10858_v12 }
 0x489   : > { %v4945_v28 = vpop.f32.mrf.mxu3  ;;  %v5236_v16 = vld [vmem:[#allocation6] sm:$0xff] }
 0x48a   : > { %v4958_v59 = vadd.f32 %v4945_v28, %v4896_v39  ;;  %5221 = vst.msk [vmem:[#allocation6 + $0x8] sm:$0xff] %vm3670_vm7, %v5213_v35  ;;  %v5204_v12 = vpop.f32.mrf.mxu2 }
 0x48b   : > { %v4982_v36 = vld [vmem:[#allocation6 + $0x20] sm:$0xff]  ;;  %v5030_v3 = vpop.f32.mrf.mxu0 }
 0x48c   : > { %4966 = vst.msk [vmem:[#allocation6 + $0x28] sm:$0xff] %vm3670_vm7, %v4958_v59  ;;  %v5044_v38 = vadd.f32 %v5030_v3, %v4982_v36 }
 0x48d   : > { %v5067_v1 = vld [vmem:[#allocation6 + $0x18] sm:$0xff] }
 0x48e   : > { %v5129_v48 = vadd.f32 %v10951_v60, %v5067_v1  ;;  %5052 = vst.msk [vmem:[#allocation6 + $0x20] sm:$0xff] %vm3670_vm7, %v5044_v38  ;;  %7463 = vmatmul.msk.bf16.gmra.mxu3 %vm1465_vm3, %v5592_v49  ;;  %7472 = vmatmul.msk.bf16.gmra.mxu0 %vm1465_vm3, %v5677_v51  ;;  %v5451_v45 = vpop.f32.mrf.mxu1 }
 0x48f   : > { %v5152_v5 = vld [vmem:[#allocation6 + $0x10] sm:$0xff] }
 0x490   : > { %5137 = vst.msk [vmem:[#allocation6 + $0x18] sm:$0xff] %vm3670_vm7, %v5129_v48  ;;  %v5214_v22 = vadd.f32 %v10978_v30, %v5152_v5 }
 0x491   : > { %v4948_v43 = vpop.f32.mrf.mxu3  ;;  %v5237_v2 = vld [vmem:[#allocation6 + $0x8] sm:$0xff] }
 0x492   : > { %v4959_v46 = vadd.f32 %v4948_v43, %v4897_v41  ;;  %5222 = vst.msk [vmem:[#allocation6 + $0x10] sm:$0xff] %vm3670_vm7, %v5214_v22  ;;  %v5207_v55 = vpop.f32.mrf.mxu2 }
 0x493   : > { %v4983_v60 = vld [vmem:[#allocation6 + $0x28] sm:$0xff]  ;;  %v5032_v13 = vpop.f32.mrf.mxu0 }
 0x494   : > { %4967 = vst.msk [vmem:[#allocation6 + $0x30] sm:$0xff] %vm3670_vm7, %v4959_v46  ;;  %v5045_v31 = vadd.f32 %v5032_v13, %v4983_v60 }
 0x495   : > { %v5068_v57 = vld [vmem:[#allocation6 + $0x20] sm:$0xff] }
 0x496   : > { %v5130_v6 = vadd.f32 %v10974_v34, %v5068_v57  ;;  %5053 = vst.msk [vmem:[#allocation6 + $0x28] sm:$0xff] %vm3670_vm7, %v5045_v31  ;;  %v5453_v52 = vpop.f32.mrf.mxu1 }
 0x497   : > { %v5153_v10 = vld [vmem:[#allocation6 + $0x18] sm:$0xff] }
 0x498   : > { %5138 = vst.msk [vmem:[#allocation6 + $0x20] sm:$0xff] %vm3670_vm7, %v5130_v6  ;;  %v5215_v30 = vadd.f32 %v5199_v14, %v5153_v10 }
 0x499   : > { %v4950_v40 = vpop.f32.mrf.mxu3  ;;  %v5238_v36 = vld [vmem:[#allocation6 + $0x10] sm:$0xff] }
 0x49a   : > { %v4960_v18 = vadd.f32 %v4950_v40, %v4898_v15  ;;  %5223 = vst.msk [vmem:[#allocation6 + $0x18] sm:$0xff] %vm3670_vm7, %v5215_v30  ;;  %v5209_v33 = vpop.f32.mrf.mxu2 }
 0x49b   : > { %v4984_v0 = vld [vmem:[#allocation6 + $0x30] sm:$0xff]  ;;  %v5035_v32 = vpop.f32.mrf.mxu0 }
 0x49c   : > { %4968 = vst.msk [vmem:[#allocation6 + $0x38] sm:$0xff] %vm3670_vm7, %v4960_v18  ;;  %v5046_v34 = vadd.f32 %v5035_v32, %v4984_v0 }
 0x49d   : > { %v5069_v17 = vld [vmem:[#allocation6 + $0x28] sm:$0xff] }
 0x49e   : > { %v5131_v11 = vadd.f32 %v10985_v50, %v5069_v17  ;;  %5054 = vst.msk [vmem:[#allocation6 + $0x30] sm:$0xff] %vm3670_vm7, %v5046_v34  ;;  %7473 = vmatmul.msk.bf16.gmra.mxu0 %vm1465_vm3, %v5678_v53  ;;  %v5456_v39 = vpop.f32.mrf.mxu1 }
 0x49f   : > { %v5154_v37 = vld [vmem:[#allocation6 + $0x20] sm:$0xff] }
 0x4a0   : > { %5139 = vst.msk [vmem:[#allocation6 + $0x28] sm:$0xff] %vm3670_vm7, %v5131_v11  ;;  %v5216_v27 = vadd.f32 %v5202_v63, %v5154_v37 }
 0x4a1   : > { %v5278_v14 = vpop.f32.mrf.mxu3  ;;  %v5239_v43 = vld [vmem:[#allocation6 + $0x18] sm:$0xff] }
 0x4a2   : > { %v5298_v7 = vadd.f32 %v5278_v14, %v5236_v16  ;;  %5224 = vst.msk [vmem:[#allocation6 + $0x20] sm:$0xff] %vm3670_vm7, %v5216_v27  ;;  %v5537_v49 = vpop.f32.mrf.mxu2 }
 0x4a3   : > { %v4985_v42 = vld [vmem:[#allocation6 + $0x38] sm:$0xff]  ;;  %v5037_v21 = vpop.f32.mrf.mxu0 }
 0x4a4   : > { %5306 = vst.msk [vmem:[#allocation6] sm:$0xff] %vm3670_vm7, %v5298_v7  ;;  %v5047_v25 = vadd.f32 %v5037_v21, %v4985_v42 }
 0x4a5   : > { %v5070_v50 = vld [vmem:[#allocation6 + $0x30] sm:$0xff] }
 0x4a6   : > { %v5132_v54 = vadd.f32 %v10999_v44, %v5070_v50  ;;  %5055 = vst.msk [vmem:[#allocation6 + $0x38] sm:$0xff] %vm3670_vm7, %v5047_v25 }
 0x4a7   : > { %v5155_v23 = vld [vmem:[#allocation6 + $0x28] sm:$0xff] }
 0x4a8   : > { %5140 = vst.msk [vmem:[#allocation6 + $0x30] sm:$0xff] %vm3670_vm7, %v5132_v54  ;;  %v5217_v4 = vadd.f32 %v5204_v12, %v5155_v23 }
 0x4a9   : > { %v5280_v58 = vpop.f32.mrf.mxu3  ;;  %v5240_v15 = vld [vmem:[#allocation6 + $0x20] sm:$0xff] }
 0x4aa   : > { %v5299_v19 = vadd.f32 %v5280_v58, %v5237_v2  ;;  %5225 = vst.msk [vmem:[#allocation6 + $0x28] sm:$0xff] %vm3670_vm7, %v5217_v4  ;;  %v5539_v60 = vpop.f32.mrf.mxu2 }
 0x4ab   : > { %v5322_v47 = vld [vmem:[#allocation6] sm:$0xff]  ;;  %v5364_v35 = vpop.f32.mrf.mxu0 }
 0x4ac   : > { %5307 = vst.msk [vmem:[#allocation6 + $0x8] sm:$0xff] %vm3670_vm7, %v5299_v19  ;;  %v5384_v63 = vadd.f32 %v5364_v35, %v5322_v47 }
 0x4ad   : > { %v5071_v28 = vld [vmem:[#allocation6 + $0x38] sm:$0xff] }
 0x4ae   : > { %v5133_v44 = vadd.f32 %v11015_v61, %v5071_v28  ;;  %5392 = vst.msk [vmem:[#allocation6] sm:$0xff] %vm3670_vm7, %v5384_v63  ;;  %v5458_v61 = vpop.f32.mrf.mxu1 }
 0x4af   : > { %v5156_v9 = vld [vmem:[#allocation6 + $0x30] sm:$0xff] }
 0x4b0   : > { %5141 = vst.msk [vmem:[#allocation6 + $0x38] sm:$0xff] %vm3670_vm7, %v5133_v44  ;;  %v5218_v59 = vadd.f32 %v5207_v55, %v5156_v9 }
 0x4b1   : > { %v5283_v3 = vpop.f32.mrf.mxu3  ;;  %v5241_v27 = vld [vmem:[#allocation6 + $0x28] sm:$0xff] }
 0x4b2   : > { %v5300_v29 = vadd.f32 %v5283_v3, %v5238_v36  ;;  %5226 = vst.msk [vmem:[#allocation6 + $0x30] sm:$0xff] %vm3670_vm7, %v5218_v59  ;;  %v5542_v34 = vpop.f32.mrf.mxu2 }
 0x4b3   : > { %v5323_v38 = vld [vmem:[#allocation6 + $0x8] sm:$0xff]  ;;  %v5366_v51 = vpop.f32.mrf.mxu0 }
 0x4b4   : > { %5308 = vst.msk [vmem:[#allocation6 + $0x10] sm:$0xff] %vm3670_vm7, %v5300_v29  ;;  %v5385_v1 = vadd.f32 %v5366_v51, %v5323_v38 }
 0x4b5   : > { %v5409_v48 = vld [vmem:[#allocation6] sm:$0xff] }
 0x4b6   : > { %v5471_v5 = vadd.f32 %v5451_v45, %v5409_v48  ;;  %5393 = vst.msk [vmem:[#allocation6 + $0x8] sm:$0xff] %vm3670_vm7, %v5385_v1  ;;  %v5461_v45 = vpop.f32.mrf.mxu1 }
 0x4b7   : > { %v5157_v22 = vld [vmem:[#allocation6 + $0x38] sm:$0xff] }
 0x4b8   : > { %5479 = vst.msk [vmem:[#allocation6] sm:$0xff] %vm3670_vm7, %v5471_v5  ;;  %v5219_v41 = vadd.f32 %v5209_v33, %v5157_v22 }
 0x4b9   : > { %v5285_v46 = vpop.f32.mrf.mxu3  ;;  %v5242_v4 = vld [vmem:[#allocation6 + $0x30] sm:$0xff] }
 0x4ba   : > { %v5301_v12 = vadd.f32 %v5285_v46, %v5239_v43  ;;  %5227 = vst.msk [vmem:[#allocation6 + $0x38] sm:$0xff] %vm3670_vm7, %v5219_v41  ;;  %v5544_v54 = vpop.f32.mrf.mxu2 }
 0x4bb   : > { %v5324_v13 = vld [vmem:[#allocation6 + $0x10] sm:$0xff]  ;;  %v5369_v31 = vpop.f32.mrf.mxu0 }
 0x4bc   : > { %5309 = vst.msk [vmem:[#allocation6 + $0x18] sm:$0xff] %vm3670_vm7, %v5301_v12  ;;  %v5386_v57 = vadd.f32 %v5369_v31, %v5324_v13 }
 0x4bd   : > { %v5410_v6 = vld [vmem:[#allocation6 + $0x8] sm:$0xff] }
 0x4be   : > { %v5472_v8 = vadd.f32 %v5453_v52, %v5410_v6  ;;  %5394 = vst.msk [vmem:[#allocation6 + $0x10] sm:$0xff] %vm3670_vm7, %v5386_v57  ;;  %v5463_v7 = vpop.f32.mrf.mxu1 }
 0x4bf   : > { %v5495_v10 = vld [vmem:[#allocation6] sm:$0xff] }
 0x4c0   : > { %5480 = vst.msk [vmem:[#allocation6 + $0x8] sm:$0xff] %vm3670_vm7, %v5472_v8  ;;  %v5557_v30 = vadd.f32 %v5537_v49, %v5495_v10 }
 0x4c1   : > { %v5288_v40 = vpop.f32.mrf.mxu3  ;;  %v5243_v49 = vld [vmem:[#allocation6 + $0x38] sm:$0xff] }
 0x4c2   : > { %v5302_v18 = vadd.f32 %v5288_v40, %v5240_v15  ;;  %5565 = vst.msk [vmem:[#allocation6] sm:$0xff] %vm3670_vm7, %v5557_v30  ;;  %v5547_v59 = vpop.f32.mrf.mxu2 }
 0x4c3   : > { %v5325_v53 = vld [vmem:[#allocation6 + $0x18] sm:$0xff]  ;;  %v5371_v0 = vpop.f32.mrf.mxu0 }
 0x4c4   : > { %5310 = vst.msk [vmem:[#allocation6 + $0x20] sm:$0xff] %vm3670_vm7, %v5302_v18  ;;  %v5387_v32 = vadd.f32 %v5371_v0, %v5325_v53 }
 0x4c5   : > { %v5411_v55 = vld [vmem:[#allocation6 + $0x10] sm:$0xff] }
 0x4c6   : > { %v5473_v17 = vadd.f32 %v5456_v39, %v5411_v55  ;;  %5395 = vst.msk [vmem:[#allocation6 + $0x18] sm:$0xff] %vm3670_vm7, %v5387_v32  ;;  %v5466_v63 = vpop.f32.mrf.mxu1 }
 0x4c7   : > { %v5496_v11 = vld [vmem:[#allocation6 + $0x8] sm:$0xff] }
 0x4c8   : > { %5481 = vst.msk [vmem:[#allocation6 + $0x10] sm:$0xff] %vm3670_vm7, %v5473_v17  ;;  %v5558_v37 = vadd.f32 %v5539_v60, %v5496_v11 }
 0x4c9   : > { %v5290_v16 = vpop.f32.mrf.mxu3  ;;  %v5581_v41 = vld [vmem:[#allocation6] sm:$0xff] }
 0x4ca   : > { %v5303_v14 = vadd.f32 %v5290_v16, %v5241_v27  ;;  %5566 = vst.msk [vmem:[#allocation6 + $0x8] sm:$0xff] %vm3670_vm7, %v5558_v37  ;;  %v5549_v12 = vpop.f32.mrf.mxu2 }
 0x4cb   : > { %v5326_v52 = vld [vmem:[#allocation6 + $0x20] sm:$0xff]  ;;  %v5374_v42 = vpop.f32.mrf.mxu0 }
 0x4cc   : > { %5311 = vst.msk [vmem:[#allocation6 + $0x28] sm:$0xff] %vm3670_vm7, %v5303_v14  ;;  %v5388_v21 = vadd.f32 %v5374_v42, %v5326_v52 }
 0x4cd   : > { %v5412_v25 = vld [vmem:[#allocation6 + $0x18] sm:$0xff] }
 0x4ce   : > { %v5474_v50 = vadd.f32 %v5458_v61, %v5412_v25  ;;  %5396 = vst.msk [vmem:[#allocation6 + $0x20] sm:$0xff] %vm3670_vm7, %v5388_v21  ;;  %v5468_v5 = vpop.f32.mrf.mxu1 }
 0x4cf   : > { %v5497_v33 = vld [vmem:[#allocation6 + $0x10] sm:$0xff] }
 0x4d0   : > { %5482 = vst.msk [vmem:[#allocation6 + $0x18] sm:$0xff] %vm3670_vm7, %v5474_v50  ;;  %v5559_v23 = vadd.f32 %v5542_v34, %v5497_v33 }
 0x4d1   : > { %v5293_v2 = vpop.f32.mrf.mxu3 }
 0x4d2   : > { %v5304_v58 = vadd.f32 %v5293_v2, %v5242_v4  ;;  %5567 = vst.msk [vmem:[#allocation6 + $0x10] sm:$0xff] %vm3670_vm7, %v5559_v23  ;;  %v5552_v0 = vpop.f32.mrf.mxu2 }
 0x4d3   : > { %v5327_v19 = vld [vmem:[#allocation6 + $0x28] sm:$0xff]  ;;  %v5376_v47 = vpop.f32.mrf.mxu0 }
 0x4d4   : > { %5312 = vst.msk [vmem:[#allocation6 + $0x30] sm:$0xff] %vm3670_vm7, %v5304_v58  ;;  %v5389_v35 = vadd.f32 %v5376_v47, %v5327_v19 }
 0x4d5   : > { %v5413_v39 = vld [vmem:[#allocation6 + $0x20] sm:$0xff] }
 0x4d6   : > { %v5475_v28 = vadd.f32 %v5461_v45, %v5413_v39  ;;  %5397 = vst.msk [vmem:[#allocation6 + $0x28] sm:$0xff] %vm3670_vm7, %v5389_v35  ;;  %v5795_v30 = vpop.f32.mrf.mxu1  ;;  %v5582_v45 = vld [vmem:[#allocation6 + $0x8] sm:$0xff]  ;;  %v11082_v35 = vld [vmem:[%s11227_s6] ss:$0 sm:$0xff] }
 0x4d7   : > { %v5498_v44 = vld [vmem:[#allocation6 + $0x18] sm:$0xff] }
 0x4d8   : > { %5483 = vst.msk [vmem:[#allocation6 + $0x20] sm:$0xff] %vm3670_vm7, %v5475_v28  ;;  %v5560_v9 = vadd.f32 %v5544_v54, %v5498_v44 }
 0x4d9   : > { %v5295_v36 = vpop.f32.mrf.mxu3  ;;  %v5583_v37 = vld [vmem:[#allocation6 + $0x10] sm:$0xff] }
 0x4da   : > { %v5305_v3 = vadd.f32 %v5295_v36, %v5243_v49  ;;  %5568 = vst.msk [vmem:[#allocation6 + $0x18] sm:$0xff] %vm3670_vm7, %v5560_v9  ;;  %v5554_v25 = vpop.f32.mrf.mxu2 }
 0x4db   : > { %v5328_v29 = vld [vmem:[#allocation6 + $0x30] sm:$0xff]  ;;  %v5379_v38 = vpop.f32.mrf.mxu0 }
 0x4dc   : > { %5313 = vst.msk [vmem:[#allocation6 + $0x38] sm:$0xff] %vm3670_vm7, %v5305_v3  ;;  %v5390_v51 = vadd.f32 %v5379_v38, %v5328_v29 }
 0x4dd   : > { %v5414_v1 = vld [vmem:[#allocation6 + $0x28] sm:$0xff] }
 0x4de   : > { %v5476_v48 = vadd.f32 %v5463_v7, %v5414_v1  ;;  %5398 = vst.msk [vmem:[#allocation6 + $0x30] sm:$0xff] %vm3670_vm7, %v5390_v51  ;;  %v5797_v14 = vpop.f32.mrf.mxu1 }
 0x4df   : > { %v5499_v61 = vld [vmem:[#allocation6 + $0x20] sm:$0xff] }
 0x4e0   : > { %5484 = vst.msk [vmem:[#allocation6 + $0x28] sm:$0xff] %vm3670_vm7, %v5476_v48  ;;  %v5561_v22 = vadd.f32 %v5547_v59, %v5499_v61 }
 0x4e1   : > { %v5623_v43 = vpop.f32.mrf.mxu3  ;;  %v5584_v23 = vld [vmem:[#allocation6 + $0x18] sm:$0xff] }
 0x4e2   : > { %v5643_v46 = vadd.f32 %v5623_v43, %v5581_v41  ;;  %5569 = vst.msk [vmem:[#allocation6 + $0x20] sm:$0xff] %vm3670_vm7, %v5561_v22 }
 0x4e3   : > { %v5329_v60 = vld [vmem:[#allocation6 + $0x38] sm:$0xff]  ;;  %v5381_v13 = vpop.f32.mrf.mxu0 }
 0x4e4   : > { %5651 = vst.msk [vmem:[#allocation6] sm:$0xff] %vm3670_vm7, %v5643_v46  ;;  %v5391_v31 = vadd.f32 %v5381_v13, %v5329_v60  ;;  %v11092_v46 = vld [vmem:[#allocation4 + $0x60] sm:$0xff] }
 0x4e5   : > { %v5415_v57 = vld [vmem:[#allocation6 + $0x30] sm:$0xff] }
 0x4e6   : > { %5399 = vst.msk [vmem:[#allocation6 + $0x38] sm:$0xff] %vm3670_vm7, %v5391_v31  ;;  %v5477_v6 = vadd.f32 %v5466_v63, %v5415_v57  ;;  %v5800_v63 = vpop.f32.mrf.mxu1 }
 0x4e7   : > { %v5500_v8 = vld [vmem:[#allocation6 + $0x28] sm:$0xff] }
 0x4e8   : > { %5485 = vst.msk [vmem:[#allocation6 + $0x30] sm:$0xff] %vm3670_vm7, %v5477_v6  ;;  %v5562_v10 = vadd.f32 %v5549_v12, %v5500_v8  ;;  %v11094_v12 = vld [vmem:[#allocation4 + $0x61] sm:$0xff] }
 0x4e9   : > { %v5625_v15 = vpop.f32.mrf.mxu3  ;;  %v5585_v59 = vld [vmem:[#allocation6 + $0x20] sm:$0xff]  ;;  %v5930_v8 = vadd.f32 %v11094_v12, %v11092_v46 }
 0x4ea   : > { %v5644_v40 = vadd.f32 %v5625_v15, %v5582_v45  ;;  %5570 = vst.msk [vmem:[#allocation6 + $0x28] sm:$0xff] %vm3670_vm7, %v5562_v10  ;;  %v11101_v45 = vld [vmem:[#allocation4 + $0x62] sm:$0xff] }
 0x4eb   : > { %v5667_v18 = vld [vmem:[#allocation6] sm:$0xff]  ;;  %v5709_v53 = vpop.f32.mrf.mxu0 }
 0x4ec   : > { %5652 = vst.msk [vmem:[#allocation6 + $0x8] sm:$0xff] %vm3670_vm7, %v5644_v40  ;;  %v5729_v32 = vadd.f32 %v5709_v53, %v5667_v18  ;;  %v11103_v40 = vld [vmem:[#allocation4 + $0x70] sm:$0xff] }
 0x4ed   : > { %v5416_v34 = vld [vmem:[#allocation6 + $0x38] sm:$0xff] }
 0x4ee   : > { %5737 = vst.msk [vmem:[#allocation6] sm:$0xff] %vm3670_vm7, %v5729_v32  ;;  %v5478_v55 = vadd.f32 %v5468_v5, %v5416_v34  ;;  %v5802_v5 = vpop.f32.mrf.mxu1  ;;  %v11105_v18 = vld [vmem:[#allocation4 + $0x71] sm:$0xff] }
 0x4ef   : > { %v5501_v17 = vld [vmem:[#allocation6 + $0x30] sm:$0xff] }
 0x4f0   : > { %v5563_v11 = vadd.f32 %v5552_v0, %v5501_v17  ;;  %5486 = vst.msk [vmem:[#allocation6 + $0x38] sm:$0xff] %vm3670_vm7, %v5478_v55  ;;  %v5946_v0 = vadd.f32 %v11101_v45, %v5930_v8 }
 0x4f1   : > { %v5628_v27 = vpop.f32.mrf.mxu3  ;;  %v5586_v41 = vld [vmem:[#allocation6 + $0x28] sm:$0xff] }
 0x4f2   : > { %5571 = vst.msk [vmem:[#allocation6 + $0x30] sm:$0xff] %vm3670_vm7, %v5563_v11  ;;  %v5645_v16 = vadd.f32 %v5628_v27, %v5583_v37  ;;  %v5962_v37 = vadd.f32 %v11103_v40, %v5946_v0  ;;  %v5931_v27 = vadd.f32 %v11105_v18, %v11103_v40 }
 0x4f3   : > { %v5668_v7 = vld [vmem:[#allocation6 + $0x8] sm:$0xff]  ;;  %v5711_v52 = vpop.f32.mrf.mxu0 }
 0x4f4   : > { %5653 = vst.msk [vmem:[#allocation6 + $0x10] sm:$0xff] %vm3670_vm7, %v5645_v16  ;;  %v5730_v42 = vadd.f32 %v5711_v52, %v5668_v7 }
 0x4f5   : > { %v5753_v21 = vld [vmem:[#allocation6] sm:$0xff] }
 0x4f6   : > { %v5815_v50 = vadd.f32 %v5795_v30, %v5753_v21  ;;  %5738 = vst.msk [vmem:[#allocation6 + $0x8] sm:$0xff] %vm3670_vm7, %v5730_v42  ;;  %v5805_v32 = vpop.f32.mrf.mxu1  ;;  %v11115_v42 = vld [vmem:[#allocation4 + $0x72] sm:$0xff] }
 0x4f7   : > { %v5502_v54 = vld [vmem:[#allocation6 + $0x38] sm:$0xff] }
 0x4f8   : > { %5823 = vst.msk [vmem:[#allocation6] sm:$0xff] %vm3670_vm7, %v5815_v50  ;;  %v5564_v33 = vadd.f32 %v5554_v25, %v5502_v54  ;;  %v5978_v25 = vadd.f32 %v11105_v18, %v5962_v37  ;;  %v5947_v50 = vadd.f32 %v11115_v42, %v5931_v27  ;;  %v5905_v54 = vld [vmem:[#allocation4 + $0x50] sm:$0xff] }
 0x4f9   : > { %v5630_v4 = vpop.f32.mrf.mxu3  ;;  %v5587_v34 = vld [vmem:[#allocation6 + $0x30] sm:$0xff] }
 0x4fa   : > { %5572 = vst.msk [vmem:[#allocation6 + $0x38] sm:$0xff] %vm3670_vm7, %v5564_v33  ;;  %v5646_v2 = vadd.f32 %v5630_v4, %v5584_v23  ;;  %v5921_v33 = vld [vmem:[#allocation4 + $0x51] sm:$0xff] }
 0x4fb   : > { %v5669_v58 = vld [vmem:[#allocation6 + $0x10] sm:$0xff]  ;;  %v5714_v19 = vpop.f32.mrf.mxu0 }
 0x4fc   : > { %5654 = vst.msk [vmem:[#allocation6 + $0x18] sm:$0xff] %vm3670_vm7, %v5646_v2  ;;  %v5731_v47 = vadd.f32 %v5714_v19, %v5669_v58  ;;  %v6003_v19 = vld [vmem:[#allocation4 + $0x80] sm:$0xff] }
 0x4fd   : > { %v5754_v39 = vld [vmem:[#allocation6 + $0x8] sm:$0xff] }
 0x4fe   : > { %v5816_v28 = vadd.f32 %v5797_v14, %v5754_v39  ;;  %5739 = vst.msk [vmem:[#allocation6 + $0x10] sm:$0xff] %vm3670_vm7, %v5731_v47  ;;  %v5929_v47 = vadd.f32 %v5921_v33, %v5905_v54 }
 0x4ff   : > { %v5831_v44 = vld [vmem:[#allocation6] sm:$0xff] }
 0x500   : > { %5824 = vst.msk [vmem:[#allocation6 + $0x8] sm:$0xff] %vm3670_vm7, %v5816_v28  ;;  %v5843_v9 = vadd.f32 %v11082_v35, %v5831_v44  ;;  %v5994_v28 = vadd.f32 %v11115_v42, %v5978_v25  ;;  %v5963_v44 = vadd.f32 %v6003_v19, %v5947_v50  ;;  %v11274_v25 = vld [vmem:[#allocation17_spill] sm:$0xff] }
 0x501   : > { %v5633_v49 = vpop.f32.mrf.mxu3  ;;  %v5588_v2 = vld [vmem:[#allocation6 + $0x38] sm:$0xff] }
 0x502   : > { %v5647_v36 = vadd.f32 %v5633_v49, %v5585_v59  ;;  %v5851_v3 = vmax.f32 %v5843_v9, 0.0  ;;  %v5807_v9 = vpop.f32.mrf.mxu1 }
 0x503   : > { %v5670_v29 = vld [vmem:[#allocation6 + $0x18] sm:$0xff]  ;;  %v5716_v38 = vpop.f32.mrf.mxu0 }
 0x504   : > { %5655 = vst.msk [vmem:[#allocation6 + $0x20] sm:$0xff] %vm3670_vm7, %v5647_v36  ;;  %v5732_v51 = vadd.f32 %v5716_v38, %v5670_v29  ;;  %5867 = vrot.lane.b32.xlu1 %v5851_v3, %s7888_s14  ;;  %v6019_v29 = vld [vmem:[#allocation4 + $0x81] sm:$0xff]  ;;  %v5937_v38 = vld [vmem:[#allocation4 + $0x52] sm:$0xff] }
 0x505   : > { %v5755_v1 = vld [vmem:[#allocation6 + $0x10] sm:$0xff] }
 0x506   : > { %v5817_v48 = vadd.f32 %v5800_v63, %v5755_v1  ;;  %5740 = vst.msk [vmem:[#allocation6 + $0x18] sm:$0xff] %vm3670_vm7, %v5732_v51  ;;  %v6011_v1 = vadd.f32 %v6003_v19, %v5994_v28 }
 0x507   : > { %v5832_v61 = vld [vmem:[#allocation6 + $0x8] sm:$0xff] }
 0x508   : > { %5825 = vst.msk [vmem:[#allocation6 + $0x10] sm:$0xff] %vm3670_vm7, %v5817_v48  ;;  %v5844_v22 = vadd.f32 %v11082_v35, %v5832_v61  ;;  %v5979_v48 = vadd.f32 %v6019_v29, %v5963_v44 }
 0x509   : > { %v5635_v43 = vpop.f32.mrf.mxu3 }
 0x50a   : > { %v5648_v60 = vadd.f32 %v5635_v43, %v5586_v41  ;;  %v5852_v13 = vmax.f32 %v5844_v22, 0.0  ;;  %v6035_v41 = vld [vmem:[#allocation4 + $0x82] sm:$0xff] }
 0x50b   : > { %v5671_v31 = vld [vmem:[#allocation6 + $0x20] sm:$0xff]  ;;  %v5719_v57 = vpop.f32.mrf.mxu0 }
 0x50c   : > { %5656 = vst.msk [vmem:[#allocation6 + $0x28] sm:$0xff] %vm3670_vm7, %v5648_v60  ;;  %v5733_v6 = vadd.f32 %v5719_v57, %v5671_v31  ;;  %5869 = vrot.lane.b32.xlu2 %v5852_v13, %s7888_s14  ;;  %v6027_v60 = vadd.f32 %v6019_v29, %v6011_v1  ;;  %v5995_v13 = vadd.f32 %v6035_v41, %v5979_v48  ;;  %v5810_v57 = vpop.f32.mrf.mxu1 }
 0x50d   : > { %v5756_v10 = vld [vmem:[#allocation6 + $0x18] sm:$0xff] }
 0x50e   : > { %v5818_v30 = vadd.f32 %v5802_v5, %v5756_v10  ;;  %5741 = vst.msk [vmem:[#allocation6 + $0x20] sm:$0xff] %vm3670_vm7, %v5733_v6  ;;  %v5945_v5 = vadd.f32 %v5937_v38, %v5929_v47  ;;  %v6004_v10 = vld [vmem:[#allocation4 + $0x90] sm:$0xff]  ;;  %v6043_v0 = vadd.f32 %v6035_v41, %v6027_v60 }
 0x50f   : > { %v5833_v15 = vld [vmem:[#allocation6 + $0x10] sm:$0xff] }
 0x510   : > { %5826 = vst.msk [vmem:[#allocation6 + $0x18] sm:$0xff] %vm3670_vm7, %v5818_v30  ;;  %v5845_v53 = vadd.f32 %v11082_v35, %v5833_v15  ;;  %v5961_v31 = vadd.f32 %v5945_v5, %v11092_v46  ;;  %v6051_v37 = vmul.f32 0.11111111, %v6043_v0 }
 0x511   : > { %v5638_v55 = vpop.f32.mrf.mxu3 }
 0x512   : > { %v5649_v17 = vadd.f32 %v5638_v55, %v5587_v34  ;;  %v5853_v11 = vmax.f32 %v5845_v53, 0.0  ;;  %v5977_v34 = vadd.f32 %v5961_v31, %v11094_v12  ;;  %v6065_v50 = vadd.f32 %v11274_v25, %v6051_v37 }
 0x513   : > { %v5672_v16 = vld [vmem:[#allocation6 + $0x28] sm:$0xff]  ;;  %v5721_v14 = vpop.f32.mrf.mxu0 }
 0x514   : > { %5657 = vst.msk [vmem:[#allocation6 + $0x30] sm:$0xff] %vm3670_vm7, %v5649_v17  ;;  %v5734_v7 = vadd.f32 %v5721_v14, %v5672_v16  ;;  %5871 = vrot.lane.b32.xlu0 %v5853_v11, %s7888_s14  ;;  %v6020_v17 = vld [vmem:[#allocation4 + $0x91] sm:$0xff]  ;;  %v5993_v16 = vadd.f32 %v5977_v34, %v11101_v45 }
 0x515   : > { %v5757_v52 = vld [vmem:[#allocation6 + $0x20] sm:$0xff]  ;;  %v6036_v14 = vld [vmem:[#allocation4 + $0x92] sm:$0xff] }
 0x516   : > { %v5819_v21 = vadd.f32 %v5805_v32, %v5757_v52  ;;  %5742 = vst.msk [vmem:[#allocation6 + $0x28] sm:$0xff] %vm3670_vm7, %v5734_v7  ;;  %v6012_v32 = vadd.f32 %v6004_v10, %v5995_v13  ;;  %v5812_v52 = vpop.f32.mrf.mxu1  ;;  %v6010_v54 = vadd.f32 %v5993_v16, %v11103_v40 }
 0x517   : > { %v5834_v23 = vld [vmem:[#allocation6 + $0x18] sm:$0xff] }
 0x518   : > { %5827 = vst.msk [vmem:[#allocation6 + $0x20] sm:$0xff] %vm3670_vm7, %v5819_v21  ;;  %v5846_v4 = vadd.f32 %v11082_v35, %v5834_v23  ;;  %v6028_v27 = vadd.f32 %v6020_v17, %v6012_v32  ;;  %v6026_v45 = vadd.f32 %v6010_v54, %v11105_v18 }
 0x519   : > { %v5640_v58 = vpop.f32.mrf.mxu3 }
 0x51a   : > { %v5650_v63 = vadd.f32 %v5640_v58, %v5588_v2  ;;  %v5854_v39 = vmax.f32 %v5846_v4, 0.0  ;;  %v6044_v12 = vadd.f32 %v6036_v14, %v6028_v27  ;;  %v6073_v2 = vmax.f32 %v6065_v50, 0.0 }
 0x51b   : > { %v5673_v59 = vld [vmem:[#allocation6 + $0x30] sm:$0xff]  ;;  %v5724_v49 = vpop.f32.mrf.mxu0  ;;  %v6042_v40 = vadd.f32 %v6026_v45, %v11115_v42 }
 0x51c   : > { %5658 = vst.msk [vmem:[#allocation6 + $0x38] sm:$0xff] %vm3670_vm7, %v5650_v63  ;;  %v5735_v36 = vadd.f32 %v5724_v49, %v5673_v59  ;;  %5873 = vrot.lane.b32.xlu1 %v5854_v39, %s7888_s14  ;;  %v6052_v58 = vmul.f32 0.11111111, %v6044_v12 }
 0x51d   : > { %v5758_v3 = vld [vmem:[#allocation6 + $0x28] sm:$0xff]  ;;  %v6050_v18 = vmul.f32 0.11111111, %v6042_v40 }
 0x51e   : > { %v5820_v51 = vadd.f32 %v5807_v9, %v5758_v3  ;;  %5743 = vst.msk [vmem:[#allocation6 + $0x30] sm:$0xff] %vm3670_vm7, %v5735_v36  ;;  %v6066_v19 = vadd.f32 %v11274_v25, %v6052_v58 }
 0x51f   : > { %v5835_v61 = vld [vmem:[#allocation6 + $0x20] sm:$0xff]  ;;  %v6064_v44 = vadd.f32 %v11274_v25, %v6050_v18 }
 0x520   : > { %5828 = vst.msk [vmem:[#allocation6 + $0x28] sm:$0xff] %vm3670_vm7, %v5820_v51  ;;  %v5847_v22 = vadd.f32 %v11082_v35, %v5835_v61  ;;  %v6074_v28 = vmax.f32 %v6066_v19, 0.0 }
 0x521   : > { %v6072_v9 = vmax.f32 %v6064_v44, 0.0 }
 0x522   : > { %v5855_v43 = vmax.f32 %v5847_v22, 0.0 }
 0x523   : > { %v5674_v6 = vld [vmem:[#allocation6 + $0x38] sm:$0xff]  ;;  %v5726_v8 = vpop.f32.mrf.mxu0 }
 0x524   : > { %v5736_v30 = vadd.f32 %v5726_v8, %v5674_v6  ;;  %5875 = vrot.lane.b32.xlu2 %v5855_v43, %s7888_s14 }
 0x525   : > { %v5759_v15 = vld [vmem:[#allocation6 + $0x30] sm:$0xff] }
 0x526   : > { %v5821_v53 = vadd.f32 %v5810_v57, %v5759_v15  ;;  %5744 = vst.msk [vmem:[#allocation6 + $0x38] sm:$0xff] %vm3670_vm7, %v5736_v30 }
 0x527   : > { %v5836_v55 = vld [vmem:[#allocation6 + $0x28] sm:$0xff] }
 0x528   : > { %5829 = vst.msk [vmem:[#allocation6 + $0x30] sm:$0xff] %vm3670_vm7, %v5821_v53  ;;  %v5848_v46 = vadd.f32 %v11082_v35, %v5836_v55 }
 0x52a   : > { %v5856_v11 = vmax.f32 %v5848_v46, 0.0 }
 0x52c   : > { %5877 = vrot.lane.b32.xlu0 %v5856_v11, %s7888_s14 }
 0x52d   : > { %v5760_v7 = vld [vmem:[#allocation6 + $0x38] sm:$0xff] }
 0x52e   : > { %v5822_v21 = vadd.f32 %v5812_v52, %v5760_v7 }
 0x52f   : > { %v5837_v33 = vld [vmem:[#allocation6 + $0x30] sm:$0xff] }
 0x530   : > { %5830 = vst.msk [vmem:[#allocation6 + $0x38] sm:$0xff] %vm3670_vm7, %v5822_v21  ;;  %v5849_v23 = vadd.f32 %v11082_v35, %v5837_v33 }
 0x532   : > { %v5857_v4 = vmax.f32 %v5849_v23, 0.0 }
 0x534   : > { %5879 = vrot.lane.b32.xlu1 %v5857_v4, %s7888_s14  ;;  %6095 = vrot.lane.b32.xlu0 %v6073_v2, %s7884_s13 }
 0x537   : > { %v5838_v47 = vld [vmem:[#allocation6 + $0x38] sm:$0xff] }
 0x538   : > { %v5850_v63 = vadd.f32 %v11082_v35, %v5838_v47 }
 0x53a   : > { %v5858_v39 = vmax.f32 %v5850_v63, 0.0 }
 0x53c   : > { %5881 = vrot.lane.b32.xlu2 %v5858_v39, %s7888_s14  ;;  %6097 = vrot.lane.b32.xlu1 %v6074_v28, %s7884_s13 }
 0x544   : > { %6093 = vrot.lane.b32.xlu2 %v6072_v9, %s7884_s13  ;;  %s7729_s13 = sshll.u32 %s7952_s28, 8  ;;  %s6116_s28 = scalar_lea.sflag [#allocation8], %s269_s18 }
 0x545   : > { %s6127_s17 = scalar_lea.hbm %s11228_s7, %s7729_s13 }
 0x546   : > { %s6130_s19 = sshll.u32 %s6127_s17, 4  ;;  %s6131_s19 = int_to_ptr.hbm [resolvable:$true] %s6130_s19 }
 0x547   : > { %s7834_s21 = sshra.s32 %s6131_s19, 4  ;;  %s7835_s21 = int_to_ptr.hbm [resolvable:$true] %s7834_s21 }
 0x548   : > { %s7836_s23 = scalar_lea.hbm %s7835_s21, 256  ;;  %p7841_p0 = scmp.lt.s32.totalorder %s7835_s21, %s11228_s7 }
 0x549   : > { %p7837_p11 = scmp.ne.s32.totalorder %s7835_s21, %s7836_s23  ;;  %p7842_p1 = scmp.lt.s32.totalorder %s7840_s8, %s7836_s23 }
 0x54b   : > { %p7838_p12 = pnand %p7837_p11, %p7969_p5  ;;  %p7843_p2 = por %p7842_p1, %p7841_p0 }
 0x54d   : > { %p7839_p13 = pneg %p7838_p12 }
 0x54f   : > { %p7844_p3 = pnand %p7843_p2, %p7839_p13 }
 0x566   : > { %v5870_v35 = vpop.permute.xlu2 %5869 }
 0x567   : > { %5893 = vst.msk [vmem:[%s8664_s20 + $0x38] sm:$0xff] %vm5891_vm9, %v5870_v35 }
 0x568   : > { %6108 = vst.msk [vmem:[%s8664_s20 + $0x38] sm:$0xff] %vm3645_vm8, %v10566_v20 }
 0x576   : > { %v5868_v42 = vpop.permute.xlu1 %5867 }
 0x577   : > { %5892 = vst.msk [vmem:[%s8664_s20 + $0x18] sm:$0xff] %vm5891_vm9, %v5868_v42 }
 0x578   : > { %6107 = vst.msk [vmem:[%s8664_s20 + $0x18] sm:$0xff] %vm3645_vm8, %v10526_v26 }
 0x57e   : > { %v5876_v59 = vpop.permute.xlu2 %5875 }
 0x57f   : > { %5896 = vst.msk [vmem:[%s8664_s20 + $0x98] sm:$0xff] %vm5891_vm9, %v5876_v59 }
 0x580   : > { %6111 = vst.msk [vmem:[%s8664_s20 + $0x98] sm:$0xff] %vm3645_vm8, %v10588_v24 }
 0x586   : > { %v5872_v49 = vpop.permute.xlu0 %5871 }
 0x587   : > { %5894 = vst.msk [vmem:[%s8664_s20 + $0x58] sm:$0xff] %vm5891_vm9, %v5872_v49 }
 0x588   : > { %6109 = vst.msk [vmem:[%s8664_s20 + $0x58] sm:$0xff] %vm3645_vm8, %v10474_v62 }
 0x58e   : > { %v5874_v20 = vpop.permute.xlu1 %5873 }
 0x58f   : > { %5895 = vst.msk [vmem:[%s8664_s20 + $0x78] sm:$0xff] %vm5891_vm9, %v5874_v20 }
 0x590   : > { %6110 = vst.msk [vmem:[%s8664_s20 + $0x78] sm:$0xff] %vm3645_vm8, %v10572_v56 }
 0x596   : > { %v5882_v26 = vpop.permute.xlu2 %5881 }
 0x597   : > { %5899 = vst.msk [vmem:[%s8664_s20 + $0xf8] sm:$0xff] %vm5891_vm9, %v5882_v26 }
 0x59e   : > { %v6094_v24 = vpop.permute.xlu2 %6093  ;;  %v5878_v36 = vpop.permute.xlu0 %5877 }
 0x59f   : > { %5897 = vst.msk [vmem:[%s8664_s20 + $0xb8] sm:$0xff] %vm5891_vm9, %v5878_v36 }
 0x5a0   : > { %6112 = vst.msk [vmem:[%s8664_s20 + $0xb8] sm:$0xff] %vm3645_vm8, %v6094_v24 }
 0x5a6   : > { %v5880_v62 = vpop.permute.xlu1 %5879  ;;  %v6096_v3 = vpop.permute.xlu0 %6095 }
 0x5a7   : > { %5898 = vst.msk [vmem:[%s8664_s20 + $0xd8] sm:$0xff] %vm5891_vm9, %v5880_v62 }
 0x5a8   : > { %6113 = vst.msk [vmem:[%s8664_s20 + $0xd8] sm:$0xff] %vm3645_vm8, %v6096_v3 }
 0x5ae   : > { %v6098_v56 = vpop.permute.xlu1 %6097 }
 0x5af   : > { %6114 = vst.msk [vmem:[%s8664_s20 + $0xf8] sm:$0xff] %vm3645_vm8, %v6098_v56 }
 0x5b0   : > { %7847 = shalt.err (!%p7844_p3)
}
 0x5b1   : > { %s7889_s18 = smov 512   ;;  %s7890_s20 = smov 32  }
 0x5b2   : > { %7739 = dma.vmem_to_hbm [thread:$0]  (%p7969_p5), %s6129_s9, 4096, %s6131_s19, %s6116_s28, %s7889_s18, %s7889_s18, %s7890_s20  }
 0x5b3 PF: > { %p7745_p4 = scmp.ge.s32.totalorder %s7882_s27, 2  ;;  %s6145_s15 = sand.u32 1, %s7870_s24  }
 0x5b4   : > { %s6146_s16 = scalar_lea.sflag [#allocation8], %s6145_s15 }
 0x5b5   : > { %p7742_p7 = pnand %p7745_p4, %p7973_p6 }
 0x5b7   : > { %p7743_p8 = pneg %p7742_p7 }
 0x5b9   : > { %7865 = dma.done.wait (%p7743_p8), %s6146_s16, 4096  }
 0x5ba   : > { %7867 = vsyncadd (%p7743_p8), %s6146_s16, 4294963200  ;;  %p17_p9 = scmp.ge.s32.totalorder %s7956_s30, 4   ;;  %s11275_s24 = smov %s7874_s25 }
 0x5bb   : > { %s11276_s25 = smov %s7878_s26  ;;  %s11277_s26 = smov %s7967_s10 }
 0x5bc   : > { %s11278_s27 = smov %s7956_s30  ;;  %19 = sbr.rel (!%p17_p9) target bundleno = 3 (0x3), region = 123 }
 0x5c1   :  { %6152 = vsyncpa [#allocation8], 1 }
 0x5c2   :  { %6154 = vsyncpa [#allocation8 + $0x1], 1 }

</bundles_post_ra>
